<compile_context>
chip_gen: v6e
topology: v6e:2x2x1
jax: 0.10.0
libtpu: 0.0.40
codegen_flags: <defaults>
</compile_context>

<pallas_src>
import functools
import math

import numpy as np

import jax
import jax.numpy as jnp
from jax.experimental import pallas as pl
from jax.experimental.pallas import tpu as pltpu

BN_EPS = 1e-4          # BatchNorm2d eps from the module (BN_EPS = 0.0001)
KSIZE = 3              # kernel_size of every ConvBnRelu2d (module default)
PAD = (KSIZE - 1) // 2


# ----------------------------------------------------------------------------
# Fused kernel: one grid step == one batch *block*; everything stays in VMEM.
# ----------------------------------------------------------------------------
def _stack_decoder_kernel(x_ref, d_ref, rhb_ref, rwt_ref,
                          t1_ref, t2_ref, t3_ref,
                          b1_ref, b2_ref, b3_ref,
                          o_ref,
                          pad1, pad2, pad3,
                          *, H, W, Cx, Cd, Cy, B_blk):
    # x_ref : (B_blk, Cx*h_in, w_in) f32   coarse input, raw NCHW reshape (no transpose)
    # d_ref : (B_blk, Cd*H,  W)      f32   skip tensor,  raw NCHW reshape (no transpose)
    # rhb_ref:(Cx*H, Cx*h_in)        bf16  kron(I_Cx, row bilinear operator)
    # rwt_ref:(w_in, W)              bf16  width bilinear operator (rw^T)
    # t1_ref: (KSIZE, W*(Cx+Cd), W*Cy) bf16  conv1(+BN) band, up & down halves fused
    # t2/t3 : (KSIZE, W*Cy, W*Cy)    bf16  conv2/conv3(+BN) bands
    # b*_ref: (1, W*Cy)              f32   folded BN bias tiled per output pixel
    # o_ref : (B_blk, H, W*Cy)       f32   lane-dense output slab
    # pad*  : f32 halo scratch, B_blk images stacked each with 1 zero row above/below
    HP = H + 2 * PAD                    # rows per stacked image (incl. halo rows)
    rows = B_blk * HP - 2 * PAD         # matmul M dim over the whole batch block
    W1 = W * (Cx + Cd)
    WY = W * Cy

    zero1 = jnp.zeros((1, W1), jnp.float32)
    zeroy = jnp.zeros((1, WY), jnp.float32)

    def zero_halo_rows(buf, zrow):
        # Only the 2*B_blk halo rows need zeroing each step -- interiors are
        # fully overwritten below.
        for b in range(B_blk):
            buf[b * HP:b * HP + 1, :] = zrow
            buf[(b + 1) * HP - 1:(b + 1) * HP, :] = zrow

    # ---- F.interpolate(bilinear, align_corners=True) + torch.cat, in VMEM ----
    # up(x) and down_tensor land side by side in ONE halo buffer (channel-major
    # column blocks), so conv1 is a single K = W*(Cx+Cd) contraction per tap.
    zero_halo_rows(pad1, zero1)
    for b in range(B_blk):
        r0 = b * HP + PAD                                   # first interior row
        xb = x_ref[b].astype(jnp.bfloat16)                  # (Cx*h_in, w_in)
        tw = jnp.dot(xb, rwt_ref[...], preferred_element_type=jnp.float32)
        u = jnp.dot(rhb_ref[...], tw.astype(jnp.bfloat16),
                    preferred_element_type=jnp.float32)     # (Cx*H, W) channel-major
        for c in range(Cx):                                 # upsampled x columns
            pad1[r0:r0 + H, c * W:(c + 1) * W] = u[c * H:(c + 1) * H, :]
        for c in range(Cd):                                 # skip-tensor columns
            pad1[r0:r0 + H, (Cx + c) * W:(Cx + c + 1) * W] = (
                d_ref[b, c * H:(c + 1) * H, :])

    def conv_slab(buf, band_ref):
        # 3x3 "same" conv over the whole stacked batch block: one matmul per
        # kernel row against a banded block-Toeplitz weight (width taps + width
        # zero padding folded into the band).  The slab is loaded once; the
        # three taps are register-level slices.  Rows at batch boundaries are
        # garbage and are re-zeroed / skipped by the consumers below.
        full = buf[...]
        acc = jnp.zeros((rows, WY), jnp.float32)
        for ky in range(KSIZE):
            acc = acc + jnp.dot(full[ky:ky + rows, :].astype(jnp.bfloat16),
                                band_ref[ky],
                                preferred_element_type=jnp.float32)
        return acc

    # decode[0]: Conv(cat([up(x), down])) + BN + ReLU (concat fused in the band)
    a1 = jnp.maximum(conv_slab(pad1, t1_ref) + b1_ref[...], 0.0)
    pad2[PAD:PAD + rows, :] = a1
    zero_halo_rows(pad2, zeroy)

    # decode[1]
    a2 = jnp.maximum(conv_slab(pad2, t2_ref) + b2_ref[...], 0.0)
    pad3[PAD:PAD + rows, :] = a2
    zero_halo_rows(pad3, zeroy)

    # decode[2] -> dense, lane-wide output stores (one per batch element)
    a3 = jnp.maximum(conv_slab(pad3, t3_ref) + b3_ref[...], 0.0)
    for b in range(B_blk):
        o_ref[b] = a3[b * HP:b * HP + H, :].astype(o_ref.dtype)


# ----------------------------------------------------------------------------
# Wrappers
# ----------------------------------------------------------------------------
def _pick_batch_block(n):
    """Batch elements stacked per grid step.  Bigger -> better MXU row fill
    (M = B_blk*(H+2)-2 per matmul); smaller -> more grid steps for pipelining /
    megacore sharding.  4 is a reasonable middle ground for small decoders."""
    for cand in (4, 2, 1):
        if n % cand == 0:
            return cand
    return 1


def stack_decoder_forward_slab(x_flat, d_flat, prep, *, channels,
                               batch_block=None):
    """Core fused forward on lane-dense slabs (the inter-layer contract).

    x_flat: (N, Cx*h_in, w_in) f32  -- raw NCHW reshape of x (no transpose)
    d_flat: (N, Cd*H,  W)      f32  -- raw NCHW reshape of down_tensor
    returns (N, H, W*Cy) f32 lane-dense slab, pixel-major / channel-minor rows.
    """
    N, cxh, w_in = x_flat.shape
    _, cdh, W = d_flat.shape
    Cx, Cd = channels
    h_in = cxh // Cx
    H = cdh // Cd
    WY = prep["b1"].shape[-1]
    Cy = WY // W
    W1 = W * (Cx + Cd)
    HP = H + 2 * PAD

    B_blk = batch_block if batch_block is not None else _pick_batch_block(N)
    if N % B_blk != 0:
        raise ValueError(f"batch {N} not divisible by batch_block {B_blk}")
    grid = (N // B_blk,)

    kern = functools.partial(_stack_decoder_kernel,
                             H=H, W=W, Cx=Cx, Cd=Cd, Cy=Cy, B_blk=B_blk)

    in_specs = [
        pl.BlockSpec((B_blk, Cx * h_in, w_in), lambda n: (n, 0, 0)),
        pl.BlockSpec((B_blk, Cd * H, W), lambda n: (n, 0, 0)),
        # constant index maps -> fetched once, VMEM-resident across grid steps
        pl.BlockSpec((Cx * H, Cx * h_in), lambda n: (0, 0)),
        pl.BlockSpec((w_in, W), lambda n: (0, 0)),
        pl.BlockSpec((KSIZE, W1, WY), lambda n: (0, 0, 0)),
        pl.BlockSpec((KSIZE, WY, WY), lambda n: (0, 0, 0)),
        pl.BlockSpec((KSIZE, WY, WY), lambda n: (0, 0, 0)),
        pl.BlockSpec((1, WY), lambda n: (0, 0)),
        pl.BlockSpec((1, WY), lambda n: (0, 0)),
        pl.BlockSpec((1, WY), lambda n: (0, 0)),
    ]
    out_spec = pl.BlockSpec((B_blk, H, WY), lambda n: (n, 0, 0))
    scratch = [
        pltpu.VMEM((B_blk * HP, W1), jnp.float32),   # conv1 input (up|down) halo slab
        pltpu.VMEM((B_blk * HP, WY), jnp.float32),   # conv1 output halo slab
        pltpu.VMEM((B_blk * HP, WY), jnp.float32),   # conv2 output halo slab
    ]

    # Tight, generation-agnostic VMEM budget (do NOT hard-code 64 MiB):
    # double-buffered pipeline blocks + scratch, x2 headroom + 8 MiB margin.
    def _nbytes(shape, dtype):
        return int(np.prod(shape)) * np.dtype(dtype).itemsize

    io_block_bytes = (
        _nbytes((B_blk, Cx * h_in, w_in), jnp.float32)
        + _nbytes((B_blk, Cd * H, W), jnp.float32)
        + _nbytes((Cx * H, Cx * h_in), jnp.bfloat16)
        + _nbytes((w_in, W), jnp.bfloat16)
        + _nbytes((KSIZE, W1, WY), jnp.bfloat16)
        + 2 * _nbytes((KSIZE, WY, WY), jnp.bfloat16)
        + 3 * _nbytes((1, WY), jnp.float32)
        + _nbytes((B_blk, H, WY), jnp.float32))
    scratch_bytes = (_nbytes((B_blk * HP, W1), jnp.float32)
                     + 2 * _nbytes((B_blk * HP, WY), jnp.float32))
    vmem_limit = min(2 * (2 * io_block_bytes + scratch_bytes) + (8 << 20),
                     112 << 20)

    return pl.pallas_call(
        kern,
        out_shape=jax.ShapeDtypeStruct((N, H, WY), jnp.float32),
        grid_spec=pltpu.PrefetchScalarGridSpec(
            num_scalar_prefetch=0,
            grid=grid,
            in_specs=in_specs,
            out_specs=out_spec,
            scratch_shapes=scratch,
        ),
        compiler_params=pltpu.CompilerParams(
            dimension_semantics=("parallel",),
            vmem_limit_bytes=int(vmem_limit),
        ),
    )(x_flat, d_flat, prep["rhb"], prep["rwt"],
      prep["t1"], prep["t2"], prep["t3"],
      prep["b1"], prep["b2"], prep["b3"])


def stack_decoder_forward(x_nchw, down_nchw, prep, *, batch_block=None):
    """NCHW adapter matching the PyTorch module boundary:
    x: (N, Cx, h_in, w_in), down_tensor: (N, Cd, H, W)  ->  (N, Cy, H, W)."""
    N, Cx, h_in, w_in = x_nchw.shape
    _, Cd, H, W = down_nchw.shape
    Cy = prep["b1"].shape[-1] // W

    # Free (contiguous) reshapes only -- the NCHW -> lane-dense permutation is
    # done in-kernel (VMEM column-block stores), not as XLA transposes in HBM.
    x_flat = x_nchw.reshape(N, Cx * h_in, w_in)
    d_flat = down_nchw.reshape(N, Cd * H, W)

    out_slab = stack_decoder_forward_slab(x_flat, d_flat, prep,
                                          channels=(Cx, Cd),
                                          batch_block=batch_block)
    # Boundary-only layout glue back to NCHW (skip it when chaining decoders by
    # consuming the lane-dense slab directly).
    return jnp.transpose(out_slab.reshape(N, H, W, Cy), (0, 3, 1, 2))


# ----------------------------------------------------------------------------
# Parameters (PyTorch-like init) and one-time weight preparation
# ----------------------------------------------------------------------------
def init_stack_decoder_params(key, x_big_channels, x_channels, y_channels):
    """StackDecoder(x_big_channels, x_channels, y_channels): three bias-free
    3x3 convs (HWIO layout) + BatchNorm2d params (PyTorch defaults)."""
    cin = x_big_channels + x_channels
    ks = jax.random.split(key, 3)

    def conv_w(k, ci, co):
        bound = 1.0 / math.sqrt(ci * KSIZE * KSIZE)
        return jax.random.uniform(k, (KSIZE, KSIZE, ci, co), jnp.float32,
                                  minval=-bound, maxval=bound)

    def bn(c):
        return dict(gamma=jnp.ones((c,), jnp.float32),
                    beta=jnp.zeros((c,), jnp.float32),
                    mean=jnp.zeros((c,), jnp.float32),
                    var=jnp.ones((c,), jnp.float32))

    return dict(w1=conv_w(ks[0], cin, y_channels), bn1=bn(y_channels),
                w2=conv_w(ks[1], y_channels, y_channels), bn2=bn(y_channels),
                w3=conv_w(ks[2], y_channels, y_channels), bn3=bn(y_channels))


def _bilinear_matrix(out_size, in_size):
    """Separable bilinear interpolation operator, align_corners=True (as in the
    module's F.interpolate call)."""
    m = np.zeros((out_size, in_size), np.float32)
    if out_size == 1:
        m[0, 0] = 1.0
        return m
    for i in range(out_size):
        src = i * (in_size - 1) / (out_size - 1)
        i0 = min(int(math.floor(src)), in_size - 1)
        i1 = min(i0 + 1, in_size - 1)
        f = src - i0
        m[i, i0] += 1.0 - f
        m[i, i1] += f
    return m


def _banded_conv_weights(w_hwio, out_w, in_channel_major):
    """Fold the KW width taps + zero 'same' width padding of a stride-1 conv
    into KH banded block-Toeplitz matrices so that, for halo row slabs `buf`:
        out_row[h] = sum_ky buf[h+ky] @ band[ky]
    Input row layout is channel-major (c*out_w + w) if in_channel_major else
    pixel-major (w*Ci + c).  Output row layout is always pixel-major (w*Co + c).
    TODO(synk): for large W, tile the band along the output-width axis (or use
    KW shifted-slab matmuls) -- dense bands are O(W^2) and ~(1-KW/W) zeros.
    """
    w = np.asarray(w_hwio, np.float32)
    KH, KW, Ci, Co = w.shape
    pad = (KW - 1) // 2
    band = np.zeros((KH, out_w * Ci, out_w * Co), np.float32)
    for ky in range(KH):
        for wo in range(out_w):
            for kx in range(KW):
                wi = wo + kx - pad
                if not 0 <= wi < out_w:
                    continue                      # dropped block == zero width pad
                if in_channel_major:
                    rows = wi + np.arange(Ci) * out_w
                    band[ky, rows, wo * Co:(wo + 1) * Co] = w[ky, kx]
                else:
                    band[ky, wi * Ci:(wi + 1) * Ci,
                         wo * Co:(wo + 1) * Co] = w[ky, kx]
    return jnp.asarray(band, jnp.bfloat16)


def prepare_stack_decoder(params, x_shape, down_shape):
    """One-time host-side prep (outside the jitted forward): fold eval-mode
    BatchNorm into the conv weights/bias, expand the convs into banded
    lane-dense bf16 MXU matrices (conv1's up/down halves fused into ONE band),
    and build bf16 bilinear-upsample operators that also fold the NCHW channel
    permutation of x.
    TODO(synk): training-mode BatchNorm (per-batch statistics) is not computed
    in-kernel; BN is folded here in eval mode from gamma/beta/running stats."""
    _, Cx, h_in, w_in = x_shape
    _, Cd, H, W = down_shape

    def fold(w, bn):
        scale = np.asarray(bn["gamma"]) / np.sqrt(np.asarray(bn["var"]) + BN_EPS)
        bias = np.asarray(bn["beta"]) - np.asarray(bn["mean"]) * scale
        return np.asarray(w, np.float32) * scale[None, None, None, :], bias

    w1f, b1f = fold(params["w1"], params["bn1"])
    w2f, b2f = fold(params["w2"], params["bn2"])
    w3f, b3f = fold(params["w3"], params["bn3"])
    Cy = w1f.shape[-1]

    rh = _bilinear_matrix(H, h_in)                       # (H, h_in)
    rw = _bilinear_matrix(W, w_in)                       # (W, w_in)
    rhb = np.kron(np.eye(Cx, dtype=np.float32), rh)      # (Cx*H, Cx*h_in)
    rwt = np.ascontiguousarray(rw.T)                     # (w_in, W)

    def bias_row(b):
        return jnp.asarray(np.tile(b.astype(np.float32), W).reshape(1, W * Cy))

    return dict(
        rhb=jnp.asarray(rhb, jnp.bfloat16),
        rwt=jnp.asarray(rwt, jnp.bfloat16),
        # conv1 consumes cat([up(x), down]) as channel-major column blocks of a
        # single halo buffer, so its weights are ONE fused band (K = W*(Cx+Cd)).
        t1=_banded_conv_weights(w1f, W, in_channel_major=True),
        t2=_banded_conv_weights(w2f, W, in_channel_major=False),
        t3=_banded_conv_weights(w3f, W, in_channel_major=False),
        b1=bias_row(b1f), b2=bias_row(b2f), b3=bias_row(b3f),
    )


# ----------------------------------------------------------------------------
if __name__ == "__main__":
    # StackDecoder(x_big_channels=8, x_channels=8, y_channels=32):
    # x (coarse) = (2, 8, 8, 8), down_tensor (skip) = (2, 8, 16, 16).
    N, X_BIG, X_CH, Y_CH = 2, 8, 8, 32
    h_in = w_in = 8
    H = W = 16

    root = jax.random.PRNGKey(0)
    kx, kd, kp = jax.random.split(root, 3)
    x = jax.random.normal(kx, (N, X_BIG, h_in, w_in), dtype=jnp.float32)
    down = jax.random.normal(kd, (N, X_CH, H, W), dtype=jnp.float32)

    params = init_stack_decoder_params(kp, X_BIG, X_CH, Y_CH)
    prep = prepare_stack_decoder(params, x.shape, down.shape)

    fwd = jax.jit(stack_decoder_forward)
    out = fwd(x, down, prep)
    jax.block_until_ready(out)

    assert out.shape == (N, Y_CH, H, W), out.shape
    assert out.dtype == jnp.float32
    print("KERNEL_OK")
</pallas_src>

<mosaic_0001>
module attributes {stable_mosaic.version = 11 : i64} {
  func.func @_stack_decoder_kernel(%arg0: i32, %arg1: memref<2x64x8xf32, #tpu.memory_space<vmem>>, %arg2: memref<2x128x16xf32, #tpu.memory_space<vmem>>, %arg3: memref<128x64xbf16, #tpu.memory_space<vmem>>, %arg4: memref<8x16xbf16, #tpu.memory_space<vmem>>, %arg5: memref<3x256x512xbf16, #tpu.memory_space<vmem>>, %arg6: memref<3x512x512xbf16, #tpu.memory_space<vmem>>, %arg7: memref<3x512x512xbf16, #tpu.memory_space<vmem>>, %arg8: memref<1x512xf32, #tpu.memory_space<vmem>>, %arg9: memref<1x512xf32, #tpu.memory_space<vmem>>, %arg10: memref<1x512xf32, #tpu.memory_space<vmem>>, %arg11: memref<2x16x512xf32, #tpu.memory_space<vmem>>, %arg12: memref<36x256xf32, #tpu.memory_space<vmem>>, %arg13: memref<36x512xf32, #tpu.memory_space<vmem>>, %arg14: memref<36x512xf32, #tpu.memory_space<vmem>>) attributes {dimension_semantics = [#tpu.dimension_semantics<parallel>], iteration_bounds = array<i64: 1>, scalar_prefetch = 0 : i64, scratch_operands = 3 : i64, tpu.core_type = #tpu.core_type<tc>, window_params = [{transform_indices = @transform_0, window_bounds = array<i64: 2, 64, 8>}, {transform_indices = @transform_1, window_bounds = array<i64: 2, 128, 16>}, {pipeline_mode = #tpu.pipeline_mode<synchronous>, transform_indices = @transform_2, window_bounds = array<i64: 128, 64>}, {pipeline_mode = #tpu.pipeline_mode<synchronous>, transform_indices = @transform_3, window_bounds = array<i64: 8, 16>}, {pipeline_mode = #tpu.pipeline_mode<synchronous>, transform_indices = @transform_4, window_bounds = array<i64: 3, 256, 512>}, {pipeline_mode = #tpu.pipeline_mode<synchronous>, transform_indices = @transform_5, window_bounds = array<i64: 3, 512, 512>}, {pipeline_mode = #tpu.pipeline_mode<synchronous>, transform_indices = @transform_6, window_bounds = array<i64: 3, 512, 512>}, {pipeline_mode = #tpu.pipeline_mode<synchronous>, transform_indices = @transform_7, window_bounds = array<i64: 1, 512>}, {pipeline_mode = #tpu.pipeline_mode<synchronous>, transform_indices = @transform_8, window_bounds = array<i64: 1, 512>}, {pipeline_mode = #tpu.pipeline_mode<synchronous>, transform_indices = @transform_9, window_bounds = array<i64: 1, 512>}, {transform_indices = @transform_10, window_bounds = array<i64: 2, 16, 512>}]} {
    %cst = arith.constant 0.000000e+00 : f32
    %0 = vector.broadcast %cst : f32 to vector<1x256xf32>
    %cst_0 = arith.constant 0.000000e+00 : f32
    %1 = vector.broadcast %cst_0 : f32 to vector<1x512xf32>
    %c0 = arith.constant 0 : index
    %c0_1 = arith.constant 0 : index
    %2 = vector.load %arg12[%c0, %c0_1] : memref<36x256xf32, #tpu.memory_space<vmem>>, vector<1x256xf32>
    tpu.vector_store %arg12[%c0, %c0_1], %0 {strides = array<i32>} : memref<36x256xf32, #tpu.memory_space<vmem>>, vector<1x256xf32>,
    %c17 = arith.constant 17 : index
    %c0_2 = arith.constant 0 : index
    %3 = vector.load %arg12[%c17, %c0_2] : memref<36x256xf32, #tpu.memory_space<vmem>>, vector<1x256xf32>
    tpu.vector_store %arg12[%c17, %c0_2], %0 {strides = array<i32>} : memref<36x256xf32, #tpu.memory_space<vmem>>, vector<1x256xf32>,
    %c18 = arith.constant 18 : index
    %c0_3 = arith.constant 0 : index
    %4 = vector.load %arg12[%c18, %c0_3] : memref<36x256xf32, #tpu.memory_space<vmem>>, vector<1x256xf32>
    tpu.vector_store %arg12[%c18, %c0_3], %0 {strides = array<i32>} : memref<36x256xf32, #tpu.memory_space<vmem>>, vector<1x256xf32>,
    %c35 = arith.constant 35 : index
    %c0_4 = arith.constant 0 : index
    %5 = vector.load %arg12[%c35, %c0_4] : memref<36x256xf32, #tpu.memory_space<vmem>>, vector<1x256xf32>
    tpu.vector_store %arg12[%c35, %c0_4], %0 {strides = array<i32>} : memref<36x256xf32, #tpu.memory_space<vmem>>, vector<1x256xf32>,
    %c0_5 = arith.constant 0 : index
    %c0_6 = arith.constant 0 : index
    %c0_7 = arith.constant 0 : index
    %6 = vector.load %arg1[%c0_5, %c0_6, %c0_7] : memref<2x64x8xf32, #tpu.memory_space<vmem>>, vector<1x64x8xf32>
    %7 = vector.shape_cast %6 : vector<1x64x8xf32> to vector<64x8xf32>
    %8 = arith.truncf %7 : vector<64x8xf32> to vector<64x8xbf16>
    %c0_8 = arith.constant 0 : index
    %c0_9 = arith.constant 0 : index
    %9 = vector.load %arg4[%c0_8, %c0_9] : memref<8x16xbf16, #tpu.memory_space<vmem>>, vector<8x16xbf16>
    %cst_10 = arith.constant dense<0.000000e+00> : vector<64x16xf32>
    %10 = tpu.matmul %8, %9, %cst_10 {dimension_numbers = #tpu.dot_dimension_numbers<[1], [0], [0], [1], [0, 0, 1, 1], [], []>} : vector<64x8xbf16>, vector<8x16xbf16>, vector<64x16xf32> -> vector<64x16xf32>
    %c0_11 = arith.constant 0 : index
    %c0_12 = arith.constant 0 : index
    %11 = vector.load %arg3[%c0_11, %c0_12] : memref<128x64xbf16, #tpu.memory_space<vmem>>, vector<128x64xbf16>
    %12 = arith.truncf %10 : vector<64x16xf32> to vector<64x16xbf16>
    %cst_13 = arith.constant dense<0.000000e+00> : vector<128x16xf32>
    %13 = tpu.matmul %11, %12, %cst_13 {dimension_numbers = #tpu.dot_dimension_numbers<[1], [0], [0], [1], [0, 0, 1, 1], [], []>} : vector<128x64xbf16>, vector<64x16xbf16>, vector<128x16xf32> -> vector<128x16xf32>
    %14 = vector.extract_strided_slice %13 {offsets = [0, 0], sizes = [16, 16], strides = [1, 1]} : vector<128x16xf32> to vector<16x16xf32>
    %c1 = arith.constant 1 : index
    %c0_14 = arith.constant 0 : index
    %15 = vector.load %arg12[%c1, %c0_14] : memref<36x256xf32, #tpu.memory_space<vmem>>, vector<16x16xf32>
    tpu.vector_store %arg12[%c1, %c0_14], %14 {strides = array<i32>} : memref<36x256xf32, #tpu.memory_space<vmem>>, vector<16x16xf32>,
    %16 = vector.extract_strided_slice %13 {offsets = [16, 0], sizes = [16, 16], strides = [1, 1]} : vector<128x16xf32> to vector<16x16xf32>
    %c1_15 = arith.constant 1 : index
    %c16 = arith.constant 16 : index
    %17 = vector.load %arg12[%c1_15, %c16] : memref<36x256xf32, #tpu.memory_space<vmem>>, vector<16x16xf32>
    tpu.vector_store %arg12[%c1_15, %c16], %16 {strides = array<i32>} : memref<36x256xf32, #tpu.memory_space<vmem>>, vector<16x16xf32>,
    %18 = vector.extract_strided_slice %13 {offsets = [32, 0], sizes = [16, 16], strides = [1, 1]} : vector<128x16xf32> to vector<16x16xf32>
    %c1_16 = arith.constant 1 : index
    %c32 = arith.constant 32 : index
    %19 = vector.load %arg12[%c1_16, %c32] : memref<36x256xf32, #tpu.memory_space<vmem>>, vector<16x16xf32>
    tpu.vector_store %arg12[%c1_16, %c32], %18 {strides = array<i32>} : memref<36x256xf32, #tpu.memory_space<vmem>>, vector<16x16xf32>,
    %20 = vector.extract_strided_slice %13 {offsets = [48, 0], sizes = [16, 16], strides = [1, 1]} : vector<128x16xf32> to vector<16x16xf32>
    %c1_17 = arith.constant 1 : index
    %c48 = arith.constant 48 : index
    %21 = vector.load %arg12[%c1_17, %c48] : memref<36x256xf32, #tpu.memory_space<vmem>>, vector<16x16xf32>
    tpu.vector_store %arg12[%c1_17, %c48], %20 {strides = array<i32>} : memref<36x256xf32, #tpu.memory_space<vmem>>, vector<16x16xf32>,
    %22 = vector.extract_strided_slice %13 {offsets = [64, 0], sizes = [16, 16], strides = [1, 1]} : vector<128x16xf32> to vector<16x16xf32>
    %c1_18 = arith.constant 1 : index
    %c64 = arith.constant 64 : index
    %23 = vector.load %arg12[%c1_18, %c64] : memref<36x256xf32, #tpu.memory_space<vmem>>, vector<16x16xf32>
    tpu.vector_store %arg12[%c1_18, %c64], %22 {strides = array<i32>} : memref<36x256xf32, #tpu.memory_space<vmem>>, vector<16x16xf32>,
    %24 = vector.extract_strided_slice %13 {offsets = [80, 0], sizes = [16, 16], strides = [1, 1]} : vector<128x16xf32> to vector<16x16xf32>
    %c1_19 = arith.constant 1 : index
    %c80 = arith.constant 80 : index
    %25 = vector.load %arg12[%c1_19, %c80] : memref<36x256xf32, #tpu.memory_space<vmem>>, vector<16x16xf32>
    tpu.vector_store %arg12[%c1_19, %c80], %24 {strides = array<i32>} : memref<36x256xf32, #tpu.memory_space<vmem>>, vector<16x16xf32>,
    %26 = vector.extract_strided_slice %13 {offsets = [96, 0], sizes = [16, 16], strides = [1, 1]} : vector<128x16xf32> to vector<16x16xf32>
    %c1_20 = arith.constant 1 : index
    %c96 = arith.constant 96 : index
    %27 = vector.load %arg12[%c1_20, %c96] : memref<36x256xf32, #tpu.memory_space<vmem>>, vector<16x16xf32>
    tpu.vector_store %arg12[%c1_20, %c96], %26 {strides = array<i32>} : memref<36x256xf32, #tpu.memory_space<vmem>>, vector<16x16xf32>,
    %28 = vector.extract_strided_slice %13 {offsets = [112, 0], sizes = [16, 16], strides = [1, 1]} : vector<128x16xf32> to vector<16x16xf32>
    %c1_21 = arith.constant 1 : index
    %c112 = arith.constant 112 : index
    %29 = vector.load %arg12[%c1_21, %c112] : memref<36x256xf32, #tpu.memory_space<vmem>>, vector<16x16xf32>
    tpu.vector_store %arg12[%c1_21, %c112], %28 {strides = array<i32>} : memref<36x256xf32, #tpu.memory_space<vmem>>, vector<16x16xf32>,
    %c0_22 = arith.constant 0 : index
    %c0_23 = arith.constant 0 : index
    %c0_24 = arith.constant 0 : index
    %30 = vector.load %arg2[%c0_22, %c0_23, %c0_24] : memref<2x128x16xf32, #tpu.memory_space<vmem>>, vector<1x16x16xf32>
    %31 = vector.shape_cast %30 : vector<1x16x16xf32> to vector<16x16xf32>
    %c1_25 = arith.constant 1 : index
    %c128 = arith.constant 128 : index
    %32 = vector.load %arg12[%c1_25, %c128] : memref<36x256xf32, #tpu.memory_space<vmem>>, vector<16x16xf32>
    tpu.vector_store %arg12[%c1_25, %c128], %31 {strides = array<i32>} : memref<36x256xf32, #tpu.memory_space<vmem>>, vector<16x16xf32>,
    %c0_26 = arith.constant 0 : index
    %c16_27 = arith.constant 16 : index
    %c0_28 = arith.constant 0 : index
    %33 = vector.load %arg2[%c0_26, %c16_27, %c0_28] : memref<2x128x16xf32, #tpu.memory_space<vmem>>, vector<1x16x16xf32>
    %34 = vector.shape_cast %33 : vector<1x16x16xf32> to vector<16x16xf32>
    %c1_29 = arith.constant 1 : index
    %c144 = arith.constant 144 : index
    %35 = vector.load %arg12[%c1_29, %c144] : memref<36x256xf32, #tpu.memory_space<vmem>>, vector<16x16xf32>
    tpu.vector_store %arg12[%c1_29, %c144], %34 {strides = array<i32>} : memref<36x256xf32, #tpu.memory_space<vmem>>, vector<16x16xf32>,
    %c0_30 = arith.constant 0 : index
    %c32_31 = arith.constant 32 : index
    %c0_32 = arith.constant 0 : index
    %36 = vector.load %arg2[%c0_30, %c32_31, %c0_32] : memref<2x128x16xf32, #tpu.memory_space<vmem>>, vector<1x16x16xf32>
    %37 = vector.shape_cast %36 : vector<1x16x16xf32> to vector<16x16xf32>
    %c1_33 = arith.constant 1 : index
    %c160 = arith.constant 160 : index
    %38 = vector.load %arg12[%c1_33, %c160] : memref<36x256xf32, #tpu.memory_space<vmem>>, vector<16x16xf32>
    tpu.vector_store %arg12[%c1_33, %c160], %37 {strides = array<i32>} : memref<36x256xf32, #tpu.memory_space<vmem>>, vector<16x16xf32>,
    %c0_34 = arith.constant 0 : index
    %c48_35 = arith.constant 48 : index
    %c0_36 = arith.constant 0 : index
    %39 = vector.load %arg2[%c0_34, %c48_35, %c0_36] : memref<2x128x16xf32, #tpu.memory_space<vmem>>, vector<1x16x16xf32>
    %40 = vector.shape_cast %39 : vector<1x16x16xf32> to vector<16x16xf32>
    %c1_37 = arith.constant 1 : index
    %c176 = arith.constant 176 : index
    %41 = vector.load %arg12[%c1_37, %c176] : memref<36x256xf32, #tpu.memory_space<vmem>>, vector<16x16xf32>
    tpu.vector_store %arg12[%c1_37, %c176], %40 {strides = array<i32>} : memref<36x256xf32, #tpu.memory_space<vmem>>, vector<16x16xf32>,
    %c0_38 = arith.constant 0 : index
    %c64_39 = arith.constant 64 : index
    %c0_40 = arith.constant 0 : index
    %42 = vector.load %arg2[%c0_38, %c64_39, %c0_40] : memref<2x128x16xf32, #tpu.memory_space<vmem>>, vector<1x16x16xf32>
    %43 = vector.shape_cast %42 : vector<1x16x16xf32> to vector<16x16xf32>
    %c1_41 = arith.constant 1 : index
    %c192 = arith.constant 192 : index
    %44 = vector.load %arg12[%c1_41, %c192] : memref<36x256xf32, #tpu.memory_space<vmem>>, vector<16x16xf32>
    tpu.vector_store %arg12[%c1_41, %c192], %43 {strides = array<i32>} : memref<36x256xf32, #tpu.memory_space<vmem>>, vector<16x16xf32>,
    %c0_42 = arith.constant 0 : index
    %c80_43 = arith.constant 80 : index
    %c0_44 = arith.constant 0 : index
    %45 = vector.load %arg2[%c0_42, %c80_43, %c0_44] : memref<2x128x16xf32, #tpu.memory_space<vmem>>, vector<1x16x16xf32>
    %46 = vector.shape_cast %45 : vector<1x16x16xf32> to vector<16x16xf32>
    %c1_45 = arith.constant 1 : index
    %c208 = arith.constant 208 : index
    %47 = vector.load %arg12[%c1_45, %c208] : memref<36x256xf32, #tpu.memory_space<vmem>>, vector<16x16xf32>
    tpu.vector_store %arg12[%c1_45, %c208], %46 {strides = array<i32>} : memref<36x256xf32, #tpu.memory_space<vmem>>, vector<16x16xf32>,
    %c0_46 = arith.constant 0 : index
    %c96_47 = arith.constant 96 : index
    %c0_48 = arith.constant 0 : index
    %48 = vector.load %arg2[%c0_46, %c96_47, %c0_48] : memref<2x128x16xf32, #tpu.memory_space<vmem>>, vector<1x16x16xf32>
    %49 = vector.shape_cast %48 : vector<1x16x16xf32> to vector<16x16xf32>
    %c1_49 = arith.constant 1 : index
    %c224 = arith.constant 224 : index
    %50 = vector.load %arg12[%c1_49, %c224] : memref<36x256xf32, #tpu.memory_space<vmem>>, vector<16x16xf32>
    tpu.vector_store %arg12[%c1_49, %c224], %49 {strides = array<i32>} : memref<36x256xf32, #tpu.memory_space<vmem>>, vector<16x16xf32>,
    %c0_50 = arith.constant 0 : index
    %c112_51 = arith.constant 112 : index
    %c0_52 = arith.constant 0 : index
    %51 = vector.load %arg2[%c0_50, %c112_51, %c0_52] : memref<2x128x16xf32, #tpu.memory_space<vmem>>, vector<1x16x16xf32>
    %52 = vector.shape_cast %51 : vector<1x16x16xf32> to vector<16x16xf32>
    %c1_53 = arith.constant 1 : index
    %c240 = arith.constant 240 : index
    %53 = vector.load %arg12[%c1_53, %c240] : memref<36x256xf32, #tpu.memory_space<vmem>>, vector<16x16xf32>
    tpu.vector_store %arg12[%c1_53, %c240], %52 {strides = array<i32>} : memref<36x256xf32, #tpu.memory_space<vmem>>, vector<16x16xf32>,
    %c1_54 = arith.constant 1 : index
    %c0_55 = arith.constant 0 : index
    %c0_56 = arith.constant 0 : index
    %54 = vector.load %arg1[%c1_54, %c0_55, %c0_56] : memref<2x64x8xf32, #tpu.memory_space<vmem>>, vector<1x64x8xf32>
    %55 = vector.shape_cast %54 : vector<1x64x8xf32> to vector<64x8xf32>
    %56 = arith.truncf %55 : vector<64x8xf32> to vector<64x8xbf16>
    %c0_57 = arith.constant 0 : index
    %c0_58 = arith.constant 0 : index
    %57 = vector.load %arg4[%c0_57, %c0_58] : memref<8x16xbf16, #tpu.memory_space<vmem>>, vector<8x16xbf16>
    %cst_59 = arith.constant dense<0.000000e+00> : vector<64x16xf32>
    %58 = tpu.matmul %56, %57, %cst_59 {dimension_numbers = #tpu.dot_dimension_numbers<[1], [0], [0], [1], [0, 0, 1, 1], [], []>} : vector<64x8xbf16>, vector<8x16xbf16>, vector<64x16xf32> -> vector<64x16xf32>
    %c0_60 = arith.constant 0 : index
    %c0_61 = arith.constant 0 : index
    %59 = vector.load %arg3[%c0_60, %c0_61] : memref<128x64xbf16, #tpu.memory_space<vmem>>, vector<128x64xbf16>
    %60 = arith.truncf %58 : vector<64x16xf32> to vector<64x16xbf16>
    %cst_62 = arith.constant dense<0.000000e+00> : vector<128x16xf32>
    %61 = tpu.matmul %59, %60, %cst_62 {dimension_numbers = #tpu.dot_dimension_numbers<[1], [0], [0], [1], [0, 0, 1, 1], [], []>} : vector<128x64xbf16>, vector<64x16xbf16>, vector<128x16xf32> -> vector<128x16xf32>
    %62 = vector.extract_strided_slice %61 {offsets = [0, 0], sizes = [16, 16], strides = [1, 1]} : vector<128x16xf32> to vector<16x16xf32>
    %c19 = arith.constant 19 : index
    %c0_63 = arith.constant 0 : index
    %63 = vector.load %arg12[%c19, %c0_63] : memref<36x256xf32, #tpu.memory_space<vmem>>, vector<16x16xf32>
    tpu.vector_store %arg12[%c19, %c0_63], %62 {strides = array<i32>} : memref<36x256xf32, #tpu.memory_space<vmem>>, vector<16x16xf32>,
    %64 = vector.extract_strided_slice %61 {offsets = [16, 0], sizes = [16, 16], strides = [1, 1]} : vector<128x16xf32> to vector<16x16xf32>
    %c19_64 = arith.constant 19 : index
    %c16_65 = arith.constant 16 : index
    %65 = vector.load %arg12[%c19_64, %c16_65] : memref<36x256xf32, #tpu.memory_space<vmem>>, vector<16x16xf32>
    tpu.vector_store %arg12[%c19_64, %c16_65], %64 {strides = array<i32>} : memref<36x256xf32, #tpu.memory_space<vmem>>, vector<16x16xf32>,
    %66 = vector.extract_strided_slice %61 {offsets = [32, 0], sizes = [16, 16], strides = [1, 1]} : vector<128x16xf32> to vector<16x16xf32>
    %c19_66 = arith.constant 19 : index
    %c32_67 = arith.constant 32 : index
    %67 = vector.load %arg12[%c19_66, %c32_67] : memref<36x256xf32, #tpu.memory_space<vmem>>, vector<16x16xf32>
    tpu.vector_store %arg12[%c19_66, %c32_67], %66 {strides = array<i32>} : memref<36x256xf32, #tpu.memory_space<vmem>>, vector<16x16xf32>,
    %68 = vector.extract_strided_slice %61 {offsets = [48, 0], sizes = [16, 16], strides = [1, 1]} : vector<128x16xf32> to vector<16x16xf32>
    %c19_68 = arith.constant 19 : index
    %c48_69 = arith.constant 48 : index
    %69 = vector.load %arg12[%c19_68, %c48_69] : memref<36x256xf32, #tpu.memory_space<vmem>>, vector<16x16xf32>
    tpu.vector_store %arg12[%c19_68, %c48_69], %68 {strides = array<i32>} : memref<36x256xf32, #tpu.memory_space<vmem>>, vector<16x16xf32>,
    %70 = vector.extract_strided_slice %61 {offsets = [64, 0], sizes = [16, 16], strides = [1, 1]} : vector<128x16xf32> to vector<16x16xf32>
    %c19_70 = arith.constant 19 : index
    %c64_71 = arith.constant 64 : index
    %71 = vector.load %arg12[%c19_70, %c64_71] : memref<36x256xf32, #tpu.memory_space<vmem>>, vector<16x16xf32>
    tpu.vector_store %arg12[%c19_70, %c64_71], %70 {strides = array<i32>} : memref<36x256xf32, #tpu.memory_space<vmem>>, vector<16x16xf32>,
    %72 = vector.extract_strided_slice %61 {offsets = [80, 0], sizes = [16, 16], strides = [1, 1]} : vector<128x16xf32> to vector<16x16xf32>
    %c19_72 = arith.constant 19 : index
    %c80_73 = arith.constant 80 : index
    %73 = vector.load %arg12[%c19_72, %c80_73] : memref<36x256xf32, #tpu.memory_space<vmem>>, vector<16x16xf32>
    tpu.vector_store %arg12[%c19_72, %c80_73], %72 {strides = array<i32>} : memref<36x256xf32, #tpu.memory_space<vmem>>, vector<16x16xf32>,
    %74 = vector.extract_strided_slice %61 {offsets = [96, 0], sizes = [16, 16], strides = [1, 1]} : vector<128x16xf32> to vector<16x16xf32>
    %c19_74 = arith.constant 19 : index
    %c96_75 = arith.constant 96 : index
    %75 = vector.load %arg12[%c19_74, %c96_75] : memref<36x256xf32, #tpu.memory_space<vmem>>, vector<16x16xf32>
    tpu.vector_store %arg12[%c19_74, %c96_75], %74 {strides = array<i32>} : memref<36x256xf32, #tpu.memory_space<vmem>>, vector<16x16xf32>,
    %76 = vector.extract_strided_slice %61 {offsets = [112, 0], sizes = [16, 16], strides = [1, 1]} : vector<128x16xf32> to vector<16x16xf32>
    %c19_76 = arith.constant 19 : index
    %c112_77 = arith.constant 112 : index
    %77 = vector.load %arg12[%c19_76, %c112_77] : memref<36x256xf32, #tpu.memory_space<vmem>>, vector<16x16xf32>
    tpu.vector_store %arg12[%c19_76, %c112_77], %76 {strides = array<i32>} : memref<36x256xf32, #tpu.memory_space<vmem>>, vector<16x16xf32>,
    %c1_78 = arith.constant 1 : index
    %c0_79 = arith.constant 0 : index
    %c0_80 = arith.constant 0 : index
    %78 = vector.load %arg2[%c1_78, %c0_79, %c0_80] : memref<2x128x16xf32, #tpu.memory_space<vmem>>, vector<1x16x16xf32>
    %79 = vector.shape_cast %78 : vector<1x16x16xf32> to vector<16x16xf32>
    %c19_81 = arith.constant 19 : index
    %c128_82 = arith.constant 128 : index
    %80 = vector.load %arg12[%c19_81, %c128_82] : memref<36x256xf32, #tpu.memory_space<vmem>>, vector<16x16xf32>
    tpu.vector_store %arg12[%c19_81, %c128_82], %79 {strides = array<i32>} : memref<36x256xf32, #tpu.memory_space<vmem>>, vector<16x16xf32>,
    %c1_83 = arith.constant 1 : index
    %c16_84 = arith.constant 16 : index
    %c0_85 = arith.constant 0 : index
    %81 = vector.load %arg2[%c1_83, %c16_84, %c0_85] : memref<2x128x16xf32, #tpu.memory_space<vmem>>, vector<1x16x16xf32>
    %82 = vector.shape_cast %81 : vector<1x16x16xf32> to vector<16x16xf32>
    %c19_86 = arith.constant 19 : index
    %c144_87 = arith.constant 144 : index
    %83 = vector.load %arg12[%c19_86, %c144_87] : memref<36x256xf32, #tpu.memory_space<vmem>>, vector<16x16xf32>
    tpu.vector_store %arg12[%c19_86, %c144_87], %82 {strides = array<i32>} : memref<36x256xf32, #tpu.memory_space<vmem>>, vector<16x16xf32>,
    %c1_88 = arith.constant 1 : index
    %c32_89 = arith.constant 32 : index
    %c0_90 = arith.constant 0 : index
    %84 = vector.load %arg2[%c1_88, %c32_89, %c0_90] : memref<2x128x16xf32, #tpu.memory_space<vmem>>, vector<1x16x16xf32>
    %85 = vector.shape_cast %84 : vector<1x16x16xf32> to vector<16x16xf32>
    %c19_91 = arith.constant 19 : index
    %c160_92 = arith.constant 160 : index
    %86 = vector.load %arg12[%c19_91, %c160_92] : memref<36x256xf32, #tpu.memory_space<vmem>>, vector<16x16xf32>
    tpu.vector_store %arg12[%c19_91, %c160_92], %85 {strides = array<i32>} : memref<36x256xf32, #tpu.memory_space<vmem>>, vector<16x16xf32>,
    %c1_93 = arith.constant 1 : index
    %c48_94 = arith.constant 48 : index
    %c0_95 = arith.constant 0 : index
    %87 = vector.load %arg2[%c1_93, %c48_94, %c0_95] : memref<2x128x16xf32, #tpu.memory_space<vmem>>, vector<1x16x16xf32>
    %88 = vector.shape_cast %87 : vector<1x16x16xf32> to vector<16x16xf32>
    %c19_96 = arith.constant 19 : index
    %c176_97 = arith.constant 176 : index
    %89 = vector.load %arg12[%c19_96, %c176_97] : memref<36x256xf32, #tpu.memory_space<vmem>>, vector<16x16xf32>
    tpu.vector_store %arg12[%c19_96, %c176_97], %88 {strides = array<i32>} : memref<36x256xf32, #tpu.memory_space<vmem>>, vector<16x16xf32>,
    %c1_98 = arith.constant 1 : index
    %c64_99 = arith.constant 64 : index
    %c0_100 = arith.constant 0 : index
    %90 = vector.load %arg2[%c1_98, %c64_99, %c0_100] : memref<2x128x16xf32, #tpu.memory_space<vmem>>, vector<1x16x16xf32>
    %91 = vector.shape_cast %90 : vector<1x16x16xf32> to vector<16x16xf32>
    %c19_101 = arith.constant 19 : index
    %c192_102 = arith.constant 192 : index
    %92 = vector.load %arg12[%c19_101, %c192_102] : memref<36x256xf32, #tpu.memory_space<vmem>>, vector<16x16xf32>
    tpu.vector_store %arg12[%c19_101, %c192_102], %91 {strides = array<i32>} : memref<36x256xf32, #tpu.memory_space<vmem>>, vector<16x16xf32>,
    %c1_103 = arith.constant 1 : index
    %c80_104 = arith.constant 80 : index
    %c0_105 = arith.constant 0 : index
    %93 = vector.load %arg2[%c1_103, %c80_104, %c0_105] : memref<2x128x16xf32, #tpu.memory_space<vmem>>, vector<1x16x16xf32>
    %94 = vector.shape_cast %93 : vector<1x16x16xf32> to vector<16x16xf32>
    %c19_106 = arith.constant 19 : index
    %c208_107 = arith.constant 208 : index
    %95 = vector.load %arg12[%c19_106, %c208_107] : memref<36x256xf32, #tpu.memory_space<vmem>>, vector<16x16xf32>
    tpu.vector_store %arg12[%c19_106, %c208_107], %94 {strides = array<i32>} : memref<36x256xf32, #tpu.memory_space<vmem>>, vector<16x16xf32>,
    %c1_108 = arith.constant 1 : index
    %c96_109 = arith.constant 96 : index
    %c0_110 = arith.constant 0 : index
    %96 = vector.load %arg2[%c1_108, %c96_109, %c0_110] : memref<2x128x16xf32, #tpu.memory_space<vmem>>, vector<1x16x16xf32>
    %97 = vector.shape_cast %96 : vector<1x16x16xf32> to vector<16x16xf32>
    %c19_111 = arith.constant 19 : index
    %c224_112 = arith.constant 224 : index
    %98 = vector.load %arg12[%c19_111, %c224_112] : memref<36x256xf32, #tpu.memory_space<vmem>>, vector<16x16xf32>
    tpu.vector_store %arg12[%c19_111, %c224_112], %97 {strides = array<i32>} : memref<36x256xf32, #tpu.memory_space<vmem>>, vector<16x16xf32>,
    %c1_113 = arith.constant 1 : index
    %c112_114 = arith.constant 112 : index
    %c0_115 = arith.constant 0 : index
    %99 = vector.load %arg2[%c1_113, %c112_114, %c0_115] : memref<2x128x16xf32, #tpu.memory_space<vmem>>, vector<1x16x16xf32>
    %100 = vector.shape_cast %99 : vector<1x16x16xf32> to vector<16x16xf32>
    %c19_116 = arith.constant 19 : index
    %c240_117 = arith.constant 240 : index
    %101 = vector.load %arg12[%c19_116, %c240_117] : memref<36x256xf32, #tpu.memory_space<vmem>>, vector<16x16xf32>
    tpu.vector_store %arg12[%c19_116, %c240_117], %100 {strides = array<i32>} : memref<36x256xf32, #tpu.memory_space<vmem>>, vector<16x16xf32>,
    %c0_118 = arith.constant 0 : index
    %c0_119 = arith.constant 0 : index
    %102 = vector.load %arg12[%c0_118, %c0_119] : memref<36x256xf32, #tpu.memory_space<vmem>>, vector<36x256xf32>
    %cst_120 = arith.constant 0.000000e+00 : f32
    %103 = vector.broadcast %cst_120 : f32 to vector<34x512xf32>
    %104 = vector.extract_strided_slice %102 {offsets = [0, 0], sizes = [34, 256], strides = [1, 1]} : vector<36x256xf32> to vector<34x256xf32>
    %105 = arith.truncf %104 : vector<34x256xf32> to vector<34x256xbf16>
    %c0_121 = arith.constant 0 : index
    %c0_122 = arith.constant 0 : index
    %c0_123 = arith.constant 0 : index
    %106 = vector.load %arg5[%c0_121, %c0_122, %c0_123] : memref<3x256x512xbf16, #tpu.memory_space<vmem>>, vector<1x256x512xbf16>
    %107 = vector.shape_cast %106 : vector<1x256x512xbf16> to vector<256x512xbf16>
    %cst_124 = arith.constant dense<0.000000e+00> : vector<34x512xf32>
    %108 = tpu.matmul %105, %107, %cst_124 {dimension_numbers = #tpu.dot_dimension_numbers<[1], [0], [0], [1], [0, 0, 1, 1], [], []>} : vector<34x256xbf16>, vector<256x512xbf16>, vector<34x512xf32> -> vector<34x512xf32>
    %109 = arith.addf %103, %108 : vector<34x512xf32>
    %110 = vector.extract_strided_slice %102 {offsets = [1, 0], sizes = [34, 256], strides = [1, 1]} : vector<36x256xf32> to vector<34x256xf32>
    %111 = arith.truncf %110 : vector<34x256xf32> to vector<34x256xbf16>
    %c1_125 = arith.constant 1 : index
    %c0_126 = arith.constant 0 : index
    %c0_127 = arith.constant 0 : index
    %112 = vector.load %arg5[%c1_125, %c0_126, %c0_127] : memref<3x256x512xbf16, #tpu.memory_space<vmem>>, vector<1x256x512xbf16>
    %113 = vector.shape_cast %112 : vector<1x256x512xbf16> to vector<256x512xbf16>
    %cst_128 = arith.constant dense<0.000000e+00> : vector<34x512xf32>
    %114 = tpu.matmul %111, %113, %cst_128 {dimension_numbers = #tpu.dot_dimension_numbers<[1], [0], [0], [1], [0, 0, 1, 1], [], []>} : vector<34x256xbf16>, vector<256x512xbf16>, vector<34x512xf32> -> vector<34x512xf32>
    %115 = arith.addf %109, %114 : vector<34x512xf32>
    %116 = vector.extract_strided_slice %102 {offsets = [2, 0], sizes = [34, 256], strides = [1, 1]} : vector<36x256xf32> to vector<34x256xf32>
    %117 = arith.truncf %116 : vector<34x256xf32> to vector<34x256xbf16>
    %c2 = arith.constant 2 : index
    %c0_129 = arith.constant 0 : index
    %c0_130 = arith.constant 0 : index
    %118 = vector.load %arg5[%c2, %c0_129, %c0_130] : memref<3x256x512xbf16, #tpu.memory_space<vmem>>, vector<1x256x512xbf16>
    %119 = vector.shape_cast %118 : vector<1x256x512xbf16> to vector<256x512xbf16>
    %cst_131 = arith.constant dense<0.000000e+00> : vector<34x512xf32>
    %120 = tpu.matmul %117, %119, %cst_131 {dimension_numbers = #tpu.dot_dimension_numbers<[1], [0], [0], [1], [0, 0, 1, 1], [], []>} : vector<34x256xbf16>, vector<256x512xbf16>, vector<34x512xf32> -> vector<34x512xf32>
    %121 = arith.addf %115, %120 : vector<34x512xf32>
    %c0_132 = arith.constant 0 : index
    %c0_133 = arith.constant 0 : index
    %122 = vector.load %arg8[%c0_132, %c0_133] : memref<1x512xf32, #tpu.memory_space<vmem>>, vector<1x512xf32>
    %123 = vector.broadcast %122 : vector<1x512xf32> to vector<34x512xf32>
    %124 = arith.addf %121, %123 : vector<34x512xf32>
    %cst_134 = arith.constant 0.000000e+00 : f32
    %125 = vector.broadcast %cst_134 : f32 to vector<34x512xf32>
    %126 = arith.maximumf %124, %125 : vector<34x512xf32>
    %c1_135 = arith.constant 1 : index
    %c0_136 = arith.constant 0 : index
    %127 = vector.load %arg13[%c1_135, %c0_136] : memref<36x512xf32, #tpu.memory_space<vmem>>, vector<34x512xf32>
    tpu.vector_store %arg13[%c1_135, %c0_136], %126 {strides = array<i32>} : memref<36x512xf32, #tpu.memory_space<vmem>>, vector<34x512xf32>,
    %c0_137 = arith.constant 0 : index
    %c0_138 = arith.constant 0 : index
    %128 = vector.load %arg13[%c0_137, %c0_138] : memref<36x512xf32, #tpu.memory_space<vmem>>, vector<1x512xf32>
    tpu.vector_store %arg13[%c0_137, %c0_138], %1 {strides = array<i32>} : memref<36x512xf32, #tpu.memory_space<vmem>>, vector<1x512xf32>,
    %c17_139 = arith.constant 17 : index
    %c0_140 = arith.constant 0 : index
    %129 = vector.load %arg13[%c17_139, %c0_140] : memref<36x512xf32, #tpu.memory_space<vmem>>, vector<1x512xf32>
    tpu.vector_store %arg13[%c17_139, %c0_140], %1 {strides = array<i32>} : memref<36x512xf32, #tpu.memory_space<vmem>>, vector<1x512xf32>,
    %c18_141 = arith.constant 18 : index
    %c0_142 = arith.constant 0 : index
    %130 = vector.load %arg13[%c18_141, %c0_142] : memref<36x512xf32, #tpu.memory_space<vmem>>, vector<1x512xf32>
    tpu.vector_store %arg13[%c18_141, %c0_142], %1 {strides = array<i32>} : memref<36x512xf32, #tpu.memory_space<vmem>>, vector<1x512xf32>,
    %c35_143 = arith.constant 35 : index
    %c0_144 = arith.constant 0 : index
    %131 = vector.load %arg13[%c35_143, %c0_144] : memref<36x512xf32, #tpu.memory_space<vmem>>, vector<1x512xf32>
    tpu.vector_store %arg13[%c35_143, %c0_144], %1 {strides = array<i32>} : memref<36x512xf32, #tpu.memory_space<vmem>>, vector<1x512xf32>,
    %c0_145 = arith.constant 0 : index
    %c0_146 = arith.constant 0 : index
    %132 = vector.load %arg13[%c0_145, %c0_146] : memref<36x512xf32, #tpu.memory_space<vmem>>, vector<36x512xf32>
    %cst_147 = arith.constant 0.000000e+00 : f32
    %133 = vector.broadcast %cst_147 : f32 to vector<34x512xf32>
    %134 = vector.extract_strided_slice %132 {offsets = [0, 0], sizes = [34, 512], strides = [1, 1]} : vector<36x512xf32> to vector<34x512xf32>
    %135 = arith.truncf %134 : vector<34x512xf32> to vector<34x512xbf16>
    %c0_148 = arith.constant 0 : index
    %c0_149 = arith.constant 0 : index
    %c0_150 = arith.constant 0 : index
    %136 = vector.load %arg6[%c0_148, %c0_149, %c0_150] : memref<3x512x512xbf16, #tpu.memory_space<vmem>>, vector<1x512x512xbf16>
    %137 = vector.shape_cast %136 : vector<1x512x512xbf16> to vector<512x512xbf16>
    %cst_151 = arith.constant dense<0.000000e+00> : vector<34x512xf32>
    %138 = tpu.matmul %135, %137, %cst_151 {dimension_numbers = #tpu.dot_dimension_numbers<[1], [0], [0], [1], [0, 0, 1, 1], [], []>} : vector<34x512xbf16>, vector<512x512xbf16>, vector<34x512xf32> -> vector<34x512xf32>
    %139 = arith.addf %133, %138 : vector<34x512xf32>
    %140 = vector.extract_strided_slice %132 {offsets = [1, 0], sizes = [34, 512], strides = [1, 1]} : vector<36x512xf32> to vector<34x512xf32>
    %141 = arith.truncf %140 : vector<34x512xf32> to vector<34x512xbf16>
    %c1_152 = arith.constant 1 : index
    %c0_153 = arith.constant 0 : index
    %c0_154 = arith.constant 0 : index
    %142 = vector.load %arg6[%c1_152, %c0_153, %c0_154] : memref<3x512x512xbf16, #tpu.memory_space<vmem>>, vector<1x512x512xbf16>
    %143 = vector.shape_cast %142 : vector<1x512x512xbf16> to vector<512x512xbf16>
    %cst_155 = arith.constant dense<0.000000e+00> : vector<34x512xf32>
    %144 = tpu.matmul %141, %143, %cst_155 {dimension_numbers = #tpu.dot_dimension_numbers<[1], [0], [0], [1], [0, 0, 1, 1], [], []>} : vector<34x512xbf16>, vector<512x512xbf16>, vector<34x512xf32> -> vector<34x512xf32>
    %145 = arith.addf %139, %144 : vector<34x512xf32>
    %146 = vector.extract_strided_slice %132 {offsets = [2, 0], sizes = [34, 512], strides = [1, 1]} : vector<36x512xf32> to vector<34x512xf32>
    %147 = arith.truncf %146 : vector<34x512xf32> to vector<34x512xbf16>
    %c2_156 = arith.constant 2 : index
    %c0_157 = arith.constant 0 : index
    %c0_158 = arith.constant 0 : index
    %148 = vector.load %arg6[%c2_156, %c0_157, %c0_158] : memref<3x512x512xbf16, #tpu.memory_space<vmem>>, vector<1x512x512xbf16>
    %149 = vector.shape_cast %148 : vector<1x512x512xbf16> to vector<512x512xbf16>
    %cst_159 = arith.constant dense<0.000000e+00> : vector<34x512xf32>
    %150 = tpu.matmul %147, %149, %cst_159 {dimension_numbers = #tpu.dot_dimension_numbers<[1], [0], [0], [1], [0, 0, 1, 1], [], []>} : vector<34x512xbf16>, vector<512x512xbf16>, vector<34x512xf32> -> vector<34x512xf32>
    %151 = arith.addf %145, %150 : vector<34x512xf32>
    %c0_160 = arith.constant 0 : index
    %c0_161 = arith.constant 0 : index
    %152 = vector.load %arg9[%c0_160, %c0_161] : memref<1x512xf32, #tpu.memory_space<vmem>>, vector<1x512xf32>
    %153 = vector.broadcast %152 : vector<1x512xf32> to vector<34x512xf32>
    %154 = arith.addf %151, %153 : vector<34x512xf32>
    %cst_162 = arith.constant 0.000000e+00 : f32
    %155 = vector.broadcast %cst_162 : f32 to vector<34x512xf32>
    %156 = arith.maximumf %154, %155 : vector<34x512xf32>
    %c1_163 = arith.constant 1 : index
    %c0_164 = arith.constant 0 : index
    %157 = vector.load %arg14[%c1_163, %c0_164] : memref<36x512xf32, #tpu.memory_space<vmem>>, vector<34x512xf32>
    tpu.vector_store %arg14[%c1_163, %c0_164], %156 {strides = array<i32>} : memref<36x512xf32, #tpu.memory_space<vmem>>, vector<34x512xf32>,
    %c0_165 = arith.constant 0 : index
    %c0_166 = arith.constant 0 : index
    %158 = vector.load %arg14[%c0_165, %c0_166] : memref<36x512xf32, #tpu.memory_space<vmem>>, vector<1x512xf32>
    tpu.vector_store %arg14[%c0_165, %c0_166], %1 {strides = array<i32>} : memref<36x512xf32, #tpu.memory_space<vmem>>, vector<1x512xf32>,
    %c17_167 = arith.constant 17 : index
    %c0_168 = arith.constant 0 : index
    %159 = vector.load %arg14[%c17_167, %c0_168] : memref<36x512xf32, #tpu.memory_space<vmem>>, vector<1x512xf32>
    tpu.vector_store %arg14[%c17_167, %c0_168], %1 {strides = array<i32>} : memref<36x512xf32, #tpu.memory_space<vmem>>, vector<1x512xf32>,
    %c18_169 = arith.constant 18 : index
    %c0_170 = arith.constant 0 : index
    %160 = vector.load %arg14[%c18_169, %c0_170] : memref<36x512xf32, #tpu.memory_space<vmem>>, vector<1x512xf32>
    tpu.vector_store %arg14[%c18_169, %c0_170], %1 {strides = array<i32>} : memref<36x512xf32, #tpu.memory_space<vmem>>, vector<1x512xf32>,
    %c35_171 = arith.constant 35 : index
    %c0_172 = arith.constant 0 : index
    %161 = vector.load %arg14[%c35_171, %c0_172] : memref<36x512xf32, #tpu.memory_space<vmem>>, vector<1x512xf32>
    tpu.vector_store %arg14[%c35_171, %c0_172], %1 {strides = array<i32>} : memref<36x512xf32, #tpu.memory_space<vmem>>, vector<1x512xf32>,
    %c0_173 = arith.constant 0 : index
    %c0_174 = arith.constant 0 : index
    %162 = vector.load %arg14[%c0_173, %c0_174] : memref<36x512xf32, #tpu.memory_space<vmem>>, vector<36x512xf32>
    %cst_175 = arith.constant 0.000000e+00 : f32
    %163 = vector.broadcast %cst_175 : f32 to vector<34x512xf32>
    %164 = vector.extract_strided_slice %162 {offsets = [0, 0], sizes = [34, 512], strides = [1, 1]} : vector<36x512xf32> to vector<34x512xf32>
    %165 = arith.truncf %164 : vector<34x512xf32> to vector<34x512xbf16>
    %c0_176 = arith.constant 0 : index
    %c0_177 = arith.constant 0 : index
    %c0_178 = arith.constant 0 : index
    %166 = vector.load %arg7[%c0_176, %c0_177, %c0_178] : memref<3x512x512xbf16, #tpu.memory_space<vmem>>, vector<1x512x512xbf16>
    %167 = vector.shape_cast %166 : vector<1x512x512xbf16> to vector<512x512xbf16>
    %cst_179 = arith.constant dense<0.000000e+00> : vector<34x512xf32>
    %168 = tpu.matmul %165, %167, %cst_179 {dimension_numbers = #tpu.dot_dimension_numbers<[1], [0], [0], [1], [0, 0, 1, 1], [], []>} : vector<34x512xbf16>, vector<512x512xbf16>, vector<34x512xf32> -> vector<34x512xf32>
    %169 = arith.addf %163, %168 : vector<34x512xf32>
    %170 = vector.extract_strided_slice %162 {offsets = [1, 0], sizes = [34, 512], strides = [1, 1]} : vector<36x512xf32> to vector<34x512xf32>
    %171 = arith.truncf %170 : vector<34x512xf32> to vector<34x512xbf16>
    %c1_180 = arith.constant 1 : index
    %c0_181 = arith.constant 0 : index
    %c0_182 = arith.constant 0 : index
    %172 = vector.load %arg7[%c1_180, %c0_181, %c0_182] : memref<3x512x512xbf16, #tpu.memory_space<vmem>>, vector<1x512x512xbf16>
    %173 = vector.shape_cast %172 : vector<1x512x512xbf16> to vector<512x512xbf16>
    %cst_183 = arith.constant dense<0.000000e+00> : vector<34x512xf32>
    %174 = tpu.matmul %171, %173, %cst_183 {dimension_numbers = #tpu.dot_dimension_numbers<[1], [0], [0], [1], [0, 0, 1, 1], [], []>} : vector<34x512xbf16>, vector<512x512xbf16>, vector<34x512xf32> -> vector<34x512xf32>
    %175 = arith.addf %169, %174 : vector<34x512xf32>
    %176 = vector.extract_strided_slice %162 {offsets = [2, 0], sizes = [34, 512], strides = [1, 1]} : vector<36x512xf32> to vector<34x512xf32>
    %177 = arith.truncf %176 : vector<34x512xf32> to vector<34x512xbf16>
    %c2_184 = arith.constant 2 : index
    %c0_185 = arith.constant 0 : index
    %c0_186 = arith.constant 0 : index
    %178 = vector.load %arg7[%c2_184, %c0_185, %c0_186] : memref<3x512x512xbf16, #tpu.memory_space<vmem>>, vector<1x512x512xbf16>
    %179 = vector.shape_cast %178 : vector<1x512x512xbf16> to vector<512x512xbf16>
    %cst_187 = arith.constant dense<0.000000e+00> : vector<34x512xf32>
    %180 = tpu.matmul %177, %179, %cst_187 {dimension_numbers = #tpu.dot_dimension_numbers<[1], [0], [0], [1], [0, 0, 1, 1], [], []>} : vector<34x512xbf16>, vector<512x512xbf16>, vector<34x512xf32> -> vector<34x512xf32>
    %181 = arith.addf %175, %180 : vector<34x512xf32>
    %c0_188 = arith.constant 0 : index
    %c0_189 = arith.constant 0 : index
    %182 = vector.load %arg10[%c0_188, %c0_189] : memref<1x512xf32, #tpu.memory_space<vmem>>, vector<1x512xf32>
    %183 = vector.broadcast %182 : vector<1x512xf32> to vector<34x512xf32>
    %184 = arith.addf %181, %183 : vector<34x512xf32>
    %cst_190 = arith.constant 0.000000e+00 : f32
    %185 = vector.broadcast %cst_190 : f32 to vector<34x512xf32>
    %186 = arith.maximumf %184, %185 : vector<34x512xf32>
    %187 = vector.extract_strided_slice %186 {offsets = [0, 0], sizes = [16, 512], strides = [1, 1]} : vector<34x512xf32> to vector<16x512xf32>
    %c0_191 = arith.constant 0 : index
    %c0_192 = arith.constant 0 : index
    %c0_193 = arith.constant 0 : index
    %188 = vector.load %arg11[%c0_191, %c0_192, %c0_193] : memref<2x16x512xf32, #tpu.memory_space<vmem>>, vector<1x16x512xf32>
    %189 = vector.shape_cast %188 : vector<1x16x512xf32> to vector<16x512xf32>
    %190 = vector.shape_cast %187 : vector<16x512xf32> to vector<1x16x512xf32>
    tpu.vector_store %arg11[%c0_191, %c0_192, %c0_193], %190 {strides = array<i32>} : memref<2x16x512xf32, #tpu.memory_space<vmem>>, vector<1x16x512xf32>,
    %191 = vector.extract_strided_slice %186 {offsets = [18, 0], sizes = [16, 512], strides = [1, 1]} : vector<34x512xf32> to vector<16x512xf32>
    %c1_194 = arith.constant 1 : index
    %c0_195 = arith.constant 0 : index
    %c0_196 = arith.constant 0 : index
    %192 = vector.load %arg11[%c1_194, %c0_195, %c0_196] : memref<2x16x512xf32, #tpu.memory_space<vmem>>, vector<1x16x512xf32>
    %193 = vector.shape_cast %192 : vector<1x16x512xf32> to vector<16x512xf32>
    %194 = vector.shape_cast %191 : vector<16x512xf32> to vector<1x16x512xf32>
    tpu.vector_store %arg11[%c1_194, %c0_195, %c0_196], %194 {strides = array<i32>} : memref<2x16x512xf32, #tpu.memory_space<vmem>>, vector<1x16x512xf32>,
    return
  }
  func.func @transform_0(%arg0: i32) -> (i32, i32, i32) {
    %c0_i32 = arith.constant 0 : i32
    %c0_i32_0 = arith.constant 0 : i32
    %c0_i32_1 = arith.constant 0 : i32
    return %arg0, %c0_i32, %c0_i32_0 : i32, i32, i32
  }
  func.func @transform_1(%arg0: i32) -> (i32, i32, i32) {
    %c0_i32 = arith.constant 0 : i32
    %c0_i32_0 = arith.constant 0 : i32
    %c0_i32_1 = arith.constant 0 : i32
    return %arg0, %c0_i32, %c0_i32_0 : i32, i32, i32
  }
  func.func @transform_2(%arg0: i32) -> (i32, i32) {
    %c0_i32 = arith.constant 0 : i32
    %c0_i32_0 = arith.constant 0 : i32
    %c0_i32_1 = arith.constant 0 : i32
    return %c0_i32, %c0_i32_0 : i32, i32
  }
  func.func @transform_3(%arg0: i32) -> (i32, i32) {
    %c0_i32 = arith.constant 0 : i32
    %c0_i32_0 = arith.constant 0 : i32
    %c0_i32_1 = arith.constant 0 : i32
    return %c0_i32, %c0_i32_0 : i32, i32
  }
  func.func @transform_4(%arg0: i32) -> (i32, i32, i32) {
    %c0_i32 = arith.constant 0 : i32
    %c0_i32_0 = arith.constant 0 : i32
    %c0_i32_1 = arith.constant 0 : i32
    %c0_i32_2 = arith.constant 0 : i32
    return %c0_i32, %c0_i32_0, %c0_i32_1 : i32, i32, i32
  }
  func.func @transform_5(%arg0: i32) -> (i32, i32, i32) {
    %c0_i32 = arith.constant 0 : i32
    %c0_i32_0 = arith.constant 0 : i32
    %c0_i32_1 = arith.constant 0 : i32
    %c0_i32_2 = arith.constant 0 : i32
    return %c0_i32, %c0_i32_0, %c0_i32_1 : i32, i32, i32
  }
  func.func @transform_6(%arg0: i32) -> (i32, i32, i32) {
    %c0_i32 = arith.constant 0 : i32
    %c0_i32_0 = arith.constant 0 : i32
    %c0_i32_1 = arith.constant 0 : i32
    %c0_i32_2 = arith.constant 0 : i32
    return %c0_i32, %c0_i32_0, %c0_i32_1 : i32, i32, i32
  }
  func.func @transform_7(%arg0: i32) -> (i32, i32) {
    %c0_i32 = arith.constant 0 : i32
    %c0_i32_0 = arith.constant 0 : i32
    %c0_i32_1 = arith.constant 0 : i32
    return %c0_i32, %c0_i32_0 : i32, i32
  }
  func.func @transform_8(%arg0: i32) -> (i32, i32) {
    %c0_i32 = arith.constant 0 : i32
    %c0_i32_0 = arith.constant 0 : i32
    %c0_i32_1 = arith.constant 0 : i32
    return %c0_i32, %c0_i32_0 : i32, i32
  }
  func.func @transform_9(%arg0: i32) -> (i32, i32) {
    %c0_i32 = arith.constant 0 : i32
    %c0_i32_0 = arith.constant 0 : i32
    %c0_i32_1 = arith.constant 0 : i32
    return %c0_i32, %c0_i32_0 : i32, i32
  }
  func.func @transform_10(%arg0: i32) -> (i32, i32, i32) {
    %c0_i32 = arith.constant 0 : i32
    %c0_i32_0 = arith.constant 0 : i32
    %c0_i32_1 = arith.constant 0 : i32
    return %arg0, %c0_i32, %c0_i32_0 : i32, i32, i32
  }
}

</mosaic_0001>

<bundles_post_ra>
// kernel: stack_decoder_forward.1
= control target key start
LH: loop header
LB: loop body
LE: loop exit
PB: predicated region body
PF: predicated region fallthrough
CT: control target
= control target key end

     0   :  { %15 = vsyncpa [#allocation6], 0  ;;  %s14282_s0 = inlined_call_operand.hbm [shape: f32[2,64,8], index: 0, kind: input, shape index: {}]   ;;  %s14283_s1 = inlined_call_operand.hbm [shape: f32[2,128,16], index: 1, kind: input, shape index: {}]   ;;  %s14284_s2 = inlined_call_operand.vmem [shape: bf16[128,64], index: 2, kind: input, shape index: {}]   ;;  %s14285_s3 = inlined_call_operand.hbm [shape: bf16[8,16], index: 3, kind: input, shape index: {}]   ;;  %s14286_s4 = inlined_call_operand.hbm [shape: bf16[3,256,512], index: 4, kind: input, shape index: {}]   ;;  %s14287_s5 = inlined_call_operand.hbm [shape: bf16[3,512,512], index: 5, kind: input, shape index: {}]   ;;  %s14288_s6 = inlined_call_operand.hbm [shape: bf16[3,512,512], index: 6, kind: input, shape index: {}]   ;;  %s14289_s7 = inlined_call_operand.hbm [shape: f32[1,512], index: 7, kind: input, shape index: {}]   ;;  %s14290_s8 = inlined_call_operand.hbm [shape: f32[1,512], index: 8, kind: input, shape index: {}]   ;;  %s14291_s9 = inlined_call_operand.hbm [shape: f32[1,512], index: 9, kind: input, shape index: {}]   ;;  %s14292_s10 = inlined_call_operand.vmem [shape: f32[2,16,512], index: 10, kind: output, shape index: {}]  }
   0x1   :  { %16 = vsyncpa [#allocation8], 0 }
   0x2   :  { %17 = vsyncpa [#allocation11], 0 }
   0x3   :  { %18 = vsyncpa [#allocation14], 0 }
   0x4   :  { %19 = vsyncpa [#allocation17], 0  ;;  %s12667_s13 = smov [#allocation7]   ;;  %s12668_s15 = smov [#allocation10]  }
   0x5   :  { %s37_s14 = sshll.u32 %s12667_s13, 4  ;;  %s61_s16 = sshll.u32 %s12668_s15, 4  ;;  %s38_s14 = int_to_ptr.vmem [resolvable:$true] %s37_s14  ;;  %s62_s16 = int_to_ptr.vmem [resolvable:$true] %s61_s16 }
   0x6   :  { %s12485_s17 = scalar_lea.vmem %s38_s14, 4096  ;;  %p12490_p1 = scmp.lt.s32.totalorder %s38_s14, %s38_s14 }
   0x7   :  { %p12486_p0 = scmp.ne.s32.totalorder %s38_s14, %s12485_s17  ;;  %p12491_p2 = scmp.lt.s32.totalorder %s12485_s17, %s12485_s17 }
   0x9   :  { %p12492_p3 = por %p12491_p2, %p12490_p1 }
   0xb   :  { %p12493_p4 = pnand %p12492_p3, %p12486_p0 }
   0xd   :  { %12496 = shalt.err (!%p12493_p4)
}
   0xe   :  { %s12669_s18 = smov 128   ;;  %s12670_s19 = smov 8  }
   0xf   :  { %43 = dma.hbm_to_vmem [thread:$0]  %s14283_s1, 4096, %s38_s14, [#allocation8], %s12669_s18, %s12669_s18, %s12670_s19  }
  0x10   :  { %s12505_s22 = scalar_lea.vmem %s62_s16, 24576  ;;  %p12510_p6 = scmp.lt.s32.totalorder %s62_s16, %s62_s16 }
  0x11   :  { %p12506_p5 = scmp.ne.s32.totalorder %s62_s16, %s12505_s22  ;;  %p12511_p7 = scmp.lt.s32.totalorder %s12505_s22, %s12505_s22 }
  0x13   :  { %p12512_p8 = por %p12511_p7, %p12510_p6 }
  0x15   :  { %p12513_p9 = pnand %p12512_p8, %p12506_p5 }
  0x17   :  { %12516 = shalt.err (!%p12513_p9)
}
  0x18   :  { %s12671_s23 = smov 256   ;;  %s12672_s24 = smov 16  }
  0x19   :  { %67 = dma.hbm_to_vmem [thread:$0]  %s14286_s4, 24576, %s62_s16, [#allocation11], %s12671_s23, %s12671_s23, %s12672_s24  }
  0x1a   :  { %s12673_s27 = smov [#allocation13]   ;;  %s12674_s29 = smov [#allocation16]  }
  0x1b   :  { %s85_s28 = sshll.u32 %s12673_s27, 4  ;;  %s108_s1 = sshll.u32 %s12674_s29, 4  ;;  %s86_s28 = int_to_ptr.vmem [resolvable:$true] %s85_s28  ;;  %s109_s1 = int_to_ptr.vmem [resolvable:$true] %s108_s1 }
  0x1c   :  { %s12525_s30 = scalar_lea.vmem %s86_s28, 49152  ;;  %p12530_p11 = scmp.lt.s32.totalorder %s86_s28, %s86_s28 }
  0x1d   :  { %p12526_p10 = scmp.ne.s32.totalorder %s86_s28, %s12525_s30  ;;  %p12531_p12 = scmp.lt.s32.totalorder %s12525_s30, %s12525_s30 }
  0x1f   :  { %p12532_p13 = por %p12531_p12, %p12530_p11 }
  0x21   :  { %p12533_p0 = pnand %p12532_p13, %p12526_p10 }
  0x23   :  { %12536 = shalt.err (!%p12533_p0)
}
  0x24   :  { %91 = dma.hbm_to_vmem [thread:$0]  %s14288_s6, 49152, %s86_s28, [#allocation14], %s12671_s23, %s12671_s23, %s12672_s24  }
  0x25   :  { %s12545_s4 = scalar_lea.vmem %s109_s1, 64  ;;  %p12550_p2 = scmp.lt.s32.totalorder %s109_s1, %s109_s1 }
  0x26   :  { %p12546_p1 = scmp.ne.s32.totalorder %s109_s1, %s12545_s4  ;;  %p12551_p3 = scmp.lt.s32.totalorder %s12545_s4, %s12545_s4 }
  0x28   :  { %p12552_p4 = por %p12551_p3, %p12550_p2 }
  0x2a   :  { %p12553_p5 = pnand %p12552_p4, %p12546_p1 }
  0x2c   :  { %12556 = shalt.err (!%p12553_p5)
}
  0x2d   :  { %111 = dma.hbm_to_vmem [thread:$0]  %s14290_s8, 64, %s109_s1, [#allocation17]  }
  0x2e   :  { %s12675_s15 = smov [#allocation5]   ;;  %s12676_s17 = smov [#allocation9]  }
  0x2f   :  { %s25_s16 = sshll.u32 %s12675_s15, 4  ;;  %s52_s20 = sshll.u32 %s12676_s17, 4  ;;  %s26_s16 = int_to_ptr.vmem [resolvable:$true] %s25_s16  ;;  %s53_s20 = int_to_ptr.vmem [resolvable:$true] %s52_s20 }
  0x30   :  { %s12565_s21 = scalar_lea.vmem %s26_s16, 2048  ;;  %p12570_p7 = scmp.lt.s32.totalorder %s26_s16, %s26_s16 }
  0x31   :  { %p12566_p6 = scmp.ne.s32.totalorder %s26_s16, %s12565_s21  ;;  %p12571_p8 = scmp.lt.s32.totalorder %s12565_s21, %s12565_s21 }
  0x33   :  { %p12572_p9 = por %p12571_p8, %p12570_p7 }
  0x35   :  { %p12573_p10 = pnand %p12572_p9, %p12566_p6 }
  0x37   :  { %12576 = shalt.err (!%p12573_p10)
}
  0x38   :  { %31 = dma.hbm_to_vmem [thread:$0]  %s14282_s0, 2048, %s26_s16, [#allocation6], %s12669_s18, %s12669_s18, %s12670_s19  }
  0x39   :  { %s12585_s8 = scalar_lea.vmem %s53_s20, 64  ;;  %p12590_p12 = scmp.lt.s32.totalorder %s53_s20, %s53_s20 }
  0x3a   :  { %p12586_p11 = scmp.ne.s32.totalorder %s53_s20, %s12585_s8  ;;  %p12591_p13 = scmp.lt.s32.totalorder %s12585_s8, %s12585_s8 }
  0x3c   :  { %p12592_p0 = por %p12591_p13, %p12590_p12 }
  0x3e   :  { %p12593_p1 = pnand %p12592_p0, %p12586_p11 }
  0x40   :  { %12596 = shalt.err (!%p12593_p1)
}
  0x41   :  { %55 = dma.hbm_to_vmem [thread:$0]  %s14285_s3, 64, %s53_s20, [#allocation8]  }
  0x42   :  { %s12677_s27 = smov [#allocation12]   ;;  %s12678_s29 = smov [#allocation15]  }
  0x43   :  { %s73_s28 = sshll.u32 %s12677_s27, 4  ;;  %s98_s1 = sshll.u32 %s12678_s29, 4  ;;  %s74_s28 = int_to_ptr.vmem [resolvable:$true] %s73_s28  ;;  %s99_s1 = int_to_ptr.vmem [resolvable:$true] %s98_s1 }
  0x44   :  { %s12605_s30 = scalar_lea.vmem %s74_s28, 49152  ;;  %p12610_p3 = scmp.lt.s32.totalorder %s74_s28, %s74_s28 }
  0x45   :  { %p12606_p2 = scmp.ne.s32.totalorder %s74_s28, %s12605_s30  ;;  %p12611_p4 = scmp.lt.s32.totalorder %s12605_s30, %s12605_s30 }
  0x47   :  { %p12612_p5 = por %p12611_p4, %p12610_p3 }
  0x49   :  { %p12613_p6 = pnand %p12612_p5, %p12606_p2 }
  0x4b   :  { %12616 = shalt.err (!%p12613_p6)
}
  0x4c   :  { %79 = dma.hbm_to_vmem [thread:$0]  %s14287_s5, 49152, %s74_s28, [#allocation11], %s12671_s23, %s12671_s23, %s12672_s24  }
  0x4d   :  { %s12625_s3 = scalar_lea.vmem %s99_s1, 64  ;;  %p12630_p8 = scmp.lt.s32.totalorder %s99_s1, %s99_s1 }
  0x4e   :  { %p12626_p7 = scmp.ne.s32.totalorder %s99_s1, %s12625_s3  ;;  %p12631_p9 = scmp.lt.s32.totalorder %s12625_s3, %s12625_s3 }
  0x50   :  { %p12632_p10 = por %p12631_p9, %p12630_p8 }
  0x52   :  { %p12633_p11 = pnand %p12632_p10, %p12626_p7 }
  0x54   :  { %12636 = shalt.err (!%p12633_p11)
}
  0x55   :  { %101 = dma.hbm_to_vmem [thread:$0]  %s14289_s7, 64, %s99_s1, [#allocation14]  }
  0x56   :  { %s12679_s12 = smov [#allocation18]  }
  0x57   :  { %s118_s4 = sshll.u32 %s12679_s12, 4  ;;  %s119_s4 = int_to_ptr.vmem [resolvable:$true] %s118_s4 }
  0x58   :  { %s12645_s13 = scalar_lea.vmem %s119_s4, 64  ;;  %p12650_p13 = scmp.lt.s32.totalorder %s119_s4, %s119_s4 }
  0x59   :  { %p12646_p12 = scmp.ne.s32.totalorder %s119_s4, %s12645_s13  ;;  %p12651_p0 = scmp.lt.s32.totalorder %s12645_s13, %s12645_s13 }
  0x5b   :  { %p12652_p1 = por %p12651_p0, %p12650_p13 }
  0x5d   :  { %p12653_p2 = pnand %p12652_p1, %p12646_p12 }
  0x5f   :  { %12656 = shalt.err (!%p12653_p2)
}
  0x60   :  { %121 = dma.hbm_to_vmem [thread:$0]  %s14291_s9, 64, %s119_s4, [#allocation17]  }
  0x61   :  { %12657 = dma.done.wait [#allocation6], 2048  }
  0x62   :  { %12658 = vsyncadd [#allocation6], 4294965248 }
  0x63   :  { %12659 = dma.done.wait [#allocation8], 4160  }
  0x64   :  { %12660 = vsyncadd [#allocation8], 4294963136 }
  0x65   :  { %12661 = dma.done.wait [#allocation11], 73728  }
  0x66   :  { %12662 = vsyncadd [#allocation11], 4294893568 }
  0x67   :  { %12663 = dma.done.wait [#allocation14], 49216  }
  0x68   :  { %12664 = vsyncadd [#allocation14], 4294918080 }
  0x69   :  { %12665 = dma.done.wait [#allocation17], 128  }
  0x6a   :  { %12666 = vsyncadd [#allocation17], 4294967168  ;;  %vm191_vm0 = vcmask 1043456   ;;  %v177_v0 = vld [vmem:[#allocation9] sm:$0xf]  ;;  %v166_v5 = vld [vmem:[#allocation5 + $0x8] sm:$0xff] }
  0x6b   :  { %v756_v1 = vld [vmem:[#allocation9] sm:$0xf]  ;;  %10999 = vmatprep.subr.msk.bf16.mxu1 %vm191_vm0, %v177_v0  ;;  %v193_v3 = vsel %vm191_vm0, %v177_v0, 0  ;;  %vm178_vm1 = vcmask 64512   ;;  %v745_v7 = vld [vmem:[#allocation5 + $0x48] sm:$0xff]  ;;  %v167_v10 = vld [vmem:[#allocation5 + $0x10] sm:$0xff] }
  0x6c   :  { %v165_v2 = vld [vmem:[#allocation5] sm:$0xff]  ;;  %11000 = vmatprep.subr.msk.bf16.mxu0 %vm191_vm0, %v756_v1  ;;  %v770_v4 = vsel %vm191_vm0, %v756_v1, 0  ;;  %10932 = vmatpush3.bf16.msra.mxu1 %v193_v3  ;;  %v168_v11 = vld [vmem:[#allocation5 + $0x18] sm:$0xff]  ;;  %v746_v12 = vld [vmem:[#allocation5 + $0x50] sm:$0xff]  ;;  %vm320_vm2 = vcmask 523264   ;;  %vm14313_vm3 = vcmask 1040384  }
  0x6d   :  { %v744_v6 = vld [vmem:[#allocation5 + $0x40] sm:$0xff]  ;;  %10966 = vmatpush3.bf16.msra.mxu0 %v770_v4  ;;  %v173_v8 = vpack.c.bf16 %v166_v5, %v165_v2  ;;  %v174_v13 = vpack.c.bf16 %v168_v11, %v167_v10  ;;  %v747_v14 = vld [vmem:[#allocation5 + $0x58] sm:$0xff]  ;;  %v170_v16 = vld [vmem:[#allocation5 + $0x28] sm:$0xff]  ;;  %s12680_s16 = smov 48   ;;  %s12681_s17 = smov 32   ;;  %vm1020_vm4 = vcmask 1042432  }
  0x6e   :  { %v752_v9 = vpack.c.bf16 %v745_v7, %v744_v6  ;;  %v169_v15 = vld [vmem:[#allocation5 + $0x20] sm:$0xff]  ;;  %v753_v17 = vpack.c.bf16 %v747_v14, %v746_v12  ;;  %v749_v20 = vld [vmem:[#allocation5 + $0x68] sm:$0xff]  ;;  %v171_v21 = vld [vmem:[#allocation5 + $0x30] sm:$0xff]  ;;  %s12682_s20 = smov 64   ;;  %s12683_s21 = smov 80   ;;  %vm14300_vm5 = vcmask 261249  }
  0x6f   :  { %10933 = vmatprep.mubr.msk.bf16.mxu1 %vm178_vm1, %v173_v8  ;;  %v175_v18 = vpack.c.bf16 %v170_v16, %v169_v15  ;;  %v748_v19 = vld [vmem:[#allocation5 + $0x60] sm:$0xff]  ;;  %v172_v23 = vld [vmem:[#allocation5 + $0x38] sm:$0xff]  ;;  %v750_v24 = vld [vmem:[#allocation5 + $0x70] sm:$0xff]  ;;  %s12684_s6 = smov 96   ;;  %s12685_s22 = smov 112   ;;  %vm451_vm6 = vcmask 130049  }
  0x70   :  { %10967 = vmatprep.mubr.msk.bf16.mxu0 %vm178_vm1, %v752_v9  ;;  %10934 = vmatmul.mubr.msk.bf16.vlgmr.msra.gmra.mxu1 %vm178_vm1, %v174_v13  ;;  %v754_v22 = vpack.c.bf16 %v749_v20, %v748_v19  ;;  %v751_v25 = vld [vmem:[#allocation5 + $0x78] sm:$0xff]  ;;  %v176_v26 = vpack.c.bf16 %v172_v23, %v171_v21  ;;  %v11021_v28 = vld [vmem:[%s14284_s2] sm:$0xff]   ;;  %v629_v31 = vld [vmem:[#allocation7 + $0x20] sm:$0xff]  ;;  %vm14293_vm7 = vcmask 392449   ;;  %vm455_vm8 = vcmask 122880  }
  0x71   :  { %10968 = vmatmul.mubr.msk.bf16.vlgmr.msra.gmra.mxu0 %vm178_vm1, %v753_v17  ;;  %10937 = vmatprep.mubr.msk.bf16.mxu1 %vm178_vm1, %v175_v18  ;;  %v755_v27 = vpack.c.bf16 %v751_v25, %v750_v24  ;;  %v11022_v29 = vld [vmem:[%s14284_s2] sm:$0xff]   ;;  %v611_v33 = vld [vmem:[#allocation7 + $0x18] sm:$0xff]  ;;  %v630_v36 = vld [vmem:[#allocation7 + $0x28] sm:$0xff]  ;;  %v633_v37 = vrot.slane %v629_v31, 7  ;;  %vm14299_vm9 = vcmask 261248   ;;  %vm453_vm10 = vcmask 130048  }
  0x72   :  { %10971 = vmatprep.mubr.msk.bf16.mxu0 %vm178_vm1, %v754_v22  ;;  %v610_v30 = vld [vmem:[#allocation7 + $0x10] sm:$0xff]  ;;  %v634_v38 = vrot.slane %v630_v36, 7  ;;  %v615_v39 = vrot.slane %v611_v33, 7  ;;  %v649_v43 = vld [vmem:[#allocation7 + $0x38] sm:$0xff]  ;;  %v667_v45 = vld [vmem:[#allocation7 + $0x40] sm:$0xff]  ;;  %vm14295_vm11 = vcmask 254080  }
  0x73   :  { %v614_v32 = vrot.slane %v610_v30, 7  ;;  %v648_v34 = vld [vmem:[#allocation7 + $0x30] sm:$0xff]  ;;  %v12807_v46 = vld [vmem:[#allocation7 + $0x98] sm:$0xff]  ;;  %v653_v47 = vrot.slane %v649_v43, 7  ;;  %v1198_v48 = vld [vmem:[#allocation7 + $0xa0] sm:$0xff]  ;;  %v671_v49 = vrot.slane %v667_v45, 7 }
  0x74   :  { %v652_v35 = vrot.slane %v648_v34, 7  ;;  %v635_v40 = vsel %vm14313_vm3, %v633_v37, %v634_v38  ;;  %v1179_v41 = vld [vmem:[#allocation7 + $0x90] sm:$0xff]  ;;  %v1184_v51 = vrot.slane %v12807_v46, 5  ;;  %v1202_v53 = vrot.slane %v1198_v48, 5  ;;  %v668_v54 = vld [vmem:[#allocation7 + $0x48] sm:$0xff]  ;;  %v705_v60 = vld [vmem:[#allocation7 + $0x60] sm:$0xff] }
  0x75   :  { %617 = vrot.lane.b32.xlu0 %v614_v32, %s12672_s24  ;;  %v616_v42 = vsel %vm14313_vm3, %v614_v32, %v615_v39  ;;  %v1183_v44 = vrot.slane %v1179_v41, 5  ;;  %v686_v52 = vld [vmem:[#allocation7 + $0x50] sm:$0xff]  ;;  %v12820_v58 = vld [vmem:[#allocation7 + $0xa8] sm:$0xff]  ;;  %v672_v59 = vrot.slane %v668_v54, 7  ;;  %v1236_v0 = vld [vmem:[#allocation7 + $0xc0] sm:$0xff]  ;;  %v709_v1 = vrot.slane %v705_v60, 7 }
  0x76   :  { %655 = vrot.lane.b32.xlu1 %v652_v35, %s12680_s16  ;;  %v654_v50 = vsel %vm14313_vm3, %v652_v35, %v653_v47  ;;  %v1217_v56 = vld [vmem:[#allocation7 + $0xb0] sm:$0xff]  ;;  %v690_v57 = vrot.slane %v686_v52, 7  ;;  %v1203_v63 = vrot.slane %v12820_v58, 5  ;;  %v687_v2 = vld [vmem:[#allocation7 + $0x58] sm:$0xff]  ;;  %v1240_v5 = vrot.slane %v1236_v0, 5  ;;  %v1274_v12 = vld [vmem:[#allocation7 + $0xe0] sm:$0xff] }
  0x77   :  { %v1185_v55 = vsel %vm1020_vm4, %v1183_v44, %v1184_v51  ;;  %v1221_v61 = vrot.slane %v1217_v56, 5  ;;  %v673_v62 = vsel %vm14313_vm3, %v671_v49, %v672_v59  ;;  %v724_v4 = vld [vmem:[#allocation7 + $0x70] sm:$0xff]  ;;  %v12833_v6 = vld [vmem:[#allocation7 + $0xb8] sm:$0xff]  ;;  %v691_v7 = vrot.slane %v687_v2, 7  ;;  %v706_v14 = vld [vmem:[#allocation7 + $0x68] sm:$0xff] }
  0x78   :  { %10938 = vmatmul.mubr.msk.bf16.gmra.mxu1 %vm178_vm1, %v176_v26  ;;  %v1204_v3 = vsel %vm1020_vm4, %v1202_v53, %v1203_v63  ;;  %v1255_v8 = vld [vmem:[#allocation7 + $0xd0] sm:$0xff]  ;;  %v728_v9 = vrot.slane %v724_v4, 7  ;;  %v1222_v11 = vrot.slane %v12833_v6, 5  ;;  %v1278_v17 = vrot.slane %v1274_v12, 5  ;;  %v12846_v18 = vld [vmem:[#allocation7 + $0xc8] sm:$0xff]  ;;  %v725_v23 = vld [vmem:[#allocation7 + $0x78] sm:$0xff] }
  0x79   :  { %10972 = vmatmul.mubr.msk.bf16.gmra.mxu0 %vm178_vm1, %v755_v27  ;;  %10949 = vmatprep.mubr.msk.bf16.mxu1 %vm320_vm2, %v11021_v28  ;;  %v692_v10 = vsel %vm14313_vm3, %v690_v57, %v691_v7  ;;  %v1259_v13 = vrot.slane %v1255_v8, 5  ;;  %v1293_v15 = vld [vmem:[#allocation7 + $0xf0] sm:$0xff]  ;;  %v710_v19 = vrot.slane %v706_v14, 7  ;;  %v1241_v22 = vrot.slane %v12846_v18, 5  ;;  %v12858_v25 = vld [vmem:[#allocation7 + $0xd8] sm:$0xff]  ;;  %v11025_v2 = vld [vmem:[%s14284_s2 + $0x10] sm:$0xff]  }
  0x7a   :  { %10983 = vmatprep.mubr.msk.bf16.mxu0 %vm320_vm2, %v11022_v29  ;;  %636 = vrot.lane.b32.xlu0 %v633_v37, %s12681_s17  ;;  %v1223_v16 = vsel %vm1020_vm4, %v1221_v61, %v1222_v11  ;;  %v1297_v20 = vrot.slane %v1293_v15, 5  ;;  %v729_v26 = vrot.slane %v725_v23, 7  ;;  %v1260_v28 = vrot.slane %v12858_v25, 5  ;;  %v12864_v29 = vld [vmem:[#allocation7 + $0xe8] sm:$0xff]  ;;  %v12872_v36 = vld [vmem:[#allocation7 + $0xf8] sm:$0xff]  ;;  %v11031_v8 = vld [vmem:[%s14284_s2 + $0x20] sm:$0xff]  }
  0x7b   :  { %638 = vrot.lane.b32.xlu1 %v635_v40, %s12681_s17  ;;  %v711_v21 = vsel %vm14313_vm3, %v709_v1, %v710_v19  ;;  %v1242_v24 = vsel %vm1020_vm4, %v1240_v5, %v1241_v22  ;;  %v1279_v32 = vrot.slane %v12864_v29, 5  ;;  %v1298_v43 = vrot.slane %v12872_v36, 5  ;;  %v11023_v0 = vld [vmem:[%s14284_s2 + $0x8] sm:$0xff]   ;;  %v11026_v4 = vld [vmem:[%s14284_s2 + $0x18] sm:$0xff]   ;;  %v11033_v12 = vld [vmem:[%s14284_s2 + $0x30] sm:$0xff]  }
  0x7c   :  { %v730_v27 = vsel %vm14313_vm3, %v728_v9, %v729_v26  ;;  %v1261_v30 = vsel %vm1020_vm4, %v1259_v13, %v1260_v28  ;;  %v11034_v14 = vld [vmem:[%s14284_s2 + $0x38] sm:$0xff]   ;;  %vm1027_vm12 = vcmask 130051   ;;  %vm1030_vm13 = vcmask 124928   ;;  %v11121_v18 = vld [vmem:[#allocation10 + $0x320] ss:$16 sps:$4 sm:$0xff]  }
  0x7d   :  { %v11036_v15 = vld [vmem:[%s14284_s2 + $0x38] sm:$0xff]   ;;  %vm14294_vm14 = vcmask 385280   ;;  %vm14298_vm15 = vcmask 392448   ;;  %vm14297_vm0 = vcmask 523649   ;;  %vm14296_vm1 = vcmask 516480  }
  0x7e   :  { %619 = vrot.lane.b32.xlu0 %v616_v42, %s12672_s24  ;;  %v598_v23 = vld [vmem:[#allocation7 + $0x8] sm:$0xff] }
  0x7f   :  { %1186 = vrot.lane.b32.xlu1 %v1183_v44, %s12672_s24  ;;  %v11105_v46 = vld [vmem:[#allocation10 + $0x384] ss:$16 sps:$4 sm:$0xff]  }
  0x80   :  { %v11111_v58 = vld [vmem:[#allocation10 + $0x364] ss:$16 sps:$4 sm:$0xff]  }
  0x82   :  { %621 = vrot.lane.b32.xlu0 %v615_v39, %s12672_s24 }
  0x83   :  { %674 = vrot.lane.b32.xlu1 %v671_v49, %s12682_s20  ;;  %v1299_v49 = vsel %vm1020_vm4, %v1297_v20, %v1298_v43 }
  0x86   :  { %657 = vrot.lane.b32.xlu0 %v654_v50, %s12680_s16 }
  0x87   :  { %1205 = vrot.lane.b32.xlu1 %v1202_v53, %s12681_s17 }
  0x8a   :  { %1188 = vrot.lane.b32.xlu0 %v1185_v55, %s12672_s24 }
  0x8b   :  { %693 = vrot.lane.b32.xlu1 %v690_v57, %s12683_s21 }
  0x8e   :  { %640 = vrot.lane.b32.xlu0 %v634_v38, %s12681_s17  ;;  %v1280_v38 = vsel %vm1020_vm4, %v1278_v17, %v1279_v32 }
  0x8f   :  { %1224 = vrot.lane.b32.xlu1 %v1221_v61, %s12680_s16 }
  0x92   :  { %676 = vrot.lane.b32.xlu0 %v673_v62, %s12682_s20 }
  0x93   :  { %712 = vrot.lane.b32.xlu1 %v709_v1, %s12684_s6  ;;  %v11024_v1 = vld [vmem:[%s14284_s2 + $0x8] sm:$0xff]  }
  0x96   :  { %1207 = vrot.lane.b32.xlu0 %v1204_v3, %s12681_s17  ;;  %v11027_v3 = vld [vmem:[%s14284_s2 + $0x10] sm:$0xff]  }
  0x97   :  { %1243 = vrot.lane.b32.xlu1 %v1240_v5, %s12682_s20  ;;  %v11028_v5 = vld [vmem:[%s14284_s2 + $0x18] sm:$0xff]  }
  0x9a   :  { %659 = vrot.lane.b32.xlu0 %v653_v47, %s12680_s16 }
  0x9b   :  { %731 = vrot.lane.b32.xlu1 %v728_v9, %s12685_s22  ;;  %v11030_v9 = vld [vmem:[%s14284_s2 + $0x28] sm:$0xff]  }
  0x9e   :  { %695 = vrot.lane.b32.xlu0 %v692_v10, %s12683_s21  ;;  %v11032_v10 = vld [vmem:[%s14284_s2 + $0x28] sm:$0xff]  }
  0x9f   :  { %1262 = vrot.lane.b32.xlu1 %v1259_v13, %s12683_s21  ;;  %v11035_v13 = vld [vmem:[%s14284_s2 + $0x30] sm:$0xff]  }
  0xa2   :  { %1226 = vrot.lane.b32.xlu0 %v1223_v16, %s12680_s16 }
  0xa3   :  { %1281 = vrot.lane.b32.xlu1 %v1278_v17, %s12684_s6  ;;  %v597_v17 = vld [vmem:[#allocation7] sm:$0xff] }
  0xa6   :  { %678 = vrot.lane.b32.xlu0 %v672_v59, %s12682_s20 }
  0xa7   :  { %1300 = vrot.lane.b32.xlu1 %v1297_v20, %s12685_s22 }
  0xaa   :  { %714 = vrot.lane.b32.xlu0 %v711_v21, %s12684_s6 }
  0xae   :  { %1245 = vrot.lane.b32.xlu0 %v1242_v24, %s12682_s20  ;;  %v602_v24 = vrot.slane %v598_v23, 7 }
  0xb0   :  { %609 = vst.msk [vmem:[#allocation2 + $0x28] sm:$0x1] %vm455_vm8, %v602_v24 }
  0xb2   :  { %697 = vrot.lane.b32.xlu0 %v691_v7, %s12683_s21  ;;  %v11029_v7 = vld [vmem:[%s14284_s2 + $0x20] sm:$0xff]  }
  0xb6   :  { %733 = vrot.lane.b32.xlu0 %v730_v27, %s12685_s22 }
  0xba   :  { %1264 = vrot.lane.b32.xlu0 %v1261_v30, %s12683_s21 }
  0xbe   :  { %716 = vrot.lane.b32.xlu0 %v710_v19, %s12684_s6  ;;  %v601_v19 = vrot.slane %v597_v17, 7 }
  0xc0   :  { %607 = vst.msk [vmem:[#allocation2 + $0x8] sm:$0xfe] %vm451_vm6, %v601_v19 }
  0xc2   :  { %1283 = vrot.lane.b32.xlu0 %v1280_v38, %s12684_s6 }
  0xc6   :  { %735 = vrot.lane.b32.xlu0 %v729_v26, %s12685_s22  ;;  %v603_v26 = vsel %vm14313_vm3, %v601_v19, %v602_v24 }
  0xc7   :  { %608 = vst.msk [vmem:[#allocation2 + $0x18] sm:$0xff] %vm453_vm10, %v603_v26 }
  0xca   :  { %1302 = vrot.lane.b32.xlu0 %v1299_v49, %s12685_s22 }
  0xe7   :  { %v618_v16 = vpop.permute.xlu0 %617 }
  0xe8   :  { %626 = vst.msk [vmem:[#allocation2 + $0x8] sm:$0xfe] %vm14300_vm5, %v618_v16  ;;  %vm14307_vm5 = vcmask 786049  }
  0xec   :  { %v637_v20 = vpop.permute.xlu0 %636 }
  0xed   :  { %645 = vst.msk [vmem:[#allocation2 + $0x8] sm:$0xfe] %vm14293_vm7, %v637_v20  ;;  %vm14306_vm7 = vcmask 654848  }
  0xf0   :  { %v620_v21 = vpop.permute.xlu0 %619 }
  0xf1   :  { %627 = vst.msk [vmem:[#allocation2 + $0x18] sm:$0xff] %vm14299_vm9, %v620_v21 }
  0xf4   :  { %v622_v27 = vpop.permute.xlu0 %621 }
  0xf5   :  { %628 = vst.msk [vmem:[#allocation2 + $0x28] sm:$0x1] %vm14295_vm11, %v622_v27  ;;  %vm14305_vm11 = vcmask 261251  }
  0xf8   :  { %v658_v30 = vpop.permute.xlu0 %657 }
 0x130   :  { %v10935_v31 = vpop.f32.mrf.mxu1 }
 0x131   :  { %v10969_v33 = vpop.f32.mrf.mxu0 }
 0x132   :  { %v229_v34 = vpop.f32.mrf.mxu1 }
 0x133   :  { %v806_v35 = vpop.f32.mrf.mxu0 }
 0x134   :  { %v10936_v37 = vpop.f32.mrf.mxu1 }
 0x135   :  { %v10970_v39 = vpop.f32.mrf.mxu0  ;;  %v277_v59 = vpack.c.bf16 %v10936_v37, %v10935_v31  ;;  %v1166_v31 = vld [vmem:[#allocation7 + $0x80] sm:$0xff] }
 0x136   :  { %v232_v40 = vpop.f32.mrf.mxu1  ;;  %v854_v60 = vpack.c.bf16 %v10970_v39, %v10969_v33  ;;  %v1167_v33 = vld [vmem:[#allocation7 + $0x88] sm:$0xff] }
 0x137   :  { %v809_v41 = vpop.f32.mrf.mxu0  ;;  %v276_v61 = vpack.c.bf16 %v232_v40, %v229_v34  ;;  %v1189_v34 = vpop.permute.xlu0 %1188  ;;  %v1171_v37 = vrot.slane %v1167_v33, 5 }
 0x138   :  { %v10939_v42 = vpop.f32.mrf.mxu1  ;;  %v853_v62 = vpack.c.bf16 %v809_v41, %v806_v35  ;;  %v1170_v35 = vrot.slane %v1166_v31, 5 }
 0x139   :  { %v10973_v44 = vpop.f32.mrf.mxu0  ;;  %1178 = vst.msk [vmem:[#allocation2 + $0x48] sm:$0x7] %vm1030_vm13, %v1171_v37 }
 0x13a   :  { %v245_v45 = vpop.f32.mrf.mxu1  ;;  %v1172_v38 = vsel %vm1020_vm4, %v1170_v35, %v1171_v37  ;;  %1176 = vst.msk [vmem:[#allocation2 + $0x28] sm:$0xf8] %vm1027_vm12, %v1170_v35 }
 0x13b   :  { %v822_v47 = vpop.f32.mrf.mxu0  ;;  %1177 = vst.msk [vmem:[#allocation2 + $0x38] sm:$0xff] %vm453_vm10, %v1172_v38  ;;  %v641_v39 = vpop.permute.xlu0 %640 }
 0x13c   :  { %v10940_v48 = vpop.f32.mrf.mxu1  ;;  %1196 = vst.msk [vmem:[#allocation2 + $0x38] sm:$0xff] %vm14299_vm9, %v1189_v34  ;;  %vm573_vm9 = vcmask 917248  }
 0x13d   :  { %v279_v50 = vpack.c.bf16 %v10940_v48, %v10939_v42  ;;  %v10974_v52 = vpop.f32.mrf.mxu0  ;;  %647 = vst.msk [vmem:[#allocation2 + $0x28] sm:$0x1] %vm14294_vm14, %v641_v39  ;;  %v656_v42 = vpop.permute.xlu1 %655  ;;  %vm553_vm14 = vcmask 786048  }
 0x13e   :  { %v856_v53 = vpack.c.bf16 %v10974_v52, %v10973_v44  ;;  %v248_v54 = vpop.f32.mrf.mxu1  ;;  %664 = vst.msk [vmem:[#allocation2 + $0x8] sm:$0xfe] %vm14297_vm0, %v656_v42  ;;  %vm14303_vm0 = vcmask 647680  }
 0x13f   :  { %v278_v55 = vpack.c.bf16 %v248_v54, %v245_v45  ;;  %v825_v56 = vpop.f32.mrf.mxu0  ;;  %10941 = vmatprep.subr.bf16.mxu1 %v279_v50  ;;  %v677_v40 = vpop.permute.xlu0 %676 }
 0x140   :  { %v855_v57 = vpack.c.bf16 %v825_v56, %v822_v47  ;;  %10975 = vmatprep.subr.bf16.mxu0 %v856_v53  ;;  %10942 = vmatpush3.bf16.msra.mxu1 %v279_v50 }
 0x141   :  { %10976 = vmatpush3.bf16.msra.mxu0 %v856_v53  ;;  %10943 = vmatprep.subr.bf16.mxu1 %v278_v55  ;;  %v639_v45 = vpop.permute.xlu1 %638 }
 0x142   :  { %10977 = vmatprep.subr.bf16.mxu0 %v855_v57  ;;  %646 = vst.msk [vmem:[#allocation2 + $0x18] sm:$0xff] %vm14298_vm15, %v639_v45 }
 0x143   :  { %v1208_v41 = vpop.permute.xlu0 %1207 }
 0x144   :  { %10944 = vmatpush3.bf16.msra.mxu1 %v278_v55  ;;  %1215 = vst.msk [vmem:[#allocation2 + $0x38] sm:$0xff] %vm14298_vm15, %v1208_v41  ;;  %vm14304_vm15 = vcmask 392451  }
 0x145   :  { %10978 = vmatpush3.bf16.msra.mxu0 %v855_v57  ;;  %10945 = vmatprep.subr.bf16.mxu1 %v277_v59  ;;  %v1187_v48 = vpop.permute.xlu1 %1186 }
 0x146   :  { %10979 = vmatprep.subr.bf16.mxu0 %v854_v60  ;;  %1195 = vst.msk [vmem:[#allocation2 + $0x28] sm:$0xf8] %vm14305_vm11, %v1187_v48  ;;  %vm14311_vm11 = vcmask 654851  }
 0x147   :  { %v660_v44 = vpop.permute.xlu0 %659 }
 0x148   :  { %10946 = vmatpush3.bf16.msra.mxu1 %v277_v59  ;;  %666 = vst.msk [vmem:[#allocation2 + $0x28] sm:$0x1] %vm14296_vm1, %v660_v44  ;;  %vm14302_vm1 = vcmask 654849  }
 0x149   :  { %10980 = vmatpush3.bf16.msra.mxu0 %v854_v60  ;;  %10947 = vmatprep.subr.bf16.mxu1 %v276_v61  ;;  %v675_v50 = vpop.permute.xlu1 %674 }
 0x14a   :  { %10981 = vmatprep.subr.bf16.mxu0 %v853_v62  ;;  %683 = vst.msk [vmem:[#allocation2 + $0x8] sm:$0xfe] %vm14302_vm1, %v675_v50  ;;  %vm14308_vm1 = vcmask 778880  }
 0x14b   :  { %v696_v47 = vpop.permute.xlu0 %695 }
 0x14c   :  { %10948 = vmatpush3.bf16.msra.mxu1 %v276_v61 }
 0x14d   :  { %10982 = vmatpush3.bf16.msra.mxu0 %v853_v62  ;;  %v1206_v53 = vpop.permute.xlu1 %1205 }
 0x14e   :  { %1214 = vst.msk [vmem:[#allocation2 + $0x28] sm:$0xf8] %vm14304_vm15, %v1206_v53  ;;  %vm593_vm15 = vcmask 1048448  }
 0x14f   :  { %10950 = vmatmul.mubr.msk.bf16.vlgmr.msra.gmra.mxu1 %vm320_vm2, %v11023_v0  ;;  %v1227_v49 = vpop.permute.xlu0 %1226 }
 0x150   :  { %10984 = vmatmul.mubr.msk.bf16.vlgmr.msra.gmra.mxu0 %vm320_vm2, %v11024_v1  ;;  %10953 = vmatprep.mubr.msk.bf16.mxu1 %vm320_vm2, %v11025_v2 }
 0x151   :  { %10987 = vmatprep.mubr.msk.bf16.mxu0 %vm320_vm2, %v11027_v3  ;;  %v694_v55 = vpop.permute.xlu1 %693 }
 0x152   :  { %702 = vst.msk [vmem:[#allocation2 + $0x8] sm:$0xfe] %vm14307_vm5, %v694_v55  ;;  %vm575_vm5 = vcmask 910080  }
 0x153   :  { %v679_v52 = vpop.permute.xlu0 %678 }
 0x154   :  { %685 = vst.msk [vmem:[#allocation2 + $0x28] sm:$0x1] %vm14303_vm0, %v679_v52  ;;  %vm14309_vm0 = vcmask 917249  }
 0x155   :  { %v1225_v57 = vpop.permute.xlu1 %1224 }
 0x157   :  { %10954 = vmatmul.mubr.msk.bf16.gmra.mxu1 %vm320_vm2, %v11026_v4  ;;  %v715_v54 = vpop.permute.xlu0 %714 }
 0x158   :  { %10988 = vmatmul.mubr.msk.bf16.gmra.mxu0 %vm320_vm2, %v11028_v5  ;;  %10957 = vmatprep.mubr.msk.bf16.mxu1 %vm320_vm2, %v11029_v7 }
 0x159   :  { %10991 = vmatprep.mubr.msk.bf16.mxu0 %vm320_vm2, %v11031_v8  ;;  %v713_v60 = vpop.permute.xlu1 %712  ;;  %v150_v8 = vlaneseq }
 0x15a   :  { %721 = vst.msk [vmem:[#allocation2 + $0x8] sm:$0xfe] %vm14309_vm0, %v713_v60  ;;  %vm1141_vm0 = vcmask 917251  }
 0x15b   :  { %v1246_v56 = vpop.permute.xlu0 %1245 }
 0x15d   :  { %v1244_v62 = vpop.permute.xlu1 %1243 }
 0x15f   :  { %10958 = vmatmul.mubr.msk.bf16.gmra.mxu1 %vm320_vm2, %v11030_v9  ;;  %v698_v59 = vpop.permute.xlu0 %697 }
 0x160   :  { %10992 = vmatmul.mubr.msk.bf16.gmra.mxu0 %vm320_vm2, %v11032_v10  ;;  %10961 = vmatprep.mubr.msk.bf16.mxu1 %vm320_vm2, %v11033_v12  ;;  %704 = vst.msk [vmem:[#allocation2 + $0x28] sm:$0x1] %vm14308_vm1, %v698_v59  ;;  %vm1122_vm1 = vcmask 786051   ;;  %v12686_v12 = vmov 0.0  }
 0x161   :  { %10995 = vmatprep.mubr.msk.bf16.mxu0 %vm320_vm2, %v11035_v13  ;;  %v732_v1 = vpop.permute.xlu1 %731 }
 0x163   :  { %v734_v61 = vpop.permute.xlu0 %733 }
 0x165   :  { %v1263_v3 = vpop.permute.xlu1 %1262 }
 0x167   :  { %10962 = vmatmul.mubr.msk.bf16.gmra.mxu1 %vm320_vm2, %v11034_v14  ;;  %v1265_v0 = vpop.permute.xlu0 %1264 }
 0x168   :  { %10996 = vmatmul.mubr.msk.bf16.gmra.mxu0 %vm320_vm2, %v11036_v15  ;;  %vm14301_vm2 = vcmask 523648  }
 0x169   :  { %665 = vst.msk [vmem:[#allocation2 + $0x18] sm:$0xff] %vm14301_vm2, %v658_v30  ;;  %1234 = vst.msk [vmem:[#allocation2 + $0x38] sm:$0xff] %vm14301_vm2, %v1227_v49  ;;  %vm14310_vm2 = vcmask 523651   ;;  %v1282_v5 = vpop.permute.xlu1 %1281 }
 0x16a   :  { %684 = vst.msk [vmem:[#allocation2 + $0x18] sm:$0xff] %vm14306_vm7, %v677_v40  ;;  %1253 = vst.msk [vmem:[#allocation2 + $0x38] sm:$0xff] %vm14306_vm7, %v1246_v56  ;;  %vm14312_vm7 = vcmask 1048449  }
 0x16b   :  { %703 = vst.msk [vmem:[#allocation2 + $0x18] sm:$0xff] %vm553_vm14, %v696_v47  ;;  %1272 = vst.msk [vmem:[#allocation2 + $0x38] sm:$0xff] %vm553_vm14, %v1265_v0  ;;  %v717_v2 = vpop.permute.xlu0 %716 }
 0x16c   :  { %722 = vst.msk [vmem:[#allocation2 + $0x18] sm:$0xff] %vm573_vm9, %v715_v54 }
 0x16d   :  { %1233 = vst.msk [vmem:[#allocation2 + $0x28] sm:$0xf8] %vm14310_vm2, %v1225_v57  ;;  %vm595_vm2 = vcmask 1041280   ;;  %v1301_v9 = vpop.permute.xlu1 %1300 }
 0x16e   :  { %741 = vst.msk [vmem:[#allocation2 + $0x18] sm:$0xff] %vm593_vm15, %v734_v61 }
 0x16f   :  { %1252 = vst.msk [vmem:[#allocation2 + $0x28] sm:$0xf8] %vm14311_vm11, %v1244_v62  ;;  %v1284_v4 = vpop.permute.xlu0 %1283  ;;  %vm1160_vm11 = vcmask 1048451  }
 0x170   :  { %740 = vst.msk [vmem:[#allocation2 + $0x8] sm:$0xfe] %vm14312_vm7, %v732_v1  ;;  %vm152_vm7 = vcmp.lt.s32.totalorder %v150_v8, 256 }
 0x171   :  { %723 = vst.msk [vmem:[#allocation2 + $0x28] sm:$0x1] %vm575_vm5, %v717_v2 }
 0x172   :  { %1271 = vst.msk [vmem:[#allocation2 + $0x28] sm:$0xf8] %vm1122_vm1, %v1263_v3 }
 0x173   :  { %1291 = vst.msk [vmem:[#allocation2 + $0x38] sm:$0xff] %vm573_vm9, %v1284_v4  ;;  %v736_v7 = vpop.permute.xlu0 %735 }
 0x174   :  { %1290 = vst.msk [vmem:[#allocation2 + $0x28] sm:$0xf8] %vm1141_vm0, %v1282_v5 }
 0x175   :  { %742 = vst.msk [vmem:[#allocation2 + $0x28] sm:$0x1] %vm595_vm2, %v736_v7  ;;  %v1315_v14 = vld [vmem:[#allocation2 + $0x18] sm:$0xff] }
 0x176   :  { %154 = vst.msk [vmem:[#allocation2] ss:$8 sm:$0x3] %vm152_vm7, %v12686_v12  ;;  %157 = vst.msk [vmem:[#allocation2 + $0x21] ss:$8 sm:$0x3] %vm152_vm7, %v12686_v12 }
 0x177   :  { %v1303_v10 = vpop.permute.xlu0 %1302  ;;  %160 = vst.msk [vmem:[#allocation2 + $0x22] ss:$8 sm:$0x3] %vm152_vm7, %v12686_v12  ;;  %163 = vst.msk [vmem:[#allocation2 + $0x43] ss:$8 sm:$0x3] %vm152_vm7, %v12686_v12 }
 0x178   :  { %1309 = vst.msk [vmem:[#allocation2 + $0x28] sm:$0xf8] %vm1160_vm11, %v1301_v9  ;;  %vm14314_vm7 = vsmask.f32 7424 }
 0x179   :  { %1310 = vst.msk [vmem:[#allocation2 + $0x38] sm:$0xff] %vm593_vm15, %v1303_v10 }
 0x17d   :  { %v1313_v13 = vld [vmem:[#allocation2 + $0x8] sm:$0xff] }
 0x17e   :  { %v12988_v15 = vpack.c.bf16 %v1315_v14, %v1313_v13 }
 0x17f   :  { %v1317_v16 = vld [vmem:[#allocation2 + $0x28] sm:$0xff] }
 0x180   :  { %v1319_v17 = vld [vmem:[#allocation2 + $0x38] sm:$0xff]  ;;  %v1473_v20 = vshll.u32 %v12988_v15, 16  ;;  %v1471_v21 = vshrl.u32 %v12988_v15, 16 }
 0x181   :  { %v12990_v19 = vpack.c.bf16 %v1319_v17, %v1317_v16  ;;  %v11037_v17 = vld [vmem:[#allocation10 + $0x2e0] ss:$16 sps:$4 sm:$0xff]  }
 0x182   :  { %v1475_v23 = vrot.slane %v1473_v20, 1  ;;  %v11039_v20 = vld [vmem:[#allocation10 + $0x2e4] ss:$16 sps:$4 sm:$0xff]  }
 0x183   :  { %v1478_v24 = vshll.u32 %v12990_v19, 16  ;;  %1830 = vmatprep.subr.bf16.mxu1 %v11039_v20 }
 0x184   :  { %v1476_v26 = vor.u32 %v1475_v23, %v1471_v21  ;;  %v11040_v23 = vld [vmem:[#allocation10 + $0x2e8] ss:$16 sps:$4 sm:$0xff]   ;;  %1831 = vmatpush1.bf16.msra.mxu1 %v11037_v17 }
 0x185   :  { %v12995_v27 = vrot.slane %v1478_v24, 1  ;;  %v11042_v24 = vld [vmem:[#allocation10 + $0x2ec] ss:$16 sps:$4 sm:$0xff]  }
 0x186   :  { %1891 = vmatprep.subr.bf16.mxu0 %v11042_v24  ;;  %v11061_v24 = vld [vmem:[#allocation10 + $0x260] ss:$16 sps:$4 sm:$0xff]  }
 0x187   :  { %v1481_v30 = vsel %vm14314_vm7, %v1476_v26, %v12995_v27  ;;  %1892 = vmatpush1.bf16.msra.mxu0 %v11040_v23  ;;  %v11066_v23 = vld [vmem:[#allocation10 + $0x26c] ss:$16 sps:$4 sm:$0xff]   ;;  %vm14329_vm7 = vcmask 516480  }
 0x188   :  { %1862 = vmatprep.mubr.bf16.mxu1 %v1481_v30  ;;  %1923 = vmatprep.mubr.bf16.mxu0 %v1481_v30 }
 0x20f   :  { %v10951_v31 = vpop.f32.mrf.mxu1 }
 0x210   :  { %v459_v33 = vrot.slane %v10951_v31, 7  ;;  %v10985_v34 = vpop.f32.mrf.mxu0 }
 0x211   :  { %v379_v35 = vpop.f32.mrf.mxu1  ;;  %v1034_v37 = vrot.slane %v10985_v34, 5  ;;  %v11045_v34 = vld [vmem:[#allocation10 + $0x2c4] ss:$16 sps:$4 sm:$0xff]  }
 0x212   :  { %v445_v38 = vrot.slane %v379_v35, 7  ;;  %v955_v39 = vpop.f32.mrf.mxu0  ;;  %462 = vrot.lane.b32.xlu1 %v459_v33, %s12672_s24  ;;  %v11048_v35 = vld [vmem:[#allocation10 + $0x2cc] ss:$16 sps:$4 sm:$0xff]   ;;  %1832 = vmatprep.subr.bf16.mxu1 %v11045_v34 }
 0x213   :  { %v1021_v40 = vrot.slane %v955_v39, 5  ;;  %v10952_v41 = vpop.f32.mrf.mxu1  ;;  %1893 = vmatprep.subr.bf16.mxu0 %v11048_v35  ;;  %v11067_v35 = vld [vmem:[#allocation10 + $0x240] ss:$16 sps:$4 sm:$0xff]  }
 0x214   :  { %452 = vst.msk [vmem:[#allocation2] sm:$0xfe] %vm451_vm6, %v445_v38  ;;  %v13001_v42 = vpop.f32.mrf.mxu0  ;;  %v460_v53 = vrot.slane %v10952_v41, 7  ;;  %vm14316_vm6 = vcmask 261251  }
 0x215   :  { %1028 = vst.msk [vmem:[#allocation2 + $0x20] sm:$0xf8] %vm1027_vm12, %v1021_v40  ;;  %v1035_v44 = vrot.slane %v13001_v42, 5  ;;  %v382_v45 = vpop.f32.mrf.mxu1 }
 0x216   :  { %v446_v47 = vrot.slane %v382_v45, 7  ;;  %v958_v48 = vpop.f32.mrf.mxu0  ;;  %1037 = vrot.lane.b32.xlu1 %v1034_v37, %s12672_s24  ;;  %v461_v2 = vsel %vm14313_vm3, %v459_v33, %v460_v53 }
 0x217   :  { %v1022_v49 = vrot.slane %v958_v48, 5  ;;  %v1036_v50 = vsel %vm1020_vm4, %v1034_v37, %v1035_v44  ;;  %v10955_v52 = vpop.f32.mrf.mxu1  ;;  %v11043_v37 = vld [vmem:[#allocation10 + $0x2c0] ss:$16 sps:$4 sm:$0xff]  }
 0x218   :  { %v447_v54 = vsel %vm14313_vm3, %v445_v38, %v446_v47  ;;  %456 = vst.msk [vmem:[#allocation2 + $0x20] sm:$0x1] %vm455_vm8, %v446_v47  ;;  %1039 = vrot.lane.b32.xlu0 %v1036_v50, %s12672_s24  ;;  %v499_v55 = vrot.slane %v10955_v52, 7  ;;  %v10989_v56 = vpop.f32.mrf.mxu0  ;;  %v11046_v38 = vld [vmem:[#allocation10 + $0x2c8] ss:$16 sps:$4 sm:$0xff]   ;;  %1833 = vmatpush1.bf16.msra.mxu1 %v11043_v37  ;;  %vm14317_vm8 = vcmask 261248  }
 0x219   :  { %v1023_v57 = vsel %vm1020_vm4, %v1021_v40, %v1022_v49  ;;  %1031 = vst.msk [vmem:[#allocation2 + $0x40] sm:$0x7] %vm1030_vm13, %v1022_v49  ;;  %v13014_v59 = vpop.f32.mrf.mxu1  ;;  %v1072_v0 = vrot.slane %v10989_v56, 5  ;;  %1894 = vmatpush1.bf16.msra.mxu0 %v11046_v38  ;;  %v11049_v50 = vld [vmem:[#allocation10 + $0x2a0] ss:$16 sps:$4 sm:$0xff]   ;;  %vm14319_vm12 = vmmov %vm14317_vm8  ;;  %vm14320_vm13 = vcmask 392449  }
 0x21a   :  { %454 = vst.msk [vmem:[#allocation2 + $0x10] sm:$0xff] %vm453_vm10, %v447_v54  ;;  %466 = vrot.lane.b32.xlu1 %v460_v53, %s12672_s24  ;;  %v971_v60 = vpop.f32.mrf.mxu0  ;;  %1029 = vst.msk [vmem:[#allocation2 + $0x30] sm:$0xff] %vm453_vm10, %v1023_v57  ;;  %v479_v61 = vrot.slane %v13014_v59, 7  ;;  %v11051_v52 = vld [vmem:[#allocation10 + $0x2a4] ss:$16 sps:$4 sm:$0xff]   ;;  %vm14318_vm10 = vcmask 254080  }
 0x21b   :  { %v10956_v3 = vpop.f32.mrf.mxu1  ;;  %v1053_v9 = vrot.slane %v971_v60, 5  ;;  %v11052_v53 = vld [vmem:[#allocation10 + $0x2a8] ss:$16 sps:$4 sm:$0xff]   ;;  %v11054_v54 = vld [vmem:[#allocation10 + $0x2ac] ss:$16 sps:$4 sm:$0xff]   ;;  %1834 = vmatprep.subr.bf16.mxu1 %v11051_v52 }
 0x21c   :  { %502 = vrot.lane.b32.xlu0 %v499_v55, %s12680_s16  ;;  %v13021_v62 = vpop.f32.mrf.mxu0  ;;  %v500_v26 = vrot.slane %v10956_v3, 7  ;;  %1895 = vmatprep.subr.bf16.mxu0 %v11054_v54  ;;  %v11057_v3 = vld [vmem:[#allocation10 + $0x284] ss:$16 sps:$4 sm:$0xff]   ;;  %v11070_v38 = vld [vmem:[#allocation10 + $0x248] ss:$16 sps:$4 sm:$0xff]  }
 0x21d   :  { %v1073_v1 = vrot.slane %v13021_v62, 5  ;;  %v398_v13 = vpop.f32.mrf.mxu1  ;;  %1835 = vmatpush1.bf16.msra.mxu1 %v11049_v50  ;;  %1896 = vmatpush1.bf16.msra.mxu0 %v11052_v53  ;;  %v11069_v37 = vld [vmem:[#allocation10 + $0x244] ss:$16 sps:$4 sm:$0xff]   ;;  %v11078_v54 = vld [vmem:[#allocation10 + $0x22c] ss:$16 sps:$4 sm:$0xff]  }
 0x21e   :  { %464 = vrot.lane.b32.xlu1 %v461_v2, %s12672_s24  ;;  %v13029_v4 = vpop.f32.mrf.mxu0  ;;  %v501_v45 = vsel %vm14313_vm3, %v499_v55, %v500_v26  ;;  %v480_v56 = vrot.slane %v398_v13, 7  ;;  %1836 = vmatprep.subr.bf16.mxu1 %v11057_v3 }
 0x21f   :  { %v1074_v5 = vsel %vm1020_vm4, %v1072_v0, %v1073_v1  ;;  %v1054_v10 = vrot.slane %v13029_v4, 5  ;;  %v13039_v14 = vpop.f32.mrf.mxu1 }
 0x220   :  { %482 = vrot.lane.b32.xlu0 %v479_v61, %s12681_s17  ;;  %v13035_v7 = vpop.f32.mrf.mxu0  ;;  %v539_v30 = vrot.slane %v13039_v14, 7  ;;  %v481_v13 = vsel %vm14313_vm3, %v479_v61, %v480_v56  ;;  %v11093_v14 = vld [vmem:[#allocation10 + $0x3c4] ss:$16 sps:$4 sm:$0xff]  }
 0x221   :  { %v1055_v21 = vsel %vm1020_vm4, %v1053_v9, %v1054_v10  ;;  %v13049_v31 = vpop.f32.mrf.mxu1  ;;  %v1110_v41 = vrot.slane %v13035_v7, 5  ;;  %v11055_v7 = vld [vmem:[#allocation10 + $0x280] ss:$16 sps:$4 sm:$0xff]  }
 0x222   :  { %1075 = vrot.lane.b32.xlu1 %v1072_v0, %s12680_s16  ;;  %v13042_v16 = vpop.f32.mrf.mxu0  ;;  %v519_v39 = vrot.slane %v13049_v31, 7  ;;  %1837 = vmatpush1.bf16.msra.mxu1 %v11055_v7  ;;  %v11079_v7 = vld [vmem:[#allocation10 + $0x200] ss:$16 sps:$4 sm:$0xff]  }
 0x223   :  { %v13063_v48 = vpop.f32.mrf.mxu1  ;;  %v1091_v55 = vrot.slane %v13042_v16, 5 }
 0x224   :  { %1077 = vrot.lane.b32.xlu0 %v1074_v5, %s12680_s16  ;;  %v13052_v33 = vpop.f32.mrf.mxu0  ;;  %v11060_v5 = vld [vmem:[#allocation10 + $0x28c] ss:$16 sps:$4 sm:$0xff]   ;;  %v540_v3 = vrot.slane %v13063_v48, 7 }
 0x225   :  { %v1111_v47 = vrot.slane %v13052_v33, 5  ;;  %v13076_v0 = vpop.f32.mrf.mxu1  ;;  %1897 = vmatprep.subr.bf16.mxu0 %v11060_v5  ;;  %v11084_v5 = vld [vmem:[#allocation10 + $0x20c] ss:$16 sps:$4 sm:$0xff]  }
 0x226   :  { %1056 = vrot.lane.b32.xlu1 %v1053_v9, %s12681_s17  ;;  %v13058_v40 = vpop.f32.mrf.mxu0  ;;  %v11058_v9 = vld [vmem:[#allocation10 + $0x288] ss:$16 sps:$4 sm:$0xff]  }
 0x227   :  { %v1092_v57 = vrot.slane %v13058_v40, 5  ;;  %v1112_v60 = vsel %vm1020_vm4, %v1110_v41, %v1111_v47  ;;  %v13088_v17 = vpop.f32.mrf.mxu1  ;;  %1898 = vmatpush1.bf16.msra.mxu0 %v11058_v9  ;;  %v11082_v9 = vld [vmem:[#allocation10 + $0x208] ss:$16 sps:$4 sm:$0xff]  }
 0x228   :  { %1058 = vrot.lane.b32.xlu0 %v1055_v21, %s12681_s17  ;;  %v13066_v49 = vpop.f32.mrf.mxu0  ;;  %v11063_v21 = vld [vmem:[#allocation10 + $0x264] ss:$16 sps:$4 sm:$0xff]   ;;  %v579_v59 = vrot.slane %v13088_v17, 7  ;;  %1899 = vmatprep.subr.bf16.mxu0 %v11066_v23  ;;  %v11085_v23 = vld [vmem:[#allocation10 + $0x3e0] ss:$16 sps:$4 sm:$0xff]  }
 0x229   :  { %v1093_v16 = vsel %vm1020_vm4, %v1091_v55, %v1092_v57  ;;  %1838 = vmatprep.subr.bf16.mxu1 %v11063_v21  ;;  %v13095_v61 = vpop.f32.mrf.mxu1  ;;  %v1148_v48 = vrot.slane %v13066_v49, 5  ;;  %v11090_v21 = vld [vmem:[#allocation10 + $0x3ec] ss:$16 sps:$4 sm:$0xff]   ;;  %v11124_v17 = vld [vmem:[#allocation10 + $0x328] ss:$16 sps:$4 sm:$0xff]  }
 0x22a   :  { %506 = vrot.lane.b32.xlu1 %v500_v26, %s12680_s16  ;;  %v13079_v2 = vpop.f32.mrf.mxu0  ;;  %v11064_v26 = vld [vmem:[#allocation10 + $0x268] ss:$16 sps:$4 sm:$0xff]   ;;  %1839 = vmatpush1.bf16.msra.mxu1 %v11061_v24  ;;  %v559_v50 = vrot.slane %v13095_v61, 7 }
 0x22b   :  { %1900 = vmatpush1.bf16.msra.mxu0 %v11064_v26  ;;  %1840 = vmatprep.subr.bf16.mxu1 %v11069_v37  ;;  %v1129_v52 = vrot.slane %v13079_v2, 5  ;;  %v11088_v24 = vld [vmem:[#allocation10 + $0x3e8] ss:$16 sps:$4 sm:$0xff]   ;;  %v520_v26 = vrot.slane %v13076_v0, 7  ;;  %v10964_v31 = vpop.f32.mrf.mxu1 }
 0x22c   :  { %542 = vrot.lane.b32.xlu0 %v539_v30, %s12683_s21  ;;  %v13091_v20 = vpop.f32.mrf.mxu0  ;;  %v11094_v37 = vld [vmem:[#allocation10 + $0x3c8] ss:$16 sps:$4 sm:$0xff]  }
 0x22d   :  { %v521_v0 = vsel %vm14313_vm3, %v519_v39, %v520_v26 }
 0x22e   :  { %504 = vrot.lane.b32.xlu1 %v501_v45, %s12680_s16  ;;  %v13098_v34 = vpop.f32.mrf.mxu0  ;;  %v11072_v45 = vld [vmem:[#allocation10 + $0x24c] ss:$16 sps:$4 sm:$0xff]   ;;  %1841 = vmatpush1.bf16.msra.mxu1 %v11067_v35  ;;  %v11091_v35 = vld [vmem:[#allocation10 + $0x3c0] ss:$16 sps:$4 sm:$0xff]  }
 0x22f   :  { %v1130_v53 = vrot.slane %v13098_v34, 5  ;;  %1901 = vmatprep.subr.bf16.mxu0 %v11072_v45  ;;  %v11102_v45 = vld [vmem:[#allocation10 + $0x3ac] ss:$16 sps:$4 sm:$0xff]  }
 0x230   :  { %522 = vrot.lane.b32.xlu0 %v519_v39, %s12682_s20  ;;  %1902 = vmatpush1.bf16.msra.mxu0 %v11070_v38  ;;  %v11099_v38 = vld [vmem:[#allocation10 + $0x3a4] ss:$16 sps:$4 sm:$0xff]   ;;  %v11103_v39 = vld [vmem:[#allocation10 + $0x380] ss:$16 sps:$4 sm:$0xff]  }
 0x231   :  { %v1131_v2 = vsel %vm1020_vm4, %v1129_v52, %v1130_v53  ;;  %1903 = vmatprep.subr.bf16.mxu0 %v11078_v54  ;;  %v11100_v54 = vld [vmem:[#allocation10 + $0x3a8] ss:$16 sps:$4 sm:$0xff]  }
 0x232   :  { %486 = vrot.lane.b32.xlu1 %v480_v56, %s12681_s17  ;;  %v11073_v56 = vld [vmem:[#allocation10 + $0x220] ss:$16 sps:$4 sm:$0xff]  }
 0x234   :  { %1115 = vrot.lane.b32.xlu0 %v1112_v60, %s12683_s21  ;;  %v11076_v60 = vld [vmem:[#allocation10 + $0x228] ss:$16 sps:$4 sm:$0xff]  }
 0x235   :  { %1904 = vmatpush1.bf16.msra.mxu0 %v11076_v60  ;;  %v580_v60 = vrot.slane %v10964_v31, 7 }
 0x236   :  { %484 = vrot.lane.b32.xlu1 %v481_v13, %s12681_s17  ;;  %v541_v13 = vsel %vm14313_vm3, %v539_v30, %v540_v3  ;;  %1905 = vmatprep.subr.bf16.mxu0 %v11084_v5  ;;  %v11096_v30 = vld [vmem:[#allocation10 + $0x3cc] ss:$16 sps:$4 sm:$0xff]   ;;  %v11118_v5 = vld [vmem:[#allocation10 + $0x348] ss:$16 sps:$4 sm:$0xff]  }
 0x237   :  { %v581_v6 = vsel %vm14313_vm3, %v579_v59, %v580_v60 }
 0x238   :  { %1096 = vrot.lane.b32.xlu0 %v1093_v16, %s12682_s20  ;;  %v11087_v16 = vld [vmem:[#allocation10 + $0x3e4] ss:$16 sps:$4 sm:$0xff]  }
 0x239   :  { %1906 = vmatpush1.bf16.msra.mxu0 %v11082_v9 }
 0x23a   :  { %1113 = vrot.lane.b32.xlu1 %v1110_v41, %s12683_s21  ;;  %v11075_v41 = vld [vmem:[#allocation10 + $0x224] ss:$16 sps:$4 sm:$0xff]   ;;  %1907 = vmatprep.subr.bf16.mxu0 %v11090_v21  ;;  %v11130_v21 = vld [vmem:[#allocation10 + $0x308] ss:$16 sps:$4 sm:$0xff]  }
 0x23b   :  { %1842 = vmatprep.subr.bf16.mxu1 %v11075_v41  ;;  %v11097_v41 = vld [vmem:[#allocation10 + $0x3a0] ss:$16 sps:$4 sm:$0xff]  }
 0x23c   :  { %582 = vrot.lane.b32.xlu0 %v579_v59, %s12685_s22  ;;  %1843 = vmatpush1.bf16.msra.mxu1 %v11073_v56  ;;  %v11106_v56 = vld [vmem:[#allocation10 + $0x388] ss:$16 sps:$4 sm:$0xff]   ;;  %v11126_v59 = vld [vmem:[#allocation10 + $0x32c] ss:$16 sps:$4 sm:$0xff]  }
 0x23d   :  { %1908 = vmatpush2.bf16.msra.mxu0 %v11088_v24 }
 0x23e   :  { %1094 = vrot.lane.b32.xlu1 %v1091_v55, %s12682_s20  ;;  %v11081_v55 = vld [vmem:[#allocation10 + $0x204] ss:$16 sps:$4 sm:$0xff]   ;;  %1909 = vmatprep.subr.bf16.mxu0 %v11096_v30 }
 0x23f   :  { %1844 = vmatprep.subr.bf16.mxu1 %v11081_v55  ;;  %v11117_v55 = vld [vmem:[#allocation10 + $0x344] ss:$16 sps:$4 sm:$0xff]  }
 0x240   :  { %562 = vrot.lane.b32.xlu0 %v559_v50, %s12684_s6  ;;  %1845 = vmatpush1.bf16.msra.mxu1 %v11079_v7  ;;  %v11120_v7 = vld [vmem:[#allocation10 + $0x34c] ss:$16 sps:$4 sm:$0xff]  }
 0x241   :  { %1846 = vmatprep.subr.bf16.mxu1 %v11087_v16  ;;  %1910 = vmatpush2.bf16.msra.mxu0 %v11094_v37  ;;  %v11129_v16 = vld [vmem:[#allocation10 + $0x304] ss:$16 sps:$4 sm:$0xff]  }
 0x242   :  { %546 = vrot.lane.b32.xlu1 %v540_v3, %s12683_s21  ;;  %1911 = vmatprep.subr.bf16.mxu0 %v11102_v45  ;;  %v11112_v3 = vld [vmem:[#allocation10 + $0x368] ss:$16 sps:$4 sm:$0xff]  }
 0x244   :  { %1134 = vrot.lane.b32.xlu0 %v1131_v2, %s12684_s6  ;;  %1847 = vmatpush2.bf16.msra.mxu1 %v11085_v23  ;;  %v430_v2 = vpop.f32.mrf.mxu1  ;;  %v11132_v23 = vld [vmem:[#allocation10 + $0x30c] ss:$16 sps:$4 sm:$0xff]  }
 0x245   :  { %1848 = vmatprep.subr.bf16.mxu1 %v11093_v14  ;;  %1912 = vmatpush2.bf16.msra.mxu0 %v11100_v54  ;;  %v560_v9 = vrot.slane %v430_v2, 7 }
 0x246   :  { %544 = vrot.lane.b32.xlu1 %v541_v13, %s12683_s21  ;;  %v1149_v13 = vrot.slane %v13091_v20, 5  ;;  %v11138_v20 = vld [vmem:[#allocation10 + $0xec] ss:$16 sps:$4 sm:$0xff]  }
 0x247   :  { %v561_v25 = vsel %vm14313_vm3, %v559_v50, %v560_v9  ;;  %vm14321_vm3 = vcmask 523649  }
 0x248   :  { %1151 = vrot.lane.b32.xlu0 %v1148_v48, %s12685_s22  ;;  %1849 = vmatpush2.bf16.msra.mxu1 %v11091_v35  ;;  %v1150_v29 = vsel %vm1020_vm4, %v1148_v48, %v1149_v13  ;;  %vm14315_vm4 = vcmask 261249  }
 0x249   :  { %1850 = vmatprep.subr.bf16.mxu1 %v11099_v38 }
 0x24a   :  { %526 = vrot.lane.b32.xlu1 %v520_v26, %s12682_s20 }
 0x24c   :  { %1190 = vrot.lane.b32.xlu0 %v1184_v51, %s12672_s24  ;;  %1851 = vmatpush2.bf16.msra.mxu1 %v11097_v41  ;;  %v11108_v51 = vld [vmem:[#allocation10 + $0x38c] ss:$16 sps:$4 sm:$0xff]  }
 0x24d   :  { %1852 = vmatprep.subr.bf16.mxu1 %v11105_v46  ;;  %1913 = vmatprep.subr.bf16.mxu0 %v11108_v51 }
 0x24e   :  { %524 = vrot.lane.b32.xlu1 %v521_v0, %s12682_s20  ;;  %1914 = vmatpush2.bf16.msra.mxu0 %v11106_v56 }
 0x250   :  { %1209 = vrot.lane.b32.xlu0 %v1203_v63, %s12681_s17  ;;  %1853 = vmatpush2.bf16.msra.mxu1 %v11103_v39  ;;  %v11114_v63 = vld [vmem:[#allocation10 + $0x36c] ss:$16 sps:$4 sm:$0xff]  }
 0x251   :  { %1854 = vmatprep.subr.bf16.mxu1 %v11111_v58  ;;  %1915 = vmatprep.subr.bf16.mxu0 %v11114_v63 }
 0x252   :  { %1132 = vrot.lane.b32.xlu1 %v1129_v52, %s12684_s6  ;;  %v11109_v52 = vld [vmem:[#allocation10 + $0x360] ss:$16 sps:$4 sm:$0xff]   ;;  %1916 = vmatpush2.bf16.msra.mxu0 %v11112_v3 }
 0x253   :  { %1917 = vmatprep.subr.bf16.mxu0 %v11120_v7 }
 0x254   :  { %1228 = vrot.lane.b32.xlu0 %v1222_v11, %s12680_s16  ;;  %1855 = vmatpush2.bf16.msra.mxu1 %v11109_v52  ;;  %v11115_v11 = vld [vmem:[#allocation10 + $0x340] ss:$16 sps:$4 sm:$0xff]  }
 0x255   :  { %1856 = vmatprep.subr.bf16.mxu1 %v11117_v55 }
 0x256   :  { %586 = vrot.lane.b32.xlu1 %v580_v60, %s12685_s22  ;;  %1918 = vmatpush2.bf16.msra.mxu0 %v11118_v5 }
 0x257   :  { %1919 = vmatprep.subr.bf16.mxu0 %v11126_v59 }
 0x258   :  { %1247 = vrot.lane.b32.xlu0 %v1241_v22, %s12682_s20  ;;  %1857 = vmatpush2.bf16.msra.mxu1 %v11115_v11  ;;  %v11123_v22 = vld [vmem:[#allocation10 + $0x324] ss:$16 sps:$4 sm:$0xff]  }
 0x259   :  { %1858 = vmatprep.subr.bf16.mxu1 %v11123_v22 }
 0x25a   :  { %584 = vrot.lane.b32.xlu1 %v581_v6, %s12685_s22  ;;  %1920 = vmatpush2.bf16.msra.mxu0 %v11124_v17 }
 0x25b   :  { %1921 = vmatprep.subr.bf16.mxu0 %v11132_v23 }
 0x25c   :  { %1266 = vrot.lane.b32.xlu0 %v1260_v28, %s12683_s21  ;;  %1859 = vmatpush2.bf16.msra.mxu1 %v11121_v18  ;;  %v11127_v28 = vld [vmem:[#allocation10 + $0x300] ss:$16 sps:$4 sm:$0xff]  }
 0x25d   :  { %1860 = vmatprep.subr.bf16.mxu1 %v11129_v16 }
 0x25e   :  { %566 = vrot.lane.b32.xlu1 %v560_v9, %s12684_s6  ;;  %1922 = vmatpush2.bf16.msra.mxu0 %v11130_v21 }
 0x25f   :  { %2333 = vmatprep.subr.bf16.mxu0 %v11138_v20 }
 0x260   :  { %1285 = vrot.lane.b32.xlu0 %v1279_v32, %s12684_s6  ;;  %1861 = vmatpush2.bf16.msra.mxu1 %v11127_v28  ;;  %v11135_v32 = vld [vmem:[#allocation10 + $0xe4] ss:$16 sps:$4 sm:$0xff]  }
 0x261   :  { %2272 = vmatprep.subr.bf16.mxu1 %v11135_v32  ;;  %v1490_v32 = vshrl.u32 %v12990_v19, 16 }
 0x262   :  { %564 = vrot.lane.b32.xlu1 %v561_v25, %s12684_s6 }
 0x264   :  { %1304 = vrot.lane.b32.xlu0 %v1298_v43, %s12685_s22 }
 0x266   :  { %1153 = vrot.lane.b32.xlu1 %v1150_v29, %s12685_s22 }
 0x26a   :  { %1041 = vrot.lane.b32.xlu1 %v1035_v44, %s12672_s24 }
 0x26e   :  { %1060 = vrot.lane.b32.xlu1 %v1054_v10, %s12681_s17 }
 0x272   :  { %1079 = vrot.lane.b32.xlu1 %v1073_v1, %s12680_s16 }
 0x276   :  { %1098 = vrot.lane.b32.xlu1 %v1092_v57, %s12682_s20 }
 0x27a   :  { %1117 = vrot.lane.b32.xlu1 %v1111_v47, %s12683_s21 }
 0x27e   :  { %1136 = vrot.lane.b32.xlu1 %v1130_v53, %s12684_s6 }
 0x282   :  { %1155 = vrot.lane.b32.xlu1 %v1149_v13, %s12685_s22 }
 0x284   :  { %v463_v36 = vpop.permute.xlu1 %462 }
 0x285   :  { %472 = vst.msk [vmem:[#allocation2] sm:$0xfe] %vm14315_vm4, %v463_v36  ;;  %vm14322_vm4 = vcmask 392451  }
 0x288   :  { %v1038_v43 = vpop.permute.xlu1 %1037 }
 0x289   :  { %1047 = vst.msk [vmem:[#allocation2 + $0x20] sm:$0xf8] %vm14316_vm6, %v1038_v43  ;;  %vm14323_vm6 = vcmask 523651   ;;  %v11133_v43 = vld [vmem:[#allocation10 + $0xe0] ss:$16 sps:$4 sm:$0xff]  }
 0x28a   :  { %v1040_v42 = vpop.permute.xlu0 %1039 }
 0x28b   :  { %1048 = vst.msk [vmem:[#allocation2 + $0x30] sm:$0xff] %vm14317_vm8, %v1040_v42  ;;  %vm14324_vm8 = vcmask 392448   ;;  %v11136_v42 = vld [vmem:[#allocation10 + $0xe8] ss:$16 sps:$4 sm:$0xff]  }
 0x28c   :  { %v467_v44 = vpop.permute.xlu1 %466 }
 0x28d   :  { %476 = vst.msk [vmem:[#allocation2 + $0x20] sm:$0x1] %vm14318_vm10, %v467_v44  ;;  %vm14325_vm10 = vcmask 523648  }
 0x28e   :  { %v503_v62 = vpop.permute.xlu0 %502 }
 0x290   :  { %v465_v1 = vpop.permute.xlu1 %464 }
 0x291   :  { %474 = vst.msk [vmem:[#allocation2 + $0x10] sm:$0xff] %vm14319_vm12, %v465_v1  ;;  %vm14326_vm12 = vcmask 654849  }
 0x292   :  { %v483_v4 = vpop.permute.xlu0 %482 }
 0x293   :  { %492 = vst.msk [vmem:[#allocation2] sm:$0xfe] %vm14320_vm13, %v483_v4  ;;  %vm14327_vm13 = vcmask 786049   ;;  %v1492_v4 = vor.u32 %v1490_v32, %v12995_v27 }
 0x294   :  { %512 = vst.msk [vmem:[#allocation2] sm:$0xfe] %vm14321_vm3, %v503_v62  ;;  %v1076_v10 = vpop.permute.xlu1 %1075  ;;  %vm14328_vm3 = vcmask 385280  }
 0x296   :  { %v1078_v33 = vpop.permute.xlu0 %1077 }
 0x298   :  { %v1057_v40 = vpop.permute.xlu1 %1056 }
 0x299   :  { %1066 = vst.msk [vmem:[#allocation2 + $0x20] sm:$0xf8] %vm14322_vm4, %v1057_v40  ;;  %vm14330_vm4 = vmmov %vm14324_vm8 }
 0x29a   :  { %1085 = vst.msk [vmem:[#allocation2 + $0x20] sm:$0xf8] %vm14323_vm6, %v1076_v10  ;;  %v1059_v47 = vpop.permute.xlu0 %1058  ;;  %vm14331_vm6 = vmmov %vm14325_vm10  ;;  %v11141_v10 = vld [vmem:[#allocation10 + $0xc4] ss:$16 sps:$4 sm:$0xff]  }
 0x29b   :  { %1067 = vst.msk [vmem:[#allocation2 + $0x30] sm:$0xff] %vm14324_vm8, %v1059_v47  ;;  %vm14332_vm8 = vcmask 654848  }
 0x29c   :  { %1086 = vst.msk [vmem:[#allocation2 + $0x30] sm:$0xff] %vm14325_vm10, %v1078_v33  ;;  %v507_v49 = vpop.permute.xlu1 %506  ;;  %vm14333_vm10 = vcmask 654851   ;;  %v11144_v33 = vld [vmem:[#allocation10 + $0xcc] ss:$16 sps:$4 sm:$0xff]  }
 0x29e   :  { %v543_v57 = vpop.permute.xlu0 %542 }
 0x2a0   :  { %v505_v61 = vpop.permute.xlu1 %504 }
 0x2a2   :  { %v523_v34 = vpop.permute.xlu0 %522 }
 0x2a3   :  { %532 = vst.msk [vmem:[#allocation2] sm:$0xfe] %vm14326_vm12, %v523_v34  ;;  %vm14335_vm12 = vcmask 1048449   ;;  %v11150_v34 = vld [vmem:[#allocation10 + $0xac] ss:$16 sps:$4 sm:$0xff]  }
 0x2a4   :  { %552 = vst.msk [vmem:[#allocation2] sm:$0xfe] %vm14327_vm13, %v543_v57  ;;  %v487_v50 = vpop.permute.xlu1 %486  ;;  %vm1049_vm13 = vcmask 256128   ;;  %v11142_v57 = vld [vmem:[#allocation10 + $0xc8] ss:$16 sps:$4 sm:$0xff]  }
 0x2a5   :  { %496 = vst.msk [vmem:[#allocation2 + $0x20] sm:$0x1] %vm14328_vm3, %v487_v50  ;;  %vm14336_vm3 = vcmask 647680   ;;  %v11145_v50 = vld [vmem:[#allocation10 + $0xa0] ss:$16 sps:$4 sm:$0xff]  }
 0x2a6   :  { %516 = vst.msk [vmem:[#allocation2 + $0x20] sm:$0x1] %vm14329_vm7, %v507_v49  ;;  %v1116_v53 = vpop.permute.xlu0 %1115  ;;  %vm14334_vm7 = vcmask 917249   ;;  %v11139_v49 = vld [vmem:[#allocation10 + $0xc0] ss:$16 sps:$4 sm:$0xff]  }
 0x2a8   :  { %v485_v48 = vpop.permute.xlu1 %484 }
 0x2a9   :  { %494 = vst.msk [vmem:[#allocation2 + $0x10] sm:$0xff] %vm14330_vm4, %v485_v48  ;;  %vm14337_vm4 = vcmask 778880   ;;  %v11153_v48 = vld [vmem:[#allocation10 + $0x84] ss:$16 sps:$4 sm:$0xff]  }
 0x2aa   :  { %514 = vst.msk [vmem:[#allocation2 + $0x10] sm:$0xff] %vm14331_vm6, %v505_v61  ;;  %v1097_v24 = vpop.permute.xlu0 %1096  ;;  %vm14338_vm6 = vmmov %vm14332_vm8  ;;  %v11147_v61 = vld [vmem:[#allocation10 + $0xa4] ss:$16 sps:$4 sm:$0xff]  }
 0x2ab   :  { %1105 = vst.msk [vmem:[#allocation2 + $0x30] sm:$0xff] %vm14332_vm8, %v1097_v24  ;;  %vm1087_vm8 = vcmask 518528   ;;  %v11156_v24 = vld [vmem:[#allocation10 + $0x8c] ss:$16 sps:$4 sm:$0xff]  }
 0x2ac   :  { %1124 = vst.msk [vmem:[#allocation2 + $0x30] sm:$0xff] %vm553_vm14, %v1116_v53  ;;  %v1114_v26 = vpop.permute.xlu1 %1113  ;;  %v11148_v53 = vld [vmem:[#allocation10 + $0xa8] ss:$16 sps:$4 sm:$0xff]  }
 0x2ae   :  { %v583_v14 = vpop.permute.xlu0 %582 }
 0x2b0   :  { %v1095_v30 = vpop.permute.xlu1 %1094 }
 0x2b1   :  { %1104 = vst.msk [vmem:[#allocation2 + $0x20] sm:$0xf8] %vm14333_vm10, %v1095_v30  ;;  %vm1106_vm10 = vcmask 649728   ;;  %v11154_v30 = vld [vmem:[#allocation10 + $0x88] ss:$16 sps:$4 sm:$0xff]  }
 0x2b2   :  { %1123 = vst.msk [vmem:[#allocation2 + $0x20] sm:$0xf8] %vm1122_vm1, %v1114_v26  ;;  %v563_v35 = vpop.permute.xlu0 %562  ;;  %vm1068_vm1 = vcmask 387328  }
 0x2b3   :  { %572 = vst.msk [vmem:[#allocation2] sm:$0xfe] %vm14334_vm7, %v563_v35  ;;  %vm1125_vm7 = vcmask 780928   ;;  %v11159_v35 = vld [vmem:[#allocation10 + $0x64] ss:$16 sps:$4 sm:$0xff]  }
 0x2b4   :  { %592 = vst.msk [vmem:[#allocation2] sm:$0xfe] %vm14335_vm12, %v583_v14  ;;  %v547_v37 = vpop.permute.xlu1 %546  ;;  %v11151_v14 = vld [vmem:[#allocation10 + $0x80] ss:$16 sps:$4 sm:$0xff]   ;;  %vm14344_vm12 = vcmask 1040384  }
 0x2b6   :  { %v1135_v0 = vpop.permute.xlu0 %1134 }
 0x2b7   :  { %1143 = vst.msk [vmem:[#allocation2 + $0x30] sm:$0xff] %vm573_vm9, %v1135_v0 }
 0x2b8   :  { %v545_v38 = vpop.permute.xlu1 %544 }
 0x2ba   :  { %v1152_v45 = vpop.permute.xlu0 %1151 }
 0x2bb   :  { %v1312_v5 = vld [vmem:[#allocation2] sm:$0xff] }
 0x2bc   :  { %v527_v41 = vpop.permute.xlu1 %526 }
 0x2bd   :  { %536 = vst.msk [vmem:[#allocation2 + $0x20] sm:$0x1] %vm14336_vm3, %v527_v41  ;;  %v11165_v41 = vld [vmem:[#allocation10 + $0x44] ss:$16 sps:$4 sm:$0xff]   ;;  %vm14346_vm3 = vmmov %vm14344_vm12 }
 0x2be   :  { %556 = vst.msk [vmem:[#allocation2 + $0x20] sm:$0x1] %vm14337_vm4, %v547_v37  ;;  %v1191_v54 = vpop.permute.xlu0 %1190  ;;  %v11162_v37 = vld [vmem:[#allocation10 + $0x6c] ss:$16 sps:$4 sm:$0xff]   ;;  %vm14347_vm4 = vmmov %vm14346_vm3 }
 0x2bf   :  { %1197 = vst.msk [vmem:[#allocation2 + $0x48] sm:$0x7] %vm1049_vm13, %v1191_v54  ;;  %v11168_v54 = vld [vmem:[#allocation10 + $0x4c] ss:$16 sps:$4 sm:$0xff]  }
 0x2c0   :  { %v525_v46 = vpop.permute.xlu1 %524 }
 0x2c1   :  { %534 = vst.msk [vmem:[#allocation2 + $0x10] sm:$0xff] %vm14338_vm6, %v525_v46  ;;  %v11163_v46 = vld [vmem:[#allocation10 + $0x40] ss:$16 sps:$4 sm:$0xff]  }
 0x2c2   :  { %554 = vst.msk [vmem:[#allocation2 + $0x10] sm:$0xff] %vm553_vm14, %v545_v38  ;;  %v1210_v51 = vpop.permute.xlu0 %1209  ;;  %vm1144_vm14 = vcmask 912128   ;;  %v11157_v38 = vld [vmem:[#allocation10 + $0x60] ss:$16 sps:$4 sm:$0xff]  }
 0x2c3   :  { %1216 = vst.msk [vmem:[#allocation2 + $0x48] sm:$0x7] %vm1068_vm1, %v1210_v51  ;;  %v11166_v51 = vld [vmem:[#allocation10 + $0x48] ss:$16 sps:$4 sm:$0xff]  }
 0x2c4   :  { %v1133_v31 = vpop.permute.xlu1 %1132 }
 0x2c5   :  { %1142 = vst.msk [vmem:[#allocation2 + $0x20] sm:$0xf8] %vm1141_vm0, %v1133_v31  ;;  %v11171_v31 = vld [vmem:[#allocation10 + $0x24] ss:$16 sps:$4 sm:$0xff]   ;;  %vm2465_vm0 = vcmask 1046528  }
 0x2c6   :  { %1161 = vst.msk [vmem:[#allocation2 + $0x20] sm:$0xf8] %vm1160_vm11, %v1152_v45  ;;  %v1229_v39 = vpop.permute.xlu0 %1228  ;;  %vm1163_vm11 = vcmask 1043328   ;;  %v11160_v45 = vld [vmem:[#allocation10 + $0x68] ss:$16 sps:$4 sm:$0xff]  }
 0x2c7   :  { %1235 = vst.msk [vmem:[#allocation2 + $0x48] sm:$0x7] %vm1087_vm8, %v1229_v39  ;;  %v11174_v39 = vld [vmem:[#allocation10 + $0x2c] ss:$16 sps:$4 sm:$0xff]  }
 0x2c8   :  { %v587_v56 = vpop.permute.xlu1 %586 }
 0x2ca   :  { %v1248_v60 = vpop.permute.xlu0 %1247 }
 0x2cb   :  { %1254 = vst.msk [vmem:[#allocation2 + $0x48] sm:$0x7] %vm1106_vm10, %v1248_v60  ;;  %v11169_v60 = vld [vmem:[#allocation10 + $0x20] ss:$16 sps:$4 sm:$0xff]  }
 0x2cc   :  { %v585_v58 = vpop.permute.xlu1 %584 }
 0x2ce   :  { %v1267_v63 = vpop.permute.xlu0 %1266 }
 0x2cf   :  { %1273 = vst.msk [vmem:[#allocation2 + $0x48] sm:$0x7] %vm1125_vm7, %v1267_v63 }
 0x2d0   :  { %v567_v52 = vpop.permute.xlu1 %566 }
 0x2d1   :  { %576 = vst.msk [vmem:[#allocation2 + $0x20] sm:$0x1] %vm575_vm5, %v567_v52  ;;  %vm14339_vm5 = vsmask.f32 7424  ;;  %v11177_v52 = vld [vmem:[#allocation10 + $0x4] ss:$16 sps:$4 sm:$0xff]  }
 0x2d2   :  { %596 = vst.msk [vmem:[#allocation2 + $0x20] sm:$0x1] %vm595_vm2, %v587_v56  ;;  %v1286_v3 = vpop.permute.xlu0 %1285  ;;  %vm13291_vm2 = vcmp.lt.s32.totalorder %v150_v8, 512 }
 0x2d3   :  { %1292 = vst.msk [vmem:[#allocation2 + $0x48] sm:$0x7] %vm1144_vm14, %v1286_v3  ;;  %v11180_v3 = vld [vmem:[#allocation10 + $0xc] ss:$16 sps:$4 sm:$0xff]  }
 0x2d4   :  { %v565_v2 = vpop.permute.xlu1 %564  ;;  %3104 = vst.msk [vmem:[#allocation3] ss:$8 sm:$0xf] %vm13291_vm2, %v12686_v12  ;;  %6511 = vst.msk [vmem:[#allocation4] ss:$8 sm:$0xf] %vm13291_vm2, %v12686_v12 }
 0x2d5   :  { %574 = vst.msk [vmem:[#allocation2 + $0x10] sm:$0xff] %vm573_vm9, %v565_v2  ;;  %vm14340_vm9 = vmmov %vm14339_vm5 }
 0x2d6   :  { %594 = vst.msk [vmem:[#allocation2 + $0x10] sm:$0xff] %vm593_vm15, %v585_v58  ;;  %v1305_v6 = vpop.permute.xlu0 %1304  ;;  %v11172_v58 = vld [vmem:[#allocation10 + $0x28] ss:$16 sps:$4 sm:$0xff]  }
 0x2d7   :  { %1311 = vst.msk [vmem:[#allocation2 + $0x48] sm:$0x7] %vm1163_vm11, %v1305_v6 }
 0x2d8   :  { %v1154_v11 = vpop.permute.xlu1 %1153  ;;  %3113 = vst.msk [vmem:[#allocation3 + $0x83] ss:$8 sm:$0xf] %vm13291_vm2, %v12686_v12  ;;  %6520 = vst.msk [vmem:[#allocation4 + $0x83] ss:$8 sm:$0xf] %vm13291_vm2, %v12686_v12 }
 0x2d9   :  { %1162 = vst.msk [vmem:[#allocation2 + $0x30] sm:$0xff] %vm593_vm15, %v1154_v11  ;;  %v1316_v59 = vld [vmem:[#allocation2 + $0x20] sm:$0xff]  ;;  %vm14341_vm15 = vmmov %vm14339_vm5 }
 0x2dc   :  { %v1042_v55 = vpop.permute.xlu1 %1041 }
 0x2dd   :  { %1050 = vst.msk [vmem:[#allocation2 + $0x40] sm:$0x7] %vm1049_vm13, %v1042_v55  ;;  %v1314_v7 = vld [vmem:[#allocation2 + $0x10] sm:$0xff]  ;;  %vm14345_vm13 = vmmov %vm14344_vm12 }
 0x2de   :  { %v13229_v9 = vpack.c.bf16 %v1314_v7, %v1312_v5  ;;  %v1321_v18 = vld [vmem:[#allocation2 + $0x48] sm:$0xf]  ;;  %v11175_v55 = vld [vmem:[#allocation10] ss:$16 sps:$4 sm:$0xff]   ;;  %v11178_v5 = vld [vmem:[#allocation10 + $0x8] ss:$16 sps:$4 sm:$0xff]  }
 0x2df   :  { %v13231_v22 = vpack.c.bf16 %v1321_v18, %v1321_v18 }
 0x2e0   :  { %v1061_v17 = vpop.permute.xlu1 %1060  ;;  %v1318_v13 = vld [vmem:[#allocation2 + $0x30] sm:$0xff]  ;;  %v1461_v25 = vshll.u32 %v13229_v9, 16  ;;  %v1459_v21 = vshrl.u32 %v13229_v9, 16 }
 0x2e1   :  { %1069 = vst.msk [vmem:[#allocation2 + $0x40] sm:$0x7] %vm1068_vm1, %v1061_v17  ;;  %v13235_v28 = vpack.c.bf16 %v1318_v13, %v1316_v59  ;;  %v1494_v16 = vshll.u32 %v13231_v22, 16  ;;  %v1501_v11 = vshrl.u32 %v13231_v22, 16  ;;  %v11183_v17 = vld [vmem:[#allocation10 + $0x1e4] ss:$16 sps:$4 sm:$0xff]   ;;  %vm14348_vm1 = vmmov %vm14346_vm3 }
 0x2e2   :  { %v1463_v23 = vrot.slane %v1461_v25, 1  ;;  %v11186_v59 = vld [vmem:[#allocation10 + $0x1ec] ss:$16 sps:$4 sm:$0xff]   ;;  %vm14349_vm6 = vmmov %vm14348_vm1 }
 0x2e3   :  { %v1466_v29 = vshll.u32 %v13235_v28, 16  ;;  %v13244_v62 = vrot.slane %v1494_v16, 1  ;;  %v1482_v2 = vshrl.u32 %v13235_v28, 16  ;;  %v11181_v16 = vld [vmem:[#allocation10 + $0x1e0] ss:$16 sps:$4 sm:$0xff]  }
 0x2e4   :  { %v1080_v20 = vpop.permute.xlu1 %1079  ;;  %v1464_v36 = vor.u32 %v1463_v23, %v1459_v21  ;;  %v11184_v21 = vld [vmem:[#allocation10 + $0x1e8] ss:$16 sps:$4 sm:$0xff]   ;;  %v11189_v23 = vld [vmem:[#allocation10 + $0x1c4] ss:$16 sps:$4 sm:$0xff]  }
 0x2e5   :  { %1088 = vst.msk [vmem:[#allocation2 + $0x40] sm:$0x7] %vm1087_vm8, %v1080_v20  ;;  %v13242_v44 = vrot.slane %v1466_v29, 1  ;;  %v1497_v47 = vsel %vm14340_vm9, %v1492_v4, %v13244_v62  ;;  %v1503_v25 = vor.u32 %v1501_v11, %v13244_v62  ;;  %v11192_v29 = vld [vmem:[#allocation10 + $0x1cc] ss:$16 sps:$4 sm:$0xff]   ;;  %vm14350_vm8 = vmmov %vm14348_vm1 }
 0x2e6   :  { %v11187_v20 = vld [vmem:[#allocation10 + $0x1c0] ss:$16 sps:$4 sm:$0xff]   ;;  %v11201_v4 = vld [vmem:[#allocation10 + $0x184] ss:$16 sps:$4 sm:$0xff]   ;;  %v11250_v11 = vld [vmem:[#allocation10 + $0x488] ss:$16 sps:$4 sm:$0xff]  }
 0x2e7   :  { %v1469_v1 = vsel %vm14339_vm5, %v1464_v36, %v13242_v44  ;;  %v1484_v7 = vor.u32 %v1482_v2, %v13242_v44  ;;  %v11190_v36 = vld [vmem:[#allocation10 + $0x1c8] ss:$16 sps:$4 sm:$0xff]   ;;  %v11198_v44 = vld [vmem:[#allocation10 + $0x1ac] ss:$16 sps:$4 sm:$0xff]   ;;  %v11193_v62 = vld [vmem:[#allocation10 + $0x1a0] ss:$16 sps:$4 sm:$0xff]  }
 0x2e8   :  { %v1099_v40 = vpop.permute.xlu1 %1098  ;;  %1863 = vmatmul.mubr.bf16.vlgmr.msra.gmra.mxu1 %v1469_v1  ;;  %1924 = vmatmul.mubr.bf16.vlgmr.msra.gmra.mxu0 %v1469_v1  ;;  %v11196_v1 = vld [vmem:[#allocation10 + $0x1a8] ss:$16 sps:$4 sm:$0xff]   ;;  %v11252_v2 = vld [vmem:[#allocation10 + $0x48c] ss:$16 sps:$4 sm:$0xff]   ;;  %vm14355_vm5 = vmmov %vm14348_vm1 }
 0x2e9   :  { %1107 = vst.msk [vmem:[#allocation2 + $0x40] sm:$0x7] %vm1106_vm10, %v1099_v40  ;;  %2273 = vmatpush1.bf16.msra.mxu1 %v11133_v43  ;;  %2334 = vmatpush1.bf16.msra.mxu0 %v11136_v42  ;;  %v11195_v42 = vld [vmem:[#allocation10 + $0x1a4] ss:$16 sps:$4 sm:$0xff]   ;;  %v11202_v40 = vld [vmem:[#allocation10 + $0x188] ss:$16 sps:$4 sm:$0xff]   ;;  %vm14351_vm10 = vmmov %vm14348_vm1 }
 0x2ea   :  { %1872 = vmatprep.mubr.bf16.mxu1 %v1497_v47  ;;  %1933 = vmatprep.mubr.bf16.mxu0 %v1497_v47  ;;  %v11207_v47 = vld [vmem:[#allocation10 + $0x164] ss:$16 sps:$4 sm:$0xff]   ;;  %vm14356_vm9 = vmmov %vm14348_vm1 }
 0x2eb   :  { %2274 = vmatprep.subr.bf16.mxu1 %v11141_v10  ;;  %2335 = vmatprep.subr.bf16.mxu0 %v11144_v33  ;;  %v11204_v10 = vld [vmem:[#allocation10 + $0x18c] ss:$16 sps:$4 sm:$0xff]   ;;  %v11199_v33 = vld [vmem:[#allocation10 + $0x180] ss:$16 sps:$4 sm:$0xff]  }
 0x2ec   :  { %v1118_v27 = vpop.permute.xlu1 %1117 }
 0x2ed   :  { %1126 = vst.msk [vmem:[#allocation2 + $0x40] sm:$0x7] %vm1125_vm7, %v1118_v27  ;;  %2275 = vmatpush1.bf16.msra.mxu1 %v11139_v49  ;;  %2336 = vmatpush1.bf16.msra.mxu0 %v11142_v57  ;;  %v11210_v49 = vld [vmem:[#allocation10 + $0x16c] ss:$16 sps:$4 sm:$0xff]   ;;  %v11205_v57 = vld [vmem:[#allocation10 + $0x160] ss:$16 sps:$4 sm:$0xff]   ;;  %vm14352_vm7 = vmmov %vm14348_vm1 }
 0x2ee   :  { %2276 = vmatprep.subr.bf16.mxu1 %v11147_v61  ;;  %2337 = vmatprep.subr.bf16.mxu0 %v11150_v34  ;;  %v11208_v61 = vld [vmem:[#allocation10 + $0x168] ss:$16 sps:$4 sm:$0xff]   ;;  %v11213_v34 = vld [vmem:[#allocation10 + $0x144] ss:$16 sps:$4 sm:$0xff]   ;;  %v11216_v27 = vld [vmem:[#allocation10 + $0x14c] ss:$16 sps:$4 sm:$0xff]  }
 0x2f0   :  { %v1137_v26 = vpop.permute.xlu1 %1136 }
 0x2f1   :  { %1145 = vst.msk [vmem:[#allocation2 + $0x40] sm:$0x7] %vm1144_vm14, %v1137_v26  ;;  %2277 = vmatpush1.bf16.msra.mxu1 %v11145_v50  ;;  %2338 = vmatpush1.bf16.msra.mxu0 %v11148_v53  ;;  %v11211_v50 = vld [vmem:[#allocation10 + $0x140] ss:$16 sps:$4 sm:$0xff]   ;;  %v11214_v53 = vld [vmem:[#allocation10 + $0x148] ss:$16 sps:$4 sm:$0xff]   ;;  %vm14353_vm14 = vmmov %vm14348_vm1 }
 0x2f2   :  { %2278 = vmatprep.subr.bf16.mxu1 %v11153_v48  ;;  %2339 = vmatprep.subr.bf16.mxu0 %v11156_v24  ;;  %v11219_v48 = vld [vmem:[#allocation10 + $0x124] ss:$16 sps:$4 sm:$0xff]   ;;  %v11222_v24 = vld [vmem:[#allocation10 + $0x12c] ss:$16 sps:$4 sm:$0xff]   ;;  %v11217_v26 = vld [vmem:[#allocation10 + $0x120] ss:$16 sps:$4 sm:$0xff]  }
 0x2f4   :  { %v1156_v0 = vpop.permute.xlu1 %1155 }
 0x2f5   :  { %1164 = vst.msk [vmem:[#allocation2 + $0x40] sm:$0x7] %vm1163_vm11, %v1156_v0  ;;  %2279 = vmatpush1.bf16.msra.mxu1 %v11151_v14  ;;  %2340 = vmatpush1.bf16.msra.mxu0 %v11154_v30  ;;  %v11220_v14 = vld [vmem:[#allocation10 + $0x128] ss:$16 sps:$4 sm:$0xff]   ;;  %v11225_v30 = vld [vmem:[#allocation10 + $0x104] ss:$16 sps:$4 sm:$0xff]   ;;  %vm14354_vm11 = vmmov %vm14348_vm1 }
 0x2f6   :  { %2280 = vmatprep.subr.bf16.mxu1 %v11159_v35  ;;  %2341 = vmatprep.subr.bf16.mxu0 %v11162_v37  ;;  %v11228_v35 = vld [vmem:[#allocation10 + $0x10c] ss:$16 sps:$4 sm:$0xff]   ;;  %v11223_v37 = vld [vmem:[#allocation10 + $0x100] ss:$16 sps:$4 sm:$0xff]   ;;  %v11226_v0 = vld [vmem:[#allocation10 + $0x108] ss:$16 sps:$4 sm:$0xff]  }
 0x2f9   :  { %2281 = vmatpush1.bf16.msra.mxu1 %v11157_v38  ;;  %2342 = vmatpush1.bf16.msra.mxu0 %v11160_v45  ;;  %v11231_v38 = vld [vmem:[#allocation10 + $0x4e4] ss:$16 sps:$4 sm:$0xff]   ;;  %v11234_v45 = vld [vmem:[#allocation10 + $0x4ec] ss:$16 sps:$4 sm:$0xff]  }
 0x2fa   :  { %2282 = vmatprep.subr.bf16.mxu1 %v11165_v41  ;;  %2343 = vmatprep.subr.bf16.mxu0 %v11168_v54  ;;  %v11229_v41 = vld [vmem:[#allocation10 + $0x4e0] ss:$16 sps:$4 sm:$0xff]   ;;  %v11232_v54 = vld [vmem:[#allocation10 + $0x4e8] ss:$16 sps:$4 sm:$0xff]  }
 0x2fc   :  { %v1320_v56 = vld [vmem:[#allocation2 + $0x40] sm:$0xf] }
 0x2fd   :  { %2283 = vmatpush1.bf16.msra.mxu1 %v11163_v46  ;;  %2344 = vmatpush1.bf16.msra.mxu0 %v11166_v51  ;;  %v13255_v63 = vpack.c.bf16 %v1320_v56, %v1320_v56  ;;  %v11237_v46 = vld [vmem:[#allocation10 + $0x4c4] ss:$16 sps:$4 sm:$0xff]   ;;  %v11240_v51 = vld [vmem:[#allocation10 + $0x4cc] ss:$16 sps:$4 sm:$0xff]  }
 0x2fe   :  { %2284 = vmatprep.subr.bf16.mxu1 %v11171_v31  ;;  %2345 = vmatprep.subr.bf16.mxu0 %v11174_v39  ;;  %v11235_v31 = vld [vmem:[#allocation10 + $0x4c0] ss:$16 sps:$4 sm:$0xff]   ;;  %v11238_v39 = vld [vmem:[#allocation10 + $0x4c8] ss:$16 sps:$4 sm:$0xff]   ;;  %v11243_v56 = vld [vmem:[#allocation10 + $0x4a4] ss:$16 sps:$4 sm:$0xff]  }
 0x2ff   :  { %v1486_v6 = vshll.u32 %v13255_v63, 16  ;;  %v1498_v32 = vshrl.u32 %v13255_v63, 16 }
 0x301   :  { %2285 = vmatpush1.bf16.msra.mxu1 %v11169_v60  ;;  %2346 = vmatpush1.bf16.msra.mxu0 %v11172_v58  ;;  %v1488_v18 = vrot.slane %v1486_v6, 1  ;;  %v11246_v60 = vld [vmem:[#allocation10 + $0x4ac] ss:$16 sps:$4 sm:$0xff]   ;;  %v11241_v58 = vld [vmem:[#allocation10 + $0x4a0] ss:$16 sps:$4 sm:$0xff]  }
 0x302   :  { %2286 = vmatprep.subr.bf16.mxu1 %v11177_v52  ;;  %2347 = vmatprep.subr.bf16.mxu0 %v11180_v3  ;;  %v11244_v52 = vld [vmem:[#allocation10 + $0x4a8] ss:$16 sps:$4 sm:$0xff]   ;;  %v11249_v3 = vld [vmem:[#allocation10 + $0x484] ss:$16 sps:$4 sm:$0xff]   ;;  %v11247_v6 = vld [vmem:[#allocation10 + $0x480] ss:$16 sps:$4 sm:$0xff]  }
 0x303   :  { %v1489_v13 = vsel %vm14341_vm15, %v1484_v7, %v1488_v18  ;;  %v1500_v43 = vor.u32 %v1498_v32, %v1488_v18  ;;  %v2469_v7 = vrot.slane %v12988_v15, 1  ;;  %v2470_v18 = vrot.slane %v12990_v19, 1  ;;  %v11265_v32 = vld [vmem:[#allocation10 + $0x420] ss:$16 sps:$4 sm:$0xff]   ;;  %vm14357_vm15 = vmmov %vm14348_vm1 }
 0x304   :  { %1873 = vmatmul.mubr.bf16.gmra.mxu1 %v1489_v13  ;;  %1934 = vmatmul.mubr.bf16.gmra.mxu0 %v1489_v13  ;;  %v11261_v13 = vld [vmem:[#allocation10 + $0x444] ss:$16 sps:$4 sm:$0xff]  }
 0x305   :  { %2287 = vmatpush1.bf16.msra.mxu1 %v11175_v55  ;;  %2348 = vmatpush1.bf16.msra.mxu0 %v11178_v5  ;;  %v11255_v55 = vld [vmem:[#allocation10 + $0x464] ss:$16 sps:$4 sm:$0xff]   ;;  %v11258_v5 = vld [vmem:[#allocation10 + $0x46c] ss:$16 sps:$4 sm:$0xff]  }
 0x306   :  { %2288 = vmatprep.subr.bf16.mxu1 %v11183_v17  ;;  %2349 = vmatprep.subr.bf16.mxu0 %v11186_v59  ;;  %v11253_v17 = vld [vmem:[#allocation10 + $0x460] ss:$16 sps:$4 sm:$0xff]   ;;  %v11256_v59 = vld [vmem:[#allocation10 + $0x468] ss:$16 sps:$4 sm:$0xff]  }
 0x307   :  { %1882 = vmatprep.mubr.bf16.mxu1 %v1503_v25  ;;  %1943 = vmatprep.mubr.bf16.mxu0 %v1503_v25  ;;  %v11264_v25 = vld [vmem:[#allocation10 + $0x44c] ss:$16 sps:$4 sm:$0xff]  }
 0x309   :  { %2289 = vmatpush2.bf16.msra.mxu1 %v11181_v16  ;;  %2350 = vmatpush2.bf16.msra.mxu0 %v11184_v21  ;;  %v2471_v16 = vsel %vm2465_vm0, %v2469_v7, %v2470_v18  ;;  %v11262_v21 = vld [vmem:[#allocation10 + $0x448] ss:$16 sps:$4 sm:$0xff]   ;;  %v11333_v7 = vld [vmem:[#allocation12 + $0x4c4] ss:$16 sps:$4 sm:$0xff]  }
 0x30a   :  { %2290 = vmatprep.subr.bf16.mxu1 %v11189_v23  ;;  %2351 = vmatprep.subr.bf16.mxu0 %v11192_v29  ;;  %v11267_v23 = vld [vmem:[#allocation10 + $0x424] ss:$16 sps:$4 sm:$0xff]   ;;  %v11270_v29 = vld [vmem:[#allocation10 + $0x42c] ss:$16 sps:$4 sm:$0xff]  }
 0x30c   :  { %1883 = vmatmul.mubr.bf16.gmra.mxu1 %v1500_v43  ;;  %1944 = vmatmul.mubr.bf16.gmra.mxu0 %v1500_v43  ;;  %v11276_v43 = vld [vmem:[#allocation10 + $0x40c] ss:$16 sps:$4 sm:$0xff]  }
 0x30d   :  { %2291 = vmatpush2.bf16.msra.mxu1 %v11187_v20  ;;  %2352 = vmatpush2.bf16.msra.mxu0 %v11190_v36  ;;  %v11268_v20 = vld [vmem:[#allocation10 + $0x428] ss:$16 sps:$4 sm:$0xff]   ;;  %v11273_v36 = vld [vmem:[#allocation10 + $0x404] ss:$16 sps:$4 sm:$0xff]  }
 0x30e   :  { %2304 = vmatprep.mubr.bf16.mxu1 %v12988_v15  ;;  %2365 = vmatprep.mubr.bf16.mxu0 %v12988_v15  ;;  %v11259_v15 = vld [vmem:[#allocation10 + $0x440] ss:$16 sps:$4 sm:$0xff]  }
 0x30f   :  { %2292 = vmatprep.subr.bf16.mxu1 %v11195_v42  ;;  %2353 = vmatprep.subr.bf16.mxu0 %v11198_v44  ;;  %v11271_v42 = vld [vmem:[#allocation10 + $0x400] ss:$16 sps:$4 sm:$0xff]   ;;  %v11274_v44 = vld [vmem:[#allocation10 + $0x408] ss:$16 sps:$4 sm:$0xff]  }
 0x311   :  { %2293 = vmatpush2.bf16.msra.mxu1 %v11193_v62  ;;  %2354 = vmatpush2.bf16.msra.mxu0 %v11196_v1  ;;  %v11279_v62 = vld [vmem:[#allocation10 + $0x5e4] ss:$16 sps:$4 sm:$0xff]   ;;  %v11282_v1 = vld [vmem:[#allocation10 + $0x5ec] ss:$16 sps:$4 sm:$0xff]  }
 0x312   :  { %2294 = vmatprep.subr.bf16.mxu1 %v11201_v4  ;;  %2355 = vmatprep.subr.bf16.mxu0 %v11204_v10  ;;  %v11277_v4 = vld [vmem:[#allocation10 + $0x5e0] ss:$16 sps:$4 sm:$0xff]   ;;  %v11280_v10 = vld [vmem:[#allocation10 + $0x5e8] ss:$16 sps:$4 sm:$0xff]  }
 0x315   :  { %2295 = vmatpush2.bf16.msra.mxu1 %v11199_v33  ;;  %2356 = vmatpush2.bf16.msra.mxu0 %v11202_v40  ;;  %v11285_v33 = vld [vmem:[#allocation10 + $0x5c4] ss:$16 sps:$4 sm:$0xff]   ;;  %v11288_v40 = vld [vmem:[#allocation10 + $0x5cc] ss:$16 sps:$4 sm:$0xff]  }
 0x316   :  { %2296 = vmatprep.subr.bf16.mxu1 %v11207_v47  ;;  %2357 = vmatprep.subr.bf16.mxu0 %v11210_v49  ;;  %v11283_v47 = vld [vmem:[#allocation10 + $0x5c0] ss:$16 sps:$4 sm:$0xff]   ;;  %v11286_v49 = vld [vmem:[#allocation10 + $0x5c8] ss:$16 sps:$4 sm:$0xff]  }
 0x319   :  { %2297 = vmatpush2.bf16.msra.mxu1 %v11205_v57  ;;  %2358 = vmatpush2.bf16.msra.mxu0 %v11208_v61  ;;  %v11291_v57 = vld [vmem:[#allocation10 + $0x5a4] ss:$16 sps:$4 sm:$0xff]   ;;  %v11294_v61 = vld [vmem:[#allocation10 + $0x5ac] ss:$16 sps:$4 sm:$0xff]  }
 0x31a   :  { %2298 = vmatprep.subr.bf16.mxu1 %v11213_v34  ;;  %2359 = vmatprep.subr.bf16.mxu0 %v11216_v27  ;;  %v11289_v34 = vld [vmem:[#allocation10 + $0x5a0] ss:$16 sps:$4 sm:$0xff]   ;;  %v11292_v27 = vld [vmem:[#allocation10 + $0x5a8] ss:$16 sps:$4 sm:$0xff]  }
 0x31d   :  { %2299 = vmatpush2.bf16.msra.mxu1 %v11211_v50  ;;  %2360 = vmatpush2.bf16.msra.mxu0 %v11214_v53  ;;  %v11297_v50 = vld [vmem:[#allocation10 + $0x584] ss:$16 sps:$4 sm:$0xff]   ;;  %v11300_v53 = vld [vmem:[#allocation10 + $0x58c] ss:$16 sps:$4 sm:$0xff]  }
 0x31e   :  { %2300 = vmatprep.subr.bf16.mxu1 %v11219_v48  ;;  %2361 = vmatprep.subr.bf16.mxu0 %v11222_v24  ;;  %v11295_v48 = vld [vmem:[#allocation10 + $0x580] ss:$16 sps:$4 sm:$0xff]   ;;  %v11298_v24 = vld [vmem:[#allocation10 + $0x588] ss:$16 sps:$4 sm:$0xff]  }
 0x321   :  { %2301 = vmatpush2.bf16.msra.mxu1 %v11217_v26  ;;  %2362 = vmatpush2.bf16.msra.mxu0 %v11220_v14  ;;  %v11303_v26 = vld [vmem:[#allocation10 + $0x564] ss:$16 sps:$4 sm:$0xff]   ;;  %v11306_v14 = vld [vmem:[#allocation10 + $0x56c] ss:$16 sps:$4 sm:$0xff]  }
 0x322   :  { %2302 = vmatprep.subr.bf16.mxu1 %v11225_v30  ;;  %2363 = vmatprep.subr.bf16.mxu0 %v11228_v35  ;;  %v11301_v30 = vld [vmem:[#allocation10 + $0x560] ss:$16 sps:$4 sm:$0xff]   ;;  %v11304_v35 = vld [vmem:[#allocation10 + $0x568] ss:$16 sps:$4 sm:$0xff]  }
 0x325   :  { %2303 = vmatpush2.bf16.msra.mxu1 %v11223_v37  ;;  %2364 = vmatpush2.bf16.msra.mxu0 %v11226_v0  ;;  %v11309_v37 = vld [vmem:[#allocation10 + $0x544] ss:$16 sps:$4 sm:$0xff]   ;;  %v11312_v0 = vld [vmem:[#allocation10 + $0x54c] ss:$16 sps:$4 sm:$0xff]  }
 0x326   :  { %2802 = vmatprep.subr.bf16.mxu1 %v11231_v38  ;;  %2863 = vmatprep.subr.bf16.mxu0 %v11234_v45  ;;  %v11307_v38 = vld [vmem:[#allocation10 + $0x540] ss:$16 sps:$4 sm:$0xff]   ;;  %v11310_v45 = vld [vmem:[#allocation10 + $0x548] ss:$16 sps:$4 sm:$0xff]  }
 0x328   :  { %2305 = vmatmul.mubr.bf16.vlgmr.msra.gmra.mxu1 %v13229_v9  ;;  %2366 = vmatmul.mubr.bf16.vlgmr.msra.gmra.mxu0 %v13229_v9 }
 0x329   :  { %2314 = vmatprep.mubr.bf16.mxu1 %v12990_v19  ;;  %2375 = vmatprep.mubr.bf16.mxu0 %v12990_v19  ;;  %v11336_v19 = vld [vmem:[#allocation12 + $0x6c4] ss:$16 sps:$4 sm:$0xff]  }
 0x32a   :  { %2803 = vmatpush1.bf16.msra.mxu1 %v11229_v41  ;;  %2864 = vmatpush1.bf16.msra.mxu0 %v11232_v54  ;;  %v11315_v41 = vld [vmem:[#allocation10 + $0x524] ss:$16 sps:$4 sm:$0xff]   ;;  %v11318_v54 = vld [vmem:[#allocation10 + $0x52c] ss:$16 sps:$4 sm:$0xff]  }
 0x32b   :  { %2804 = vmatprep.subr.bf16.mxu1 %v11237_v46  ;;  %2865 = vmatprep.subr.bf16.mxu0 %v11240_v51  ;;  %v11313_v46 = vld [vmem:[#allocation10 + $0x520] ss:$16 sps:$4 sm:$0xff]   ;;  %v11316_v51 = vld [vmem:[#allocation10 + $0x528] ss:$16 sps:$4 sm:$0xff]  }
 0x32e   :  { %2805 = vmatpush1.bf16.msra.mxu1 %v11235_v31  ;;  %2866 = vmatpush1.bf16.msra.mxu0 %v11238_v39  ;;  %v11321_v31 = vld [vmem:[#allocation10 + $0x504] ss:$16 sps:$4 sm:$0xff]   ;;  %v11324_v39 = vld [vmem:[#allocation10 + $0x50c] ss:$16 sps:$4 sm:$0xff]  }
 0x32f   :  { %2806 = vmatprep.subr.bf16.mxu1 %v11243_v56  ;;  %2867 = vmatprep.subr.bf16.mxu0 %v11246_v60  ;;  %v11319_v56 = vld [vmem:[#allocation10 + $0x500] ss:$16 sps:$4 sm:$0xff]   ;;  %v11322_v60 = vld [vmem:[#allocation10 + $0x508] ss:$16 sps:$4 sm:$0xff]  }
 0x330   :  { %2315 = vmatmul.mubr.bf16.gmra.mxu1 %v13235_v28  ;;  %2376 = vmatmul.mubr.bf16.gmra.mxu0 %v13235_v28 }
 0x331   :  { %2324 = vmatprep.mubr.bf16.mxu1 %v13231_v22  ;;  %2385 = vmatprep.mubr.bf16.mxu0 %v13231_v22 }
 0x332   :  { %2807 = vmatpush1.bf16.msra.mxu1 %v11241_v58  ;;  %2868 = vmatpush1.bf16.msra.mxu0 %v11244_v52  ;;  %v2467_v58 = vrot.slane %v13235_v28, 1  ;;  %v2474_v52 = vrot.slane %v13231_v22, 1  ;;  %v11327_v22 = vld [vmem:[#allocation12 + $0x4e4] ss:$16 sps:$4 sm:$0xff]  }
 0x333   :  { %2808 = vmatprep.subr.bf16.mxu1 %v11249_v3  ;;  %2869 = vmatprep.subr.bf16.mxu0 %v11252_v2  ;;  %v2466_v3 = vrot.slane %v13229_v9, 1  ;;  %v11325_v9 = vld [vmem:[#allocation12 + $0x4e0] ss:$16 sps:$4 sm:$0xff]  }
 0x335   :  { %v2468_v2 = vsel %vm2465_vm0, %v2466_v3, %v2467_v58  ;;  %v11397_v3 = vld [vmem:[#allocation12 + $0x560] ss:$16 sps:$4 sm:$0xff]  }
 0x336   :  { %2809 = vmatpush1.bf16.msra.mxu1 %v11247_v6  ;;  %2870 = vmatpush1.bf16.msra.mxu0 %v11250_v11  ;;  %v2475_v6 = vsel %vm2465_vm0, %v2470_v18, %v2474_v52  ;;  %v2472_v11 = vrot.slane %v13255_v63, 1  ;;  %v11331_v18 = vld [vmem:[#allocation12 + $0x4c0] ss:$16 sps:$4 sm:$0xff]  }
 0x337   :  { %2810 = vmatprep.subr.bf16.mxu1 %v11255_v55  ;;  %2871 = vmatprep.subr.bf16.mxu0 %v11258_v5  ;;  %v11328_v55 = vld [vmem:[#allocation12 + $0x6e0] ss:$16 sps:$4 sm:$0xff]   ;;  %v11330_v5 = vld [vmem:[#allocation12 + $0x6e4] ss:$16 sps:$4 sm:$0xff]  }
 0x338   :  { %2325 = vmatmul.mubr.bf16.gmra.mxu1 %v13255_v63  ;;  %2386 = vmatmul.mubr.bf16.gmra.mxu0 %v13255_v63  ;;  %v2473_v28 = vsel %vm2465_vm0, %v2467_v58, %v2472_v11  ;;  %v11334_v63 = vld [vmem:[#allocation12 + $0x6c0] ss:$16 sps:$4 sm:$0xff]   ;;  %v11399_v58 = vld [vmem:[#allocation12 + $0x564] ss:$16 sps:$4 sm:$0xff]  }
 0x339   :  { %2834 = vmatprep.mubr.bf16.mxu1 %v2471_v16  ;;  %2895 = vmatprep.mubr.bf16.mxu0 %v2471_v16  ;;  %v11345_v16 = vld [vmem:[#allocation12 + $0x484] ss:$16 sps:$4 sm:$0xff]  }
 0x33a   :  { %2811 = vmatpush1.bf16.msra.mxu1 %v11253_v17  ;;  %2872 = vmatpush1.bf16.msra.mxu0 %v11256_v59  ;;  %v11339_v17 = vld [vmem:[#allocation12 + $0x4a4] ss:$16 sps:$4 sm:$0xff]  }
 0x33b   :  { %2812 = vmatprep.subr.bf16.mxu1 %v11261_v13  ;;  %2873 = vmatprep.subr.bf16.mxu0 %v11264_v25  ;;  %v11342_v59 = vld [vmem:[#allocation12 + $0x6a4] ss:$16 sps:$4 sm:$0xff]   ;;  %v11337_v13 = vld [vmem:[#allocation12 + $0x4a0] ss:$16 sps:$4 sm:$0xff]  }
 0x33c   :  { %v11340_v25 = vld [vmem:[#allocation12 + $0x6a0] ss:$16 sps:$4 sm:$0xff]  }
 0x33e   :  { %2813 = vmatpush1.bf16.msra.mxu1 %v11259_v15  ;;  %2874 = vmatpush1.bf16.msra.mxu0 %v11262_v21  ;;  %v11348_v15 = vld [vmem:[#allocation12 + $0x684] ss:$16 sps:$4 sm:$0xff]   ;;  %v11343_v21 = vld [vmem:[#allocation12 + $0x480] ss:$16 sps:$4 sm:$0xff]  }
 0x33f   :  { %2814 = vmatprep.subr.bf16.mxu1 %v11267_v23  ;;  %2875 = vmatprep.subr.bf16.mxu0 %v11270_v29  ;;  %v11346_v23 = vld [vmem:[#allocation12 + $0x680] ss:$16 sps:$4 sm:$0xff]   ;;  %v11351_v29 = vld [vmem:[#allocation12 + $0x464] ss:$16 sps:$4 sm:$0xff]  }
 0x342   :  { %2815 = vmatpush1.bf16.msra.mxu1 %v11265_v32  ;;  %2876 = vmatpush1.bf16.msra.mxu0 %v11268_v20  ;;  %v11354_v32 = vld [vmem:[#allocation12 + $0x664] ss:$16 sps:$4 sm:$0xff]   ;;  %v11349_v20 = vld [vmem:[#allocation12 + $0x460] ss:$16 sps:$4 sm:$0xff]  }
 0x343   :  { %2816 = vmatprep.subr.bf16.mxu1 %v11273_v36  ;;  %2877 = vmatprep.subr.bf16.mxu0 %v11276_v43  ;;  %v11352_v36 = vld [vmem:[#allocation12 + $0x660] ss:$16 sps:$4 sm:$0xff]   ;;  %v11357_v43 = vld [vmem:[#allocation12 + $0x444] ss:$16 sps:$4 sm:$0xff]  }
 0x346   :  { %2817 = vmatpush1.bf16.msra.mxu1 %v11271_v42  ;;  %2878 = vmatpush1.bf16.msra.mxu0 %v11274_v44  ;;  %v11360_v42 = vld [vmem:[#allocation12 + $0x644] ss:$16 sps:$4 sm:$0xff]   ;;  %v11355_v44 = vld [vmem:[#allocation12 + $0x440] ss:$16 sps:$4 sm:$0xff]  }
 0x347   :  { %2818 = vmatprep.subr.bf16.mxu1 %v11279_v62  ;;  %2879 = vmatprep.subr.bf16.mxu0 %v11282_v1  ;;  %v11358_v62 = vld [vmem:[#allocation12 + $0x640] ss:$16 sps:$4 sm:$0xff]   ;;  %v11363_v1 = vld [vmem:[#allocation12 + $0x424] ss:$16 sps:$4 sm:$0xff]  }
 0x34a   :  { %2819 = vmatpush2.bf16.msra.mxu1 %v11277_v4  ;;  %2880 = vmatpush2.bf16.msra.mxu0 %v11280_v10  ;;  %v11366_v4 = vld [vmem:[#allocation12 + $0x624] ss:$16 sps:$4 sm:$0xff]   ;;  %v11361_v10 = vld [vmem:[#allocation12 + $0x420] ss:$16 sps:$4 sm:$0xff]  }
 0x34b   :  { %2820 = vmatprep.subr.bf16.mxu1 %v11285_v33  ;;  %2881 = vmatprep.subr.bf16.mxu0 %v11288_v40  ;;  %v11364_v33 = vld [vmem:[#allocation12 + $0x620] ss:$16 sps:$4 sm:$0xff]   ;;  %v11369_v40 = vld [vmem:[#allocation12 + $0x404] ss:$16 sps:$4 sm:$0xff]  }
 0x34e   :  { %2821 = vmatpush2.bf16.msra.mxu1 %v11283_v47  ;;  %2882 = vmatpush2.bf16.msra.mxu0 %v11286_v49  ;;  %v11372_v47 = vld [vmem:[#allocation12 + $0x604] ss:$16 sps:$4 sm:$0xff]   ;;  %v11367_v49 = vld [vmem:[#allocation12 + $0x400] ss:$16 sps:$4 sm:$0xff]  }
 0x34f   :  { %2822 = vmatprep.subr.bf16.mxu1 %v11291_v57  ;;  %2883 = vmatprep.subr.bf16.mxu0 %v11294_v61  ;;  %v11370_v57 = vld [vmem:[#allocation12 + $0x600] ss:$16 sps:$4 sm:$0xff]   ;;  %v11375_v61 = vld [vmem:[#allocation12 + $0x5e4] ss:$16 sps:$4 sm:$0xff]  }
 0x352   :  { %2823 = vmatpush2.bf16.msra.mxu1 %v11289_v34  ;;  %2884 = vmatpush2.bf16.msra.mxu0 %v11292_v27  ;;  %v11378_v34 = vld [vmem:[#allocation12 + $0x7e4] ss:$16 sps:$4 sm:$0xff]   ;;  %v11373_v27 = vld [vmem:[#allocation12 + $0x5e0] ss:$16 sps:$4 sm:$0xff]  }
 0x353   :  { %2824 = vmatprep.subr.bf16.mxu1 %v11297_v50  ;;  %2885 = vmatprep.subr.bf16.mxu0 %v11300_v53  ;;  %v11376_v50 = vld [vmem:[#allocation12 + $0x7e0] ss:$16 sps:$4 sm:$0xff]   ;;  %v11381_v53 = vld [vmem:[#allocation12 + $0x5c4] ss:$16 sps:$4 sm:$0xff]  }
 0x356   :  { %2825 = vmatpush2.bf16.msra.mxu1 %v11295_v48  ;;  %2886 = vmatpush2.bf16.msra.mxu0 %v11298_v24  ;;  %v11384_v48 = vld [vmem:[#allocation12 + $0x7c4] ss:$16 sps:$4 sm:$0xff]   ;;  %v11379_v24 = vld [vmem:[#allocation12 + $0x5c0] ss:$16 sps:$4 sm:$0xff]  }
 0x357   :  { %2826 = vmatprep.subr.bf16.mxu1 %v11303_v26  ;;  %2887 = vmatprep.subr.bf16.mxu0 %v11306_v14  ;;  %v11382_v26 = vld [vmem:[#allocation12 + $0x7c0] ss:$16 sps:$4 sm:$0xff]  }
 0x35a   :  { %2827 = vmatpush2.bf16.msra.mxu1 %v11301_v30  ;;  %2888 = vmatpush2.bf16.msra.mxu0 %v11304_v35 }
 0x35b   :  { %2828 = vmatprep.subr.bf16.mxu1 %v11309_v37  ;;  %2889 = vmatprep.subr.bf16.mxu0 %v11312_v0  ;;  %v11387_v37 = vld [vmem:[#allocation12 + $0x5a4] ss:$16 sps:$4 sm:$0xff]  }
 0x35c   :  { %v11390_v0 = vld [vmem:[#allocation12 + $0x7a4] ss:$16 sps:$4 sm:$0xff]  }
 0x35e   :  { %2829 = vmatpush2.bf16.msra.mxu1 %v11307_v38  ;;  %2890 = vmatpush2.bf16.msra.mxu0 %v11310_v45  ;;  %v11385_v38 = vld [vmem:[#allocation12 + $0x5a0] ss:$16 sps:$4 sm:$0xff]  }
 0x35f   :  { %2830 = vmatprep.subr.bf16.mxu1 %v11315_v41  ;;  %2891 = vmatprep.subr.bf16.mxu0 %v11318_v54  ;;  %v11388_v45 = vld [vmem:[#allocation12 + $0x7a0] ss:$16 sps:$4 sm:$0xff]  }
 0x362   :  { %2831 = vmatpush2.bf16.msra.mxu1 %v11313_v46  ;;  %2892 = vmatpush2.bf16.msra.mxu0 %v11316_v51  ;;  %v11393_v46 = vld [vmem:[#allocation12 + $0x584] ss:$16 sps:$4 sm:$0xff]  }
 0x363   :  { %2832 = vmatprep.subr.bf16.mxu1 %v11321_v31  ;;  %2893 = vmatprep.subr.bf16.mxu0 %v11324_v39  ;;  %v11396_v51 = vld [vmem:[#allocation12 + $0x784] ss:$16 sps:$4 sm:$0xff]   ;;  %v11391_v31 = vld [vmem:[#allocation12 + $0x580] ss:$16 sps:$4 sm:$0xff]  }
 0x364   :  { %v11394_v39 = vld [vmem:[#allocation12 + $0x780] ss:$16 sps:$4 sm:$0xff]  }
 0x366   :  { %2833 = vmatpush2.bf16.msra.mxu1 %v11319_v56  ;;  %2894 = vmatpush2.bf16.msra.mxu0 %v11322_v60 }
 0x367   :  { %4148 = vmatprep.subr.bf16.mxu1 %v11327_v22  ;;  %4209 = vmatprep.subr.bf16.mxu0 %v11330_v5  ;;  %v11403_v22 = vld [vmem:[#allocation12 + $0x540] ss:$16 sps:$4 sm:$0xff]  }
 0x369   :  { %2835 = vmatmul.mubr.bf16.vlgmr.msra.gmra.mxu1 %v2468_v2  ;;  %2896 = vmatmul.mubr.bf16.vlgmr.msra.gmra.mxu0 %v2468_v2  ;;  %v11400_v2 = vld [vmem:[#allocation12 + $0x760] ss:$16 sps:$4 sm:$0xff]  }
 0x36a   :  { %2844 = vmatprep.mubr.bf16.mxu1 %v2475_v6  ;;  %2905 = vmatprep.mubr.bf16.mxu0 %v2475_v6 }
 0x36b   :  { %4149 = vmatpush1.bf16.msra.mxu1 %v11325_v9  ;;  %4210 = vmatpush1.bf16.msra.mxu0 %v11328_v55  ;;  %v11408_v9 = vld [vmem:[#allocation12 + $0x744] ss:$16 sps:$4 sm:$0xff]   ;;  %v11406_v55 = vld [vmem:[#allocation12 + $0x740] ss:$16 sps:$4 sm:$0xff]  }
 0x36c   :  { %4150 = vmatprep.subr.bf16.mxu1 %v11333_v7  ;;  %4211 = vmatprep.subr.bf16.mxu0 %v11336_v19 }
 0x36f   :  { %4151 = vmatpush1.bf16.msra.mxu1 %v11331_v18  ;;  %4212 = vmatpush1.bf16.msra.mxu0 %v11334_v63  ;;  %v11411_v63 = vld [vmem:[#allocation12 + $0x524] ss:$16 sps:$4 sm:$0xff]  }
 0x370   :  { %4152 = vmatprep.subr.bf16.mxu1 %v11339_v17  ;;  %4213 = vmatprep.subr.bf16.mxu0 %v11342_v59  ;;  %v11414_v17 = vld [vmem:[#allocation12 + $0x724] ss:$16 sps:$4 sm:$0xff]   ;;  %v11409_v59 = vld [vmem:[#allocation12 + $0x520] ss:$16 sps:$4 sm:$0xff]  }
 0x371   :  { %2845 = vmatmul.mubr.bf16.gmra.mxu1 %v2473_v28  ;;  %2906 = vmatmul.mubr.bf16.gmra.mxu0 %v2473_v28  ;;  %v11405_v28 = vld [vmem:[#allocation12 + $0x544] ss:$16 sps:$4 sm:$0xff]  }
 0x372   :  { %2854 = vmatprep.mubr.bf16.mxu1 %v2474_v52  ;;  %2915 = vmatprep.mubr.bf16.mxu0 %v2474_v52  ;;  %v11402_v52 = vld [vmem:[#allocation12 + $0x764] ss:$16 sps:$4 sm:$0xff]  }
 0x373   :  { %4153 = vmatpush1.bf16.msra.mxu1 %v11337_v13  ;;  %4214 = vmatpush1.bf16.msra.mxu0 %v11340_v25  ;;  %v11412_v13 = vld [vmem:[#allocation12 + $0x720] ss:$16 sps:$4 sm:$0xff]  }
 0x374   :  { %4154 = vmatprep.subr.bf16.mxu1 %v11345_v16  ;;  %4215 = vmatprep.subr.bf16.mxu0 %v11348_v15  ;;  %v11417_v15 = vld [vmem:[#allocation12 + $0x504] ss:$16 sps:$4 sm:$0xff]  }
 0x377   :  { %4155 = vmatpush1.bf16.msra.mxu1 %v11343_v21  ;;  %4216 = vmatpush1.bf16.msra.mxu0 %v11346_v23  ;;  %v11420_v21 = vld [vmem:[#allocation12 + $0x704] ss:$16 sps:$4 sm:$0xff]   ;;  %v11415_v23 = vld [vmem:[#allocation12 + $0x500] ss:$16 sps:$4 sm:$0xff]  }
 0x378   :  { %4156 = vmatprep.subr.bf16.mxu1 %v11351_v29  ;;  %4217 = vmatprep.subr.bf16.mxu0 %v11354_v32  ;;  %v11418_v29 = vld [vmem:[#allocation12 + $0x700] ss:$16 sps:$4 sm:$0xff]  }
 0x379   :  { %2855 = vmatmul.mubr.bf16.gmra.mxu1 %v2472_v11  ;;  %2916 = vmatmul.mubr.bf16.gmra.mxu0 %v2472_v11 }
 0x37b   :  { %4157 = vmatpush1.bf16.msra.mxu1 %v11349_v20  ;;  %4218 = vmatpush1.bf16.msra.mxu0 %v11352_v36 }
 0x37c   :  { %4158 = vmatprep.subr.bf16.mxu1 %v11357_v43  ;;  %4219 = vmatprep.subr.bf16.mxu0 %v11360_v42  ;;  %v11423_v42 = vld [vmem:[#allocation12 + $0x4ec] ss:$16 sps:$4 sm:$0xff]  }
 0x37f   :  { %4159 = vmatpush1.bf16.msra.mxu1 %v11355_v44  ;;  %4220 = vmatpush1.bf16.msra.mxu0 %v11358_v62 }
 0x380   :  { %4160 = vmatprep.subr.bf16.mxu1 %v11363_v1  ;;  %4221 = vmatprep.subr.bf16.mxu0 %v11366_v4  ;;  %v11426_v1 = vld [vmem:[#allocation12 + $0x6ec] ss:$16 sps:$4 sm:$0xff]  }
 0x383   :  { %4161 = vmatpush1.bf16.msra.mxu1 %v11361_v10  ;;  %4222 = vmatpush1.bf16.msra.mxu0 %v11364_v33 }
 0x384   :  { %4162 = vmatprep.subr.bf16.mxu1 %v11369_v40  ;;  %4223 = vmatprep.subr.bf16.mxu0 %v11372_v47 }
 0x387   :  { %4163 = vmatpush1.bf16.msra.mxu1 %v11367_v49  ;;  %4224 = vmatpush1.bf16.msra.mxu0 %v11370_v57 }
 0x388   :  { %4164 = vmatprep.subr.bf16.mxu1 %v11375_v61  ;;  %4225 = vmatprep.subr.bf16.mxu0 %v11378_v34 }
 0x38b   :  { %4165 = vmatpush2.bf16.msra.mxu1 %v11373_v27  ;;  %4226 = vmatpush2.bf16.msra.mxu0 %v11376_v50 }
 0x38c   :  { %4166 = vmatprep.subr.bf16.mxu1 %v11381_v53  ;;  %4227 = vmatprep.subr.bf16.mxu0 %v11384_v48 }
 0x38f   :  { %4167 = vmatpush2.bf16.msra.mxu1 %v11379_v24  ;;  %4228 = vmatpush2.bf16.msra.mxu0 %v11382_v26 }
 0x390   :  { %4168 = vmatprep.subr.bf16.mxu1 %v11387_v37  ;;  %4229 = vmatprep.subr.bf16.mxu0 %v11390_v0 }
 0x393   :  { %4169 = vmatpush2.bf16.msra.mxu1 %v11385_v38  ;;  %4230 = vmatpush2.bf16.msra.mxu0 %v11388_v45 }
 0x394   :  { %4170 = vmatprep.subr.bf16.mxu1 %v11393_v46  ;;  %4231 = vmatprep.subr.bf16.mxu0 %v11396_v51 }
 0x397   :  { %4171 = vmatpush2.bf16.msra.mxu1 %v11391_v31  ;;  %4232 = vmatpush2.bf16.msra.mxu0 %v11394_v39 }
 0x398   :  { %4172 = vmatprep.subr.bf16.mxu1 %v11399_v58  ;;  %4233 = vmatprep.subr.bf16.mxu0 %v11402_v52 }
 0x39b   :  { %4173 = vmatpush2.bf16.msra.mxu1 %v11397_v3  ;;  %4234 = vmatpush2.bf16.msra.mxu0 %v11400_v2 }
 0x39c   :  { %4174 = vmatprep.subr.bf16.mxu1 %v11405_v28  ;;  %4235 = vmatprep.subr.bf16.mxu0 %v11408_v9 }
 0x39f   :  { %4175 = vmatpush2.bf16.msra.mxu1 %v11403_v22  ;;  %4236 = vmatpush2.bf16.msra.mxu0 %v11406_v55 }
 0x3a0   :  { %4176 = vmatprep.subr.bf16.mxu1 %v11411_v63  ;;  %4237 = vmatprep.subr.bf16.mxu0 %v11414_v17 }
 0x3a3   :  { %4177 = vmatpush2.bf16.msra.mxu1 %v11409_v59  ;;  %4238 = vmatpush2.bf16.msra.mxu0 %v11412_v13  ;;  %v2947_v13 = vshrl.u32 %v150_v8, 7 }
 0x3a4   :  { %4178 = vmatprep.subr.bf16.mxu1 %v11417_v15  ;;  %4239 = vmatprep.subr.bf16.mxu0 %v11420_v21  ;;  %v2944_v15 = vld [vmem:[#allocation15] sm:$0xf] }
 0x3a5   :  { %v13352_v21 = vsub.s32 1, %v2947_v13 }
 0x3a7   :  { %4179 = vmatpush2.bf16.msra.mxu1 %v11415_v23  ;;  %4240 = vmatpush2.bf16.msra.mxu0 %v11418_v29  ;;  %v13354_v23 = vsub.s32 3, %v2947_v13 }
 0x3a8   :  { %v13307_v30 = vpop.f32.mrf.mxu1  ;;  %v13309_v35 = vpop.f32.mrf.mxu0  ;;  %4270 = vmatprep.subr.bf16.mxu1 %v11423_v42  ;;  %4331 = vmatprep.subr.bf16.mxu0 %v11426_v1 }
 0x3a9   :  { %v13368_v1 = vrot.slane %v2944_v15, %v13354_v23 }
 0x3aa   :  { %v13311_v41 = vpop.f32.mrf.mxu1  ;;  %v13313_v54 = vpop.f32.mrf.mxu0 }
 0x3ac   :  { %v1868_v56 = vpop.f32.mrf.mxu1  ;;  %v1929_v60 = vpop.f32.mrf.mxu0 }
 0x3ae   :  { %v13315_v6 = vpop.f32.mrf.mxu1  ;;  %v13317_v11 = vpop.f32.mrf.mxu0 }
 0x3c4   :  { %v13319_v5 = vpop.f32.mrf.mxu1  ;;  %v13321_v7 = vpop.f32.mrf.mxu0 }
 0x3c6   :  { %v13323_v19 = vpop.f32.mrf.mxu1  ;;  %v13325_v18 = vpop.f32.mrf.mxu0 }
 0x3c8   :  { %v1878_v25 = vpop.f32.mrf.mxu1  ;;  %v1939_v16 = vpop.f32.mrf.mxu0 }
 0x3ca   :  { %v13327_v32 = vpop.f32.mrf.mxu1  ;;  %v13329_v20 = vpop.f32.mrf.mxu0 }
 0x3cc   :  { %v1884_v36 = vpop.f32.mrf.mxu1  ;;  %v1945_v43 = vpop.f32.mrf.mxu0 }
 0x3ce   :  { %v1886_v44 = vpop.f32.mrf.mxu1  ;;  %v1947_v62 = vpop.f32.mrf.mxu0 }
 0x3d0   :  { %v1888_v4 = vpop.f32.mrf.mxu1  ;;  %v1949_v10 = vpop.f32.mrf.mxu0 }
 0x3d2   :  { %v1889_v33 = vpop.f32.mrf.mxu1  ;;  %v1950_v40 = vpop.f32.mrf.mxu0 }
 0x3e8   :  { %v2306_v47 = vpop.f32.mrf.mxu1  ;;  %v2367_v49 = vpop.f32.mrf.mxu0 }
 0x3e9   :  { %v2307_v29 = vadd.f32 %v2306_v47, %v13307_v30 }
 0x3ea   :  { %v2308_v57 = vpop.f32.mrf.mxu1  ;;  %v2369_v61 = vpop.f32.mrf.mxu0 }
 0x3eb   :  { %v2309_v4 = vadd.f32 %v2308_v57, %v13311_v41  ;;  %v2370_v30 = vadd.f32 %v2369_v61, %v13313_v54 }
 0x3ec   :  { %v2310_v34 = vpop.f32.mrf.mxu1  ;;  %v2371_v27 = vpop.f32.mrf.mxu0 }
 0x3ed   :  { %v13331_v50 = vadd.f32 %v2310_v34, %v1868_v56  ;;  %v13333_v53 = vadd.f32 %v2371_v27, %v1929_v60 }
 0x3ee   :  { %v2312_v48 = vpop.f32.mrf.mxu1  ;;  %v2373_v24 = vpop.f32.mrf.mxu0 }
 0x3ef   :  { %v2313_v33 = vadd.f32 %v2312_v48, %v13315_v6  ;;  %v2374_v40 = vadd.f32 %v2373_v24, %v13317_v11 }
 0x3f0   :  { %v2316_v26 = vpop.f32.mrf.mxu1  ;;  %v2377_v37 = vpop.f32.mrf.mxu0 }
 0x3f1   :  { %v2378_v41 = vadd.f32 %v2377_v37, %v13321_v7 }
 0x3f2   :  { %v2318_v0 = vpop.f32.mrf.mxu1  ;;  %v2379_v38 = vpop.f32.mrf.mxu0 }
 0x3f3   :  { %v2319_v54 = vadd.f32 %v2318_v0, %v13323_v19  ;;  %v2380_v57 = vadd.f32 %v2379_v38, %v13325_v18 }
 0x3f4   :  { %v2320_v45 = vpop.f32.mrf.mxu1  ;;  %v2381_v46 = vpop.f32.mrf.mxu0 }
 0x3f5   :  { %v13335_v51 = vadd.f32 %v2320_v45, %v1878_v25  ;;  %v13337_v31 = vadd.f32 %v2381_v46, %v1939_v16  ;;  %v13348_v25 = vsub.s32 0, %v2947_v13  ;;  %v13350_v16 = vsub.s32 2, %v2947_v13 }
 0x3f6   :  { %v2322_v39 = vpop.f32.mrf.mxu1  ;;  %v2383_v58 = vpop.f32.mrf.mxu0 }
 0x3f7   :  { %v13362_v42 = vrot.slane %v2944_v15, %v13350_v16 }
 0x3f8   :  { %v2326_v52 = vpop.f32.mrf.mxu1  ;;  %v2387_v3 = vpop.f32.mrf.mxu0 }
 0x3f9   :  { %v13339_v56 = vadd.f32 %v2326_v52, %v1884_v36  ;;  %v13341_v60 = vadd.f32 %v2387_v3, %v1945_v43  ;;  %v2368_v36 = vadd.f32 %v2367_v49, %v13309_v35  ;;  %v13359_v43 = vrot.slane %v2944_v15, %v13348_v25 }
 0x3fa   :  { %v2328_v2 = vpop.f32.mrf.mxu1  ;;  %v2389_v28 = vpop.f32.mrf.mxu0  ;;  %v2317_v52 = vadd.f32 %v2316_v26, %v13319_v5 }
 0x3fb   :  { %v13343_v9 = vadd.f32 %v2328_v2, %v1886_v44  ;;  %v13345_v22 = vadd.f32 %v2389_v28, %v1947_v62  ;;  %v13365_v62 = vrot.slane %v2944_v15, %v13352_v21  ;;  %v13383_v2 = vadd.f32 %v2322_v39, %v13327_v32 }
 0x3fc   :  { %v2330_v55 = vpop.f32.mrf.mxu1  ;;  %v2391_v63 = vpop.f32.mrf.mxu0  ;;  %v13386_v28 = vadd.f32 %v2383_v58, %v13329_v20 }
 0x3fe   :  { %v2331_v17 = vpop.f32.mrf.mxu1  ;;  %v2392_v59 = vpop.f32.mrf.mxu0 }
 0x429   :  { %v2836_v8 = vpop.f32.mrf.mxu1  ;;  %v2897_v44 = vpop.f32.mrf.mxu0 }
 0x42a   :  { %v2924_v10 = vadd.f32 %v2836_v8, %v2307_v29  ;;  %v2926_v35 = vadd.f32 %v2897_v44, %v2368_v36 }
 0x42b   :  { %v2838_v47 = vpop.f32.mrf.mxu1  ;;  %v2899_v49 = vpop.f32.mrf.mxu0 }
 0x42c   :  { %v2966_v34 = vadd.f32 %v13359_v43, %v2924_v10  ;;  %v2968_v27 = vadd.f32 %v13362_v42, %v2926_v35  ;;  %v2925_v45 = vadd.f32 %v2838_v47, %v2309_v4  ;;  %v2927_v46 = vadd.f32 %v2899_v49, %v2370_v30 }
 0x42d   :  { %v2840_v61 = vpop.f32.mrf.mxu1  ;;  %v2901_v6 = vpop.f32.mrf.mxu0 }
 0x42e   :  { %v2986_v48 = vmax.f32 %v2966_v34, 0.0  ;;  %v2988_v11 = vmax.f32 %v2968_v27, 0.0  ;;  %v2967_v24 = vadd.f32 %v13365_v62, %v2925_v45  ;;  %v2969_v3 = vadd.f32 %v13368_v1, %v2927_v46 }
 0x42f   :  { %v2928_v5 = vadd.f32 %v2840_v61, %v13331_v50  ;;  %v2930_v7 = vadd.f32 %v2901_v6, %v13333_v53  ;;  %v2842_v19 = vpop.f32.mrf.mxu1  ;;  %v2903_v18 = vpop.f32.mrf.mxu0 }
 0x430   :  { %v3026_v26 = vrot.slane %v2986_v48, 7  ;;  %v3028_v37 = vrot.slane %v2988_v11, 7  ;;  %v2987_v0 = vmax.f32 %v2967_v24, 0.0  ;;  %v2989_v38 = vmax.f32 %v2969_v3, 0.0 }
 0x431   :  { %v2970_v55 = vadd.f32 %v13359_v43, %v2928_v5  ;;  %v2972_v63 = vadd.f32 %v13362_v42, %v2930_v7  ;;  %v2929_v17 = vadd.f32 %v2842_v19, %v2313_v33  ;;  %v2931_v32 = vadd.f32 %v2903_v18, %v2374_v40  ;;  %v2846_v39 = vpop.f32.mrf.mxu1  ;;  %v2907_v59 = vpop.f32.mrf.mxu0 }
 0x432   :  { %3082 = vst [vmem:[#allocation3] sm:$0xfe] %v3026_v26  ;;  %3084 = vst [vmem:[#allocation3 + $0x10] sm:$0xfe] %v3028_v37  ;;  %v3027_v20 = vrot.slane %v2987_v0, 7  ;;  %v3029_v50 = vrot.slane %v2989_v38, 7  ;;  %v2932_v58 = vadd.f32 %v2846_v39, %v2317_v52  ;;  %v2934_v53 = vadd.f32 %v2907_v59, %v2378_v41 }
 0x433   :  { %v2990_v13 = vmax.f32 %v2970_v55, 0.0  ;;  %v2992_v15 = vmax.f32 %v2972_v63, 0.0  ;;  %v2971_v29 = vadd.f32 %v13365_v62, %v2929_v17  ;;  %v2973_v36 = vadd.f32 %v13368_v1, %v2931_v32  ;;  %v2848_v8 = vpop.f32.mrf.mxu1  ;;  %v2909_v44 = vpop.f32.mrf.mxu0 }
 0x434   :  { %3083 = vst [vmem:[#allocation3 + $0x8] sm:$0xfe] %v3027_v20  ;;  %3085 = vst [vmem:[#allocation3 + $0x18] sm:$0xfe] %v3029_v50  ;;  %v2974_v4 = vadd.f32 %v13359_v43, %v2932_v58  ;;  %v2976_v30 = vadd.f32 %v13362_v42, %v2934_v53  ;;  %v2933_v10 = vadd.f32 %v2848_v8, %v2319_v54 }
 0x435   :  { %v2935_v35 = vadd.f32 %v2909_v44, %v2380_v57  ;;  %v3030_v33 = vrot.slane %v2990_v13, 7  ;;  %v3034_v40 = vrot.slane %v2992_v15, 7  ;;  %v2991_v47 = vmax.f32 %v2971_v29, 0.0  ;;  %v2850_v34 = vpop.f32.mrf.mxu1  ;;  %v2911_v27 = vpop.f32.mrf.mxu0 }
 0x436   :  { %v2993_v49 = vmax.f32 %v2973_v36, 0.0  ;;  %v2994_v45 = vmax.f32 %v2974_v4, 0.0  ;;  %v2996_v46 = vmax.f32 %v2976_v30, 0.0  ;;  %v2975_v52 = vadd.f32 %v13365_v62, %v2933_v10 }
 0x437   :  { %v2977_v41 = vadd.f32 %v13368_v1, %v2935_v35  ;;  %v13399_v61 = vsel %vm14344_vm12, %v3026_v26, %v3030_v33  ;;  %v13402_v6 = vsel %vm14345_vm13, %v3028_v37, %v3034_v40  ;;  %v3032_v54 = vrot.slane %v2991_v47, 7  ;;  %v2852_v48 = vpop.f32.mrf.mxu1  ;;  %v2913_v11 = vpop.f32.mrf.mxu0  ;;  %vm14358_vm12 = vmmov %vm14348_vm1 }
 0x438   :  { %v3036_v57 = vrot.slane %v2993_v49, 7  ;;  %v3038_v24 = vrot.slane %v2994_v45, 7  ;;  %v3042_v3 = vrot.slane %v2996_v46, 7  ;;  %v2995_v5 = vmax.f32 %v2975_v52, 0.0  ;;  %vm14359_vm13 = vmmov %vm14348_vm1 }
 0x439   :  { %v2997_v7 = vmax.f32 %v2977_v41, 0.0  ;;  %v3033_v19 = vsel %vm14346_vm3, %v3027_v20, %v3032_v54  ;;  %v2936_v0 = vadd.f32 %v2850_v34, %v13335_v51  ;;  %v2938_v26 = vadd.f32 %v2911_v27, %v13337_v31  ;;  %v2856_v38 = vpop.f32.mrf.mxu1  ;;  %v2917_v55 = vpop.f32.mrf.mxu0 }
 0x43a   :  { %v3037_v18 = vsel %vm14347_vm4, %v3029_v50, %v3036_v57  ;;  %v3039_v37 = vsel %vm14348_vm1, %v3030_v33, %v3038_v24  ;;  %v3043_v63 = vsel %vm14349_vm6, %v3034_v40, %v3042_v3  ;;  %v3040_v17 = vrot.slane %v2995_v5, 7 }
 0x43b   :  { %v3044_v32 = vrot.slane %v2997_v7, 7  ;;  %3090 = vst [vmem:[#allocation3 + $0x40] sm:$0xff] %v3039_v37  ;;  %3092 = vst [vmem:[#allocation3 + $0x50] sm:$0xff] %v3043_v63  ;;  %v2978_v39 = vadd.f32 %v13359_v43, %v2936_v0  ;;  %v2980_v59 = vadd.f32 %v13362_v42, %v2938_v26  ;;  %v2937_v20 = vadd.f32 %v2852_v48, %v13383_v2  ;;  %v2858_v50 = vpop.f32.mrf.mxu1  ;;  %v2919_v31 = vpop.f32.mrf.mxu0  ;;  %v3116_v52 = vld [vmem:[#allocation3 + $0x8] sm:$0xff] }
 0x43c   :  { %v2939_v51 = vadd.f32 %v2913_v11, %v13386_v28  ;;  %v3041_v58 = vsel %vm14350_vm8, %v3032_v54, %v3040_v17  ;;  %v2940_v13 = vadd.f32 %v2856_v38, %v13339_v56  ;;  %v2942_v15 = vadd.f32 %v2917_v55, %v13341_v60  ;;  %v3115_v38 = vld [vmem:[#allocation3] sm:$0xff]  ;;  %v3117_v55 = vld [vmem:[#allocation3 + $0x10] sm:$0xff] }
 0x43d   :  { %v3045_v53 = vsel %vm14351_vm10, %v3036_v57, %v3044_v32  ;;  %3091 = vst [vmem:[#allocation3 + $0x48] sm:$0xff] %v3041_v58  ;;  %v2998_v29 = vmax.f32 %v2978_v39, 0.0  ;;  %v3000_v36 = vmax.f32 %v2980_v59, 0.0  ;;  %v2979_v8 = vadd.f32 %v13365_v62, %v2937_v20  ;;  %v2860_v44 = vpop.f32.mrf.mxu1  ;;  %v2921_v28 = vpop.f32.mrf.mxu0 }
 0x43e   :  { %3093 = vst [vmem:[#allocation3 + $0x58] sm:$0xff] %v3045_v53  ;;  %v2981_v2 = vadd.f32 %v13368_v1, %v2939_v51  ;;  %v2982_v56 = vadd.f32 %v13359_v43, %v2940_v13  ;;  %v2984_v60 = vadd.f32 %v13362_v42, %v2942_v15  ;;  %v2941_v4 = vadd.f32 %v2858_v50, %v13343_v9  ;;  %v3118_v43 = vld [vmem:[#allocation3 + $0x18] sm:$0xff] }
 0x43f   :  { %3107 = vst.msk [vmem:[#allocation3 + $0x41] ss:$8 sm:$0xf] %vm13291_vm2, %v12686_v12  ;;  %3110 = vst.msk [vmem:[#allocation3 + $0x42] ss:$8 sm:$0xf] %vm13291_vm2, %v12686_v12  ;;  %v2943_v30 = vadd.f32 %v2919_v31, %v13345_v22  ;;  %v2861_v47 = vpop.f32.mrf.mxu1  ;;  %v2922_v49 = vpop.f32.mrf.mxu0  ;;  %v13436_v0 = vpack.c.bf16 %v3033_v19, %v3116_v52  ;;  %v13453_v13 = vpack.c.bf16 %v13399_v61, %v3115_v38 }
 0x440   :  { %v3046_v10 = vrot.slane %v2998_v29, 7  ;;  %v3050_v35 = vrot.slane %v3000_v36, 7  ;;  %v2999_v33 = vmax.f32 %v2979_v8, 0.0  ;;  %v3001_v40 = vmax.f32 %v2981_v2, 0.0 }
 0x441   :  { %v3002_v34 = vmax.f32 %v2982_v56, 0.0  ;;  %v3004_v27 = vmax.f32 %v2984_v60, 0.0  ;;  %v2983_v45 = vadd.f32 %v13365_v62, %v2941_v4  ;;  %v2985_v46 = vadd.f32 %v13368_v1, %v2943_v30 }
 0x442   :  { %v3047_v42 = vsel %vm14352_vm7, %v3038_v24, %v3046_v10  ;;  %v3051_v9 = vsel %vm14353_vm14, %v3042_v3, %v3050_v35  ;;  %v3048_v41 = vrot.slane %v2999_v33, 7  ;;  %v3052_v22 = vrot.slane %v3001_v40, 7 }
 0x443   :  { %v3054_v54 = vrot.slane %v3002_v34, 7  ;;  %v3058_v57 = vrot.slane %v3004_v27, 7  ;;  %v3003_v48 = vmax.f32 %v2983_v45, 0.0  ;;  %v3005_v11 = vmax.f32 %v2985_v46, 0.0  ;;  %v11421_v27 = vld [vmem:[#allocation12 + $0x4e8] ss:$16 sps:$4 sm:$0xff]  }
 0x444   :  { %v3049_v5 = vsel %vm14354_vm11, %v3040_v17, %v3048_v41  ;;  %v3053_v7 = vsel %vm14355_vm5, %v3044_v32, %v3052_v22  ;;  %v13438_v62 = vpack.c.bf16 %v3037_v18, %v3118_v43  ;;  %v3417_v63 = vshrl.u32 %v13436_v0, 16  ;;  %vm14368_vm11 = vmmov %vm14355_vm5 }
 0x445   :  { %v3055_v1 = vsel %vm14356_vm9, %v3046_v10, %v3054_v54  ;;  %v3059_v24 = vsel %vm14357_vm15, %v3050_v35, %v3058_v57  ;;  %v3056_v26 = vrot.slane %v3003_v48, 7  ;;  %v3060_v3 = vrot.slane %v3005_v11, 7  ;;  %v11424_v57 = vld [vmem:[#allocation12 + $0x6e8] ss:$16 sps:$4 sm:$0xff]   ;;  %vm14369_vm9 = vmmov %vm14355_vm5 }
 0x446   :  { %3098 = vst [vmem:[#allocation3 + $0x80] sm:$0x7] %v3055_v1  ;;  %3100 = vst [vmem:[#allocation3 + $0x90] sm:$0x7] %v3059_v24  ;;  %v3124_v37 = vld [vmem:[#allocation3 + $0x48] sm:$0xff]  ;;  %v3419_v17 = vshll.u32 %v13436_v0, 16  ;;  %v13460_v8 = vpack.c.bf16 %v13402_v6, %v3117_v55 }
 0x447   :  { %v3126_v32 = vld [vmem:[#allocation3 + $0x58] sm:$0xff]  ;;  %v3441_v19 = vshrl.u32 %v13438_v62, 16  ;;  %v3443_v18 = vshll.u32 %v13438_v62, 16  ;;  %v3057_v39 = vsel %vm14358_vm12, %v3048_v41, %v3056_v26  ;;  %v3061_v59 = vsel %vm14359_vm13, %v3052_v22, %v3060_v3  ;;  %v3123_v50 = vld [vmem:[#allocation3 + $0x40] sm:$0xff]  ;;  %v3125_v31 = vld [vmem:[#allocation3 + $0x50] sm:$0xff] }
 0x448   :  { %v13448_v20 = vpack.c.bf16 %v3049_v5, %v3124_v37  ;;  %v13450_v51 = vpack.c.bf16 %v3053_v7, %v3126_v32  ;;  %3099 = vst [vmem:[#allocation3 + $0x88] sm:$0x7] %v3057_v39  ;;  %3101 = vst [vmem:[#allocation3 + $0x98] sm:$0x7] %v3061_v59  ;;  %v3421_v58 = vrot.slane %v3419_v17, 1  ;;  %v13455_v15 = vpack.c.bf16 %v3047_v42, %v3123_v50 }
 0x449   :  { %v3445_v53 = vrot.slane %v3443_v18, 1  ;;  %v13462_v2 = vpack.c.bf16 %v3051_v9, %v3125_v31  ;;  %v3407_v28 = vshll.u32 %v13453_v13, 16  ;;  %v3405_v30 = vshrl.u32 %v13453_v13, 16  ;;  %v11429_v41 = vld [vmem:[#allocation12 + $0x4cc] ss:$16 sps:$4 sm:$0xff]   ;;  %vm14370_vm15 = vmmov %vm14355_vm5 }
 0x44a   :  { %v3424_v29 = vshll.u32 %v13448_v20, 16  ;;  %v3448_v36 = vshll.u32 %v13450_v51, 16  ;;  %v3422_v44 = vor.u32 %v3421_v58, %v3417_v63  ;;  %v3412_v61 = vshll.u32 %v13455_v15, 16  ;;  %v11432_v26 = vld [vmem:[#allocation12 + $0x6cc] ss:$16 sps:$4 sm:$0xff]   ;;  %vm14371_vm12 = vmmov %vm14355_vm5 }
 0x44b   :  { %v3446_v60 = vor.u32 %v3445_v53, %v3441_v19  ;;  %v3409_v10 = vrot.slane %v3407_v28, 1  ;;  %v3431_v35 = vshll.u32 %v13460_v8, 16  ;;  %v3436_v33 = vshll.u32 %v13462_v2, 16  ;;  %v11427_v63 = vld [vmem:[#allocation12 + $0x4c8] ss:$16 sps:$4 sm:$0xff]   ;;  %vm14372_vm13 = vmmov %vm14355_vm5 }
 0x44c   :  { %v3426_v56 = vrot.slane %v3424_v29, 1  ;;  %v3450_v4 = vrot.slane %v3448_v36, 1  ;;  %vm14360_vm3 = vsmask.f32 7424  ;;  %v3414_v47 = vrot.slane %v3412_v61, 1 }
 0x44d   :  { %vm14361_vm4 = vmmov %vm14360_vm3  ;;  %v3131_v49 = vld [vmem:[#allocation3 + $0x80] sm:$0xf]  ;;  %v3133_v34 = vld [vmem:[#allocation3 + $0x90] sm:$0xf]  ;;  %v3410_v45 = vor.u32 %v3409_v10, %v3405_v30  ;;  %v3429_v46 = vshrl.u32 %v13460_v8, 16  ;;  %v3433_v52 = vrot.slane %v3431_v35, 1 }
 0x44e   :  { %v13470_v6 = vsel %vm14360_vm3, %v3422_v44, %v3426_v56  ;;  %v13473_v40 = vsel %vm14361_vm4, %v3446_v60, %v3450_v4  ;;  %v3438_v43 = vrot.slane %v3436_v33, 1  ;;  %v13478_v22 = vpack.c.bf16 %v3131_v49, %v3131_v49  ;;  %vm14362_vm1 = vmmov %vm14360_vm3  ;;  %v11430_v19 = vld [vmem:[#allocation12 + $0x6c8] ss:$16 sps:$4 sm:$0xff]   ;;  %v11435_v31 = vld [vmem:[#allocation12 + $0x4ac] ss:$16 sps:$4 sm:$0xff]  }
 0x44f   :  { %4180 = vmatprep.mubr.bf16.mxu1 %v13470_v6  ;;  %4241 = vmatprep.mubr.bf16.mxu0 %v13473_v40  ;;  %v3132_v42 = vld [vmem:[#allocation3 + $0x88] sm:$0xf]  ;;  %v3134_v9 = vld [vmem:[#allocation3 + $0x98] sm:$0xf]  ;;  %v13480_v54 = vpack.c.bf16 %v3133_v34, %v3133_v34  ;;  %v13483_v48 = vsel %vm14362_vm1, %v3410_v45, %v3414_v47  ;;  %v3434_v11 = vor.u32 %v3433_v52, %v3429_v46  ;;  %v3460_v1 = vshrl.u32 %v13448_v20, 16  ;;  %vm14363_vm6 = vmmov %vm14362_vm1 }
 0x450   :  { %v13485_v5 = vpack.c.bf16 %v3132_v42, %v3132_v42  ;;  %v13487_v7 = vpack.c.bf16 %v3134_v9, %v3134_v9  ;;  %4181 = vmatmul.mubr.bf16.vlgmr.msra.gmra.mxu1 %v13483_v48  ;;  %v3476_v24 = vshrl.u32 %v13450_v51, 16  ;;  %v3456_v3 = vshll.u32 %v13478_v22, 16  ;;  %v11438_v53 = vld [vmem:[#allocation12 + $0x6ac] ss:$16 sps:$4 sm:$0xff]   ;;  %vm14364_vm8 = vmmov %vm14362_vm1  ;;  %v11436_v30 = vld [vmem:[#allocation12 + $0x6a8] ss:$16 sps:$4 sm:$0xff]  }
 0x451   :  { %v13494_v38 = vsel %vm14363_vm6, %v3434_v11, %v3438_v43  ;;  %4271 = vmatpush1.bf16.msra.mxu1 %v11421_v27  ;;  %v3472_v17 = vshll.u32 %v13480_v54, 16  ;;  %v3462_v32 = vor.u32 %v3460_v1, %v3426_v56  ;;  %v3452_v18 = vshrl.u32 %v13455_v15, 16  ;;  %vm14365_vm10 = vmmov %vm14362_vm1  ;;  %v11433_v56 = vld [vmem:[#allocation12 + $0x4a8] ss:$16 sps:$4 sm:$0xff]   ;;  %v11444_v49 = vld [vmem:[#allocation12 + $0x68c] ss:$16 sps:$4 sm:$0xff]  }
 0x452   :  { %v3464_v55 = vshll.u32 %v13485_v5, 16  ;;  %v3480_v37 = vshll.u32 %v13487_v7, 16  ;;  %4242 = vmatmul.mubr.bf16.vlgmr.msra.gmra.mxu0 %v13494_v38  ;;  %4272 = vmatprep.subr.bf16.mxu1 %v11429_v41  ;;  %v3478_v59 = vor.u32 %v3476_v24, %v3450_v4  ;;  %v3458_v58 = vrot.slane %v3456_v3, 1  ;;  %v11441_v4 = vld [vmem:[#allocation12 + $0x48c] ss:$16 sps:$4 sm:$0xff]   ;;  %vm14366_vm7 = vmmov %vm14362_vm1 }
 0x453   :  { %4332 = vmatpush1.bf16.msra.mxu0 %v11424_v57  ;;  %v3454_v29 = vor.u32 %v3452_v18, %v3414_v47  ;;  %v3468_v36 = vshrl.u32 %v13462_v2, 16  ;;  %v3474_v60 = vrot.slane %v3472_v17, 1  ;;  %v3487_v61 = vshrl.u32 %v13485_v5, 16  ;;  %vm14367_vm14 = vmmov %vm14362_vm1  ;;  %v11439_v45 = vld [vmem:[#allocation12 + $0x488] ss:$16 sps:$4 sm:$0xff]  }
 0x454   :  { %v3466_v39 = vrot.slane %v3464_v55, 1  ;;  %v3482_v50 = vrot.slane %v3480_v37, 1  ;;  %4333 = vmatprep.subr.bf16.mxu0 %v11432_v26  ;;  %v3493_v47 = vshrl.u32 %v13487_v7, 16  ;;  %v11447_v46 = vld [vmem:[#allocation12 + $0x46c] ss:$16 sps:$4 sm:$0xff]   ;;  %v3484_v42 = vshrl.u32 %v13478_v22, 16  ;;  %vm14373_vm3 = vmmov %vm14355_vm5 }
 0x455   :  { %4273 = vmatpush1.bf16.msra.mxu1 %v11427_v63  ;;  %v13512_v10 = vsel %vm14366_vm7, %v3454_v29, %v3458_v58  ;;  %v3470_v35 = vor.u32 %v3468_v36, %v3438_v43  ;;  %v11442_v52 = vld [vmem:[#allocation12 + $0x688] ss:$16 sps:$4 sm:$0xff]   ;;  %v11450_v43 = vld [vmem:[#allocation12 + $0x66c] ss:$16 sps:$4 sm:$0xff]   ;;  %v3490_v57 = vshrl.u32 %v13480_v54, 16  ;;  %vm14374_vm4 = vmmov %vm14373_vm3 }
 0x456   :  { %v13503_v44 = vsel %vm14364_vm8, %v3462_v32, %v3466_v39  ;;  %v13506_v28 = vsel %vm14365_vm10, %v3478_v59, %v3482_v50  ;;  %4274 = vmatprep.subr.bf16.mxu1 %v11435_v31  ;;  %v13514_v33 = vor.u32 %v3487_v61, %v3466_v39  ;;  %v13522_v27 = vor.u32 %v3493_v47, %v3482_v50  ;;  %v11445_v9 = vld [vmem:[#allocation12 + $0x468] ss:$16 sps:$4 sm:$0xff]   ;;  %v11453_v11 = vld [vmem:[#allocation12 + $0x44c] ss:$16 sps:$4 sm:$0xff]   ;;  %vm14375_vm1 = vmmov %vm14373_vm3 }
 0x457   :  { %4190 = vmatprep.mubr.bf16.mxu1 %v13503_v44  ;;  %4251 = vmatprep.mubr.bf16.mxu0 %v13506_v28  ;;  %v13519_v34 = vsel %vm14367_vm14, %v3470_v35, %v3474_v60  ;;  %v13527_v41 = vor.u32 %v3484_v42, %v3458_v58  ;;  %v11448_v1 = vld [vmem:[#allocation12 + $0x668] ss:$16 sps:$4 sm:$0xff]   ;;  %v13531_v24 = vor.u32 %v3490_v57, %v3474_v60  ;;  %v11456_v26 = vld [vmem:[#allocation12 + $0x64c] ss:$16 sps:$4 sm:$0xff]   ;;  %vm14376_vm6 = vmmov %vm14375_vm1 }
 0x458   :  { %4334 = vmatpush1.bf16.msra.mxu0 %v11430_v19  ;;  %4191 = vmatmul.mubr.bf16.gmra.mxu1 %v13512_v10  ;;  %v11451_v3 = vld [vmem:[#allocation12 + $0x448] ss:$16 sps:$4 sm:$0xff]   ;;  %v11459_v55 = vld [vmem:[#allocation12 + $0x42c] ss:$16 sps:$4 sm:$0xff]   ;;  %vm14377_vm8 = vmmov %vm14375_vm1 }
 0x459   :  { %4335 = vmatprep.subr.bf16.mxu0 %v11438_v53  ;;  %4275 = vmatpush1.bf16.msra.mxu1 %v11433_v56  ;;  %v11454_v37 = vld [vmem:[#allocation12 + $0x648] ss:$16 sps:$4 sm:$0xff]   ;;  %v11462_v63 = vld [vmem:[#allocation12 + $0x62c] ss:$16 sps:$4 sm:$0xff]   ;;  %vm14378_vm10 = vmmov %vm14375_vm1 }
 0x45a   :  { %4200 = vmatprep.mubr.bf16.mxu1 %v13514_v33  ;;  %4252 = vmatmul.mubr.bf16.gmra.mxu0 %v13519_v34  ;;  %v11457_v17 = vld [vmem:[#allocation12 + $0x428] ss:$16 sps:$4 sm:$0xff]   ;;  %v11465_v32 = vld [vmem:[#allocation12 + $0x40c] ss:$16 sps:$4 sm:$0xff]   ;;  %vm14379_vm7 = vmmov %vm14375_vm1 }
 0x45b   :  { %4276 = vmatprep.subr.bf16.mxu1 %v11441_v4  ;;  %4261 = vmatprep.mubr.bf16.mxu0 %v13522_v27  ;;  %v11460_v19 = vld [vmem:[#allocation12 + $0x628] ss:$16 sps:$4 sm:$0xff]   ;;  %v11468_v18 = vld [vmem:[#allocation12 + $0x60c] ss:$16 sps:$4 sm:$0xff]   ;;  %vm14380_vm14 = vmmov %vm14375_vm1 }
 0x45c   :  { %4336 = vmatpush1.bf16.msra.mxu0 %v11436_v30  ;;  %v11471_v39 = vld [vmem:[#allocation12 + $0x5ec] ss:$16 sps:$4 sm:$0xff]   ;;  %v11466_v59 = vld [vmem:[#allocation12 + $0x608] ss:$16 sps:$4 sm:$0xff]  }
 0x45d   :  { %4337 = vmatprep.subr.bf16.mxu0 %v11444_v49  ;;  %4277 = vmatpush1.bf16.msra.mxu1 %v11439_v45  ;;  %v11474_v50 = vld [vmem:[#allocation12 + $0x7ec] ss:$16 sps:$4 sm:$0xff]   ;;  %v11472_v58 = vld [vmem:[#allocation12 + $0x7e8] ss:$16 sps:$4 sm:$0xff]  }
 0x45e   :  { %4278 = vmatprep.subr.bf16.mxu1 %v11447_v46  ;;  %v11477_v31 = vld [vmem:[#allocation12 + $0x5cc] ss:$16 sps:$4 sm:$0xff]   ;;  %v11475_v29 = vld [vmem:[#allocation12 + $0x5c8] ss:$16 sps:$4 sm:$0xff]  }
 0x45f   :  { %v11480_v53 = vld [vmem:[#allocation12 + $0x7cc] ss:$16 sps:$4 sm:$0xff]   ;;  %v11478_v56 = vld [vmem:[#allocation12 + $0x7c8] ss:$16 sps:$4 sm:$0xff]  }
 0x460   :  { %4338 = vmatpush1.bf16.msra.mxu0 %v11442_v52  ;;  %4201 = vmatmul.mubr.bf16.gmra.mxu1 %v13527_v41  ;;  %v11483_v36 = vld [vmem:[#allocation12 + $0x5ac] ss:$16 sps:$4 sm:$0xff]   ;;  %v11481_v61 = vld [vmem:[#allocation12 + $0x5a8] ss:$16 sps:$4 sm:$0xff]  }
 0x461   :  { %4339 = vmatprep.subr.bf16.mxu0 %v11450_v43  ;;  %4279 = vmatpush1.bf16.msra.mxu1 %v11445_v9  ;;  %v11486_v60 = vld [vmem:[#allocation12 + $0x7ac] ss:$16 sps:$4 sm:$0xff]   ;;  %v11484_v30 = vld [vmem:[#allocation12 + $0x7a8] ss:$16 sps:$4 sm:$0xff]  }
 0x462   :  { %4302 = vmatprep.mubr.bf16.mxu1 %v13470_v6  ;;  %4262 = vmatmul.mubr.bf16.gmra.mxu0 %v13531_v24  ;;  %v11463_v6 = vld [vmem:[#allocation12 + $0x408] ss:$16 sps:$4 sm:$0xff]   ;;  %v11489_v4 = vld [vmem:[#allocation12 + $0x58c] ss:$16 sps:$4 sm:$0xff]  }
 0x463   :  { %4280 = vmatprep.subr.bf16.mxu1 %v11453_v11  ;;  %4363 = vmatprep.mubr.bf16.mxu0 %v13473_v40  ;;  %v11469_v40 = vld [vmem:[#allocation12 + $0x5e8] ss:$16 sps:$4 sm:$0xff]   ;;  %v11492_v35 = vld [vmem:[#allocation12 + $0x78c] ss:$16 sps:$4 sm:$0xff]  }
 0x464   :  { %4340 = vmatpush1.bf16.msra.mxu0 %v11448_v1  ;;  %v11487_v47 = vld [vmem:[#allocation12 + $0x588] ss:$16 sps:$4 sm:$0xff]   ;;  %v11495_v49 = vld [vmem:[#allocation12 + $0x56c] ss:$16 sps:$4 sm:$0xff]  }
 0x465   :  { %4341 = vmatprep.subr.bf16.mxu0 %v11456_v26  ;;  %4281 = vmatpush1.bf16.msra.mxu1 %v11451_v3  ;;  %v11490_v45 = vld [vmem:[#allocation12 + $0x788] ss:$16 sps:$4 sm:$0xff]   ;;  %v11498_v46 = vld [vmem:[#allocation12 + $0x76c] ss:$16 sps:$4 sm:$0xff]  }
 0x466   :  { %4282 = vmatprep.subr.bf16.mxu1 %v11459_v55  ;;  %v11493_v52 = vld [vmem:[#allocation12 + $0x568] ss:$16 sps:$4 sm:$0xff]   ;;  %v11501_v43 = vld [vmem:[#allocation12 + $0x54c] ss:$16 sps:$4 sm:$0xff]  }
 0x467   :  { %v11496_v42 = vld [vmem:[#allocation12 + $0x768] ss:$16 sps:$4 sm:$0xff]   ;;  %v11504_v9 = vld [vmem:[#allocation12 + $0x74c] ss:$16 sps:$4 sm:$0xff]  }
 0x468   :  { %4342 = vmatpush1.bf16.msra.mxu0 %v11454_v37  ;;  %v11499_v57 = vld [vmem:[#allocation12 + $0x548] ss:$16 sps:$4 sm:$0xff]   ;;  %v11507_v11 = vld [vmem:[#allocation12 + $0x52c] ss:$16 sps:$4 sm:$0xff]  }
 0x469   :  { %4343 = vmatprep.subr.bf16.mxu0 %v11462_v63  ;;  %4283 = vmatpush1.bf16.msra.mxu1 %v11457_v17  ;;  %v11502_v1 = vld [vmem:[#allocation12 + $0x748] ss:$16 sps:$4 sm:$0xff]   ;;  %v11510_v26 = vld [vmem:[#allocation12 + $0x72c] ss:$16 sps:$4 sm:$0xff]  }
 0x46a   :  { %4284 = vmatprep.subr.bf16.mxu1 %v11465_v32  ;;  %v11505_v3 = vld [vmem:[#allocation12 + $0x528] ss:$16 sps:$4 sm:$0xff]   ;;  %v11513_v55 = vld [vmem:[#allocation12 + $0x50c] ss:$16 sps:$4 sm:$0xff]   ;;  %v11519_v32 = vld [vmem:[#allocation12 + $0xe4] ss:$16 sps:$4 sm:$0xff]  }
 0x46b   :  { %v11508_v37 = vld [vmem:[#allocation12 + $0x728] ss:$16 sps:$4 sm:$0xff]   ;;  %v11516_v63 = vld [vmem:[#allocation12 + $0x70c] ss:$16 sps:$4 sm:$0xff]  }
 0x46c   :  { %4344 = vmatpush1.bf16.msra.mxu0 %v11460_v19  ;;  %v11511_v17 = vld [vmem:[#allocation12 + $0x508] ss:$16 sps:$4 sm:$0xff]  }
 0x46d   :  { %4345 = vmatprep.subr.bf16.mxu0 %v11468_v18  ;;  %4285 = vmatpush1.bf16.msra.mxu1 %v11463_v6  ;;  %v11514_v19 = vld [vmem:[#allocation12 + $0x708] ss:$16 sps:$4 sm:$0xff]   ;;  %v11522_v18 = vld [vmem:[#allocation12 + $0x2e4] ss:$16 sps:$4 sm:$0xff]   ;;  %v11517_v6 = vld [vmem:[#allocation12 + $0xe0] ss:$16 sps:$4 sm:$0xff]  }
 0x46e   :  { %4286 = vmatprep.subr.bf16.mxu1 %v11471_v39  ;;  %v11525_v39 = vld [vmem:[#allocation12 + $0xc4] ss:$16 sps:$4 sm:$0xff]  }
 0x470   :  { %4346 = vmatpush1.bf16.msra.mxu0 %v11466_v59  ;;  %v11520_v59 = vld [vmem:[#allocation12 + $0x2e0] ss:$16 sps:$4 sm:$0xff]  }
 0x471   :  { %4347 = vmatprep.subr.bf16.mxu0 %v11474_v50  ;;  %4287 = vmatpush2.bf16.msra.mxu1 %v11469_v40  ;;  %v11528_v50 = vld [vmem:[#allocation12 + $0x2c4] ss:$16 sps:$4 sm:$0xff]   ;;  %v11523_v40 = vld [vmem:[#allocation12 + $0xc0] ss:$16 sps:$4 sm:$0xff]  }
 0x472   :  { %4288 = vmatprep.subr.bf16.mxu1 %v11477_v31  ;;  %v11531_v31 = vld [vmem:[#allocation12 + $0xa4] ss:$16 sps:$4 sm:$0xff]  }
 0x474   :  { %4348 = vmatpush2.bf16.msra.mxu0 %v11472_v58  ;;  %v11526_v58 = vld [vmem:[#allocation12 + $0x2c0] ss:$16 sps:$4 sm:$0xff]  }
 0x475   :  { %4349 = vmatprep.subr.bf16.mxu0 %v11480_v53  ;;  %4289 = vmatpush2.bf16.msra.mxu1 %v11475_v29  ;;  %v11534_v53 = vld [vmem:[#allocation12 + $0x2a4] ss:$16 sps:$4 sm:$0xff]   ;;  %v11529_v29 = vld [vmem:[#allocation12 + $0xa0] ss:$16 sps:$4 sm:$0xff]  }
 0x476   :  { %4290 = vmatprep.subr.bf16.mxu1 %v11483_v36  ;;  %v11532_v36 = vld [vmem:[#allocation12 + $0x2a0] ss:$16 sps:$4 sm:$0xff]  }
 0x478   :  { %4350 = vmatpush2.bf16.msra.mxu0 %v11478_v56  ;;  %v11538_v56 = vld [vmem:[#allocation12 + $0x280] ss:$16 sps:$4 sm:$0xff]  }
 0x479   :  { %4351 = vmatprep.subr.bf16.mxu0 %v11486_v60  ;;  %4291 = vmatpush2.bf16.msra.mxu1 %v11481_v61  ;;  %v11546_v60 = vld [vmem:[#allocation12 + $0x264] ss:$16 sps:$4 sm:$0xff]   ;;  %v11541_v61 = vld [vmem:[#allocation12 + $0x60] ss:$16 sps:$4 sm:$0xff]  }
 0x47a   :  { %4292 = vmatprep.subr.bf16.mxu1 %v11489_v4  ;;  %v11544_v4 = vld [vmem:[#allocation12 + $0x260] ss:$16 sps:$4 sm:$0xff]  }
 0x47c   :  { %4352 = vmatpush2.bf16.msra.mxu0 %v11484_v30  ;;  %v11550_v30 = vld [vmem:[#allocation12 + $0x240] ss:$16 sps:$4 sm:$0xff]  }
 0x47d   :  { %4353 = vmatprep.subr.bf16.mxu0 %v11492_v35  ;;  %4293 = vmatpush2.bf16.msra.mxu1 %v11487_v47  ;;  %v11558_v35 = vld [vmem:[#allocation12 + $0x224] ss:$16 sps:$4 sm:$0xff]   ;;  %v11553_v47 = vld [vmem:[#allocation12 + $0x20] ss:$16 sps:$4 sm:$0xff]  }
 0x47e   :  { %4294 = vmatprep.subr.bf16.mxu1 %v11495_v49  ;;  %v11556_v49 = vld [vmem:[#allocation12 + $0x220] ss:$16 sps:$4 sm:$0xff]  }
 0x480   :  { %4354 = vmatpush2.bf16.msra.mxu0 %v11490_v45  ;;  %v11564_v45 = vld [vmem:[#allocation12 + $0x204] ss:$16 sps:$4 sm:$0xff]  }
 0x481   :  { %4355 = vmatprep.subr.bf16.mxu0 %v11498_v46  ;;  %4295 = vmatpush2.bf16.msra.mxu1 %v11493_v52  ;;  %v11559_v46 = vld [vmem:[#allocation12] ss:$16 sps:$4 sm:$0xff]  }
 0x482   :  { %4296 = vmatprep.subr.bf16.mxu1 %v11501_v43  ;;  %v11562_v52 = vld [vmem:[#allocation12 + $0x200] ss:$16 sps:$4 sm:$0xff]   ;;  %v11570_v43 = vld [vmem:[#allocation12 + $0x3e4] ss:$16 sps:$4 sm:$0xff]  }
 0x484   :  { %4356 = vmatpush2.bf16.msra.mxu0 %v11496_v42  ;;  %v11565_v42 = vld [vmem:[#allocation12 + $0x1e0] ss:$16 sps:$4 sm:$0xff]  }
 0x485   :  { %4357 = vmatprep.subr.bf16.mxu0 %v11504_v9  ;;  %4297 = vmatpush2.bf16.msra.mxu1 %v11499_v57  ;;  %v11573_v9 = vld [vmem:[#allocation12 + $0x1c4] ss:$16 sps:$4 sm:$0xff]   ;;  %v11568_v57 = vld [vmem:[#allocation12 + $0x3e0] ss:$16 sps:$4 sm:$0xff]  }
 0x486   :  { %4298 = vmatprep.subr.bf16.mxu1 %v11507_v11  ;;  %v11576_v11 = vld [vmem:[#allocation12 + $0x3c4] ss:$16 sps:$4 sm:$0xff]  }
 0x488   :  { %4358 = vmatpush2.bf16.msra.mxu0 %v11502_v1  ;;  %v11571_v1 = vld [vmem:[#allocation12 + $0x1c0] ss:$16 sps:$4 sm:$0xff]  }
 0x489   :  { %4359 = vmatprep.subr.bf16.mxu0 %v11510_v26  ;;  %4299 = vmatpush2.bf16.msra.mxu1 %v11505_v3  ;;  %v11579_v26 = vld [vmem:[#allocation12 + $0x1a4] ss:$16 sps:$4 sm:$0xff]   ;;  %v11574_v3 = vld [vmem:[#allocation12 + $0x3c0] ss:$16 sps:$4 sm:$0xff]  }
 0x48a   :  { %4300 = vmatprep.subr.bf16.mxu1 %v11513_v55  ;;  %v11582_v55 = vld [vmem:[#allocation12 + $0x3a4] ss:$16 sps:$4 sm:$0xff]  }
 0x48c   :  { %4360 = vmatpush2.bf16.msra.mxu0 %v11508_v37  ;;  %v11577_v37 = vld [vmem:[#allocation12 + $0x1a0] ss:$16 sps:$4 sm:$0xff]  }
 0x48d   :  { %4361 = vmatprep.subr.bf16.mxu0 %v11516_v63  ;;  %4301 = vmatpush2.bf16.msra.mxu1 %v11511_v17  ;;  %v11585_v63 = vld [vmem:[#allocation12 + $0x184] ss:$16 sps:$4 sm:$0xff]   ;;  %v11580_v17 = vld [vmem:[#allocation12 + $0x3a0] ss:$16 sps:$4 sm:$0xff]  }
 0x48e   :  { %5032 = vmatprep.subr.bf16.mxu1 %v11519_v32  ;;  %v11588_v32 = vld [vmem:[#allocation12 + $0x384] ss:$16 sps:$4 sm:$0xff]  }
 0x490   :  { %4362 = vmatpush2.bf16.msra.mxu0 %v11514_v19  ;;  %4303 = vmatmul.mubr.bf16.vlgmr.msra.gmra.mxu1 %v13483_v48  ;;  %v11537_v48 = vld [vmem:[#allocation12 + $0x84] ss:$16 sps:$4 sm:$0xff]   ;;  %v11583_v19 = vld [vmem:[#allocation12 + $0x180] ss:$16 sps:$4 sm:$0xff]  }
 0x491   :  { %5093 = vmatprep.subr.bf16.mxu0 %v11522_v18  ;;  %4312 = vmatprep.mubr.bf16.mxu1 %v13503_v44  ;;  %v11540_v44 = vld [vmem:[#allocation12 + $0x284] ss:$16 sps:$4 sm:$0xff]  }
 0x492   :  { %5033 = vmatpush1.bf16.msra.mxu1 %v11517_v6  ;;  %v11591_v18 = vld [vmem:[#allocation12 + $0x164] ss:$16 sps:$4 sm:$0xff]   ;;  %v11586_v6 = vld [vmem:[#allocation12 + $0x380] ss:$16 sps:$4 sm:$0xff]  }
 0x493   :  { %4364 = vmatmul.mubr.bf16.vlgmr.msra.gmra.mxu0 %v13494_v38  ;;  %5034 = vmatprep.subr.bf16.mxu1 %v11525_v39  ;;  %v11535_v38 = vld [vmem:[#allocation12 + $0x80] ss:$16 sps:$4 sm:$0xff]   ;;  %v11594_v39 = vld [vmem:[#allocation12 + $0x364] ss:$16 sps:$4 sm:$0xff]  }
 0x494   :  { %4373 = vmatprep.mubr.bf16.mxu0 %v13506_v28  ;;  %5094 = vmatpush1.bf16.msra.mxu0 %v11520_v59  ;;  %v11543_v28 = vld [vmem:[#allocation12 + $0x64] ss:$16 sps:$4 sm:$0xff]   ;;  %v11589_v59 = vld [vmem:[#allocation12 + $0x160] ss:$16 sps:$4 sm:$0xff]  }
 0x495   :  { %5095 = vmatprep.subr.bf16.mxu0 %v11528_v50  ;;  %v11597_v50 = vld [vmem:[#allocation12 + $0x144] ss:$16 sps:$4 sm:$0xff]  }
 0x496   :  { %5035 = vmatpush1.bf16.msra.mxu1 %v11523_v40  ;;  %v11592_v40 = vld [vmem:[#allocation12 + $0x360] ss:$16 sps:$4 sm:$0xff]  }
 0x497   :  { %5036 = vmatprep.subr.bf16.mxu1 %v11531_v31  ;;  %v11600_v31 = vld [vmem:[#allocation12 + $0x344] ss:$16 sps:$4 sm:$0xff]  }
 0x498   :  { %5096 = vmatpush1.bf16.msra.mxu0 %v11526_v58  ;;  %4313 = vmatmul.mubr.bf16.gmra.mxu1 %v13512_v10  ;;  %v11549_v10 = vld [vmem:[#allocation12 + $0x44] ss:$16 sps:$4 sm:$0xff]   ;;  %v11595_v58 = vld [vmem:[#allocation12 + $0x140] ss:$16 sps:$4 sm:$0xff]  }
 0x499   :  { %5097 = vmatprep.subr.bf16.mxu0 %v11534_v53  ;;  %4322 = vmatprep.mubr.bf16.mxu1 %v13514_v33  ;;  %v11552_v33 = vld [vmem:[#allocation12 + $0x244] ss:$16 sps:$4 sm:$0xff]  }
 0x49a   :  { %5037 = vmatpush1.bf16.msra.mxu1 %v11529_v29  ;;  %v11603_v53 = vld [vmem:[#allocation12 + $0x124] ss:$16 sps:$4 sm:$0xff]   ;;  %v11598_v29 = vld [vmem:[#allocation12 + $0x340] ss:$16 sps:$4 sm:$0xff]  }
 0x49b   :  { %4374 = vmatmul.mubr.bf16.gmra.mxu0 %v13519_v34  ;;  %5038 = vmatprep.subr.bf16.mxu1 %v11537_v48  ;;  %v11547_v34 = vld [vmem:[#allocation12 + $0x40] ss:$16 sps:$4 sm:$0xff]   ;;  %v11606_v48 = vld [vmem:[#allocation12 + $0x324] ss:$16 sps:$4 sm:$0xff]  }
 0x49c   :  { %4383 = vmatprep.mubr.bf16.mxu0 %v13522_v27  ;;  %5098 = vmatpush1.bf16.msra.mxu0 %v11532_v36  ;;  %v11555_v27 = vld [vmem:[#allocation12 + $0x24] ss:$16 sps:$4 sm:$0xff]   ;;  %v11601_v36 = vld [vmem:[#allocation12 + $0x120] ss:$16 sps:$4 sm:$0xff]  }
 0x49d   :  { %5099 = vmatprep.subr.bf16.mxu0 %v11540_v44  ;;  %v11609_v44 = vld [vmem:[#allocation12 + $0x104] ss:$16 sps:$4 sm:$0xff]  }
 0x49e   :  { %5039 = vmatpush1.bf16.msra.mxu1 %v11535_v38  ;;  %v11604_v38 = vld [vmem:[#allocation12 + $0x320] ss:$16 sps:$4 sm:$0xff]  }
 0x49f   :  { %5040 = vmatprep.subr.bf16.mxu1 %v11543_v28  ;;  %v11612_v28 = vld [vmem:[#allocation12 + $0x304] ss:$16 sps:$4 sm:$0xff]  }
 0x4a0   :  { %5100 = vmatpush1.bf16.msra.mxu0 %v11538_v56  ;;  %4323 = vmatmul.mubr.bf16.gmra.mxu1 %v13527_v41  ;;  %v11561_v41 = vld [vmem:[#allocation12 + $0x4] ss:$16 sps:$4 sm:$0xff]   ;;  %v11607_v56 = vld [vmem:[#allocation12 + $0x100] ss:$16 sps:$4 sm:$0xff]  }
 0x4a1   :  { %5101 = vmatprep.subr.bf16.mxu0 %v11546_v60  ;;  %5064 = vmatprep.mubr.bf16.mxu1 %v13436_v0  ;;  %v11615_v60 = vld [vmem:[#allocation12 + $0xec] ss:$16 sps:$4 sm:$0xff]  }
 0x4a2   :  { %5041 = vmatpush1.bf16.msra.mxu1 %v11541_v61  ;;  %v11610_v61 = vld [vmem:[#allocation12 + $0x300] ss:$16 sps:$4 sm:$0xff]  }
 0x4a3   :  { %4384 = vmatmul.mubr.bf16.gmra.mxu0 %v13531_v24  ;;  %5042 = vmatprep.subr.bf16.mxu1 %v11549_v10  ;;  %v11567_v24 = vld [vmem:[#allocation12 + $0x1e4] ss:$16 sps:$4 sm:$0xff]   ;;  %v11618_v10 = vld [vmem:[#allocation12 + $0x2ec] ss:$16 sps:$4 sm:$0xff]  }
 0x4a4   :  { %5102 = vmatpush1.bf16.msra.mxu0 %v11544_v4  ;;  %5125 = vmatprep.mubr.bf16.mxu0 %v13438_v62  ;;  %v11613_v4 = vld [vmem:[#allocation12 + $0xe8] ss:$16 sps:$4 sm:$0xff]  }
 0x4a5   :  { %5103 = vmatprep.subr.bf16.mxu0 %v11552_v33  ;;  %v11621_v33 = vld [vmem:[#allocation12 + $0xcc] ss:$16 sps:$4 sm:$0xff]  }
 0x4a6   :  { %5043 = vmatpush1.bf16.msra.mxu1 %v11547_v34  ;;  %v11616_v34 = vld [vmem:[#allocation12 + $0x2e8] ss:$16 sps:$4 sm:$0xff]  }
 0x4a7   :  { %5044 = vmatprep.subr.bf16.mxu1 %v11555_v27  ;;  %v11624_v27 = vld [vmem:[#allocation12 + $0x2cc] ss:$16 sps:$4 sm:$0xff]  }
 0x4a8   :  { %5104 = vmatpush1.bf16.msra.mxu0 %v11550_v30  ;;  %v11619_v30 = vld [vmem:[#allocation12 + $0xc8] ss:$16 sps:$4 sm:$0xff]  }
 0x4a9   :  { %5105 = vmatprep.subr.bf16.mxu0 %v11558_v35  ;;  %v11627_v35 = vld [vmem:[#allocation12 + $0xac] ss:$16 sps:$4 sm:$0xff]  }
 0x4aa   :  { %5045 = vmatpush1.bf16.msra.mxu1 %v11553_v47  ;;  %v11622_v47 = vld [vmem:[#allocation12 + $0x2c8] ss:$16 sps:$4 sm:$0xff]  }
 0x4ab   :  { %5046 = vmatprep.subr.bf16.mxu1 %v11561_v41  ;;  %v11630_v41 = vld [vmem:[#allocation12 + $0x2ac] ss:$16 sps:$4 sm:$0xff]  }
 0x4ac   :  { %5106 = vmatpush1.bf16.msra.mxu0 %v11556_v49  ;;  %v11625_v49 = vld [vmem:[#allocation12 + $0xa8] ss:$16 sps:$4 sm:$0xff]  }
 0x4ad   :  { %5107 = vmatprep.subr.bf16.mxu0 %v11564_v45  ;;  %v11633_v45 = vld [vmem:[#allocation12 + $0x8c] ss:$16 sps:$4 sm:$0xff]  }
 0x4ae   :  { %5047 = vmatpush1.bf16.msra.mxu1 %v11559_v46  ;;  %v11628_v46 = vld [vmem:[#allocation12 + $0x2a8] ss:$16 sps:$4 sm:$0xff]  }
 0x4af   :  { %5048 = vmatprep.subr.bf16.mxu1 %v11567_v24  ;;  %v11636_v24 = vld [vmem:[#allocation12 + $0x28c] ss:$16 sps:$4 sm:$0xff]  }
 0x4b0   :  { %5108 = vmatpush1.bf16.msra.mxu0 %v11562_v52  ;;  %v11631_v52 = vld [vmem:[#allocation12 + $0x88] ss:$16 sps:$4 sm:$0xff]  }
 0x4b1   :  { %5109 = vmatprep.subr.bf16.mxu0 %v11570_v43  ;;  %v11639_v43 = vld [vmem:[#allocation12 + $0x6c] ss:$16 sps:$4 sm:$0xff]  }
 0x4b2   :  { %5049 = vmatpush2.bf16.msra.mxu1 %v11565_v42  ;;  %v11634_v42 = vld [vmem:[#allocation12 + $0x288] ss:$16 sps:$4 sm:$0xff]  }
 0x4b3   :  { %5050 = vmatprep.subr.bf16.mxu1 %v11573_v9  ;;  %v11642_v9 = vld [vmem:[#allocation12 + $0x26c] ss:$16 sps:$4 sm:$0xff]  }
 0x4b4   :  { %5110 = vmatpush2.bf16.msra.mxu0 %v11568_v57  ;;  %v11637_v57 = vld [vmem:[#allocation12 + $0x68] ss:$16 sps:$4 sm:$0xff]  }
 0x4b5   :  { %5111 = vmatprep.subr.bf16.mxu0 %v11576_v11  ;;  %v11645_v11 = vld [vmem:[#allocation12 + $0x4c] ss:$16 sps:$4 sm:$0xff]  }
 0x4b6   :  { %5051 = vmatpush2.bf16.msra.mxu1 %v11571_v1  ;;  %v11640_v1 = vld [vmem:[#allocation12 + $0x268] ss:$16 sps:$4 sm:$0xff]  }
 0x4b7   :  { %5052 = vmatprep.subr.bf16.mxu1 %v11579_v26  ;;  %v11648_v26 = vld [vmem:[#allocation12 + $0x24c] ss:$16 sps:$4 sm:$0xff]  }
 0x4b8   :  { %5112 = vmatpush2.bf16.msra.mxu0 %v11574_v3  ;;  %v11643_v3 = vld [vmem:[#allocation12 + $0x48] ss:$16 sps:$4 sm:$0xff]  }
 0x4b9   :  { %5113 = vmatprep.subr.bf16.mxu0 %v11582_v55  ;;  %v11651_v55 = vld [vmem:[#allocation12 + $0x2c] ss:$16 sps:$4 sm:$0xff]  }
 0x4ba   :  { %5053 = vmatpush2.bf16.msra.mxu1 %v11577_v37  ;;  %v11646_v37 = vld [vmem:[#allocation12 + $0x248] ss:$16 sps:$4 sm:$0xff]  }
 0x4bb   :  { %5054 = vmatprep.subr.bf16.mxu1 %v11585_v63  ;;  %v11654_v63 = vld [vmem:[#allocation12 + $0x22c] ss:$16 sps:$4 sm:$0xff]  }
 0x4bc   :  { %5114 = vmatpush2.bf16.msra.mxu0 %v11580_v17  ;;  %v11649_v17 = vld [vmem:[#allocation12 + $0x28] ss:$16 sps:$4 sm:$0xff]  }
 0x4bd   :  { %5115 = vmatprep.subr.bf16.mxu0 %v11588_v32  ;;  %v11657_v32 = vld [vmem:[#allocation12 + $0xc] ss:$16 sps:$4 sm:$0xff]  }
 0x4be   :  { %5055 = vmatpush2.bf16.msra.mxu1 %v11583_v19  ;;  %v11652_v19 = vld [vmem:[#allocation12 + $0x228] ss:$16 sps:$4 sm:$0xff]  }
 0x4bf   :  { %5056 = vmatprep.subr.bf16.mxu1 %v11591_v18  ;;  %v11660_v18 = vld [vmem:[#allocation12 + $0x20c] ss:$16 sps:$4 sm:$0xff]  }
 0x4c0   :  { %5116 = vmatpush2.bf16.msra.mxu0 %v11586_v6  ;;  %v11655_v6 = vld [vmem:[#allocation12 + $0x8] ss:$16 sps:$4 sm:$0xff]  }
 0x4c1   :  { %5117 = vmatprep.subr.bf16.mxu0 %v11594_v39  ;;  %v11663_v39 = vld [vmem:[#allocation12 + $0x1ec] ss:$16 sps:$4 sm:$0xff]  }
 0x4c2   :  { %5057 = vmatpush2.bf16.msra.mxu1 %v11589_v59  ;;  %v11658_v59 = vld [vmem:[#allocation12 + $0x208] ss:$16 sps:$4 sm:$0xff]  }
 0x4c3   :  { %5058 = vmatprep.subr.bf16.mxu1 %v11597_v50  ;;  %v11666_v50 = vld [vmem:[#allocation12 + $0x3ec] ss:$16 sps:$4 sm:$0xff]  }
 0x4c4   :  { %5118 = vmatpush2.bf16.msra.mxu0 %v11592_v40  ;;  %v11661_v40 = vld [vmem:[#allocation12 + $0x1e8] ss:$16 sps:$4 sm:$0xff]  }
 0x4c5   :  { %5119 = vmatprep.subr.bf16.mxu0 %v11600_v31  ;;  %v11669_v31 = vld [vmem:[#allocation12 + $0x1cc] ss:$16 sps:$4 sm:$0xff]  }
 0x4c6   :  { %5059 = vmatpush2.bf16.msra.mxu1 %v11595_v58  ;;  %v11664_v58 = vld [vmem:[#allocation12 + $0x3e8] ss:$16 sps:$4 sm:$0xff]  }
 0x4c7   :  { %5060 = vmatprep.subr.bf16.mxu1 %v11603_v53  ;;  %v11672_v53 = vld [vmem:[#allocation12 + $0x3cc] ss:$16 sps:$4 sm:$0xff]  }
 0x4c8   :  { %5120 = vmatpush2.bf16.msra.mxu0 %v11598_v29  ;;  %v11667_v29 = vld [vmem:[#allocation12 + $0x1c8] ss:$16 sps:$4 sm:$0xff]  }
 0x4c9   :  { %5121 = vmatprep.subr.bf16.mxu0 %v11606_v48  ;;  %v11675_v48 = vld [vmem:[#allocation12 + $0x1ac] ss:$16 sps:$4 sm:$0xff]  }
 0x4ca   :  { %5061 = vmatpush2.bf16.msra.mxu1 %v11601_v36  ;;  %v11670_v36 = vld [vmem:[#allocation12 + $0x3c8] ss:$16 sps:$4 sm:$0xff]  }
 0x4cb   :  { %5062 = vmatprep.subr.bf16.mxu1 %v11609_v44  ;;  %v11678_v44 = vld [vmem:[#allocation12 + $0x3ac] ss:$16 sps:$4 sm:$0xff]  }
 0x4cc   :  { %5122 = vmatpush2.bf16.msra.mxu0 %v11604_v38  ;;  %v11673_v38 = vld [vmem:[#allocation12 + $0x1a8] ss:$16 sps:$4 sm:$0xff]  }
 0x4cd   :  { %5123 = vmatprep.subr.bf16.mxu0 %v11612_v28  ;;  %v11681_v28 = vld [vmem:[#allocation12 + $0x18c] ss:$16 sps:$4 sm:$0xff]  }
 0x4ce   :  { %5063 = vmatpush2.bf16.msra.mxu1 %v11607_v56  ;;  %v11676_v56 = vld [vmem:[#allocation12 + $0x3a8] ss:$16 sps:$4 sm:$0xff]  }
 0x4cf   :  { %5154 = vmatprep.subr.bf16.mxu1 %v11615_v60  ;;  %v11684_v60 = vld [vmem:[#allocation12 + $0x38c] ss:$16 sps:$4 sm:$0xff]  }
 0x4d0   :  { %5124 = vmatpush2.bf16.msra.mxu0 %v11610_v61  ;;  %v11679_v61 = vld [vmem:[#allocation12 + $0x188] ss:$16 sps:$4 sm:$0xff]  }
 0x4d1   :  { %5065 = vmatmul.mubr.bf16.vlgmr.msra.gmra.mxu1 %v13453_v13  ;;  %5215 = vmatprep.subr.bf16.mxu0 %v11618_v10  ;;  %v11687_v10 = vld [vmem:[#allocation12 + $0x16c] ss:$16 sps:$4 sm:$0xff]  }
 0x4d2   :  { %5074 = vmatprep.mubr.bf16.mxu1 %v13448_v20  ;;  %5155 = vmatpush1.bf16.msra.mxu1 %v11613_v4  ;;  %v11682_v4 = vld [vmem:[#allocation12 + $0x388] ss:$16 sps:$4 sm:$0xff]  }
 0x4d3   :  { %5126 = vmatmul.mubr.bf16.vlgmr.msra.gmra.mxu0 %v13460_v8  ;;  %5156 = vmatprep.subr.bf16.mxu1 %v11621_v33  ;;  %v11690_v33 = vld [vmem:[#allocation12 + $0x36c] ss:$16 sps:$4 sm:$0xff]  }
 0x4d4   :  { %5135 = vmatprep.mubr.bf16.mxu0 %v13450_v51  ;;  %5216 = vmatpush1.bf16.msra.mxu0 %v11616_v34  ;;  %v11685_v34 = vld [vmem:[#allocation12 + $0x168] ss:$16 sps:$4 sm:$0xff]  }
 0x4d5   :  { %5217 = vmatprep.subr.bf16.mxu0 %v11624_v27  ;;  %v11693_v27 = vld [vmem:[#allocation12 + $0x14c] ss:$16 sps:$4 sm:$0xff]  }
 0x4d6   :  { %5157 = vmatpush1.bf16.msra.mxu1 %v11619_v30  ;;  %v11688_v30 = vld [vmem:[#allocation12 + $0x368] ss:$16 sps:$4 sm:$0xff]  }
 0x4d7   :  { %5158 = vmatprep.subr.bf16.mxu1 %v11627_v35  ;;  %v11696_v35 = vld [vmem:[#allocation12 + $0x34c] ss:$16 sps:$4 sm:$0xff]  }
 0x4d8   :  { %5218 = vmatpush1.bf16.msra.mxu0 %v11622_v47  ;;  %v11691_v47 = vld [vmem:[#allocation12 + $0x148] ss:$16 sps:$4 sm:$0xff]  }
 0x4d9   :  { %5075 = vmatmul.mubr.bf16.gmra.mxu1 %v13455_v15  ;;  %5219 = vmatprep.subr.bf16.mxu0 %v11630_v41  ;;  %v11699_v41 = vld [vmem:[#allocation12 + $0x12c] ss:$16 sps:$4 sm:$0xff]  }
 0x4da   :  { %5084 = vmatprep.mubr.bf16.mxu1 %v13485_v5  ;;  %5159 = vmatpush1.bf16.msra.mxu1 %v11625_v49  ;;  %v11694_v49 = vld [vmem:[#allocation12 + $0x348] ss:$16 sps:$4 sm:$0xff]  }
 0x4db   :  { %5136 = vmatmul.mubr.bf16.gmra.mxu0 %v13462_v2  ;;  %5160 = vmatprep.subr.bf16.mxu1 %v11633_v45  ;;  %v11702_v45 = vld [vmem:[#allocation12 + $0x32c] ss:$16 sps:$4 sm:$0xff]  }
 0x4dc   :  { %5145 = vmatprep.mubr.bf16.mxu0 %v13487_v7  ;;  %5220 = vmatpush1.bf16.msra.mxu0 %v11628_v46  ;;  %v11697_v46 = vld [vmem:[#allocation12 + $0x128] ss:$16 sps:$4 sm:$0xff]  }
 0x4dd   :  { %5221 = vmatprep.subr.bf16.mxu0 %v11636_v24  ;;  %v11705_v24 = vld [vmem:[#allocation12 + $0x10c] ss:$16 sps:$4 sm:$0xff]  }
 0x4de   :  { %5161 = vmatpush1.bf16.msra.mxu1 %v11631_v52  ;;  %v11700_v52 = vld [vmem:[#allocation12 + $0x328] ss:$16 sps:$4 sm:$0xff]  }
 0x4df   :  { %5162 = vmatprep.subr.bf16.mxu1 %v11639_v43  ;;  %v11708_v43 = vld [vmem:[#allocation12 + $0x30c] ss:$16 sps:$4 sm:$0xff]  }
 0x4e0   :  { %5222 = vmatpush1.bf16.msra.mxu0 %v11634_v42  ;;  %v11703_v42 = vld [vmem:[#allocation12 + $0x108] ss:$16 sps:$4 sm:$0xff]  }
 0x4e1   :  { %5085 = vmatmul.mubr.bf16.gmra.mxu1 %v13478_v22  ;;  %5223 = vmatprep.subr.bf16.mxu0 %v11642_v9  ;;  %v11711_v9 = vld [vmem:[#allocation12 + $0x8e4] ss:$16 sps:$4 sm:$0xff]  }
 0x4e2   :  { %5163 = vmatpush1.bf16.msra.mxu1 %v11637_v57  ;;  %5186 = vmatprep.mubr.bf16.mxu1 %v13436_v0  ;;  %v11706_v57 = vld [vmem:[#allocation12 + $0x308] ss:$16 sps:$4 sm:$0xff]  }
 0x4e3   :  { %5146 = vmatmul.mubr.bf16.gmra.mxu0 %v13480_v54  ;;  %5164 = vmatprep.subr.bf16.mxu1 %v11645_v11  ;;  %v11714_v11 = vld [vmem:[#allocation12 + $0xae4] ss:$16 sps:$4 sm:$0xff]  }
 0x4e4   :  { %5224 = vmatpush1.bf16.msra.mxu0 %v11640_v1  ;;  %5247 = vmatprep.mubr.bf16.mxu0 %v13438_v62  ;;  %v11709_v1 = vld [vmem:[#allocation12 + $0x8e0] ss:$16 sps:$4 sm:$0xff]  }
 0x4e5   :  { %5225 = vmatprep.subr.bf16.mxu0 %v11648_v26  ;;  %v11717_v26 = vld [vmem:[#allocation12 + $0x8c4] ss:$16 sps:$4 sm:$0xff]  }
 0x4e6   :  { %5165 = vmatpush1.bf16.msra.mxu1 %v11643_v3  ;;  %v11712_v3 = vld [vmem:[#allocation12 + $0xae0] ss:$16 sps:$4 sm:$0xff]  }
 0x4e7   :  { %5166 = vmatprep.subr.bf16.mxu1 %v11651_v55 }
 0x4e8   :  { %5226 = vmatpush1.bf16.msra.mxu0 %v11646_v37  ;;  %v11720_v37 = vld [vmem:[#allocation12 + $0xac4] ss:$16 sps:$4 sm:$0xff]  }
 0x4e9   :  { %5227 = vmatprep.subr.bf16.mxu0 %v11654_v63  ;;  %v11715_v63 = vld [vmem:[#allocation12 + $0x8c0] ss:$16 sps:$4 sm:$0xff]  }
 0x4ea   :  { %5167 = vmatpush1.bf16.msra.mxu1 %v11649_v17 }
 0x4eb   :  { %5168 = vmatprep.subr.bf16.mxu1 %v11657_v32 }
 0x4ec   :  { %5228 = vmatpush1.bf16.msra.mxu0 %v11652_v19  ;;  %v11723_v19 = vld [vmem:[#allocation12 + $0x8a4] ss:$16 sps:$4 sm:$0xff]  }
 0x4ed   :  { %5229 = vmatprep.subr.bf16.mxu0 %v11660_v18 }
 0x4ee   :  { %5169 = vmatpush1.bf16.msra.mxu1 %v11655_v6  ;;  %v11718_v6 = vld [vmem:[#allocation12 + $0xac0] ss:$16 sps:$4 sm:$0xff]  }
 0x4ef   :  { %5170 = vmatprep.subr.bf16.mxu1 %v11663_v39 }
 0x4f0   :  { %5230 = vmatpush1.bf16.msra.mxu0 %v11658_v59 }
 0x4f1   :  { %5231 = vmatprep.subr.bf16.mxu0 %v11666_v50  ;;  %v11726_v50 = vld [vmem:[#allocation12 + $0xaa4] ss:$16 sps:$4 sm:$0xff]  }
 0x4f2   :  { %5171 = vmatpush2.bf16.msra.mxu1 %v11661_v40 }
 0x4f3   :  { %5172 = vmatprep.subr.bf16.mxu1 %v11669_v31  ;;  %v11721_v31 = vld [vmem:[#allocation12 + $0x8a0] ss:$16 sps:$4 sm:$0xff]  }
 0x4f4   :  { %5232 = vmatpush2.bf16.msra.mxu0 %v11664_v58 }
 0x4f5   :  { %5233 = vmatprep.subr.bf16.mxu0 %v11672_v53 }
 0x4f6   :  { %5173 = vmatpush2.bf16.msra.mxu1 %v11667_v29  ;;  %v11729_v29 = vld [vmem:[#allocation12 + $0x884] ss:$16 sps:$4 sm:$0xff]  }
 0x4f7   :  { %5174 = vmatprep.subr.bf16.mxu1 %v11675_v48 }
 0x4f8   :  { %5234 = vmatpush2.bf16.msra.mxu0 %v11670_v36  ;;  %v11724_v36 = vld [vmem:[#allocation12 + $0xaa0] ss:$16 sps:$4 sm:$0xff]  }
 0x4f9   :  { %5235 = vmatprep.subr.bf16.mxu0 %v11678_v44 }
 0x4fa   :  { %5175 = vmatpush2.bf16.msra.mxu1 %v11673_v38 }
 0x4fb   :  { %5176 = vmatprep.subr.bf16.mxu1 %v11681_v28  ;;  %v11732_v28 = vld [vmem:[#allocation12 + $0xa84] ss:$16 sps:$4 sm:$0xff]  }
 0x4fc   :  { %5236 = vmatpush2.bf16.msra.mxu0 %v11676_v56  ;;  %v11727_v56 = vld [vmem:[#allocation12 + $0x880] ss:$16 sps:$4 sm:$0xff]  }
 0x4fd   :  { %5237 = vmatprep.subr.bf16.mxu0 %v11684_v60 }
 0x4fe   :  { %5177 = vmatpush2.bf16.msra.mxu1 %v11679_v61 }
 0x4ff   :  { %5178 = vmatprep.subr.bf16.mxu1 %v11687_v10  ;;  %v11735_v10 = vld [vmem:[#allocation12 + $0x864] ss:$16 sps:$4 sm:$0xff]  }
 0x500   :  { %5238 = vmatpush2.bf16.msra.mxu0 %v11682_v4 }
 0x501   :  { %5239 = vmatprep.subr.bf16.mxu0 %v11690_v33  ;;  %v11730_v33 = vld [vmem:[#allocation12 + $0xa80] ss:$16 sps:$4 sm:$0xff]  }
 0x502   :  { %5179 = vmatpush2.bf16.msra.mxu1 %v11685_v34 }
 0x503   :  { %5180 = vmatprep.subr.bf16.mxu1 %v11693_v27 }
 0x504   :  { %5240 = vmatpush2.bf16.msra.mxu0 %v11688_v30  ;;  %v11738_v30 = vld [vmem:[#allocation12 + $0xa64] ss:$16 sps:$4 sm:$0xff]  }
 0x505   :  { %5241 = vmatprep.subr.bf16.mxu0 %v11696_v35  ;;  %v5421_v35 = vrot.slane %v13448_v20, 1 }
 0x506   :  { %5181 = vmatpush2.bf16.msra.mxu1 %v11691_v47 }
 0x507   :  { %5182 = vmatprep.subr.bf16.mxu1 %v11699_v41  ;;  %v11733_v41 = vld [vmem:[#allocation12 + $0x860] ss:$16 sps:$4 sm:$0xff]  }
 0x508   :  { %5242 = vmatpush2.bf16.msra.mxu0 %v11694_v49 }
 0x509   :  { %5243 = vmatprep.subr.bf16.mxu0 %v11702_v45 }
 0x50a   :  { %5183 = vmatpush2.bf16.msra.mxu1 %v11697_v46  ;;  %v5420_v46 = vrot.slane %v13436_v0, 1  ;;  %v5426_v0 = vrot.slane %v13438_v62, 1  ;;  %v11742_v62 = vld [vmem:[#allocation12 + $0xa40] ss:$16 sps:$4 sm:$0xff]  }
 0x50b   :  { %5184 = vmatprep.subr.bf16.mxu1 %v11705_v24  ;;  %v5427_v24 = vrot.slane %v13450_v51, 1 }
 0x50c   :  { %5244 = vmatpush2.bf16.msra.mxu0 %v11700_v52  ;;  %v11741_v52 = vld [vmem:[#allocation12 + $0x844] ss:$16 sps:$4 sm:$0xff]  }
 0x50d   :  { %5245 = vmatprep.subr.bf16.mxu0 %v11708_v43 }
 0x50e   :  { %5185 = vmatpush2.bf16.msra.mxu1 %v11703_v42  ;;  %v11736_v42 = vld [vmem:[#allocation12 + $0xa60] ss:$16 sps:$4 sm:$0xff]  }
 0x50f   :  { %6089 = vmatprep.subr.bf16.mxu1 %v11711_v9 }
 0x510   :  { %5246 = vmatpush2.bf16.msra.mxu0 %v11706_v57  ;;  %v4182_v55 = vpop.f32.mrf.mxu1 }
 0x511   :  { %5187 = vmatmul.mubr.bf16.vlgmr.msra.gmra.mxu1 %v13453_v13  ;;  %6150 = vmatprep.subr.bf16.mxu0 %v11714_v11  ;;  %v13595_v11 = vsel %vm2465_vm0, %v5420_v46, %v5421_v35  ;;  %v11774_v46 = vld [vmem:[#allocation12 + $0xba4] ss:$16 sps:$4 sm:$0xff]  }
 0x512   :  { %5196 = vmatprep.mubr.bf16.mxu1 %v13448_v20  ;;  %6090 = vmatpush1.bf16.msra.mxu1 %v11709_v1  ;;  %v4243_v17 = vpop.f32.mrf.mxu0  ;;  %v4184_v32 = vpop.f32.mrf.mxu1  ;;  %v11744_v1 = vld [vmem:[#allocation12 + $0xa44] ss:$16 sps:$4 sm:$0xff]  }
 0x513   :  { %5248 = vmatmul.mubr.bf16.vlgmr.msra.gmra.mxu0 %v13460_v8  ;;  %6091 = vmatprep.subr.bf16.mxu1 %v11717_v26  ;;  %v13563_v18 = vadd.f32 %v4243_v17, %v4182_v55  ;;  %v11739_v26 = vld [vmem:[#allocation12 + $0x840] ss:$16 sps:$4 sm:$0xff]   ;;  %v13603_v55 = vsel %vm2465_vm0, %v5426_v0, %v5427_v24  ;;  %v11780_v0 = vld [vmem:[#allocation12 + $0xb84] ss:$16 sps:$4 sm:$0xff]  }
 0x514   :  { %5257 = vmatprep.mubr.bf16.mxu0 %v13450_v51  ;;  %6151 = vmatpush1.bf16.msra.mxu0 %v11712_v3  ;;  %v4245_v39 = vpop.f32.mrf.mxu0  ;;  %v4186_v59 = vpop.f32.mrf.mxu1 }
 0x515   :  { %6152 = vmatprep.subr.bf16.mxu0 %v11720_v37  ;;  %v13566_v40 = vadd.f32 %v4245_v39, %v4184_v32 }
 0x516   :  { %6092 = vmatpush1.bf16.msra.mxu1 %v11715_v63  ;;  %v4247_v58 = vpop.f32.mrf.mxu0  ;;  %v13568_v53 = vpop.f32.mrf.mxu1  ;;  %v11747_v63 = vld [vmem:[#allocation12 + $0x824] ss:$16 sps:$4 sm:$0xff]  }
 0x517   :  { %6093 = vmatprep.subr.bf16.mxu1 %v11723_v19  ;;  %v13570_v48 = vadd.f32 %v4247_v58, %v4186_v59  ;;  %v11745_v59 = vld [vmem:[#allocation12 + $0x820] ss:$16 sps:$4 sm:$0xff]   ;;  %v11753_v58 = vld [vmem:[#allocation12 + $0x804] ss:$16 sps:$4 sm:$0xff]  }
 0x518   :  { %6153 = vmatpush1.bf16.msra.mxu0 %v11718_v6  ;;  %v13572_v44 = vpop.f32.mrf.mxu0  ;;  %v4192_v38 = vpop.f32.mrf.mxu1  ;;  %v11750_v6 = vld [vmem:[#allocation12 + $0xa24] ss:$16 sps:$4 sm:$0xff]  }
 0x519   :  { %5197 = vmatmul.mubr.bf16.gmra.mxu1 %v13455_v15  ;;  %6154 = vmatprep.subr.bf16.mxu0 %v11726_v50 }
 0x51a   :  { %5206 = vmatprep.mubr.bf16.mxu1 %v13485_v5  ;;  %6094 = vmatpush1.bf16.msra.mxu1 %v11721_v31  ;;  %v4253_v60 = vpop.f32.mrf.mxu0  ;;  %v4194_v61 = vpop.f32.mrf.mxu1 }
 0x51b   :  { %5258 = vmatmul.mubr.bf16.gmra.mxu0 %v13462_v2  ;;  %6095 = vmatprep.subr.bf16.mxu1 %v11729_v29  ;;  %v13577_v4 = vadd.f32 %v4253_v60, %v4192_v38  ;;  %v11748_v29 = vld [vmem:[#allocation12 + $0xa20] ss:$16 sps:$4 sm:$0xff]   ;;  %v11756_v38 = vld [vmem:[#allocation12 + $0xa04] ss:$16 sps:$4 sm:$0xff]  }
 0x51c   :  { %5267 = vmatprep.mubr.bf16.mxu0 %v13487_v7  ;;  %6155 = vmatpush1.bf16.msra.mxu0 %v11724_v36  ;;  %v4255_v34 = vpop.f32.mrf.mxu0  ;;  %v4196_v27 = vpop.f32.mrf.mxu1  ;;  %v11754_v60 = vld [vmem:[#allocation12 + $0xa00] ss:$16 sps:$4 sm:$0xff]  }
 0x51d   :  { %6156 = vmatprep.subr.bf16.mxu0 %v11732_v28  ;;  %v13581_v47 = vadd.f32 %v4255_v34, %v4194_v61  ;;  %v11751_v28 = vld [vmem:[#allocation12 + $0x800] ss:$16 sps:$4 sm:$0xff]   ;;  %v11762_v61 = vld [vmem:[#allocation12 + $0xbe4] ss:$16 sps:$4 sm:$0xff]  }
 0x51e   :  { %6096 = vmatpush1.bf16.msra.mxu1 %v11727_v56  ;;  %v4257_v49 = vpop.f32.mrf.mxu0  ;;  %v13583_v45 = vpop.f32.mrf.mxu1  ;;  %v11759_v56 = vld [vmem:[#allocation12 + $0x9e4] ss:$16 sps:$4 sm:$0xff]   ;;  %v11760_v34 = vld [vmem:[#allocation12 + $0xbe0] ss:$16 sps:$4 sm:$0xff]  }
 0x51f   :  { %6097 = vmatprep.subr.bf16.mxu1 %v11735_v10  ;;  %v13587_v43 = vadd.f32 %v4257_v49, %v4196_v27  ;;  %v11757_v10 = vld [vmem:[#allocation12 + $0x9e0] ss:$16 sps:$4 sm:$0xff]   ;;  %v11768_v27 = vld [vmem:[#allocation12 + $0xbc4] ss:$16 sps:$4 sm:$0xff]  }
 0x520   :  { %6157 = vmatpush1.bf16.msra.mxu0 %v11730_v33  ;;  %v13589_v9 = vpop.f32.mrf.mxu0  ;;  %v4202_v57 = vpop.f32.mrf.mxu1  ;;  %v11765_v33 = vld [vmem:[#allocation12 + $0x9c4] ss:$16 sps:$4 sm:$0xff]   ;;  %v11766_v49 = vld [vmem:[#allocation12 + $0xbc0] ss:$16 sps:$4 sm:$0xff]  }
 0x521   :  { %5207 = vmatmul.mubr.bf16.gmra.mxu1 %v13478_v22  ;;  %6158 = vmatprep.subr.bf16.mxu0 %v11738_v30  ;;  %v11763_v30 = vld [vmem:[#allocation12 + $0x9c0] ss:$16 sps:$4 sm:$0xff]  }
 0x522   :  { %6098 = vmatpush1.bf16.msra.mxu1 %v11733_v41  ;;  %6121 = vmatprep.mubr.bf16.mxu1 %v13595_v11  ;;  %v4263_v3 = vpop.f32.mrf.mxu0  ;;  %v4204_v37 = vpop.f32.mrf.mxu1  ;;  %v11771_v41 = vld [vmem:[#allocation12 + $0x9a4] ss:$16 sps:$4 sm:$0xff]  }
 0x523   :  { %5268 = vmatmul.mubr.bf16.gmra.mxu0 %v13480_v54  ;;  %6099 = vmatprep.subr.bf16.mxu1 %v11741_v52  ;;  %v13605_v17 = vadd.f32 %v4263_v3, %v4202_v57  ;;  %v11769_v52 = vld [vmem:[#allocation12 + $0x9a0] ss:$16 sps:$4 sm:$0xff]  }
 0x524   :  { %6159 = vmatpush1.bf16.msra.mxu0 %v11736_v42  ;;  %6182 = vmatprep.mubr.bf16.mxu0 %v13603_v55  ;;  %v4265_v32 = vpop.f32.mrf.mxu0  ;;  %v4206_v19 = vpop.f32.mrf.mxu1  ;;  %v11777_v42 = vld [vmem:[#allocation12 + $0x984] ss:$16 sps:$4 sm:$0xff]   ;;  %v11772_v57 = vld [vmem:[#allocation12 + $0xba0] ss:$16 sps:$4 sm:$0xff]  }
 0x525   :  { %6160 = vmatprep.subr.bf16.mxu0 %v11744_v1  ;;  %v13608_v39 = vadd.f32 %v4265_v32, %v4204_v37  ;;  %v11775_v1 = vld [vmem:[#allocation12 + $0x980] ss:$16 sps:$4 sm:$0xff]   ;;  %v11786_v37 = vld [vmem:[#allocation12 + $0xb64] ss:$16 sps:$4 sm:$0xff]  }
 0x526   :  { %6100 = vmatpush1.bf16.msra.mxu1 %v11739_v26  ;;  %v4267_v50 = vpop.f32.mrf.mxu0  ;;  %v4207_v31 = vpop.f32.mrf.mxu1  ;;  %v11783_v26 = vld [vmem:[#allocation12 + $0x964] ss:$16 sps:$4 sm:$0xff]   ;;  %v11778_v3 = vld [vmem:[#allocation12 + $0xb80] ss:$16 sps:$4 sm:$0xff]  }
 0x527   :  { %6101 = vmatprep.subr.bf16.mxu1 %v11747_v63  ;;  %v11781_v63 = vld [vmem:[#allocation12 + $0x960] ss:$16 sps:$4 sm:$0xff]   ;;  %v11792_v19 = vld [vmem:[#allocation12 + $0xb44] ss:$16 sps:$4 sm:$0xff]  }
 0x528   :  { %6161 = vmatpush1.bf16.msra.mxu0 %v11742_v62  ;;  %v4268_v36 = vpop.f32.mrf.mxu0  ;;  %v11789_v62 = vld [vmem:[#allocation12 + $0x944] ss:$16 sps:$4 sm:$0xff]   ;;  %v11784_v32 = vld [vmem:[#allocation12 + $0xb60] ss:$16 sps:$4 sm:$0xff]  }
 0x529   :  { %6162 = vmatprep.subr.bf16.mxu0 %v11750_v6  ;;  %v11787_v6 = vld [vmem:[#allocation12 + $0x940] ss:$16 sps:$4 sm:$0xff]   ;;  %v11798_v31 = vld [vmem:[#allocation12 + $0xb24] ss:$16 sps:$4 sm:$0xff]  }
 0x52a   :  { %6102 = vmatpush1.bf16.msra.mxu1 %v11745_v59  ;;  %v11795_v59 = vld [vmem:[#allocation12 + $0x924] ss:$16 sps:$4 sm:$0xff]   ;;  %v11790_v50 = vld [vmem:[#allocation12 + $0xb40] ss:$16 sps:$4 sm:$0xff]  }
 0x52b   :  { %6103 = vmatprep.subr.bf16.mxu1 %v11753_v58  ;;  %v11793_v58 = vld [vmem:[#allocation12 + $0x920] ss:$16 sps:$4 sm:$0xff]  }
 0x52c   :  { %6163 = vmatpush1.bf16.msra.mxu0 %v11748_v29  ;;  %v11801_v29 = vld [vmem:[#allocation12 + $0x904] ss:$16 sps:$4 sm:$0xff]   ;;  %v11796_v36 = vld [vmem:[#allocation12 + $0xb20] ss:$16 sps:$4 sm:$0xff]  }
 0x52d   :  { %6164 = vmatprep.subr.bf16.mxu0 %v11756_v38  ;;  %v11804_v38 = vld [vmem:[#allocation12 + $0xb04] ss:$16 sps:$4 sm:$0xff]  }
 0x52e   :  { %6104 = vmatpush1.bf16.msra.mxu1 %v11751_v28  ;;  %v11799_v28 = vld [vmem:[#allocation12 + $0x900] ss:$16 sps:$4 sm:$0xff]  }
 0x52f   :  { %6105 = vmatprep.subr.bf16.mxu1 %v11759_v56  ;;  %v11807_v56 = vld [vmem:[#allocation12 + $0x8ec] ss:$16 sps:$4 sm:$0xff]  }
 0x530   :  { %6165 = vmatpush1.bf16.msra.mxu0 %v11754_v60  ;;  %v11802_v60 = vld [vmem:[#allocation12 + $0xb00] ss:$16 sps:$4 sm:$0xff]  }
 0x531   :  { %6166 = vmatprep.subr.bf16.mxu0 %v11762_v61  ;;  %v5418_v61 = vrot.slane %v13455_v15, 1  ;;  %v5423_v15 = vrot.slane %v13460_v8, 1 }
 0x532   :  { %6106 = vmatpush2.bf16.msra.mxu1 %v11757_v10  ;;  %v11810_v10 = vld [vmem:[#allocation12 + $0xaec] ss:$16 sps:$4 sm:$0xff]  }
 0x533   :  { %6107 = vmatprep.subr.bf16.mxu1 %v11765_v33  ;;  %v13612_v33 = vrot.slane %v13485_v5, 1 }
 0x534   :  { %6167 = vmatpush2.bf16.msra.mxu0 %v11760_v34  ;;  %v5417_v34 = vrot.slane %v13453_v13, 1 }
 0x535   :  { %6168 = vmatprep.subr.bf16.mxu0 %v11768_v27  ;;  %v5424_v27 = vrot.slane %v13462_v2, 1  ;;  %v13628_v13 = vsel %vm2465_vm0, %v5421_v35, %v13612_v33  ;;  %v11816_v2 = vld [vmem:[#allocation12 + $0xacc] ss:$16 sps:$4 sm:$0xff]  }
 0x536   :  { %6108 = vmatpush2.bf16.msra.mxu1 %v11763_v30  ;;  %v11805_v30 = vld [vmem:[#allocation12 + $0x8e8] ss:$16 sps:$4 sm:$0xff]   ;;  %v11819_v35 = vld [vmem:[#allocation12 + $0x8ac] ss:$16 sps:$4 sm:$0xff]  }
 0x537   :  { %6109 = vmatprep.subr.bf16.mxu1 %v11771_v41  ;;  %v13617_v41 = vrot.slane %v13487_v7, 1  ;;  %v13631_v7 = vsel %vm2465_vm0, %v5423_v15, %v5424_v27 }
 0x538   :  { %6169 = vmatpush2.bf16.msra.mxu0 %v11766_v49  ;;  %v11813_v49 = vld [vmem:[#allocation12 + $0x8cc] ss:$16 sps:$4 sm:$0xff]  }
 0x539   :  { %6170 = vmatprep.subr.bf16.mxu0 %v11774_v46  ;;  %v13620_v46 = vsel %vm2465_vm0, %v5417_v34, %v5418_v61 }
 0x53a   :  { %6110 = vmatpush2.bf16.msra.mxu1 %v11769_v52  ;;  %v11808_v52 = vld [vmem:[#allocation12 + $0xae8] ss:$16 sps:$4 sm:$0xff]  }
 0x53b   :  { %6111 = vmatprep.subr.bf16.mxu1 %v11777_v42  ;;  %v11811_v42 = vld [vmem:[#allocation12 + $0x8c8] ss:$16 sps:$4 sm:$0xff]  }
 0x53c   :  { %6171 = vmatpush2.bf16.msra.mxu0 %v11772_v57  ;;  %v13639_v57 = vsel %vm2465_vm0, %v5427_v24, %v13617_v41  ;;  %v13650_v24 = vrot.slane %v13480_v54, 1  ;;  %v11828_v54 = vld [vmem:[#allocation12 + $0xa8c] ss:$16 sps:$4 sm:$0xff]  }
 0x53d   :  { %6172 = vmatprep.subr.bf16.mxu0 %v11780_v0 }
 0x53e   :  { %6112 = vmatpush2.bf16.msra.mxu1 %v11775_v1  ;;  %v11814_v1 = vld [vmem:[#allocation12 + $0xac8] ss:$16 sps:$4 sm:$0xff]  }
 0x53f   :  { %6113 = vmatprep.subr.bf16.mxu1 %v11783_v26  ;;  %v13645_v26 = vrot.slane %v13478_v22, 1 }
 0x540   :  { %6173 = vmatpush2.bf16.msra.mxu0 %v11778_v3 }
 0x541   :  { %6174 = vmatprep.subr.bf16.mxu0 %v11786_v37  ;;  %v13658_v22 = vsel %vm2465_vm0, %v5418_v61, %v13645_v26  ;;  %v11826_v61 = vld [vmem:[#allocation12 + $0xa88] ss:$16 sps:$4 sm:$0xff]  }
 0x542   :  { %6114 = vmatpush2.bf16.msra.mxu1 %v11781_v63  ;;  %v11822_v63 = vld [vmem:[#allocation12 + $0xaac] ss:$16 sps:$4 sm:$0xff]  }
 0x543   :  { %6115 = vmatprep.subr.bf16.mxu1 %v11789_v62  ;;  %v11817_v62 = vld [vmem:[#allocation12 + $0x8a8] ss:$16 sps:$4 sm:$0xff]  }
 0x544   :  { %6175 = vmatpush2.bf16.msra.mxu0 %v11784_v32 }
 0x545   :  { %6176 = vmatprep.subr.bf16.mxu0 %v11792_v19 }
 0x546   :  { %6116 = vmatpush2.bf16.msra.mxu1 %v11787_v6  ;;  %v11825_v6 = vld [vmem:[#allocation12 + $0x88c] ss:$16 sps:$4 sm:$0xff]  }
 0x547   :  { %6117 = vmatprep.subr.bf16.mxu1 %v11795_v59 }
 0x548   :  { %6177 = vmatpush2.bf16.msra.mxu0 %v11790_v50  ;;  %v11820_v50 = vld [vmem:[#allocation12 + $0xaa8] ss:$16 sps:$4 sm:$0xff]  }
 0x549   :  { %6178 = vmatprep.subr.bf16.mxu0 %v11798_v31 }
 0x54a   :  { %6118 = vmatpush2.bf16.msra.mxu1 %v11793_v58 }
 0x54b   :  { %6119 = vmatprep.subr.bf16.mxu1 %v11801_v29  ;;  %v13665_v29 = vsel %vm2465_vm0, %v5424_v27, %v13650_v24  ;;  %v11834_v27 = vld [vmem:[#allocation12 + $0xa6c] ss:$16 sps:$4 sm:$0xff]  }
 0x54c   :  { %6179 = vmatpush2.bf16.msra.mxu0 %v11796_v36  ;;  %v11823_v36 = vld [vmem:[#allocation12 + $0x888] ss:$16 sps:$4 sm:$0xff]  }
 0x54d   :  { %6180 = vmatprep.subr.bf16.mxu0 %v11804_v38 }
 0x54e   :  { %6120 = vmatpush2.bf16.msra.mxu1 %v11799_v28 }
 0x54f   :  { %6211 = vmatprep.subr.bf16.mxu1 %v11807_v56  ;;  %v11831_v56 = vld [vmem:[#allocation12 + $0x86c] ss:$16 sps:$4 sm:$0xff]  }
 0x550   :  { %6181 = vmatpush2.bf16.msra.mxu0 %v11802_v60  ;;  %v4304_v5 = vpop.f32.mrf.mxu1 }
 0x551   :  { %6122 = vmatmul.mubr.bf16.vlgmr.msra.gmra.mxu1 %v13620_v46  ;;  %6272 = vmatprep.subr.bf16.mxu0 %v11810_v10 }
 0x552   :  { %6131 = vmatprep.mubr.bf16.mxu1 %v13628_v13  ;;  %6212 = vmatpush1.bf16.msra.mxu1 %v11805_v30  ;;  %v4306_v20 = vpop.f32.mrf.mxu1 }
 0x553   :  { %v4365_v8 = vpop.f32.mrf.mxu0  ;;  %6183 = vmatmul.mubr.bf16.vlgmr.msra.gmra.mxu0 %v13631_v7  ;;  %6213 = vmatprep.subr.bf16.mxu1 %v11813_v49  ;;  %v11829_v49 = vld [vmem:[#allocation12 + $0x868] ss:$16 sps:$4 sm:$0xff]  }
 0x554   :  { %v13641_v0 = vadd.f32 %v4365_v8, %v4304_v5  ;;  %6192 = vmatprep.mubr.bf16.mxu0 %v13639_v57  ;;  %6273 = vmatpush1.bf16.msra.mxu0 %v11808_v52  ;;  %v4308_v37 = vpop.f32.mrf.mxu1  ;;  %v11837_v5 = vld [vmem:[#allocation12 + $0x84c] ss:$16 sps:$4 sm:$0xff]  }
 0x555   :  { %v4367_v3 = vpop.f32.mrf.mxu0  ;;  %6274 = vmatprep.subr.bf16.mxu0 %v11816_v2 }
 0x556   :  { %v13647_v51 = vadd.f32 %v4367_v3, %v4306_v20  ;;  %6214 = vmatpush1.bf16.msra.mxu1 %v11811_v42  ;;  %v13652_v19 = vpop.f32.mrf.mxu1  ;;  %v11832_v42 = vld [vmem:[#allocation12 + $0xa68] ss:$16 sps:$4 sm:$0xff]  }
 0x557   :  { %v4369_v32 = vpop.f32.mrf.mxu0  ;;  %6215 = vmatprep.subr.bf16.mxu1 %v11819_v35  ;;  %v11840_v35 = vld [vmem:[#allocation12 + $0xa4c] ss:$16 sps:$4 sm:$0xff]  }
 0x558   :  { %v13654_v59 = vadd.f32 %v4369_v32, %v4308_v37  ;;  %6275 = vmatpush1.bf16.msra.mxu0 %v11814_v1  ;;  %v4314_v58 = vpop.f32.mrf.mxu1  ;;  %v11835_v1 = vld [vmem:[#allocation12 + $0x848] ss:$16 sps:$4 sm:$0xff]  }
 0x559   :  { %v13660_v31 = vpop.f32.mrf.mxu0  ;;  %6132 = vmatmul.mubr.bf16.gmra.mxu1 %v13658_v22  ;;  %6276 = vmatprep.subr.bf16.mxu0 %v11822_v63  ;;  %v11843_v63 = vld [vmem:[#allocation12 + $0x82c] ss:$16 sps:$4 sm:$0xff]   ;;  %v11838_v32 = vld [vmem:[#allocation12 + $0xa48] ss:$16 sps:$4 sm:$0xff]  }
 0x55a   :  { %6141 = vmatprep.mubr.bf16.mxu1 %v13612_v33  ;;  %6216 = vmatpush1.bf16.msra.mxu1 %v11817_v62  ;;  %v4316_v28 = vpop.f32.mrf.mxu1 }
 0x55b   :  { %v4375_v38 = vpop.f32.mrf.mxu0  ;;  %6193 = vmatmul.mubr.bf16.gmra.mxu0 %v13665_v29  ;;  %6217 = vmatprep.subr.bf16.mxu1 %v11825_v6 }
 0x55c   :  { %v13669_v60 = vadd.f32 %v4375_v38, %v4314_v58  ;;  %6202 = vmatprep.mubr.bf16.mxu0 %v13617_v41  ;;  %6277 = vmatpush1.bf16.msra.mxu0 %v11820_v50  ;;  %v4318_v34 = vpop.f32.mrf.mxu1  ;;  %v11846_v58 = vld [vmem:[#allocation12 + $0xa2c] ss:$16 sps:$4 sm:$0xff]  }
 0x55d   :  { %v4377_v10 = vpop.f32.mrf.mxu0  ;;  %6278 = vmatprep.subr.bf16.mxu0 %v11828_v54 }
 0x55e   :  { %v13672_v30 = vadd.f32 %v4377_v10, %v4316_v28  ;;  %6218 = vmatpush1.bf16.msra.mxu1 %v11823_v36  ;;  %v13674_v52 = vpop.f32.mrf.mxu1  ;;  %v11849_v28 = vld [vmem:[#allocation12 + $0x80c] ss:$16 sps:$4 sm:$0xff]  }
 0x55f   :  { %v4379_v15 = vpop.f32.mrf.mxu0  ;;  %6219 = vmatprep.subr.bf16.mxu1 %v11831_v56  ;;  %v11844_v56 = vld [vmem:[#allocation12 + $0xa28] ss:$16 sps:$4 sm:$0xff]   ;;  %v11852_v10 = vld [vmem:[#allocation12 + $0xa0c] ss:$16 sps:$4 sm:$0xff]  }
 0x560   :  { %v13676_v2 = vadd.f32 %v4379_v15, %v4318_v34  ;;  %6279 = vmatpush1.bf16.msra.mxu0 %v11826_v61  ;;  %v4324_v20 = vpop.f32.mrf.mxu1  ;;  %v11855_v34 = vld [vmem:[#allocation12 + $0x9ec] ss:$16 sps:$4 sm:$0xff]   ;;  %v11853_v15 = vld [vmem:[#allocation12 + $0x9e8] ss:$16 sps:$4 sm:$0xff]  }
 0x561   :  { %v13678_v8 = vpop.f32.mrf.mxu0  ;;  %6142 = vmatmul.mubr.bf16.gmra.mxu1 %v13645_v26  ;;  %6280 = vmatprep.subr.bf16.mxu0 %v11834_v27  ;;  %v11850_v27 = vld [vmem:[#allocation12 + $0xa08] ss:$16 sps:$4 sm:$0xff]  }
 0x562   :  { %6220 = vmatpush1.bf16.msra.mxu1 %v11829_v49  ;;  %6243 = vmatprep.mubr.bf16.mxu1 %v13595_v11  ;;  %v4326_v37 = vpop.f32.mrf.mxu1  ;;  %v11841_v11 = vld [vmem:[#allocation12 + $0x828] ss:$16 sps:$4 sm:$0xff]   ;;  %v11858_v49 = vld [vmem:[#allocation12 + $0xbec] ss:$16 sps:$4 sm:$0xff]  }
 0x563   :  { %v4385_v3 = vpop.f32.mrf.mxu0  ;;  %6203 = vmatmul.mubr.bf16.gmra.mxu0 %v13650_v24  ;;  %6221 = vmatprep.subr.bf16.mxu1 %v11837_v5  ;;  %v11861_v5 = vld [vmem:[#allocation12 + $0x9cc] ss:$16 sps:$4 sm:$0xff]  }
 0x564   :  { %v13683_v62 = vadd.f32 %v4385_v3, %v4324_v20  ;;  %6281 = vmatpush1.bf16.msra.mxu0 %v11832_v42  ;;  %6304 = vmatprep.mubr.bf16.mxu0 %v13603_v55  ;;  %v4328_v50 = vpop.f32.mrf.mxu1  ;;  %v11847_v55 = vld [vmem:[#allocation12 + $0x808] ss:$16 sps:$4 sm:$0xff]   ;;  %v11864_v20 = vld [vmem:[#allocation12 + $0xbcc] ss:$16 sps:$4 sm:$0xff]  }
 0x565   :  { %v4387_v6 = vpop.f32.mrf.mxu0  ;;  %6282 = vmatprep.subr.bf16.mxu0 %v11840_v35  ;;  %v11856_v42 = vld [vmem:[#allocation12 + $0xbe8] ss:$16 sps:$4 sm:$0xff]   ;;  %v11876_v50 = vld [vmem:[#allocation12 + $0xb8c] ss:$16 sps:$4 sm:$0xff]  }
 0x566   :  { %v13686_v54 = vadd.f32 %v4387_v6, %v4326_v37  ;;  %6222 = vmatpush1.bf16.msra.mxu1 %v11835_v1  ;;  %v4329_v38 = vpop.f32.mrf.mxu1  ;;  %v11859_v35 = vld [vmem:[#allocation12 + $0x9c8] ss:$16 sps:$4 sm:$0xff]   ;;  %v11867_v1 = vld [vmem:[#allocation12 + $0x9ac] ss:$16 sps:$4 sm:$0xff]  }
 0x567   :  { %v4389_v36 = vpop.f32.mrf.mxu0  ;;  %6223 = vmatprep.subr.bf16.mxu1 %v11843_v63  ;;  %v11862_v3 = vld [vmem:[#allocation12 + $0xbc8] ss:$16 sps:$4 sm:$0xff]   ;;  %v11870_v37 = vld [vmem:[#allocation12 + $0xbac] ss:$16 sps:$4 sm:$0xff]  }
 0x568   :  { %6283 = vmatpush1.bf16.msra.mxu0 %v11838_v32  ;;  %v11865_v63 = vld [vmem:[#allocation12 + $0x9a8] ss:$16 sps:$4 sm:$0xff]   ;;  %v11873_v32 = vld [vmem:[#allocation12 + $0x98c] ss:$16 sps:$4 sm:$0xff]  }
 0x569   :  { %v4390_v61 = vpop.f32.mrf.mxu0  ;;  %6284 = vmatprep.subr.bf16.mxu0 %v11846_v58  ;;  %v11868_v6 = vld [vmem:[#allocation12 + $0xba8] ss:$16 sps:$4 sm:$0xff]   ;;  %v11882_v38 = vld [vmem:[#allocation12 + $0xb6c] ss:$16 sps:$4 sm:$0xff]  }
 0x56a   :  { %6224 = vmatpush1.bf16.msra.mxu1 %v11841_v11  ;;  %v11871_v58 = vld [vmem:[#allocation12 + $0x988] ss:$16 sps:$4 sm:$0xff]   ;;  %v11879_v11 = vld [vmem:[#allocation12 + $0x96c] ss:$16 sps:$4 sm:$0xff]  }
 0x56b   :  { %6225 = vmatprep.subr.bf16.mxu1 %v11849_v28  ;;  %v11874_v36 = vld [vmem:[#allocation12 + $0xb88] ss:$16 sps:$4 sm:$0xff]  }
 0x56c   :  { %6285 = vmatpush1.bf16.msra.mxu0 %v11844_v56  ;;  %v11877_v28 = vld [vmem:[#allocation12 + $0x968] ss:$16 sps:$4 sm:$0xff]   ;;  %v11885_v56 = vld [vmem:[#allocation12 + $0x94c] ss:$16 sps:$4 sm:$0xff]  }
 0x56d   :  { %6286 = vmatprep.subr.bf16.mxu0 %v11852_v10  ;;  %v11880_v61 = vld [vmem:[#allocation12 + $0xb68] ss:$16 sps:$4 sm:$0xff]   ;;  %v11888_v10 = vld [vmem:[#allocation12 + $0xb4c] ss:$16 sps:$4 sm:$0xff]  }
 0x56e   :  { %6226 = vmatpush1.bf16.msra.mxu1 %v11847_v55  ;;  %v11883_v55 = vld [vmem:[#allocation12 + $0x948] ss:$16 sps:$4 sm:$0xff]  }
 0x56f   :  { %6227 = vmatprep.subr.bf16.mxu1 %v11855_v34  ;;  %v11891_v34 = vld [vmem:[#allocation12 + $0x92c] ss:$16 sps:$4 sm:$0xff]  }
 0x570   :  { %6287 = vmatpush1.bf16.msra.mxu0 %v11850_v27  ;;  %v11886_v27 = vld [vmem:[#allocation12 + $0xb48] ss:$16 sps:$4 sm:$0xff]  }
 0x571   :  { %6288 = vmatprep.subr.bf16.mxu0 %v11858_v49  ;;  %v11894_v49 = vld [vmem:[#allocation12 + $0xb2c] ss:$16 sps:$4 sm:$0xff]  }
 0x572   :  { %6228 = vmatpush2.bf16.msra.mxu1 %v11853_v15  ;;  %v11889_v15 = vld [vmem:[#allocation12 + $0x928] ss:$16 sps:$4 sm:$0xff]  }
 0x573   :  { %6229 = vmatprep.subr.bf16.mxu1 %v11861_v5  ;;  %v11897_v5 = vld [vmem:[#allocation12 + $0x90c] ss:$16 sps:$4 sm:$0xff]  }
 0x574   :  { %6289 = vmatpush2.bf16.msra.mxu0 %v11856_v42  ;;  %v11892_v42 = vld [vmem:[#allocation12 + $0xb28] ss:$16 sps:$4 sm:$0xff]  }
 0x575   :  { %6290 = vmatprep.subr.bf16.mxu0 %v11864_v20  ;;  %v11900_v20 = vld [vmem:[#allocation12 + $0xb0c] ss:$16 sps:$4 sm:$0xff]  }
 0x576   :  { %6230 = vmatpush2.bf16.msra.mxu1 %v11859_v35  ;;  %v11895_v35 = vld [vmem:[#allocation12 + $0x908] ss:$16 sps:$4 sm:$0xff]  }
 0x577   :  { %6231 = vmatprep.subr.bf16.mxu1 %v11867_v1  ;;  %v11898_v1 = vld [vmem:[#allocation12 + $0xb08] ss:$16 sps:$4 sm:$0xff]  }
 0x578   :  { %6291 = vmatpush2.bf16.msra.mxu0 %v11862_v3 }
 0x579   :  { %6292 = vmatprep.subr.bf16.mxu0 %v11870_v37 }
 0x57a   :  { %6232 = vmatpush2.bf16.msra.mxu1 %v11865_v63 }
 0x57b   :  { %6233 = vmatprep.subr.bf16.mxu1 %v11873_v32 }
 0x57c   :  { %6293 = vmatpush2.bf16.msra.mxu0 %v11868_v6 }
 0x57d   :  { %6294 = vmatprep.subr.bf16.mxu0 %v11876_v50 }
 0x57e   :  { %6234 = vmatpush2.bf16.msra.mxu1 %v11871_v58 }
 0x57f   :  { %6235 = vmatprep.subr.bf16.mxu1 %v11879_v11 }
 0x580   :  { %6295 = vmatpush2.bf16.msra.mxu0 %v11874_v36 }
 0x581   :  { %6296 = vmatprep.subr.bf16.mxu0 %v11882_v38 }
 0x582   :  { %6236 = vmatpush2.bf16.msra.mxu1 %v11877_v28 }
 0x583   :  { %6237 = vmatprep.subr.bf16.mxu1 %v11885_v56 }
 0x584   :  { %6297 = vmatpush2.bf16.msra.mxu0 %v11880_v61 }
 0x585   :  { %6298 = vmatprep.subr.bf16.mxu0 %v11888_v10 }
 0x586   :  { %6238 = vmatpush2.bf16.msra.mxu1 %v11883_v55 }
 0x587   :  { %6239 = vmatprep.subr.bf16.mxu1 %v11891_v34 }
 0x588   :  { %6299 = vmatpush2.bf16.msra.mxu0 %v11886_v27 }
 0x589   :  { %6300 = vmatprep.subr.bf16.mxu0 %v11894_v49 }
 0x58a   :  { %6240 = vmatpush2.bf16.msra.mxu1 %v11889_v15 }
 0x58b   :  { %6241 = vmatprep.subr.bf16.mxu1 %v11897_v5 }
 0x58c   :  { %6301 = vmatpush2.bf16.msra.mxu0 %v11892_v42 }
 0x58d   :  { %6302 = vmatprep.subr.bf16.mxu0 %v11900_v20 }
 0x58e   :  { %6242 = vmatpush2.bf16.msra.mxu1 %v11895_v35 }
 0x590   :  { %6303 = vmatpush2.bf16.msra.mxu0 %v11898_v1 }
 0x591   :  { %v5066_v3 = vpop.f32.mrf.mxu1  ;;  %6244 = vmatmul.mubr.bf16.vlgmr.msra.gmra.mxu1 %v13620_v46 }
 0x592   :  { %v5067_v37 = vadd.f32 %v5066_v3, %v13563_v18  ;;  %6253 = vmatprep.mubr.bf16.mxu1 %v13628_v13 }
 0x593   :  { %v5127_v63 = vpop.f32.mrf.mxu0  ;;  %6305 = vmatmul.mubr.bf16.vlgmr.msra.gmra.mxu0 %v13631_v7  ;;  %v5068_v32 = vpop.f32.mrf.mxu1 }
 0x594   :  { %v13692_v6 = vadd.f32 %v5127_v63, %v5067_v37  ;;  %6314 = vmatprep.mubr.bf16.mxu0 %v13639_v57  ;;  %v5069_v50 = vadd.f32 %v5068_v32, %v13566_v40  ;;  %v11901_v63 = vld [vmem:[#allocation13 + $0x4e0] ss:$16 sps:$4 sm:$0xff]   ;;  %v11903_v32 = vld [vmem:[#allocation13 + $0x4e4] ss:$16 sps:$4 sm:$0xff]  }
 0x595   :  { %v5129_v58 = vpop.f32.mrf.mxu0  ;;  %v5070_v11 = vpop.f32.mrf.mxu1  ;;  %7555 = vmatprep.subr.bf16.mxu1 %v11903_v32 }
 0x596   :  { %v13696_v36 = vadd.f32 %v5129_v58, %v5069_v50  ;;  %v5071_v46 = vadd.f32 %v5070_v11, %v13570_v48  ;;  %v11906_v50 = vld [vmem:[#allocation13 + $0x6e4] ss:$16 sps:$4 sm:$0xff]   ;;  %7556 = vmatpush1.bf16.msra.mxu1 %v11901_v63 }
 0x597   :  { %v5131_v38 = vpop.f32.mrf.mxu0  ;;  %v13699_v18 = vpop.f32.mrf.mxu1  ;;  %v11912_v58 = vld [vmem:[#allocation13 + $0x6c4] ss:$16 sps:$4 sm:$0xff]   ;;  %7616 = vmatprep.subr.bf16.mxu0 %v11906_v50 }
 0x598   :  { %v13701_v13 = vadd.f32 %v5131_v38, %v5071_v46  ;;  %v11915_v11 = vld [vmem:[#allocation13 + $0x4a4] ss:$16 sps:$4 sm:$0xff]   ;;  %v11913_v38 = vld [vmem:[#allocation13 + $0x4a0] ss:$16 sps:$4 sm:$0xff]  }
 0x599   :  { %v13703_v28 = vpop.f32.mrf.mxu0  ;;  %v5076_v7 = vpop.f32.mrf.mxu1  ;;  %6254 = vmatmul.mubr.bf16.gmra.mxu1 %v13658_v22  ;;  %v11918_v46 = vld [vmem:[#allocation13 + $0x6a4] ss:$16 sps:$4 sm:$0xff]  }
 0x59a   :  { %v5077_v57 = vadd.f32 %v5076_v7, %v13577_v4  ;;  %6263 = vmatprep.mubr.bf16.mxu1 %v13612_v33  ;;  %v11916_v7 = vld [vmem:[#allocation13 + $0x6a0] ss:$16 sps:$4 sm:$0xff]  }
 0x59b   :  { %v5137_v40 = vpop.f32.mrf.mxu0  ;;  %6315 = vmatmul.mubr.bf16.gmra.mxu0 %v13665_v29  ;;  %v5078_v56 = vpop.f32.mrf.mxu1 }
 0x59c   :  { %v13709_v61 = vadd.f32 %v5137_v40, %v5077_v57  ;;  %6324 = vmatprep.mubr.bf16.mxu0 %v13617_v41  ;;  %v5079_v48 = vadd.f32 %v5078_v56, %v13581_v47  ;;  %v11921_v57 = vld [vmem:[#allocation13 + $0x484] ss:$16 sps:$4 sm:$0xff]   ;;  %v11919_v56 = vld [vmem:[#allocation13 + $0x480] ss:$16 sps:$4 sm:$0xff]  }
 0x59d   :  { %v5139_v10 = vpop.f32.mrf.mxu0  ;;  %v5080_v55 = vpop.f32.mrf.mxu1  ;;  %v11924_v40 = vld [vmem:[#allocation13 + $0x684] ss:$16 sps:$4 sm:$0xff]  }
 0x59e   :  { %v13713_v34 = vadd.f32 %v5139_v10, %v5079_v48  ;;  %v5081_v22 = vadd.f32 %v5080_v55, %v13587_v43  ;;  %v11922_v48 = vld [vmem:[#allocation13 + $0x680] ss:$16 sps:$4 sm:$0xff]   ;;  %v11927_v10 = vld [vmem:[#allocation13 + $0x464] ss:$16 sps:$4 sm:$0xff]  }
 0x59f   :  { %v5141_v27 = vpop.f32.mrf.mxu0  ;;  %v13716_v4 = vpop.f32.mrf.mxu1  ;;  %v11930_v55 = vld [vmem:[#allocation13 + $0x664] ss:$16 sps:$4 sm:$0xff]  }
 0x5a0   :  { %v13718_v33 = vadd.f32 %v5141_v27, %v5081_v22  ;;  %v11925_v22 = vld [vmem:[#allocation13 + $0x460] ss:$16 sps:$4 sm:$0xff]  }
 0x5a1   :  { %v13720_v49 = vpop.f32.mrf.mxu0  ;;  %v5086_v29 = vpop.f32.mrf.mxu1  ;;  %6264 = vmatmul.mubr.bf16.gmra.mxu1 %v13645_v26  ;;  %v11904_v26 = vld [vmem:[#allocation13 + $0x6e0] ss:$16 sps:$4 sm:$0xff]  }
 0x5a2   :  { %v5087_v41 = vadd.f32 %v5086_v29, %v13605_v17  ;;  %v11909_v17 = vld [vmem:[#allocation13 + $0x4c4] ss:$16 sps:$4 sm:$0xff]   ;;  %7617 = vmatpush1.bf16.msra.mxu0 %v11904_v26  ;;  %v11928_v27 = vld [vmem:[#allocation13 + $0x660] ss:$16 sps:$4 sm:$0xff]  }
 0x5a3   :  { %v5147_v15 = vpop.f32.mrf.mxu0  ;;  %6325 = vmatmul.mubr.bf16.gmra.mxu0 %v13650_v24  ;;  %v5088_v47 = vpop.f32.mrf.mxu1  ;;  %v11907_v24 = vld [vmem:[#allocation13 + $0x4c0] ss:$16 sps:$4 sm:$0xff]   ;;  %7557 = vmatprep.subr.bf16.mxu1 %v11909_v17  ;;  %v11933_v29 = vld [vmem:[#allocation13 + $0x444] ss:$16 sps:$4 sm:$0xff]   ;;  %v4372_v17 = vadd.f32 %v13660_v31, %v13652_v19 }
 0x5a4   :  { %v13725_v5 = vadd.f32 %v5147_v15, %v5087_v41  ;;  %v5089_v43 = vadd.f32 %v5088_v47, %v13608_v39  ;;  %v11910_v39 = vld [vmem:[#allocation13 + $0x6c0] ss:$16 sps:$4 sm:$0xff]   ;;  %7618 = vmatprep.subr.bf16.mxu0 %v11912_v58  ;;  %7558 = vmatpush1.bf16.msra.mxu1 %v11907_v24  ;;  %v11936_v41 = vld [vmem:[#allocation13 + $0x644] ss:$16 sps:$4 sm:$0xff]  }
 0x5a5   :  { %v5149_v42 = vpop.f32.mrf.mxu0  ;;  %v5090_v20 = vpop.f32.mrf.mxu1  ;;  %7559 = vmatprep.subr.bf16.mxu1 %v11915_v11  ;;  %v11931_v15 = vld [vmem:[#allocation13 + $0x440] ss:$16 sps:$4 sm:$0xff]  }
 0x5a6   :  { %v13728_v35 = vadd.f32 %v5149_v42, %v5089_v43  ;;  %7619 = vmatpush1.bf16.msra.mxu0 %v11910_v39  ;;  %v11934_v47 = vld [vmem:[#allocation13 + $0x640] ss:$16 sps:$4 sm:$0xff]   ;;  %v11939_v43 = vld [vmem:[#allocation13 + $0x424] ss:$16 sps:$4 sm:$0xff]  }
 0x5a7   :  { %v5151_v1 = vpop.f32.mrf.mxu0  ;;  %v5091_v3 = vpop.f32.mrf.mxu1  ;;  %7620 = vmatprep.subr.bf16.mxu0 %v11918_v46  ;;  %v11937_v42 = vld [vmem:[#allocation13 + $0x420] ss:$16 sps:$4 sm:$0xff]  }
 0x5a8   :  { %7560 = vmatpush1.bf16.msra.mxu1 %v11913_v38 }
 0x5a9   :  { %v5152_v37 = vpop.f32.mrf.mxu0  ;;  %7561 = vmatprep.subr.bf16.mxu1 %v11921_v57 }
 0x5aa   :  { %7621 = vmatpush1.bf16.msra.mxu0 %v11916_v7 }
 0x5ab   :  { %7622 = vmatprep.subr.bf16.mxu0 %v11924_v40 }
 0x5ac   :  { %7562 = vmatpush1.bf16.msra.mxu1 %v11919_v56 }
 0x5ad   :  { %7563 = vmatprep.subr.bf16.mxu1 %v11927_v10 }
 0x5ae   :  { %7623 = vmatpush1.bf16.msra.mxu0 %v11922_v48 }
 0x5af   :  { %7624 = vmatprep.subr.bf16.mxu0 %v11930_v55 }
 0x5b0   :  { %7564 = vmatpush1.bf16.msra.mxu1 %v11925_v22 }
 0x5b1   :  { %7565 = vmatprep.subr.bf16.mxu1 %v11933_v29  ;;  %v11942_v29 = vld [vmem:[#allocation13 + $0x624] ss:$16 sps:$4 sm:$0xff]  }
 0x5b2   :  { %7625 = vmatpush1.bf16.msra.mxu0 %v11928_v27  ;;  %v11940_v27 = vld [vmem:[#allocation13 + $0x620] ss:$16 sps:$4 sm:$0xff]  }
 0x5b3   :  { %7626 = vmatprep.subr.bf16.mxu0 %v11936_v41 }
 0x5b4   :  { %7566 = vmatpush1.bf16.msra.mxu1 %v11931_v15 }
 0x5b5   :  { %7567 = vmatprep.subr.bf16.mxu1 %v11939_v43  ;;  %v11943_v43 = vld [vmem:[#allocation13 + $0x400] ss:$16 sps:$4 sm:$0xff]  }
 0x5b6   :  { %7627 = vmatpush1.bf16.msra.mxu0 %v11934_v47 }
 0x5b7   :  { %7628 = vmatprep.subr.bf16.mxu0 %v11942_v29  ;;  %v11969_v29 = vld [vmem:[#allocation13 + $0x584] ss:$16 sps:$4 sm:$0xff]  }
 0x5b8   :  { %7568 = vmatpush1.bf16.msra.mxu1 %v11937_v42  ;;  %v11945_v42 = vld [vmem:[#allocation13 + $0x404] ss:$16 sps:$4 sm:$0xff]  }
 0x5b9   :  { %7569 = vmatprep.subr.bf16.mxu1 %v11945_v42  ;;  %v11973_v42 = vld [vmem:[#allocation13 + $0x560] ss:$16 sps:$4 sm:$0xff]  }
 0x5ba   :  { %7629 = vmatpush1.bf16.msra.mxu0 %v11940_v27  ;;  %v11967_v27 = vld [vmem:[#allocation13 + $0x580] ss:$16 sps:$4 sm:$0xff]  }
 0x5bc   :  { %7570 = vmatpush1.bf16.msra.mxu1 %v11943_v43  ;;  %v11978_v43 = vld [vmem:[#allocation13 + $0x764] ss:$16 sps:$4 sm:$0xff]  }
 0x5d1   :  { %v5188_v20 = vpop.f32.mrf.mxu1 }
 0x5d2   :  { %v5189_v1 = vadd.f32 %v5188_v20, %v13641_v0 }
 0x5d3   :  { %v5249_v3 = vpop.f32.mrf.mxu0  ;;  %v5190_v37 = vpop.f32.mrf.mxu1 }
 0x5d4   :  { %v13731_v63 = vadd.f32 %v5249_v3, %v5189_v1  ;;  %v5191_v32 = vadd.f32 %v5190_v37, %v13647_v51  ;;  %v11946_v3 = vld [vmem:[#allocation13 + $0x600] ss:$16 sps:$4 sm:$0xff]   ;;  %v11948_v37 = vld [vmem:[#allocation13 + $0x604] ss:$16 sps:$4 sm:$0xff]  }
 0x5d5   :  { %v5251_v26 = vpop.f32.mrf.mxu0  ;;  %v5192_v50 = vpop.f32.mrf.mxu1  ;;  %7630 = vmatprep.subr.bf16.mxu0 %v11948_v37  ;;  %v11990_v37 = vld [vmem:[#allocation13 + $0x724] ss:$16 sps:$4 sm:$0xff]  }
 0x5d6   :  { %v13736_v58 = vadd.f32 %v5251_v26, %v5191_v32  ;;  %v5193_v24 = vadd.f32 %v5192_v50, %v13654_v59  ;;  %v4382_v59 = vadd.f32 %v13678_v8, %v13674_v52  ;;  %7631 = vmatpush1.bf16.msra.mxu0 %v11946_v3  ;;  %v11982_v3 = vld [vmem:[#allocation13 + $0x740] ss:$16 sps:$4 sm:$0xff]  }
 0x5d7   :  { %v5253_v39 = vpop.f32.mrf.mxu0  ;;  %v5194_v11 = vpop.f32.mrf.mxu1 }
 0x5d8   :  { %v13739_v46 = vadd.f32 %v5253_v39, %v5193_v24  ;;  %v5195_v0 = vadd.f32 %v5194_v11, %v4372_v17  ;;  %v11949_v24 = vld [vmem:[#allocation13 + $0x5e0] ss:$16 sps:$4 sm:$0xff]   ;;  %v11951_v39 = vld [vmem:[#allocation13 + $0x5e4] ss:$16 sps:$4 sm:$0xff]  }
 0x5d9   :  { %v5255_v38 = vpop.f32.mrf.mxu0  ;;  %v5198_v7 = vpop.f32.mrf.mxu1  ;;  %7571 = vmatprep.subr.bf16.mxu1 %v11951_v39  ;;  %v11991_v39 = vld [vmem:[#allocation13 + $0x500] ss:$16 sps:$4 sm:$0xff]  }
 0x5da   :  { %v13741_v57 = vadd.f32 %v5255_v38, %v5195_v0  ;;  %v5199_v51 = vadd.f32 %v5198_v7, %v13669_v60  ;;  %7572 = vmatpush2.bf16.msra.mxu1 %v11949_v24  ;;  %v11952_v38 = vld [vmem:[#allocation13 + $0x7e0] ss:$16 sps:$4 sm:$0xff]   ;;  %v11954_v7 = vld [vmem:[#allocation13 + $0x7e4] ss:$16 sps:$4 sm:$0xff]  }
 0x5db   :  { %v5259_v40 = vpop.f32.mrf.mxu0  ;;  %v5200_v56 = vpop.f32.mrf.mxu1  ;;  %7632 = vmatprep.subr.bf16.mxu0 %v11954_v7  ;;  %v11996_v24 = vld [vmem:[#allocation13 + $0x704] ss:$16 sps:$4 sm:$0xff]  }
 0x5dc   :  { %v13744_v48 = vadd.f32 %v5259_v40, %v5199_v51  ;;  %v5201_v19 = vadd.f32 %v5200_v56, %v13672_v30  ;;  %v11955_v40 = vld [vmem:[#allocation13 + $0x5c0] ss:$16 sps:$4 sm:$0xff]   ;;  %v11957_v56 = vld [vmem:[#allocation13 + $0x5c4] ss:$16 sps:$4 sm:$0xff]   ;;  %7633 = vmatpush2.bf16.msra.mxu0 %v11952_v38  ;;  %v12002_v38 = vld [vmem:[#allocation13 + $0x6ec] ss:$16 sps:$4 sm:$0xff]  }
 0x5dd   :  { %v5261_v31 = vpop.f32.mrf.mxu0  ;;  %v5202_v10 = vpop.f32.mrf.mxu1  ;;  %7573 = vmatprep.subr.bf16.mxu1 %v11957_v56 }
 0x5de   :  { %v13749_v55 = vadd.f32 %v5261_v31, %v5201_v19  ;;  %v5203_v22 = vadd.f32 %v5202_v10, %v13676_v2  ;;  %v11960_v19 = vld [vmem:[#allocation13 + $0x7c4] ss:$16 sps:$4 sm:$0xff]   ;;  %7574 = vmatpush2.bf16.msra.mxu1 %v11955_v40  ;;  %v11961_v31 = vld [vmem:[#allocation13 + $0x5a0] ss:$16 sps:$4 sm:$0xff]   ;;  %v4250_v40 = vadd.f32 %v13572_v44, %v13568_v53 }
 0x5df   :  { %v5263_v41 = vpop.f32.mrf.mxu0  ;;  %v5204_v15 = vpop.f32.mrf.mxu1  ;;  %7634 = vmatprep.subr.bf16.mxu0 %v11960_v19  ;;  %v11963_v10 = vld [vmem:[#allocation13 + $0x5a4] ss:$16 sps:$4 sm:$0xff]  }
 0x5e0   :  { %v13752_v60 = vadd.f32 %v5263_v41, %v5203_v22  ;;  %v5205_v47 = vadd.f32 %v5204_v15, %v4382_v59  ;;  %v11964_v59 = vld [vmem:[#allocation13 + $0x7a0] ss:$16 sps:$4 sm:$0xff]   ;;  %v11966_v22 = vld [vmem:[#allocation13 + $0x7a4] ss:$16 sps:$4 sm:$0xff]   ;;  %7575 = vmatprep.subr.bf16.mxu1 %v11963_v10  ;;  %v5073_v10 = vadd.f32 %v13699_v18, %v4250_v40 }
 0x5e1   :  { %v5265_v30 = vpop.f32.mrf.mxu0  ;;  %v5208_v20 = vpop.f32.mrf.mxu1  ;;  %v11972_v41 = vld [vmem:[#allocation13 + $0x784] ss:$16 sps:$4 sm:$0xff]  }
 0x5e2   :  { %v13754_v1 = vadd.f32 %v5265_v30, %v5205_v47  ;;  %v5209_v52 = vadd.f32 %v5208_v20, %v13683_v62  ;;  %7576 = vmatpush2.bf16.msra.mxu1 %v11961_v31  ;;  %v11975_v15 = vld [vmem:[#allocation13 + $0x564] ss:$16 sps:$4 sm:$0xff]   ;;  %v11970_v47 = vld [vmem:[#allocation13 + $0x780] ss:$16 sps:$4 sm:$0xff]  }
 0x5e3   :  { %v5269_v8 = vpop.f32.mrf.mxu0  ;;  %v5210_v2 = vpop.f32.mrf.mxu1  ;;  %7577 = vmatprep.subr.bf16.mxu1 %v11969_v29  ;;  %v11981_v30 = vld [vmem:[#allocation13 + $0x544] ss:$16 sps:$4 sm:$0xff]   ;;  %v11976_v20 = vld [vmem:[#allocation13 + $0x760] ss:$16 sps:$4 sm:$0xff]  }
 0x5e4   :  { %v13757_v32 = vadd.f32 %v5269_v8, %v5209_v52  ;;  %v5211_v26 = vadd.f32 %v5210_v2, %v13686_v54  ;;  %v11958_v54 = vld [vmem:[#allocation13 + $0x7c0] ss:$16 sps:$4 sm:$0xff]   ;;  %v11984_v52 = vld [vmem:[#allocation13 + $0x744] ss:$16 sps:$4 sm:$0xff]  }
 0x5e5   :  { %v5271_v50 = vpop.f32.mrf.mxu0  ;;  %v5212_v17 = vpop.f32.mrf.mxu1  ;;  %7635 = vmatpush2.bf16.msra.mxu0 %v11958_v54  ;;  %v11979_v8 = vld [vmem:[#allocation13 + $0x540] ss:$16 sps:$4 sm:$0xff]   ;;  %v11987_v2 = vld [vmem:[#allocation13 + $0x524] ss:$16 sps:$4 sm:$0xff]  }
 0x5e6   :  { %v13760_v11 = vadd.f32 %v5271_v50, %v5211_v26  ;;  %7636 = vmatprep.subr.bf16.mxu0 %v11966_v22  ;;  %7578 = vmatpush2.bf16.msra.mxu1 %v11967_v27  ;;  %v11985_v26 = vld [vmem:[#allocation13 + $0x520] ss:$16 sps:$4 sm:$0xff]   ;;  %v11993_v50 = vld [vmem:[#allocation13 + $0x504] ss:$16 sps:$4 sm:$0xff]  }
 0x5e7   :  { %v5273_v0 = vpop.f32.mrf.mxu0  ;;  %v5213_v62 = vpop.f32.mrf.mxu1  ;;  %7579 = vmatprep.subr.bf16.mxu1 %v11975_v15  ;;  %v11988_v17 = vld [vmem:[#allocation13 + $0x720] ss:$16 sps:$4 sm:$0xff]  }
 0x5e8   :  { %v11999_v0 = vld [vmem:[#allocation13 + $0x4ec] ss:$16 sps:$4 sm:$0xff]   ;;  %v11994_v62 = vld [vmem:[#allocation13 + $0x700] ss:$16 sps:$4 sm:$0xff]  }
 0x5e9   :  { %v5274_v51 = vpop.f32.mrf.mxu0  ;;  %7637 = vmatpush2.bf16.msra.mxu0 %v11964_v59 }
 0x5ea   :  { %7638 = vmatprep.subr.bf16.mxu0 %v11972_v41  ;;  %7580 = vmatpush2.bf16.msra.mxu1 %v11973_v42  ;;  %v13762_v51 = vld [vmem:[#allocation16] sm:$0xf]  ;;  %v5134_v42 = vadd.f32 %v13703_v28, %v5073_v10 }
 0x5eb   :  { %7581 = vmatprep.subr.bf16.mxu1 %v11981_v30  ;;  %v13768_v31 = vrot.slane %v13762_v51, %v13348_v25  ;;  %v13774_v41 = vrot.slane %v13762_v51, %v13352_v21 }
 0x5ed   :  { %7639 = vmatpush2.bf16.msra.mxu0 %v11970_v47 }
 0x5ee   :  { %7640 = vmatprep.subr.bf16.mxu0 %v11978_v43  ;;  %7582 = vmatpush2.bf16.msra.mxu1 %v11979_v8 }
 0x5ef   :  { %7583 = vmatprep.subr.bf16.mxu1 %v11987_v2 }
 0x5f1   :  { %7641 = vmatpush2.bf16.msra.mxu0 %v11976_v20 }
 0x5f2   :  { %7642 = vmatprep.subr.bf16.mxu0 %v11984_v52  ;;  %7584 = vmatpush2.bf16.msra.mxu1 %v11985_v26 }
 0x5f3   :  { %7585 = vmatprep.subr.bf16.mxu1 %v11993_v50 }
 0x5f5   :  { %7643 = vmatpush2.bf16.msra.mxu0 %v11982_v3 }
 0x5f6   :  { %7644 = vmatprep.subr.bf16.mxu0 %v11990_v37  ;;  %7586 = vmatpush2.bf16.msra.mxu1 %v11991_v39 }
 0x5f7   :  { %7677 = vmatprep.subr.bf16.mxu1 %v11999_v0 }
 0x5f9   :  { %7645 = vmatpush2.bf16.msra.mxu0 %v11988_v17 }
 0x5fa   :  { %7646 = vmatprep.subr.bf16.mxu0 %v11996_v24 }
 0x5fd   :  { %7647 = vmatpush2.bf16.msra.mxu0 %v11994_v62 }
 0x5fe   :  { %7738 = vmatprep.subr.bf16.mxu0 %v12002_v38 }
 0x611   :  { %v6123_v7 = vpop.f32.mrf.mxu1 }
 0x613   :  { %v6184_v56 = vpop.f32.mrf.mxu0  ;;  %v6125_v54 = vpop.f32.mrf.mxu1 }
 0x614   :  { %v6185_v19 = vadd.f32 %v6184_v56, %v6123_v7 }
 0x615   :  { %v6186_v59 = vpop.f32.mrf.mxu0  ;;  %v6127_v22 = vpop.f32.mrf.mxu1 }
 0x616   :  { %v6333_v27 = vadd.f32 %v6185_v19, %v13692_v6  ;;  %v6187_v29 = vadd.f32 %v6186_v59, %v6125_v54 }
 0x617   :  { %v6188_v15 = vpop.f32.mrf.mxu0  ;;  %v6129_v53 = vpop.f32.mrf.mxu1 }
 0x618   :  { %v6375_v44 = vadd.f32 %v13768_v31, %v6333_v27  ;;  %v6334_v47 = vadd.f32 %v6187_v29, %v13696_v36  ;;  %v6189_v43 = vadd.f32 %v6188_v15, %v6127_v22  ;;  %v4260_v36 = vadd.f32 %v13589_v9, %v13583_v45 }
 0x619   :  { %v6190_v30 = vpop.f32.mrf.mxu0  ;;  %v6133_v18 = vpop.f32.mrf.mxu1 }
 0x61a   :  { %v6395_v20 = vmax.f32 %v6375_v44, 0.0  ;;  %v6376_v52 = vadd.f32 %v13774_v41, %v6334_v47  ;;  %v6337_v6 = vadd.f32 %v6189_v43, %v13701_v13  ;;  %v6191_v8 = vadd.f32 %v6190_v30, %v6129_v53 }
 0x61b   :  { %v6194_v2 = vpop.f32.mrf.mxu0  ;;  %v6135_v3 = vpop.f32.mrf.mxu1  ;;  %v5083_v7 = vadd.f32 %v13716_v4, %v4260_v36 }
 0x61c   :  { %v6435_v37 = vrot.slane %v6395_v20, 7  ;;  %v6396_v26 = vmax.f32 %v6376_v52, 0.0  ;;  %v6379_v50 = vadd.f32 %v13768_v31, %v6337_v6  ;;  %v6338_v17 = vadd.f32 %v6191_v8, %v5134_v42 }
 0x61d   :  { %v6195_v24 = vadd.f32 %v6194_v2, %v6133_v18  ;;  %v6196_v28 = vpop.f32.mrf.mxu0  ;;  %v6137_v39 = vpop.f32.mrf.mxu1  ;;  %v5144_v53 = vadd.f32 %v13720_v49, %v5083_v7 }
 0x61e   :  { %6491 = vst [vmem:[#allocation4] sm:$0xfe] %v6435_v37  ;;  %v6436_v0 = vrot.slane %v6396_v26, 7  ;;  %v6399_v62 = vmax.f32 %v6379_v50, 0.0  ;;  %v6380_v38 = vadd.f32 %v13774_v41, %v6338_v17  ;;  %v6197_v13 = vadd.f32 %v6196_v28, %v6135_v3 }
 0x61f   :  { %v6341_v40 = vadd.f32 %v6195_v24, %v13709_v61  ;;  %v6198_v56 = vpop.f32.mrf.mxu0  ;;  %v6139_v54 = vpop.f32.mrf.mxu1 }
 0x620   :  { %6492 = vst [vmem:[#allocation4 + $0x8] sm:$0xfe] %v6436_v0  ;;  %v6439_v19 = vrot.slane %v6399_v62, 7  ;;  %v6400_v10 = vmax.f32 %v6380_v38, 0.0  ;;  %v6342_v45 = vadd.f32 %v6197_v13, %v13713_v34  ;;  %v6199_v9 = vadd.f32 %v6198_v56, %v6137_v39 }
 0x621   :  { %v6383_v59 = vadd.f32 %v13768_v31, %v6341_v40  ;;  %v6200_v22 = vpop.f32.mrf.mxu0  ;;  %v6143_v27 = vpop.f32.mrf.mxu1 }
 0x622   :  { %v13790_v29 = vsel %vm14368_vm11, %v6435_v37, %v6439_v19  ;;  %v6441_v15 = vrot.slane %v6400_v10, 7  ;;  %v6384_v4 = vadd.f32 %v13774_v41, %v6342_v45  ;;  %v6345_v61 = vadd.f32 %v6199_v9, %v13718_v33  ;;  %vm14382_vm11 = vmmov %vm14375_vm1 }
 0x623   :  { %v6403_v44 = vmax.f32 %v6383_v59, 0.0  ;;  %v6201_v47 = vadd.f32 %v6200_v22, %v6139_v54  ;;  %v6204_v43 = vpop.f32.mrf.mxu0  ;;  %v6145_v42 = vpop.f32.mrf.mxu1 }
 0x624   :  { %v13796_v34 = vsel %vm14355_vm5, %v6436_v0, %v6441_v15  ;;  %v6404_v30 = vmax.f32 %v6384_v4, 0.0  ;;  %v6387_v18 = vadd.f32 %v13768_v31, %v6345_v61  ;;  %v6205_v20 = vadd.f32 %v6204_v43, %v6143_v27 }
 0x625   :  { %v6447_v52 = vrot.slane %v6403_v44, 7  ;;  %v6346_v6 = vadd.f32 %v6201_v47, %v5144_v53  ;;  %v6206_v8 = vpop.f32.mrf.mxu0  ;;  %v6147_v2 = vpop.f32.mrf.mxu1  ;;  %v13821_v53 = vrot.slane %v13762_v51, %v13354_v23  ;;  %vm14383_vm5 = vsmask.f32 7424 }
 0x626   :  { %v6449_v3 = vrot.slane %v6404_v30, 7  ;;  %v6407_v37 = vmax.f32 %v6387_v18, 0.0  ;;  %v6349_v33 = vadd.f32 %v6205_v20, %v13725_v5  ;;  %v6207_v49 = vadd.f32 %v6206_v8, %v6145_v42 }
 0x627   :  { %v6448_v26 = vsel %vm14369_vm9, %v6439_v19, %v6447_v52  ;;  %v6388_v50 = vadd.f32 %v13774_v41, %v6346_v6  ;;  %v6208_v17 = vpop.f32.mrf.mxu0  ;;  %v6148_v36 = vpop.f32.mrf.mxu1  ;;  %vm14384_vm9 = vmmov %vm14383_vm5 }
 0x628   :  { %6499 = vst [vmem:[#allocation4 + $0x40] sm:$0xff] %v6448_v26  ;;  %v6450_v24 = vsel %vm14370_vm15, %v6441_v15, %v6449_v3  ;;  %v6455_v28 = vrot.slane %v6407_v37, 7  ;;  %v6391_v39 = vadd.f32 %v13768_v31, %v6349_v33  ;;  %v6350_v0 = vadd.f32 %v6207_v49, %v13728_v35  ;;  %vm14385_vm15 = vmmov %vm14383_vm5 }
 0x629   :  { %6500 = vst [vmem:[#allocation4 + $0x48] sm:$0xff] %v6450_v24  ;;  %v6408_v62 = vmax.f32 %v6388_v50, 0.0  ;;  %v6209_v38 = vpop.f32.mrf.mxu0 }
 0x62a   :  { %v13806_v5 = vsel %vm14371_vm12, %v6447_v52, %v6455_v28  ;;  %v6411_v13 = vmax.f32 %v6391_v39, 0.0  ;;  %v6392_v7 = vadd.f32 %v13774_v41, %v6350_v0  ;;  %v13816_v41 = vrot.slane %v13762_v51, %v13350_v16  ;;  %vm14386_vm12 = vmmov %vm14383_vm5 }
 0x62b   :  { %v6457_v40 = vrot.slane %v6408_v62, 7 }
 0x62c   :  { %v6463_v56 = vrot.slane %v6411_v13, 7  ;;  %v6412_v54 = vmax.f32 %v6392_v7, 0.0 }
 0x62d   :  { %v13810_v19 = vsel %vm14372_vm13, %v6449_v3, %v6457_v40  ;;  %vm14387_vm13 = vmmov %vm14383_vm5 }
 0x62e   :  { %v6464_v10 = vsel %vm14373_vm3, %v6455_v28, %v6463_v56  ;;  %v6465_v31 = vrot.slane %v6412_v54, 7  ;;  %vm14388_vm3 = vmmov %vm14383_vm5 }
 0x62f   :  { %6507 = vst [vmem:[#allocation4 + $0x80] sm:$0x7] %v6464_v10 }
 0x630   :  { %v6466_v35 = vsel %vm14374_vm4, %v6457_v40, %v6465_v31  ;;  %vm14389_vm4 = vmmov %vm14388_vm3 }
 0x631   :  { %6508 = vst [vmem:[#allocation4 + $0x88] sm:$0x7] %v6466_v35 }
 0x651   :  { %v6245_v45 = vpop.f32.mrf.mxu1 }
 0x653   :  { %v6306_v9 = vpop.f32.mrf.mxu0  ;;  %v6247_v59 = vpop.f32.mrf.mxu1 }
 0x654   :  { %v6307_v22 = vadd.f32 %v6306_v9, %v6245_v45 }
 0x655   :  { %v6308_v27 = vpop.f32.mrf.mxu0  ;;  %v6249_v15 = vpop.f32.mrf.mxu1 }
 0x656   :  { %v6335_v4 = vadd.f32 %v6307_v22, %v13731_v63  ;;  %v6309_v61 = vadd.f32 %v6308_v27, %v6247_v59 }
 0x657   :  { %v6310_v44 = vpop.f32.mrf.mxu0  ;;  %v6251_v47 = vpop.f32.mrf.mxu1 }
 0x658   :  { %v6377_v43 = vadd.f32 %v13816_v41, %v6335_v4  ;;  %v6336_v42 = vadd.f32 %v6309_v61, %v13736_v58  ;;  %v6311_v30 = vadd.f32 %v6310_v44, %v6249_v15  ;;  %v6523_v61 = vld [vmem:[#allocation4 + $0x8] sm:$0xff] }
 0x659   :  { %v6312_v18 = vpop.f32.mrf.mxu0  ;;  %v6255_v20 = vpop.f32.mrf.mxu1 }
 0x65a   :  { %v6397_v52 = vmax.f32 %v6377_v43, 0.0  ;;  %v6378_v6 = vadd.f32 %v13821_v53, %v6336_v42  ;;  %v6339_v8 = vadd.f32 %v6311_v30, %v13739_v46  ;;  %v6313_v63 = vadd.f32 %v6312_v18, %v6251_v47 }
 0x65b   :  { %v6316_v2 = vpop.f32.mrf.mxu0  ;;  %v6257_v3 = vpop.f32.mrf.mxu1 }
 0x65c   :  { %v6437_v37 = vrot.slane %v6397_v52, 7  ;;  %v6398_v51 = vmax.f32 %v6378_v6, 0.0  ;;  %v6381_v33 = vadd.f32 %v13816_v41, %v6339_v8  ;;  %v6340_v49 = vadd.f32 %v6313_v63, %v13741_v57 }
 0x65d   :  { %v6317_v26 = vadd.f32 %v6316_v2, %v6255_v20  ;;  %v6318_v50 = vpop.f32.mrf.mxu0  ;;  %v6259_v58 = vpop.f32.mrf.mxu1 }
 0x65e   :  { %6493 = vst [vmem:[#allocation4 + $0x10] sm:$0xfe] %v6437_v37  ;;  %v6438_v17 = vrot.slane %v6398_v51, 7  ;;  %v6401_v36 = vmax.f32 %v6381_v33, 0.0  ;;  %v6382_v24 = vadd.f32 %v13821_v53, %v6340_v49  ;;  %v6319_v28 = vadd.f32 %v6318_v50, %v6257_v3 }
 0x65f   :  { %v6343_v46 = vadd.f32 %v6317_v26, %v13744_v48  ;;  %v6320_v39 = vpop.f32.mrf.mxu0  ;;  %v6261_v0 = vpop.f32.mrf.mxu1  ;;  %v6522_v48 = vld [vmem:[#allocation4] sm:$0xff]  ;;  %v13846_v3 = vpack.c.bf16 %v13796_v34, %v6523_v61 }
 0x660   :  { %6494 = vst [vmem:[#allocation4 + $0x18] sm:$0xfe] %v6438_v17  ;;  %v6443_v62 = vrot.slane %v6401_v36, 7  ;;  %v6402_v38 = vmax.f32 %v6382_v24, 0.0  ;;  %v6344_v13 = vadd.f32 %v6319_v28, %v13749_v55  ;;  %v6321_v7 = vadd.f32 %v6320_v39, %v6259_v58  ;;  %v6539_v39 = vld [vmem:[#allocation4 + $0x88] sm:$0xf] }
 0x661   :  { %v6385_v57 = vadd.f32 %v13816_v41, %v6343_v46  ;;  %v6322_v40 = vpop.f32.mrf.mxu0  ;;  %v6265_v56 = vpop.f32.mrf.mxu1  ;;  %v13840_v30 = vpack.c.bf16 %v13790_v29, %v6522_v48  ;;  %v6826_v46 = vshll.u32 %v13846_v3, 16 }
 0x662   :  { %v6444_v54 = vsel %vm14375_vm1, %v6437_v37, %v6443_v62  ;;  %v6445_v10 = vrot.slane %v6402_v38, 7  ;;  %v6386_v31 = vadd.f32 %v13821_v53, %v6344_v13  ;;  %v6347_v35 = vadd.f32 %v6321_v7, %v13752_v60 }
 0x663   :  { %v6405_v45 = vmax.f32 %v6385_v57, 0.0  ;;  %v6323_v9 = vadd.f32 %v6322_v40, %v6261_v0  ;;  %v6326_v59 = vpop.f32.mrf.mxu0  ;;  %v6267_v22 = vpop.f32.mrf.mxu1  ;;  %v6828_v57 = vrot.slane %v6826_v46, 1  ;;  %v6812_v40 = vshrl.u32 %v13840_v30, 16 }
 0x664   :  { %v6446_v27 = vsel %vm14376_vm6, %v6438_v17, %v6445_v10  ;;  %v6406_v55 = vmax.f32 %v6386_v31, 0.0  ;;  %v6389_v15 = vadd.f32 %v13816_v41, %v6347_v35  ;;  %v6327_v4 = vadd.f32 %v6326_v59, %v6265_v56 }
 0x665   :  { %v6451_v44 = vrot.slane %v6405_v45, 7  ;;  %v6348_v47 = vadd.f32 %v6323_v9, %v13754_v1  ;;  %v6328_v43 = vpop.f32.mrf.mxu0  ;;  %v6269_v42 = vpop.f32.mrf.mxu1 }
 0x666   :  { %v6453_v60 = vrot.slane %v6406_v55, 7  ;;  %v6409_v18 = vmax.f32 %v6389_v15, 0.0  ;;  %v6351_v20 = vadd.f32 %v6327_v4, %v13757_v32  ;;  %v6329_v52 = vadd.f32 %v6328_v43, %v6267_v22  ;;  %v6524_v32 = vld [vmem:[#allocation4 + $0x10] sm:$0xff] }
 0x667   :  { %v6452_v6 = vsel %vm14377_vm8, %v6443_v62, %v6451_v44  ;;  %v6390_v8 = vadd.f32 %v13821_v53, %v6348_v47  ;;  %v6330_v63 = vpop.f32.mrf.mxu0  ;;  %v6270_v2 = vpop.f32.mrf.mxu1  ;;  %v6525_v1 = vld [vmem:[#allocation4 + $0x18] sm:$0xff]  ;;  %v13862_v36 = vpack.c.bf16 %v6444_v54, %v6524_v32  ;;  %v6824_v54 = vshrl.u32 %v13846_v3, 16 }
 0x668   :  { %6501 = vst [vmem:[#allocation4 + $0x50] sm:$0xff] %v6452_v6  ;;  %v6454_v37 = vsel %vm14378_vm10, %v6445_v10, %v6453_v60  ;;  %v6459_v29 = vrot.slane %v6409_v18, 7  ;;  %v6393_v51 = vadd.f32 %v13816_v41, %v6351_v20  ;;  %v6352_v33 = vadd.f32 %v6329_v52, %v13760_v11  ;;  %v11997_v2 = vld [vmem:[#allocation13 + $0x4e8] ss:$16 sps:$4 sm:$0xff]  }
 0x669   :  { %6502 = vst [vmem:[#allocation4 + $0x58] sm:$0xff] %v6454_v37  ;;  %v6410_v49 = vmax.f32 %v6390_v8, 0.0  ;;  %v6331_v26 = vpop.f32.mrf.mxu0  ;;  %v13851_v50 = vpack.c.bf16 %v6446_v27, %v6525_v1  ;;  %v6814_v11 = vshll.u32 %v13840_v30, 16  ;;  %v6838_v13 = vshll.u32 %v13862_v36, 16  ;;  %v6538_v27 = vld [vmem:[#allocation4 + $0x80] sm:$0xf] }
 0x66a   :  { %6514 = vst.msk [vmem:[#allocation4 + $0x41] ss:$8 sm:$0xf] %vm13291_vm2, %v12686_v12  ;;  %6517 = vst.msk [vmem:[#allocation4 + $0x42] ss:$8 sm:$0xf] %vm13291_vm2, %v12686_v12  ;;  %v6460_v34 = vsel %vm14379_vm7, %v6451_v44, %v6459_v29  ;;  %v6394_v41 = vadd.f32 %v13821_v53, %v6352_v33  ;;  %v13868_v53 = vpack.c.bf16 %v6539_v39, %v6539_v39 }
 0x66b   :  { %v6413_v58 = vmax.f32 %v6393_v51, 0.0  ;;  %v6461_v17 = vrot.slane %v6410_v49, 7  ;;  %v6850_v14 = vshll.u32 %v13851_v50, 16  ;;  %vm14381_vm2 = vmmov %vm14375_vm1  ;;  %v6816_v38 = vrot.slane %v6814_v11, 1  ;;  %v12003_v39 = vld [vmem:[#allocation13 + $0x4c8] ss:$16 sps:$4 sm:$0xff]  }
 0x66c   :  { %v6414_v28 = vmax.f32 %v6394_v41, 0.0  ;;  %v6871_v55 = vshll.u32 %v13868_v53, 16  ;;  %v6848_v15 = vshrl.u32 %v13851_v50, 16  ;;  %v6840_v61 = vrot.slane %v6838_v13, 1  ;;  %vm14390_vm1 = vmmov %vm14388_vm3 }
 0x66d   :  { %v6467_v24 = vrot.slane %v6413_v58, 7  ;;  %v6462_v0 = vsel %vm14380_vm14, %v6453_v60, %v6461_v17  ;;  %v6852_v35 = vrot.slane %v6850_v14, 1  ;;  %v6817_v9 = vor.u32 %v6816_v38, %v6812_v40  ;;  %v12005_v58 = vld [vmem:[#allocation13 + $0x4cc] ss:$16 sps:$4 sm:$0xff]  }
 0x66e   :  { %v6469_v62 = vrot.slane %v6414_v28, 7  ;;  %v6829_v44 = vor.u32 %v6828_v57, %v6824_v54  ;;  %v6836_v42 = vshrl.u32 %v13862_v36, 16  ;;  %v13891_v18 = vpack.c.bf16 %v6538_v27, %v6538_v27  ;;  %v12011_v38 = vld [vmem:[#allocation13 + $0x4ac] ss:$16 sps:$4 sm:$0xff]   ;;  %v12006_v57 = vld [vmem:[#allocation13 + $0x6c8] ss:$16 sps:$4 sm:$0xff]  }
 0x66f   :  { %v6468_v12 = vsel %vm14381_vm2, %v6459_v29, %v6467_v24  ;;  %v6853_v43 = vor.u32 %v6852_v35, %v6848_v15  ;;  %v6873_v1 = vrot.slane %v6871_v55, 1  ;;  %v12008_v24 = vld [vmem:[#allocation13 + $0x6cc] ss:$16 sps:$4 sm:$0xff]   ;;  %v6894_v35 = vshrl.u32 %v13868_v53, 16 }
 0x670   :  { %6509 = vst [vmem:[#allocation4 + $0x90] sm:$0x7] %v6468_v12  ;;  %v6470_v7 = vsel %vm14382_vm11, %v6461_v17, %v6469_v62  ;;  %v6841_v37 = vor.u32 %v6840_v61, %v6836_v42  ;;  %v6863_v46 = vshll.u32 %v13891_v18, 16  ;;  %v12014_v54 = vld [vmem:[#allocation13 + $0x6ac] ss:$16 sps:$4 sm:$0xff]  }
 0x671   :  { %6510 = vst [vmem:[#allocation4 + $0x98] sm:$0x7] %v6470_v7  ;;  %v6531_v56 = vld [vmem:[#allocation4 + $0x48] sm:$0xff]  ;;  %v6530_v10 = vld [vmem:[#allocation4 + $0x40] sm:$0xff]  ;;  %v6533_v31 = vld [vmem:[#allocation4 + $0x58] sm:$0xff]  ;;  %v13932_v15 = vor.u32 %v6894_v35, %v6873_v1 }
 0x672   :  { %v13875_v48 = vpack.c.bf16 %v13810_v19, %v6531_v56  ;;  %v13878_v45 = vpack.c.bf16 %v13806_v5, %v6530_v10  ;;  %v13880_v59 = vpack.c.bf16 %v6462_v0, %v6533_v31  ;;  %v6532_v22 = vld [vmem:[#allocation4 + $0x50] sm:$0xff]  ;;  %v6865_v56 = vrot.slane %v6863_v46, 1  ;;  %v12009_v31 = vld [vmem:[#allocation13 + $0x4a8] ss:$16 sps:$4 sm:$0xff]  }
 0x673   :  { %v13884_v4 = vpack.c.bf16 %v6460_v34, %v6532_v22  ;;  %v12000_v34 = vld [vmem:[#allocation13 + $0x6e8] ss:$16 sps:$4 sm:$0xff]   ;;  %v12017_v27 = vld [vmem:[#allocation13 + $0x48c] ss:$16 sps:$4 sm:$0xff]  }
 0x674   :  { %v6831_v47 = vshll.u32 %v13875_v48, 16  ;;  %v6819_v19 = vshll.u32 %v13878_v45, 16  ;;  %v6855_v5 = vshll.u32 %v13880_v59, 16  ;;  %v6867_v6 = vshrl.u32 %v13875_v48, 16  ;;  %v12012_v61 = vld [vmem:[#allocation13 + $0x6a8] ss:$16 sps:$4 sm:$0xff]  }
 0x675   :  { %v6843_v60 = vshll.u32 %v13884_v4, 16  ;;  %v6883_v0 = vshrl.u32 %v13880_v59, 16  ;;  %v6859_v12 = vshrl.u32 %v13878_v45, 16  ;;  %v12033_v46 = vld [vmem:[#allocation13 + $0x428] ss:$16 sps:$4 sm:$0xff]  }
 0x676   :  { %v6833_v20 = vrot.slane %v6831_v47, 1  ;;  %v6821_v52 = vrot.slane %v6819_v19, 1  ;;  %v6857_v8 = vrot.slane %v6855_v5, 1  ;;  %v12020_v19 = vld [vmem:[#allocation13 + $0x68c] ss:$16 sps:$4 sm:$0xff]  }
 0x677   :  { %v6540_v63 = vld [vmem:[#allocation4 + $0x90] sm:$0xf]  ;;  %v6845_v29 = vrot.slane %v6843_v60, 1  ;;  %v12057_v35 = vld [vmem:[#allocation13 + $0x5a8] ss:$16 sps:$4 sm:$0xff]  }
 0x678   :  { %v13894_v51 = vpack.c.bf16 %v6540_v63, %v6540_v63  ;;  %v13897_v33 = vsel %vm14383_vm5, %v6829_v44, %v6833_v20  ;;  %v13900_v32 = vsel %vm14384_vm9, %v6817_v9, %v6821_v52  ;;  %v6869_v49 = vor.u32 %v6867_v6, %v6833_v20  ;;  %v6541_v41 = vld [vmem:[#allocation4 + $0x98] sm:$0xf]  ;;  %v12023_v60 = vld [vmem:[#allocation13 + $0x46c] ss:$16 sps:$4 sm:$0xff]   ;;  %v12018_v20 = vld [vmem:[#allocation13 + $0x688] ss:$16 sps:$4 sm:$0xff]  }
 0x679   :  { %v13903_v26 = vsel %vm14385_vm15, %v6853_v43, %v6857_v8  ;;  %7587 = vmatprep.mubr.bf16.mxu1 %v13897_v33  ;;  %v13908_v11 = vsel %vm14386_vm12, %v6841_v37, %v6845_v29  ;;  %v13910_v17 = vpack.c.bf16 %v6541_v41, %v6541_v41  ;;  %v6885_v13 = vor.u32 %v6883_v0, %v6857_v8  ;;  %v12015_v43 = vld [vmem:[#allocation13 + $0x488] ss:$16 sps:$4 sm:$0xff]   ;;  %v12026_v6 = vld [vmem:[#allocation13 + $0x66c] ss:$16 sps:$4 sm:$0xff]  }
 0x67a   :  { %7648 = vmatprep.mubr.bf16.mxu0 %v13903_v26  ;;  %7588 = vmatmul.mubr.bf16.vlgmr.msra.gmra.mxu1 %v13900_v32  ;;  %v13914_v28 = vsel %vm14387_vm13, %v6869_v49, %v6873_v1  ;;  %v6879_v62 = vshll.u32 %v13894_v51, 16  ;;  %v6861_v40 = vor.u32 %v6859_v12, %v6821_v52  ;;  %v6875_v9 = vshrl.u32 %v13884_v4, 16  ;;  %v12021_v8 = vld [vmem:[#allocation13 + $0x468] ss:$16 sps:$4 sm:$0xff]   ;;  %v12029_v1 = vld [vmem:[#allocation13 + $0x44c] ss:$16 sps:$4 sm:$0xff]  }
 0x67b   :  { %7649 = vmatmul.mubr.bf16.vlgmr.msra.gmra.mxu0 %v13908_v11  ;;  %7678 = vmatpush1.bf16.msra.mxu1 %v11997_v2  ;;  %v6887_v14 = vshll.u32 %v13910_v17, 16  ;;  %v6900_v47 = vshrl.u32 %v13910_v17, 16  ;;  %v6891_v52 = vshrl.u32 %v13891_v18, 16  ;;  %v6897_v2 = vshrl.u32 %v13894_v51, 16  ;;  %v12024_v37 = vld [vmem:[#allocation13 + $0x668] ss:$16 sps:$4 sm:$0xff]  }
 0x67c   :  { %7597 = vmatprep.mubr.bf16.mxu1 %v13914_v28  ;;  %7679 = vmatprep.subr.bf16.mxu1 %v12005_v58  ;;  %v6881_v22 = vrot.slane %v6879_v62, 1  ;;  %v13930_v55 = vsel %vm14389_vm4, %v6861_v40, %v6865_v56  ;;  %v6877_v44 = vor.u32 %v6875_v9, %v6845_v29  ;;  %v12032_v49 = vld [vmem:[#allocation13 + $0x64c] ss:$16 sps:$4 sm:$0xff]   ;;  %v12030_v41 = vld [vmem:[#allocation13 + $0x648] ss:$16 sps:$4 sm:$0xff]  }
 0x67d   :  { %7739 = vmatpush1.bf16.msra.mxu0 %v12000_v34  ;;  %v6889_v7 = vrot.slane %v6887_v14, 1  ;;  %v13945_v63 = vor.u32 %v6891_v52, %v6865_v56  ;;  %v12027_v34 = vld [vmem:[#allocation13 + $0x448] ss:$16 sps:$4 sm:$0xff]   ;;  %v12035_v58 = vld [vmem:[#allocation13 + $0x42c] ss:$16 sps:$4 sm:$0xff]  }
 0x67e   :  { %7740 = vmatprep.subr.bf16.mxu0 %v12008_v24  ;;  %v13938_v5 = vsel %vm14390_vm1, %v6877_v44, %v6881_v22  ;;  %v13949_v29 = vor.u32 %v6897_v2, %v6881_v22  ;;  %v12038_v24 = vld [vmem:[#allocation13 + $0x62c] ss:$16 sps:$4 sm:$0xff]   ;;  %v12036_v0 = vld [vmem:[#allocation13 + $0x628] ss:$16 sps:$4 sm:$0xff]  }
 0x67f   :  { %7680 = vmatpush1.bf16.msra.mxu1 %v12003_v39  ;;  %v13924_v10 = vsel %vm14388_vm3, %v6885_v13, %v6889_v7  ;;  %v13940_v42 = vor.u32 %v6900_v47, %v6889_v7  ;;  %v12041_v39 = vld [vmem:[#allocation13 + $0x40c] ss:$16 sps:$4 sm:$0xff]   ;;  %v12042_v62 = vld [vmem:[#allocation13 + $0x608] ss:$16 sps:$4 sm:$0xff]  }
 0x680   :  { %7658 = vmatprep.mubr.bf16.mxu0 %v13924_v10  ;;  %7681 = vmatprep.subr.bf16.mxu1 %v12011_v38  ;;  %v12044_v14 = vld [vmem:[#allocation13 + $0x60c] ss:$16 sps:$4 sm:$0xff]   ;;  %v12048_v7 = vld [vmem:[#allocation13 + $0x7e8] ss:$16 sps:$4 sm:$0xff]  }
 0x681   :  { %7741 = vmatpush1.bf16.msra.mxu0 %v12006_v57  ;;  %v12047_v12 = vld [vmem:[#allocation13 + $0x5ec] ss:$16 sps:$4 sm:$0xff]   ;;  %v12051_v40 = vld [vmem:[#allocation13 + $0x5c8] ss:$16 sps:$4 sm:$0xff]  }
 0x682   :  { %7598 = vmatmul.mubr.bf16.gmra.mxu1 %v13930_v55  ;;  %7742 = vmatprep.subr.bf16.mxu0 %v12014_v54  ;;  %v12050_v38 = vld [vmem:[#allocation13 + $0x7ec] ss:$16 sps:$4 sm:$0xff]   ;;  %v12054_v54 = vld [vmem:[#allocation13 + $0x7c8] ss:$16 sps:$4 sm:$0xff]  }
 0x683   :  { %7682 = vmatpush1.bf16.msra.mxu1 %v12009_v31  ;;  %7607 = vmatprep.mubr.bf16.mxu1 %v13932_v15  ;;  %v12053_v13 = vld [vmem:[#allocation13 + $0x5cc] ss:$16 sps:$4 sm:$0xff]   ;;  %v12060_v22 = vld [vmem:[#allocation13 + $0x7a8] ss:$16 sps:$4 sm:$0xff]  }
 0x684   :  { %7659 = vmatmul.mubr.bf16.gmra.mxu0 %v13938_v5  ;;  %7683 = vmatprep.subr.bf16.mxu1 %v12017_v27  ;;  %v12056_v57 = vld [vmem:[#allocation13 + $0x7cc] ss:$16 sps:$4 sm:$0xff]   ;;  %v12066_v47 = vld [vmem:[#allocation13 + $0x788] ss:$16 sps:$4 sm:$0xff]  }
 0x685   :  { %7743 = vmatpush1.bf16.msra.mxu0 %v12012_v61  ;;  %7668 = vmatprep.mubr.bf16.mxu0 %v13940_v42  ;;  %v12059_v56 = vld [vmem:[#allocation13 + $0x5ac] ss:$16 sps:$4 sm:$0xff]   ;;  %v12063_v61 = vld [vmem:[#allocation13 + $0x588] ss:$16 sps:$4 sm:$0xff]  }
 0x686   :  { %7744 = vmatprep.subr.bf16.mxu0 %v12020_v19  ;;  %v12062_v31 = vld [vmem:[#allocation13 + $0x7ac] ss:$16 sps:$4 sm:$0xff]   ;;  %v12078_v2 = vld [vmem:[#allocation13 + $0x748] ss:$16 sps:$4 sm:$0xff]  }
 0x687   :  { %7684 = vmatpush1.bf16.msra.mxu1 %v12015_v43  ;;  %v12065_v9 = vld [vmem:[#allocation13 + $0x58c] ss:$16 sps:$4 sm:$0xff]   ;;  %v12069_v43 = vld [vmem:[#allocation13 + $0x568] ss:$16 sps:$4 sm:$0xff]  }
 0x688   :  { %7685 = vmatprep.subr.bf16.mxu1 %v12023_v60  ;;  %v12068_v27 = vld [vmem:[#allocation13 + $0x78c] ss:$16 sps:$4 sm:$0xff]  }
 0x689   :  { %7745 = vmatpush1.bf16.msra.mxu0 %v12018_v20  ;;  %v12071_v44 = vld [vmem:[#allocation13 + $0x56c] ss:$16 sps:$4 sm:$0xff]   ;;  %v12072_v20 = vld [vmem:[#allocation13 + $0x768] ss:$16 sps:$4 sm:$0xff]  }
 0x68a   :  { %7608 = vmatmul.mubr.bf16.gmra.mxu1 %v13945_v63  ;;  %7746 = vmatprep.subr.bf16.mxu0 %v12026_v6  ;;  %v12074_v19 = vld [vmem:[#allocation13 + $0x76c] ss:$16 sps:$4 sm:$0xff]   ;;  %v12075_v6 = vld [vmem:[#allocation13 + $0x548] ss:$16 sps:$4 sm:$0xff]  }
 0x68b   :  { %7686 = vmatpush1.bf16.msra.mxu1 %v12021_v8  ;;  %7709 = vmatprep.mubr.bf16.mxu1 %v13897_v33  ;;  %v12039_v33 = vld [vmem:[#allocation13 + $0x408] ss:$16 sps:$4 sm:$0xff]   ;;  %v12077_v60 = vld [vmem:[#allocation13 + $0x54c] ss:$16 sps:$4 sm:$0xff]  }
 0x68c   :  { %7669 = vmatmul.mubr.bf16.gmra.mxu0 %v13949_v29  ;;  %7687 = vmatprep.subr.bf16.mxu1 %v12029_v1  ;;  %v12080_v52 = vld [vmem:[#allocation13 + $0x74c] ss:$16 sps:$4 sm:$0xff]  }
 0x68d   :  { %7747 = vmatpush1.bf16.msra.mxu0 %v12024_v37  ;;  %7770 = vmatprep.mubr.bf16.mxu0 %v13903_v26  ;;  %v12045_v26 = vld [vmem:[#allocation13 + $0x5e8] ss:$16 sps:$4 sm:$0xff]   ;;  %v12083_v8 = vld [vmem:[#allocation13 + $0x52c] ss:$16 sps:$4 sm:$0xff]  }
 0x68e   :  { %7748 = vmatprep.subr.bf16.mxu0 %v12032_v49  ;;  %v12086_v1 = vld [vmem:[#allocation13 + $0x72c] ss:$16 sps:$4 sm:$0xff]   ;;  %v12081_v37 = vld [vmem:[#allocation13 + $0x528] ss:$16 sps:$4 sm:$0xff]  }
 0x68f   :  { %7688 = vmatpush1.bf16.msra.mxu1 %v12027_v34  ;;  %v12089_v49 = vld [vmem:[#allocation13 + $0x50c] ss:$16 sps:$4 sm:$0xff]   ;;  %v12084_v34 = vld [vmem:[#allocation13 + $0x728] ss:$16 sps:$4 sm:$0xff]  }
 0x690   :  { %7689 = vmatprep.subr.bf16.mxu1 %v12035_v58  ;;  %v12092_v58 = vld [vmem:[#allocation13 + $0x70c] ss:$16 sps:$4 sm:$0xff]  }
 0x691   :  { %7749 = vmatpush1.bf16.msra.mxu0 %v12030_v41  ;;  %v12087_v41 = vld [vmem:[#allocation13 + $0x508] ss:$16 sps:$4 sm:$0xff]  }
 0x692   :  { %7750 = vmatprep.subr.bf16.mxu0 %v12038_v24  ;;  %v12095_v24 = vld [vmem:[#allocation13 + $0xe4] ss:$16 sps:$4 sm:$0xff]  }
 0x693   :  { %7690 = vmatpush1.bf16.msra.mxu1 %v12033_v46  ;;  %v12090_v46 = vld [vmem:[#allocation13 + $0x708] ss:$16 sps:$4 sm:$0xff]  }
 0x694   :  { %7691 = vmatprep.subr.bf16.mxu1 %v12041_v39  ;;  %v12098_v39 = vld [vmem:[#allocation13 + $0x2e4] ss:$16 sps:$4 sm:$0xff]  }
 0x695   :  { %7751 = vmatpush1.bf16.msra.mxu0 %v12036_v0  ;;  %v12093_v0 = vld [vmem:[#allocation13 + $0xe0] ss:$16 sps:$4 sm:$0xff]  }
 0x696   :  { %7752 = vmatprep.subr.bf16.mxu0 %v12044_v14  ;;  %v12101_v14 = vld [vmem:[#allocation13 + $0xc4] ss:$16 sps:$4 sm:$0xff]  }
 0x697   :  { %7692 = vmatpush1.bf16.msra.mxu1 %v12039_v33  ;;  %v12096_v33 = vld [vmem:[#allocation13 + $0x2e0] ss:$16 sps:$4 sm:$0xff]  }
 0x698   :  { %7693 = vmatprep.subr.bf16.mxu1 %v12047_v12  ;;  %v12104_v12 = vld [vmem:[#allocation13 + $0x2c4] ss:$16 sps:$4 sm:$0xff]  }
 0x699   :  { %7753 = vmatpush1.bf16.msra.mxu0 %v12042_v62  ;;  %v12099_v62 = vld [vmem:[#allocation13 + $0xc0] ss:$16 sps:$4 sm:$0xff]  }
 0x69a   :  { %7754 = vmatprep.subr.bf16.mxu0 %v12050_v38  ;;  %v12107_v38 = vld [vmem:[#allocation13 + $0xa4] ss:$16 sps:$4 sm:$0xff]  }
 0x69b   :  { %7694 = vmatpush2.bf16.msra.mxu1 %v12045_v26  ;;  %v12102_v26 = vld [vmem:[#allocation13 + $0x2c0] ss:$16 sps:$4 sm:$0xff]  }
 0x69c   :  { %7695 = vmatprep.subr.bf16.mxu1 %v12053_v13  ;;  %v12110_v13 = vld [vmem:[#allocation13 + $0x2a4] ss:$16 sps:$4 sm:$0xff]  }
 0x69d   :  { %7755 = vmatpush2.bf16.msra.mxu0 %v12048_v7  ;;  %v12105_v7 = vld [vmem:[#allocation13 + $0xa0] ss:$16 sps:$4 sm:$0xff]  }
 0x69e   :  { %7756 = vmatprep.subr.bf16.mxu0 %v12056_v57  ;;  %v12108_v57 = vld [vmem:[#allocation13 + $0x2a0] ss:$16 sps:$4 sm:$0xff]  }
 0x69f   :  { %7696 = vmatpush2.bf16.msra.mxu1 %v12051_v40  ;;  %v12114_v40 = vld [vmem:[#allocation13 + $0x280] ss:$16 sps:$4 sm:$0xff]  }
 0x6a0   :  { %7697 = vmatprep.subr.bf16.mxu1 %v12059_v56  ;;  %v12122_v56 = vld [vmem:[#allocation13 + $0x264] ss:$16 sps:$4 sm:$0xff]  }
 0x6a1   :  { %7757 = vmatpush2.bf16.msra.mxu0 %v12054_v54  ;;  %v12117_v54 = vld [vmem:[#allocation13 + $0x60] ss:$16 sps:$4 sm:$0xff]  }
 0x6a2   :  { %7758 = vmatprep.subr.bf16.mxu0 %v12062_v31  ;;  %v12120_v31 = vld [vmem:[#allocation13 + $0x260] ss:$16 sps:$4 sm:$0xff]  }
 0x6a3   :  { %7698 = vmatpush2.bf16.msra.mxu1 %v12057_v35  ;;  %v12126_v35 = vld [vmem:[#allocation13 + $0x240] ss:$16 sps:$4 sm:$0xff]  }
 0x6a4   :  { %7699 = vmatprep.subr.bf16.mxu1 %v12065_v9  ;;  %v12134_v9 = vld [vmem:[#allocation13 + $0x224] ss:$16 sps:$4 sm:$0xff]  }
 0x6a5   :  { %7759 = vmatpush2.bf16.msra.mxu0 %v12060_v22  ;;  %v12129_v22 = vld [vmem:[#allocation13 + $0x20] ss:$16 sps:$4 sm:$0xff]  }
 0x6a6   :  { %7760 = vmatprep.subr.bf16.mxu0 %v12068_v27  ;;  %v12132_v27 = vld [vmem:[#allocation13 + $0x220] ss:$16 sps:$4 sm:$0xff]  }
 0x6a7   :  { %7700 = vmatpush2.bf16.msra.mxu1 %v12063_v61  ;;  %v12140_v61 = vld [vmem:[#allocation13 + $0x204] ss:$16 sps:$4 sm:$0xff]  }
 0x6a8   :  { %7701 = vmatprep.subr.bf16.mxu1 %v12071_v44  ;;  %v12135_v44 = vld [vmem:[#allocation13] ss:$16 sps:$4 sm:$0xff]  }
 0x6a9   :  { %7761 = vmatpush2.bf16.msra.mxu0 %v12066_v47  ;;  %v12138_v47 = vld [vmem:[#allocation13 + $0x200] ss:$16 sps:$4 sm:$0xff]  }
 0x6aa   :  { %7762 = vmatprep.subr.bf16.mxu0 %v12074_v19  ;;  %v12146_v19 = vld [vmem:[#allocation13 + $0x3e4] ss:$16 sps:$4 sm:$0xff]  }
 0x6ab   :  { %7702 = vmatpush2.bf16.msra.mxu1 %v12069_v43  ;;  %v12141_v43 = vld [vmem:[#allocation13 + $0x1e0] ss:$16 sps:$4 sm:$0xff]  }
 0x6ac   :  { %7703 = vmatprep.subr.bf16.mxu1 %v12077_v60  ;;  %v12149_v60 = vld [vmem:[#allocation13 + $0x1c4] ss:$16 sps:$4 sm:$0xff]  }
 0x6ad   :  { %7763 = vmatpush2.bf16.msra.mxu0 %v12072_v20  ;;  %v12144_v20 = vld [vmem:[#allocation13 + $0x3e0] ss:$16 sps:$4 sm:$0xff]  }
 0x6ae   :  { %7764 = vmatprep.subr.bf16.mxu0 %v12080_v52  ;;  %v12152_v52 = vld [vmem:[#allocation13 + $0x3c4] ss:$16 sps:$4 sm:$0xff]  }
 0x6af   :  { %7704 = vmatpush2.bf16.msra.mxu1 %v12075_v6  ;;  %v12147_v6 = vld [vmem:[#allocation13 + $0x1c0] ss:$16 sps:$4 sm:$0xff]  }
 0x6b0   :  { %7705 = vmatprep.subr.bf16.mxu1 %v12083_v8  ;;  %v12155_v8 = vld [vmem:[#allocation13 + $0x1a4] ss:$16 sps:$4 sm:$0xff]  }
 0x6b1   :  { %7765 = vmatpush2.bf16.msra.mxu0 %v12078_v2  ;;  %v12150_v2 = vld [vmem:[#allocation13 + $0x3c0] ss:$16 sps:$4 sm:$0xff]  }
 0x6b2   :  { %7766 = vmatprep.subr.bf16.mxu0 %v12086_v1  ;;  %v12158_v1 = vld [vmem:[#allocation13 + $0x3a4] ss:$16 sps:$4 sm:$0xff]  }
 0x6b3   :  { %7706 = vmatpush2.bf16.msra.mxu1 %v12081_v37  ;;  %v12153_v37 = vld [vmem:[#allocation13 + $0x1a0] ss:$16 sps:$4 sm:$0xff]  }
 0x6b4   :  { %7707 = vmatprep.subr.bf16.mxu1 %v12089_v49  ;;  %v12161_v49 = vld [vmem:[#allocation13 + $0x184] ss:$16 sps:$4 sm:$0xff]  }
 0x6b5   :  { %7767 = vmatpush2.bf16.msra.mxu0 %v12084_v34  ;;  %v12156_v34 = vld [vmem:[#allocation13 + $0x3a0] ss:$16 sps:$4 sm:$0xff]  }
 0x6b6   :  { %7768 = vmatprep.subr.bf16.mxu0 %v12092_v58  ;;  %v12164_v58 = vld [vmem:[#allocation13 + $0x384] ss:$16 sps:$4 sm:$0xff]  }
 0x6b7   :  { %7708 = vmatpush2.bf16.msra.mxu1 %v12087_v41  ;;  %v12159_v41 = vld [vmem:[#allocation13 + $0x180] ss:$16 sps:$4 sm:$0xff]  }
 0x6b8   :  { %8439 = vmatprep.subr.bf16.mxu1 %v12095_v24  ;;  %v12167_v24 = vld [vmem:[#allocation13 + $0x164] ss:$16 sps:$4 sm:$0xff]  }
 0x6b9   :  { %7769 = vmatpush2.bf16.msra.mxu0 %v12090_v46  ;;  %v12162_v46 = vld [vmem:[#allocation13 + $0x380] ss:$16 sps:$4 sm:$0xff]  }
 0x6ba   :  { %7710 = vmatmul.mubr.bf16.vlgmr.msra.gmra.mxu1 %v13900_v32  ;;  %8500 = vmatprep.subr.bf16.mxu0 %v12098_v39  ;;  %v12113_v32 = vld [vmem:[#allocation13 + $0x84] ss:$16 sps:$4 sm:$0xff]  }
 0x6bb   :  { %7719 = vmatprep.mubr.bf16.mxu1 %v13914_v28  ;;  %8440 = vmatpush1.bf16.msra.mxu1 %v12093_v0  ;;  %v12116_v28 = vld [vmem:[#allocation13 + $0x284] ss:$16 sps:$4 sm:$0xff]   ;;  %v12165_v0 = vld [vmem:[#allocation13 + $0x160] ss:$16 sps:$4 sm:$0xff]  }
 0x6bc   :  { %7771 = vmatmul.mubr.bf16.vlgmr.msra.gmra.mxu0 %v13908_v11  ;;  %8441 = vmatprep.subr.bf16.mxu1 %v12101_v14  ;;  %v12111_v11 = vld [vmem:[#allocation13 + $0x80] ss:$16 sps:$4 sm:$0xff]   ;;  %v12170_v39 = vld [vmem:[#allocation13 + $0x364] ss:$16 sps:$4 sm:$0xff]  }
 0x6bd   :  { %7780 = vmatprep.mubr.bf16.mxu0 %v13924_v10  ;;  %8501 = vmatpush1.bf16.msra.mxu0 %v12096_v33  ;;  %v12119_v10 = vld [vmem:[#allocation13 + $0x64] ss:$16 sps:$4 sm:$0xff]   ;;  %v12168_v33 = vld [vmem:[#allocation13 + $0x360] ss:$16 sps:$4 sm:$0xff]  }
 0x6be   :  { %8502 = vmatprep.subr.bf16.mxu0 %v12104_v12  ;;  %v12173_v14 = vld [vmem:[#allocation13 + $0x144] ss:$16 sps:$4 sm:$0xff]  }
 0x6bf   :  { %8442 = vmatpush1.bf16.msra.mxu1 %v12099_v62  ;;  %v12176_v12 = vld [vmem:[#allocation13 + $0x344] ss:$16 sps:$4 sm:$0xff]   ;;  %v12171_v62 = vld [vmem:[#allocation13 + $0x140] ss:$16 sps:$4 sm:$0xff]  }
 0x6c0   :  { %8443 = vmatprep.subr.bf16.mxu1 %v12107_v38  ;;  %v12179_v38 = vld [vmem:[#allocation13 + $0x124] ss:$16 sps:$4 sm:$0xff]  }
 0x6c1   :  { %8503 = vmatpush1.bf16.msra.mxu0 %v12102_v26  ;;  %v12174_v26 = vld [vmem:[#allocation13 + $0x340] ss:$16 sps:$4 sm:$0xff]  }
 0x6c2   :  { %7720 = vmatmul.mubr.bf16.gmra.mxu1 %v13930_v55  ;;  %8504 = vmatprep.subr.bf16.mxu0 %v12110_v13  ;;  %v12125_v55 = vld [vmem:[#allocation13 + $0x44] ss:$16 sps:$4 sm:$0xff]  }
 0x6c3   :  { %7729 = vmatprep.mubr.bf16.mxu1 %v13932_v15  ;;  %8444 = vmatpush1.bf16.msra.mxu1 %v12105_v7  ;;  %v12128_v15 = vld [vmem:[#allocation13 + $0x244] ss:$16 sps:$4 sm:$0xff]   ;;  %v12177_v7 = vld [vmem:[#allocation13 + $0x120] ss:$16 sps:$4 sm:$0xff]  }
 0x6c4   :  { %7781 = vmatmul.mubr.bf16.gmra.mxu0 %v13938_v5  ;;  %8445 = vmatprep.subr.bf16.mxu1 %v12113_v32  ;;  %v12123_v5 = vld [vmem:[#allocation13 + $0x40] ss:$16 sps:$4 sm:$0xff]   ;;  %v12182_v13 = vld [vmem:[#allocation13 + $0x324] ss:$16 sps:$4 sm:$0xff]  }
 0x6c5   :  { %7790 = vmatprep.mubr.bf16.mxu0 %v13940_v42  ;;  %8505 = vmatpush1.bf16.msra.mxu0 %v12108_v57  ;;  %v12131_v42 = vld [vmem:[#allocation13 + $0x24] ss:$16 sps:$4 sm:$0xff]   ;;  %v12180_v57 = vld [vmem:[#allocation13 + $0x320] ss:$16 sps:$4 sm:$0xff]  }
 0x6c6   :  { %8506 = vmatprep.subr.bf16.mxu0 %v12116_v28  ;;  %v12185_v32 = vld [vmem:[#allocation13 + $0x104] ss:$16 sps:$4 sm:$0xff]  }
 0x6c7   :  { %8446 = vmatpush1.bf16.msra.mxu1 %v12111_v11  ;;  %v12188_v28 = vld [vmem:[#allocation13 + $0x304] ss:$16 sps:$4 sm:$0xff]   ;;  %v12183_v11 = vld [vmem:[#allocation13 + $0x100] ss:$16 sps:$4 sm:$0xff]  }
 0x6c8   :  { %8447 = vmatprep.subr.bf16.mxu1 %v12119_v10  ;;  %v12191_v10 = vld [vmem:[#allocation13 + $0xec] ss:$16 sps:$4 sm:$0xff]  }
 0x6c9   :  { %8507 = vmatpush1.bf16.msra.mxu0 %v12114_v40  ;;  %v12186_v40 = vld [vmem:[#allocation13 + $0x300] ss:$16 sps:$4 sm:$0xff]  }
 0x6ca   :  { %7730 = vmatmul.mubr.bf16.gmra.mxu1 %v13945_v63  ;;  %8508 = vmatprep.subr.bf16.mxu0 %v12122_v56  ;;  %v12137_v63 = vld [vmem:[#allocation13 + $0x4] ss:$16 sps:$4 sm:$0xff]   ;;  %v12194_v56 = vld [vmem:[#allocation13 + $0x2ec] ss:$16 sps:$4 sm:$0xff]  }
 0x6cb   :  { %8448 = vmatpush1.bf16.msra.mxu1 %v12117_v54  ;;  %8471 = vmatprep.mubr.bf16.mxu1 %v13846_v3  ;;  %v12189_v54 = vld [vmem:[#allocation13 + $0xe8] ss:$16 sps:$4 sm:$0xff]  }
 0x6cc   :  { %7791 = vmatmul.mubr.bf16.gmra.mxu0 %v13949_v29  ;;  %8449 = vmatprep.subr.bf16.mxu1 %v12125_v55  ;;  %v12143_v29 = vld [vmem:[#allocation13 + $0x1e4] ss:$16 sps:$4 sm:$0xff]   ;;  %v12197_v55 = vld [vmem:[#allocation13 + $0xcc] ss:$16 sps:$4 sm:$0xff]  }
 0x6cd   :  { %8509 = vmatpush1.bf16.msra.mxu0 %v12120_v31  ;;  %8532 = vmatprep.mubr.bf16.mxu0 %v13851_v50  ;;  %v12192_v31 = vld [vmem:[#allocation13 + $0x2e8] ss:$16 sps:$4 sm:$0xff]  }
 0x6ce   :  { %8510 = vmatprep.subr.bf16.mxu0 %v12128_v15  ;;  %v12200_v15 = vld [vmem:[#allocation13 + $0x2cc] ss:$16 sps:$4 sm:$0xff]  }
 0x6cf   :  { %8450 = vmatpush1.bf16.msra.mxu1 %v12123_v5  ;;  %v12195_v5 = vld [vmem:[#allocation13 + $0xc8] ss:$16 sps:$4 sm:$0xff]  }
 0x6d0   :  { %8451 = vmatprep.subr.bf16.mxu1 %v12131_v42  ;;  %v12203_v42 = vld [vmem:[#allocation13 + $0xac] ss:$16 sps:$4 sm:$0xff]  }
 0x6d1   :  { %8511 = vmatpush1.bf16.msra.mxu0 %v12126_v35  ;;  %v12198_v35 = vld [vmem:[#allocation13 + $0x2c8] ss:$16 sps:$4 sm:$0xff]  }
 0x6d2   :  { %8512 = vmatprep.subr.bf16.mxu0 %v12134_v9  ;;  %v12206_v9 = vld [vmem:[#allocation13 + $0x2ac] ss:$16 sps:$4 sm:$0xff]  }
 0x6d3   :  { %8452 = vmatpush1.bf16.msra.mxu1 %v12129_v22  ;;  %v12201_v22 = vld [vmem:[#allocation13 + $0xa8] ss:$16 sps:$4 sm:$0xff]  }
 0x6d4   :  { %8453 = vmatprep.subr.bf16.mxu1 %v12137_v63  ;;  %v12209_v63 = vld [vmem:[#allocation13 + $0x8c] ss:$16 sps:$4 sm:$0xff]  }
 0x6d5   :  { %8513 = vmatpush1.bf16.msra.mxu0 %v12132_v27  ;;  %v12204_v27 = vld [vmem:[#allocation13 + $0x2a8] ss:$16 sps:$4 sm:$0xff]  }
 0x6d6   :  { %8514 = vmatprep.subr.bf16.mxu0 %v12140_v61  ;;  %v12212_v61 = vld [vmem:[#allocation13 + $0x28c] ss:$16 sps:$4 sm:$0xff]  }
 0x6d7   :  { %8454 = vmatpush1.bf16.msra.mxu1 %v12135_v44  ;;  %v12207_v44 = vld [vmem:[#allocation13 + $0x88] ss:$16 sps:$4 sm:$0xff]  }
 0x6d8   :  { %8455 = vmatprep.subr.bf16.mxu1 %v12143_v29  ;;  %v12215_v29 = vld [vmem:[#allocation13 + $0x6c] ss:$16 sps:$4 sm:$0xff]  }
 0x6d9   :  { %8515 = vmatpush1.bf16.msra.mxu0 %v12138_v47  ;;  %v12210_v47 = vld [vmem:[#allocation13 + $0x288] ss:$16 sps:$4 sm:$0xff]  }
 0x6da   :  { %8516 = vmatprep.subr.bf16.mxu0 %v12146_v19  ;;  %v12218_v19 = vld [vmem:[#allocation13 + $0x26c] ss:$16 sps:$4 sm:$0xff]  }
 0x6db   :  { %8456 = vmatpush2.bf16.msra.mxu1 %v12141_v43  ;;  %v12213_v43 = vld [vmem:[#allocation13 + $0x68] ss:$16 sps:$4 sm:$0xff]  }
 0x6dc   :  { %8457 = vmatprep.subr.bf16.mxu1 %v12149_v60  ;;  %v12221_v60 = vld [vmem:[#allocation13 + $0x4c] ss:$16 sps:$4 sm:$0xff]  }
 0x6dd   :  { %8517 = vmatpush2.bf16.msra.mxu0 %v12144_v20  ;;  %v12216_v20 = vld [vmem:[#allocation13 + $0x268] ss:$16 sps:$4 sm:$0xff]  }
 0x6de   :  { %8518 = vmatprep.subr.bf16.mxu0 %v12152_v52  ;;  %v12224_v52 = vld [vmem:[#allocation13 + $0x24c] ss:$16 sps:$4 sm:$0xff]  }
 0x6df   :  { %8458 = vmatpush2.bf16.msra.mxu1 %v12147_v6  ;;  %v12219_v6 = vld [vmem:[#allocation13 + $0x48] ss:$16 sps:$4 sm:$0xff]  }
 0x6e0   :  { %8459 = vmatprep.subr.bf16.mxu1 %v12155_v8  ;;  %v12227_v8 = vld [vmem:[#allocation13 + $0x2c] ss:$16 sps:$4 sm:$0xff]  }
 0x6e1   :  { %8519 = vmatpush2.bf16.msra.mxu0 %v12150_v2  ;;  %v12222_v2 = vld [vmem:[#allocation13 + $0x248] ss:$16 sps:$4 sm:$0xff]  }
 0x6e2   :  { %8520 = vmatprep.subr.bf16.mxu0 %v12158_v1  ;;  %v12230_v1 = vld [vmem:[#allocation13 + $0x22c] ss:$16 sps:$4 sm:$0xff]  }
 0x6e3   :  { %8460 = vmatpush2.bf16.msra.mxu1 %v12153_v37  ;;  %v12225_v37 = vld [vmem:[#allocation13 + $0x28] ss:$16 sps:$4 sm:$0xff]  }
 0x6e4   :  { %8461 = vmatprep.subr.bf16.mxu1 %v12161_v49  ;;  %v12233_v49 = vld [vmem:[#allocation13 + $0xc] ss:$16 sps:$4 sm:$0xff]  }
 0x6e5   :  { %8521 = vmatpush2.bf16.msra.mxu0 %v12156_v34  ;;  %v12228_v34 = vld [vmem:[#allocation13 + $0x228] ss:$16 sps:$4 sm:$0xff]  }
 0x6e6   :  { %8522 = vmatprep.subr.bf16.mxu0 %v12164_v58  ;;  %v12236_v58 = vld [vmem:[#allocation13 + $0x20c] ss:$16 sps:$4 sm:$0xff]  }
 0x6e7   :  { %8462 = vmatpush2.bf16.msra.mxu1 %v12159_v41  ;;  %v12231_v41 = vld [vmem:[#allocation13 + $0x8] ss:$16 sps:$4 sm:$0xff]  }
 0x6e8   :  { %8463 = vmatprep.subr.bf16.mxu1 %v12167_v24  ;;  %v12239_v24 = vld [vmem:[#allocation13 + $0x1ec] ss:$16 sps:$4 sm:$0xff]  }
 0x6e9   :  { %8523 = vmatpush2.bf16.msra.mxu0 %v12162_v46  ;;  %v12234_v46 = vld [vmem:[#allocation13 + $0x208] ss:$16 sps:$4 sm:$0xff]  }
 0x6ea   :  { %8524 = vmatprep.subr.bf16.mxu0 %v12170_v39  ;;  %v12242_v39 = vld [vmem:[#allocation13 + $0x3ec] ss:$16 sps:$4 sm:$0xff]  }
 0x6eb   :  { %8464 = vmatpush2.bf16.msra.mxu1 %v12165_v0  ;;  %v12237_v0 = vld [vmem:[#allocation13 + $0x1e8] ss:$16 sps:$4 sm:$0xff]  }
 0x6ec   :  { %8465 = vmatprep.subr.bf16.mxu1 %v12173_v14  ;;  %v12245_v14 = vld [vmem:[#allocation13 + $0x1cc] ss:$16 sps:$4 sm:$0xff]  }
 0x6ed   :  { %8525 = vmatpush2.bf16.msra.mxu0 %v12168_v33  ;;  %v12240_v33 = vld [vmem:[#allocation13 + $0x3e8] ss:$16 sps:$4 sm:$0xff]  }
 0x6ee   :  { %8526 = vmatprep.subr.bf16.mxu0 %v12176_v12  ;;  %v12248_v12 = vld [vmem:[#allocation13 + $0x3cc] ss:$16 sps:$4 sm:$0xff]  }
 0x6ef   :  { %8466 = vmatpush2.bf16.msra.mxu1 %v12171_v62  ;;  %v12243_v62 = vld [vmem:[#allocation13 + $0x1c8] ss:$16 sps:$4 sm:$0xff]  }
 0x6f0   :  { %8467 = vmatprep.subr.bf16.mxu1 %v12179_v38  ;;  %v12251_v38 = vld [vmem:[#allocation13 + $0x1ac] ss:$16 sps:$4 sm:$0xff]  }
 0x6f1   :  { %8527 = vmatpush2.bf16.msra.mxu0 %v12174_v26  ;;  %v12246_v26 = vld [vmem:[#allocation13 + $0x3c8] ss:$16 sps:$4 sm:$0xff]  }
 0x6f2   :  { %8528 = vmatprep.subr.bf16.mxu0 %v12182_v13  ;;  %v12254_v13 = vld [vmem:[#allocation13 + $0x3ac] ss:$16 sps:$4 sm:$0xff]  }
 0x6f3   :  { %8468 = vmatpush2.bf16.msra.mxu1 %v12177_v7  ;;  %v12249_v7 = vld [vmem:[#allocation13 + $0x1a8] ss:$16 sps:$4 sm:$0xff]  }
 0x6f4   :  { %8469 = vmatprep.subr.bf16.mxu1 %v12185_v32  ;;  %v12257_v32 = vld [vmem:[#allocation13 + $0x18c] ss:$16 sps:$4 sm:$0xff]  }
 0x6f5   :  { %8529 = vmatpush2.bf16.msra.mxu0 %v12180_v57  ;;  %v12252_v57 = vld [vmem:[#allocation13 + $0x3a8] ss:$16 sps:$4 sm:$0xff]  }
 0x6f6   :  { %8530 = vmatprep.subr.bf16.mxu0 %v12188_v28  ;;  %v12260_v28 = vld [vmem:[#allocation13 + $0x38c] ss:$16 sps:$4 sm:$0xff]  }
 0x6f7   :  { %8470 = vmatpush2.bf16.msra.mxu1 %v12183_v11  ;;  %v12255_v11 = vld [vmem:[#allocation13 + $0x188] ss:$16 sps:$4 sm:$0xff]  }
 0x6f8   :  { %8561 = vmatprep.subr.bf16.mxu1 %v12191_v10  ;;  %v12263_v10 = vld [vmem:[#allocation13 + $0x16c] ss:$16 sps:$4 sm:$0xff]  }
 0x6f9   :  { %8531 = vmatpush2.bf16.msra.mxu0 %v12186_v40  ;;  %v12258_v40 = vld [vmem:[#allocation13 + $0x388] ss:$16 sps:$4 sm:$0xff]  }
 0x6fa   :  { %8472 = vmatmul.mubr.bf16.vlgmr.msra.gmra.mxu1 %v13840_v30  ;;  %8622 = vmatprep.subr.bf16.mxu0 %v12194_v56  ;;  %v12266_v56 = vld [vmem:[#allocation13 + $0x36c] ss:$16 sps:$4 sm:$0xff]  }
 0x6fb   :  { %8481 = vmatprep.mubr.bf16.mxu1 %v13875_v48  ;;  %8562 = vmatpush1.bf16.msra.mxu1 %v12189_v54  ;;  %v12261_v54 = vld [vmem:[#allocation13 + $0x168] ss:$16 sps:$4 sm:$0xff]  }
 0x6fc   :  { %8533 = vmatmul.mubr.bf16.vlgmr.msra.gmra.mxu0 %v13862_v36  ;;  %8563 = vmatprep.subr.bf16.mxu1 %v12197_v55  ;;  %v12269_v55 = vld [vmem:[#allocation13 + $0x14c] ss:$16 sps:$4 sm:$0xff]  }
 0x6fd   :  { %8542 = vmatprep.mubr.bf16.mxu0 %v13880_v59  ;;  %8623 = vmatpush1.bf16.msra.mxu0 %v12192_v31  ;;  %v12264_v31 = vld [vmem:[#allocation13 + $0x368] ss:$16 sps:$4 sm:$0xff]  }
 0x6fe   :  { %8624 = vmatprep.subr.bf16.mxu0 %v12200_v15  ;;  %v12272_v15 = vld [vmem:[#allocation13 + $0x34c] ss:$16 sps:$4 sm:$0xff]  }
 0x6ff   :  { %8564 = vmatpush1.bf16.msra.mxu1 %v12195_v5  ;;  %v12267_v5 = vld [vmem:[#allocation13 + $0x148] ss:$16 sps:$4 sm:$0xff]  }
 0x700   :  { %8565 = vmatprep.subr.bf16.mxu1 %v12203_v42  ;;  %v12275_v42 = vld [vmem:[#allocation13 + $0x12c] ss:$16 sps:$4 sm:$0xff]  }
 0x701   :  { %8625 = vmatpush1.bf16.msra.mxu0 %v12198_v35  ;;  %v12270_v35 = vld [vmem:[#allocation13 + $0x348] ss:$16 sps:$4 sm:$0xff]  }
 0x702   :  { %8482 = vmatmul.mubr.bf16.gmra.mxu1 %v13878_v45  ;;  %8626 = vmatprep.subr.bf16.mxu0 %v12206_v9  ;;  %v12278_v9 = vld [vmem:[#allocation13 + $0x32c] ss:$16 sps:$4 sm:$0xff]  }
 0x703   :  { %8491 = vmatprep.mubr.bf16.mxu1 %v13868_v53  ;;  %8566 = vmatpush1.bf16.msra.mxu1 %v12201_v22  ;;  %v12273_v22 = vld [vmem:[#allocation13 + $0x128] ss:$16 sps:$4 sm:$0xff]  }
 0x704   :  { %8543 = vmatmul.mubr.bf16.gmra.mxu0 %v13884_v4  ;;  %8567 = vmatprep.subr.bf16.mxu1 %v12209_v63  ;;  %v12281_v63 = vld [vmem:[#allocation13 + $0x10c] ss:$16 sps:$4 sm:$0xff]  }
 0x705   :  { %8552 = vmatprep.mubr.bf16.mxu0 %v13910_v17  ;;  %8627 = vmatpush1.bf16.msra.mxu0 %v12204_v27  ;;  %v12276_v27 = vld [vmem:[#allocation13 + $0x328] ss:$16 sps:$4 sm:$0xff]  }
 0x706   :  { %8628 = vmatprep.subr.bf16.mxu0 %v12212_v61  ;;  %v12284_v61 = vld [vmem:[#allocation13 + $0x30c] ss:$16 sps:$4 sm:$0xff]  }
 0x707   :  { %8568 = vmatpush1.bf16.msra.mxu1 %v12207_v44  ;;  %v12279_v44 = vld [vmem:[#allocation13 + $0x108] ss:$16 sps:$4 sm:$0xff]  }
 0x708   :  { %8569 = vmatprep.subr.bf16.mxu1 %v12215_v29  ;;  %v12287_v29 = vld [vmem:[#allocation13 + $0x8e4] ss:$16 sps:$4 sm:$0xff]  }
 0x709   :  { %8629 = vmatpush1.bf16.msra.mxu0 %v12210_v47  ;;  %v12282_v47 = vld [vmem:[#allocation13 + $0x308] ss:$16 sps:$4 sm:$0xff]  }
 0x70a   :  { %8492 = vmatmul.mubr.bf16.gmra.mxu1 %v13891_v18  ;;  %8630 = vmatprep.subr.bf16.mxu0 %v12218_v19  ;;  %v12290_v19 = vld [vmem:[#allocation13 + $0xae4] ss:$16 sps:$4 sm:$0xff]  }
 0x70b   :  { %8570 = vmatpush1.bf16.msra.mxu1 %v12213_v43  ;;  %8593 = vmatprep.mubr.bf16.mxu1 %v13846_v3  ;;  %v12285_v43 = vld [vmem:[#allocation13 + $0x8e0] ss:$16 sps:$4 sm:$0xff]  }
 0x70c   :  { %8553 = vmatmul.mubr.bf16.gmra.mxu0 %v13894_v51  ;;  %8571 = vmatprep.subr.bf16.mxu1 %v12221_v60  ;;  %v12293_v60 = vld [vmem:[#allocation13 + $0x8c4] ss:$16 sps:$4 sm:$0xff]  }
 0x70d   :  { %8631 = vmatpush1.bf16.msra.mxu0 %v12216_v20  ;;  %8654 = vmatprep.mubr.bf16.mxu0 %v13851_v50  ;;  %v12288_v20 = vld [vmem:[#allocation13 + $0xae0] ss:$16 sps:$4 sm:$0xff]  }
 0x70e   :  { %8632 = vmatprep.subr.bf16.mxu0 %v12224_v52 }
 0x70f   :  { %8572 = vmatpush1.bf16.msra.mxu1 %v12219_v6 }
 0x710   :  { %8573 = vmatprep.subr.bf16.mxu1 %v12227_v8  ;;  %v12296_v8 = vld [vmem:[#allocation13 + $0xac4] ss:$16 sps:$4 sm:$0xff]  }
 0x711   :  { %8633 = vmatpush1.bf16.msra.mxu0 %v12222_v2 }
 0x712   :  { %8634 = vmatprep.subr.bf16.mxu0 %v12230_v1  ;;  %v12291_v1 = vld [vmem:[#allocation13 + $0x8c0] ss:$16 sps:$4 sm:$0xff]  }
 0x713   :  { %8574 = vmatpush1.bf16.msra.mxu1 %v12225_v37 }
 0x714   :  { %8575 = vmatprep.subr.bf16.mxu1 %v12233_v49 }
 0x715   :  { %8635 = vmatpush1.bf16.msra.mxu0 %v12228_v34  ;;  %v12299_v34 = vld [vmem:[#allocation13 + $0x8a4] ss:$16 sps:$4 sm:$0xff]  }
 0x716   :  { %8636 = vmatprep.subr.bf16.mxu0 %v12236_v58 }
 0x717   :  { %8576 = vmatpush1.bf16.msra.mxu1 %v12231_v41  ;;  %v12294_v41 = vld [vmem:[#allocation13 + $0xac0] ss:$16 sps:$4 sm:$0xff]  }
 0x718   :  { %8577 = vmatprep.subr.bf16.mxu1 %v12239_v24 }
 0x719   :  { %8637 = vmatpush1.bf16.msra.mxu0 %v12234_v46 }
 0x71a   :  { %8638 = vmatprep.subr.bf16.mxu0 %v12242_v39  ;;  %v12302_v39 = vld [vmem:[#allocation13 + $0xaa4] ss:$16 sps:$4 sm:$0xff]  }
 0x71b   :  { %8578 = vmatpush2.bf16.msra.mxu1 %v12237_v0 }
 0x71c   :  { %8579 = vmatprep.subr.bf16.mxu1 %v12245_v14  ;;  %v12297_v14 = vld [vmem:[#allocation13 + $0x8a0] ss:$16 sps:$4 sm:$0xff]  }
 0x71d   :  { %8639 = vmatpush2.bf16.msra.mxu0 %v12240_v33 }
 0x71e   :  { %8640 = vmatprep.subr.bf16.mxu0 %v12248_v12 }
 0x71f   :  { %8580 = vmatpush2.bf16.msra.mxu1 %v12243_v62  ;;  %v12305_v62 = vld [vmem:[#allocation13 + $0x884] ss:$16 sps:$4 sm:$0xff]  }
 0x720   :  { %8581 = vmatprep.subr.bf16.mxu1 %v12251_v38 }
 0x721   :  { %8641 = vmatpush2.bf16.msra.mxu0 %v12246_v26  ;;  %v12300_v26 = vld [vmem:[#allocation13 + $0xaa0] ss:$16 sps:$4 sm:$0xff]  }
 0x722   :  { %8642 = vmatprep.subr.bf16.mxu0 %v12254_v13 }
 0x723   :  { %8582 = vmatpush2.bf16.msra.mxu1 %v12249_v7  ;;  %v12308_v7 = vld [vmem:[#allocation13 + $0xa84] ss:$16 sps:$4 sm:$0xff]  }
 0x724   :  { %8583 = vmatprep.subr.bf16.mxu1 %v12257_v32  ;;  %v12303_v32 = vld [vmem:[#allocation13 + $0x880] ss:$16 sps:$4 sm:$0xff]  }
 0x725   :  { %8643 = vmatpush2.bf16.msra.mxu0 %v12252_v57 }
 0x726   :  { %8644 = vmatprep.subr.bf16.mxu0 %v12260_v28 }
 0x727   :  { %8584 = vmatpush2.bf16.msra.mxu1 %v12255_v11  ;;  %v12311_v11 = vld [vmem:[#allocation13 + $0x864] ss:$16 sps:$4 sm:$0xff]  }
 0x728   :  { %8585 = vmatprep.subr.bf16.mxu1 %v12263_v10 }
 0x729   :  { %8645 = vmatpush2.bf16.msra.mxu0 %v12258_v40  ;;  %v12306_v40 = vld [vmem:[#allocation13 + $0xa80] ss:$16 sps:$4 sm:$0xff]  }
 0x72a   :  { %8646 = vmatprep.subr.bf16.mxu0 %v12266_v56 }
 0x72b   :  { %8586 = vmatpush2.bf16.msra.mxu1 %v12261_v54 }
 0x72c   :  { %8587 = vmatprep.subr.bf16.mxu1 %v12269_v55  ;;  %v8828_v55 = vrot.slane %v13875_v48, 1 }
 0x72d   :  { %8647 = vmatpush2.bf16.msra.mxu0 %v12264_v31  ;;  %v12314_v31 = vld [vmem:[#allocation13 + $0xa64] ss:$16 sps:$4 sm:$0xff]  }
 0x72e   :  { %8648 = vmatprep.subr.bf16.mxu0 %v12272_v15 }
 0x72f   :  { %8588 = vmatpush2.bf16.msra.mxu1 %v12267_v5  ;;  %v12309_v5 = vld [vmem:[#allocation13 + $0x860] ss:$16 sps:$4 sm:$0xff]  }
 0x730   :  { %8589 = vmatprep.subr.bf16.mxu1 %v12275_v42 }
 0x731   :  { %8649 = vmatpush2.bf16.msra.mxu0 %v12270_v35 }
 0x732   :  { %8650 = vmatprep.subr.bf16.mxu0 %v12278_v9  ;;  %v8827_v9 = vrot.slane %v13846_v3, 1  ;;  %v12320_v3 = vld [vmem:[#allocation13 + $0xa44] ss:$16 sps:$4 sm:$0xff]  }
 0x733   :  { %8590 = vmatpush2.bf16.msra.mxu1 %v12273_v22  ;;  %v12317_v22 = vld [vmem:[#allocation13 + $0x844] ss:$16 sps:$4 sm:$0xff]  }
 0x734   :  { %8591 = vmatprep.subr.bf16.mxu1 %v12281_v63  ;;  %v8834_v63 = vrot.slane %v13880_v59, 1 }
 0x735   :  { %8651 = vmatpush2.bf16.msra.mxu0 %v12276_v27 }
 0x736   :  { %8652 = vmatprep.subr.bf16.mxu0 %v12284_v61  ;;  %v12312_v61 = vld [vmem:[#allocation13 + $0xa60] ss:$16 sps:$4 sm:$0xff]  }
 0x737   :  { %8592 = vmatpush2.bf16.msra.mxu1 %v12279_v44 }
 0x738   :  { %9496 = vmatprep.subr.bf16.mxu1 %v12287_v29  ;;  %v14007_v29 = vsel %vm2465_vm0, %v8827_v9, %v8828_v55  ;;  %v12348_v9 = vld [vmem:[#allocation13 + $0xba0] ss:$16 sps:$4 sm:$0xff]  }
 0x739   :  { %8653 = vmatpush2.bf16.msra.mxu0 %v12282_v47 }
 0x73a   :  { %8594 = vmatmul.mubr.bf16.vlgmr.msra.gmra.mxu1 %v13840_v30  ;;  %v7589_v52 = vpop.f32.mrf.mxu1  ;;  %9557 = vmatprep.subr.bf16.mxu0 %v12290_v19  ;;  %v8833_v19 = vrot.slane %v13851_v50, 1  ;;  %v12318_v50 = vld [vmem:[#allocation13 + $0xa40] ss:$16 sps:$4 sm:$0xff]  }
 0x73b   :  { %v7650_v6 = vpop.f32.mrf.mxu0  ;;  %8603 = vmatprep.mubr.bf16.mxu1 %v13875_v48  ;;  %9497 = vmatpush1.bf16.msra.mxu1 %v12285_v43 }
 0x73c   :  { %v13980_v2 = vadd.f32 %v7650_v6, %v7589_v52  ;;  %v7591_v37 = vpop.f32.mrf.mxu1  ;;  %8655 = vmatmul.mubr.bf16.vlgmr.msra.gmra.mxu0 %v13862_v36  ;;  %9498 = vmatprep.subr.bf16.mxu1 %v12293_v60  ;;  %v12315_v60 = vld [vmem:[#allocation13 + $0x840] ss:$16 sps:$4 sm:$0xff]   ;;  %v14017_v6 = vsel %vm2465_vm0, %v8833_v19, %v8834_v63  ;;  %v12362_v19 = vld [vmem:[#allocation13 + $0xb64] ss:$16 sps:$4 sm:$0xff]  }
 0x73d   :  { %v7652_v49 = vpop.f32.mrf.mxu0  ;;  %8664 = vmatprep.mubr.bf16.mxu0 %v13880_v59  ;;  %9558 = vmatpush1.bf16.msra.mxu0 %v12288_v20  ;;  %v14061_v59 = vrot.slane %v13891_v18, 1 }
 0x73e   :  { %v13984_v58 = vadd.f32 %v7652_v49, %v7591_v37  ;;  %v7593_v24 = vpop.f32.mrf.mxu1  ;;  %9559 = vmatprep.subr.bf16.mxu0 %v12296_v8  ;;  %v12323_v8 = vld [vmem:[#allocation13 + $0x824] ss:$16 sps:$4 sm:$0xff]  }
 0x73f   :  { %v7654_v46 = vpop.f32.mrf.mxu0  ;;  %9499 = vmatpush1.bf16.msra.mxu1 %v12291_v1 }
 0x740   :  { %v13986_v0 = vadd.f32 %v7654_v46, %v7593_v24  ;;  %v7595_v33 = vpop.f32.mrf.mxu1  ;;  %9500 = vmatprep.subr.bf16.mxu1 %v12299_v34  ;;  %v12326_v34 = vld [vmem:[#allocation13 + $0xa24] ss:$16 sps:$4 sm:$0xff]   ;;  %v12321_v24 = vld [vmem:[#allocation13 + $0x820] ss:$16 sps:$4 sm:$0xff]  }
 0x741   :  { %v7656_v12 = vpop.f32.mrf.mxu0  ;;  %9560 = vmatpush1.bf16.msra.mxu0 %v12294_v41 }
 0x742   :  { %v13988_v38 = vadd.f32 %v7656_v12, %v7595_v33  ;;  %8604 = vmatmul.mubr.bf16.gmra.mxu1 %v13878_v45  ;;  %v7599_v13 = vpop.f32.mrf.mxu1  ;;  %9561 = vmatprep.subr.bf16.mxu0 %v12302_v39  ;;  %v12324_v33 = vld [vmem:[#allocation13 + $0xa20] ss:$16 sps:$4 sm:$0xff]  }
 0x743   :  { %8613 = vmatprep.mubr.bf16.mxu1 %v13868_v53  ;;  %9501 = vmatpush1.bf16.msra.mxu1 %v12297_v14  ;;  %v12329_v14 = vld [vmem:[#allocation13 + $0x804] ss:$16 sps:$4 sm:$0xff]  }
 0x744   :  { %v7601_v57 = vpop.f32.mrf.mxu1  ;;  %8665 = vmatmul.mubr.bf16.gmra.mxu0 %v13884_v4  ;;  %v7660_v28 = vpop.f32.mrf.mxu0  ;;  %9502 = vmatprep.subr.bf16.mxu1 %v12305_v62  ;;  %v12332_v62 = vld [vmem:[#allocation13 + $0xa04] ss:$16 sps:$4 sm:$0xff]  }
 0x745   :  { %v13993_v10 = vadd.f32 %v7660_v28, %v7599_v13  ;;  %8674 = vmatprep.mubr.bf16.mxu0 %v13910_v17  ;;  %9562 = vmatpush1.bf16.msra.mxu0 %v12300_v26  ;;  %v12327_v26 = vld [vmem:[#allocation13 + $0x800] ss:$16 sps:$4 sm:$0xff]   ;;  %v12335_v13 = vld [vmem:[#allocation13 + $0x9e4] ss:$16 sps:$4 sm:$0xff]  }
 0x746   :  { %v7603_v56 = vpop.f32.mrf.mxu1  ;;  %v7662_v54 = vpop.f32.mrf.mxu0  ;;  %9563 = vmatprep.subr.bf16.mxu0 %v12308_v7  ;;  %v12330_v7 = vld [vmem:[#allocation13 + $0xa00] ss:$16 sps:$4 sm:$0xff]   ;;  %v12341_v28 = vld [vmem:[#allocation13 + $0x9c4] ss:$16 sps:$4 sm:$0xff]  }
 0x747   :  { %9503 = vmatpush1.bf16.msra.mxu1 %v12303_v32  ;;  %v13997_v15 = vadd.f32 %v7662_v54, %v7601_v57  ;;  %v12338_v32 = vld [vmem:[#allocation13 + $0xbe4] ss:$16 sps:$4 sm:$0xff]   ;;  %v12333_v57 = vld [vmem:[#allocation13 + $0x9e0] ss:$16 sps:$4 sm:$0xff]  }
 0x748   :  { %v7605_v42 = vpop.f32.mrf.mxu1  ;;  %v7664_v35 = vpop.f32.mrf.mxu0  ;;  %9504 = vmatprep.subr.bf16.mxu1 %v12311_v11  ;;  %v12336_v11 = vld [vmem:[#allocation13 + $0xbe0] ss:$16 sps:$4 sm:$0xff]   ;;  %v12347_v54 = vld [vmem:[#allocation13 + $0x9a4] ss:$16 sps:$4 sm:$0xff]  }
 0x749   :  { %v14001_v27 = vadd.f32 %v7664_v35, %v7603_v56  ;;  %9564 = vmatpush1.bf16.msra.mxu0 %v12306_v40  ;;  %v12344_v40 = vld [vmem:[#allocation13 + $0xbc4] ss:$16 sps:$4 sm:$0xff]   ;;  %v12339_v56 = vld [vmem:[#allocation13 + $0x9c0] ss:$16 sps:$4 sm:$0xff]  }
 0x74a   :  { %8614 = vmatmul.mubr.bf16.gmra.mxu1 %v13891_v18  ;;  %v7609_v44 = vpop.f32.mrf.mxu1  ;;  %v7666_v47 = vpop.f32.mrf.mxu0  ;;  %9565 = vmatprep.subr.bf16.mxu0 %v12314_v31  ;;  %v12342_v31 = vld [vmem:[#allocation13 + $0xbc0] ss:$16 sps:$4 sm:$0xff]   ;;  %v12353_v35 = vld [vmem:[#allocation13 + $0x984] ss:$16 sps:$4 sm:$0xff]  }
 0x74b   :  { %9505 = vmatpush1.bf16.msra.mxu1 %v12309_v5  ;;  %9528 = vmatprep.mubr.bf16.mxu1 %v14007_v29  ;;  %v14011_v43 = vadd.f32 %v7666_v47, %v7605_v42  ;;  %v12350_v5 = vld [vmem:[#allocation13 + $0xba4] ss:$16 sps:$4 sm:$0xff]   ;;  %v12345_v42 = vld [vmem:[#allocation13 + $0x9a0] ss:$16 sps:$4 sm:$0xff]  }
 0x74c   :  { %v7611_v20 = vpop.f32.mrf.mxu1  ;;  %8675 = vmatmul.mubr.bf16.gmra.mxu0 %v13894_v51  ;;  %v7670_v52 = vpop.f32.mrf.mxu0  ;;  %9506 = vmatprep.subr.bf16.mxu1 %v12317_v22  ;;  %v12356_v22 = vld [vmem:[#allocation13 + $0xb84] ss:$16 sps:$4 sm:$0xff]   ;;  %v12354_v47 = vld [vmem:[#allocation13 + $0xb80] ss:$16 sps:$4 sm:$0xff]  }
 0x74d   :  { %v14019_v1 = vadd.f32 %v7670_v52, %v7609_v44  ;;  %9566 = vmatpush1.bf16.msra.mxu0 %v12312_v61  ;;  %9589 = vmatprep.mubr.bf16.mxu0 %v14017_v6  ;;  %v12351_v61 = vld [vmem:[#allocation13 + $0x980] ss:$16 sps:$4 sm:$0xff]   ;;  %v12359_v44 = vld [vmem:[#allocation13 + $0x964] ss:$16 sps:$4 sm:$0xff]  }
 0x74e   :  { %v7613_v37 = vpop.f32.mrf.mxu1  ;;  %v7672_v49 = vpop.f32.mrf.mxu0  ;;  %9567 = vmatprep.subr.bf16.mxu0 %v12320_v3  ;;  %v12357_v3 = vld [vmem:[#allocation13 + $0x960] ss:$16 sps:$4 sm:$0xff]   ;;  %v12368_v52 = vld [vmem:[#allocation13 + $0xb44] ss:$16 sps:$4 sm:$0xff]  }
 0x74f   :  { %9507 = vmatpush1.bf16.msra.mxu1 %v12315_v60  ;;  %v14022_v41 = vadd.f32 %v7672_v49, %v7611_v20  ;;  %v12365_v60 = vld [vmem:[#allocation13 + $0x944] ss:$16 sps:$4 sm:$0xff]   ;;  %v12360_v20 = vld [vmem:[#allocation13 + $0xb60] ss:$16 sps:$4 sm:$0xff]  }
 0x750   :  { %v7614_v46 = vpop.f32.mrf.mxu1  ;;  %v7674_v39 = vpop.f32.mrf.mxu0  ;;  %9508 = vmatprep.subr.bf16.mxu1 %v12323_v8  ;;  %v12363_v8 = vld [vmem:[#allocation13 + $0x940] ss:$16 sps:$4 sm:$0xff]   ;;  %v12374_v49 = vld [vmem:[#allocation13 + $0xb24] ss:$16 sps:$4 sm:$0xff]  }
 0x751   :  { %9568 = vmatpush1.bf16.msra.mxu0 %v12318_v50  ;;  %v12371_v50 = vld [vmem:[#allocation13 + $0x924] ss:$16 sps:$4 sm:$0xff]   ;;  %v12366_v37 = vld [vmem:[#allocation13 + $0xb40] ss:$16 sps:$4 sm:$0xff]  }
 0x752   :  { %v7675_v12 = vpop.f32.mrf.mxu0  ;;  %9569 = vmatprep.subr.bf16.mxu0 %v12326_v34  ;;  %v12369_v34 = vld [vmem:[#allocation13 + $0x920] ss:$16 sps:$4 sm:$0xff]   ;;  %v12380_v39 = vld [vmem:[#allocation13 + $0xb04] ss:$16 sps:$4 sm:$0xff]  }
 0x753   :  { %9509 = vmatpush1.bf16.msra.mxu1 %v12321_v24  ;;  %v12377_v24 = vld [vmem:[#allocation13 + $0x904] ss:$16 sps:$4 sm:$0xff]   ;;  %v12372_v46 = vld [vmem:[#allocation13 + $0xb20] ss:$16 sps:$4 sm:$0xff]  }
 0x754   :  { %9510 = vmatprep.subr.bf16.mxu1 %v12329_v14  ;;  %v12375_v14 = vld [vmem:[#allocation13 + $0x900] ss:$16 sps:$4 sm:$0xff]  }
 0x755   :  { %9570 = vmatpush1.bf16.msra.mxu0 %v12324_v33  ;;  %v12383_v33 = vld [vmem:[#allocation13 + $0x8ec] ss:$16 sps:$4 sm:$0xff]   ;;  %v12378_v12 = vld [vmem:[#allocation13 + $0xb00] ss:$16 sps:$4 sm:$0xff]  }
 0x756   :  { %9571 = vmatprep.subr.bf16.mxu0 %v12332_v62  ;;  %v8825_v62 = vrot.slane %v13878_v45, 1  ;;  %v8830_v45 = vrot.slane %v13862_v36, 1 }
 0x757   :  { %9511 = vmatpush1.bf16.msra.mxu1 %v12327_v26  ;;  %v12386_v26 = vld [vmem:[#allocation13 + $0xaec] ss:$16 sps:$4 sm:$0xff]  }
 0x758   :  { %9512 = vmatprep.subr.bf16.mxu1 %v12335_v13  ;;  %v8824_v13 = vrot.slane %v13840_v30, 1 }
 0x759   :  { %9572 = vmatpush1.bf16.msra.mxu0 %v12330_v7  ;;  %v12381_v7 = vld [vmem:[#allocation13 + $0x8e8] ss:$16 sps:$4 sm:$0xff]  }
 0x75a   :  { %9573 = vmatprep.subr.bf16.mxu0 %v12338_v32  ;;  %v8831_v32 = vrot.slane %v13884_v4, 1 }
 0x75b   :  { %9513 = vmatpush2.bf16.msra.mxu1 %v12333_v57  ;;  %v14028_v57 = vrot.slane %v13868_v53, 1  ;;  %v12392_v53 = vld [vmem:[#allocation13 + $0xacc] ss:$16 sps:$4 sm:$0xff]  }
 0x75c   :  { %9514 = vmatprep.subr.bf16.mxu1 %v12341_v28  ;;  %v14031_v28 = vrot.slane %v13910_v17, 1  ;;  %v14046_v4 = vsel %vm2465_vm0, %v8830_v45, %v8831_v32  ;;  %v12387_v17 = vld [vmem:[#allocation13 + $0x8c8] ss:$16 sps:$4 sm:$0xff]  }
 0x75d   :  { %9574 = vmatpush2.bf16.msra.mxu0 %v12336_v11  ;;  %v12389_v11 = vld [vmem:[#allocation13 + $0x8cc] ss:$16 sps:$4 sm:$0xff]   ;;  %v14042_v30 = vsel %vm2465_vm0, %v8828_v55, %v14028_v57 }
 0x75e   :  { %9575 = vmatprep.subr.bf16.mxu0 %v12344_v40  ;;  %v14034_v40 = vsel %vm2465_vm0, %v8824_v13, %v8825_v62  ;;  %v14053_v48 = vsel %vm2465_vm0, %v8834_v63, %v14031_v28  ;;  %v12395_v55 = vld [vmem:[#allocation13 + $0x8ac] ss:$16 sps:$4 sm:$0xff]   ;;  %v12393_v63 = vld [vmem:[#allocation13 + $0x8a8] ss:$16 sps:$4 sm:$0xff]  }
 0x75f   :  { %9515 = vmatpush2.bf16.msra.mxu1 %v12339_v56  ;;  %v12384_v56 = vld [vmem:[#allocation13 + $0xae8] ss:$16 sps:$4 sm:$0xff]  }
 0x760   :  { %9516 = vmatprep.subr.bf16.mxu1 %v12347_v54  ;;  %v12405_v13 = vld [vmem:[#allocation13 + $0x868] ss:$16 sps:$4 sm:$0xff]  }
 0x761   :  { %9576 = vmatpush2.bf16.msra.mxu0 %v12342_v31 }
 0x762   :  { %9577 = vmatprep.subr.bf16.mxu0 %v12350_v5 }
 0x763   :  { %9517 = vmatpush2.bf16.msra.mxu1 %v12345_v42  ;;  %v12390_v42 = vld [vmem:[#allocation13 + $0xac8] ss:$16 sps:$4 sm:$0xff]  }
 0x764   :  { %9518 = vmatprep.subr.bf16.mxu1 %v12353_v35 }
 0x765   :  { %9578 = vmatpush2.bf16.msra.mxu0 %v12348_v9 }
 0x766   :  { %9579 = vmatprep.subr.bf16.mxu0 %v12356_v22  ;;  %v12398_v22 = vld [vmem:[#allocation13 + $0xaac] ss:$16 sps:$4 sm:$0xff]  }
 0x767   :  { %9519 = vmatpush2.bf16.msra.mxu1 %v12351_v61 }
 0x768   :  { %9520 = vmatprep.subr.bf16.mxu1 %v12359_v44  ;;  %v14064_v44 = vrot.slane %v13894_v51, 1 }
 0x769   :  { %9580 = vmatpush2.bf16.msra.mxu0 %v12354_v47 }
 0x76a   :  { %9581 = vmatprep.subr.bf16.mxu0 %v12362_v19 }
 0x76b   :  { %9521 = vmatpush2.bf16.msra.mxu1 %v12357_v3  ;;  %v12401_v3 = vld [vmem:[#allocation13 + $0x88c] ss:$16 sps:$4 sm:$0xff]  }
 0x76c   :  { %9522 = vmatprep.subr.bf16.mxu1 %v12365_v60 }
 0x76d   :  { %9582 = vmatpush2.bf16.msra.mxu0 %v12360_v20  ;;  %v14070_v20 = vsel %vm2465_vm0, %v8825_v62, %v14061_v59  ;;  %v12410_v62 = vld [vmem:[#allocation13 + $0xa6c] ss:$16 sps:$4 sm:$0xff]  }
 0x76e   :  { %9583 = vmatprep.subr.bf16.mxu0 %v12368_v52  ;;  %v12396_v52 = vld [vmem:[#allocation13 + $0xaa8] ss:$16 sps:$4 sm:$0xff]  }
 0x76f   :  { %9523 = vmatpush2.bf16.msra.mxu1 %v12363_v8 }
 0x770   :  { %9524 = vmatprep.subr.bf16.mxu1 %v12371_v50  ;;  %v12404_v50 = vld [vmem:[#allocation13 + $0xa8c] ss:$16 sps:$4 sm:$0xff]  }
 0x771   :  { %9584 = vmatpush2.bf16.msra.mxu0 %v12366_v37  ;;  %v14078_v37 = vsel %vm2465_vm0, %v8831_v32, %v14064_v44  ;;  %vm9842_vm0 = vcmask 1045504  }
 0x772   :  { %9585 = vmatprep.subr.bf16.mxu0 %v12374_v49  ;;  %v12399_v49 = vld [vmem:[#allocation13 + $0x888] ss:$16 sps:$4 sm:$0xff]  }
 0x773   :  { %9525 = vmatpush2.bf16.msra.mxu1 %v12369_v34 }
 0x774   :  { %9526 = vmatprep.subr.bf16.mxu1 %v12377_v24 }
 0x775   :  { %9586 = vmatpush2.bf16.msra.mxu0 %v12372_v46  ;;  %v12407_v46 = vld [vmem:[#allocation13 + $0x86c] ss:$16 sps:$4 sm:$0xff]  }
 0x776   :  { %9587 = vmatprep.subr.bf16.mxu0 %v12380_v39 }
 0x777   :  { %9527 = vmatpush2.bf16.msra.mxu1 %v12375_v14  ;;  %v12402_v14 = vld [vmem:[#allocation13 + $0xa88] ss:$16 sps:$4 sm:$0xff]  }
 0x778   :  { %9618 = vmatprep.subr.bf16.mxu1 %v12383_v33 }
 0x779   :  { %9588 = vmatpush2.bf16.msra.mxu0 %v12378_v12 }
 0x77a   :  { %v7711_v54 = vpop.f32.mrf.mxu1  ;;  %9529 = vmatmul.mubr.bf16.vlgmr.msra.gmra.mxu1 %v14034_v40  ;;  %9679 = vmatprep.subr.bf16.mxu0 %v12386_v26 }
 0x77b   :  { %9538 = vmatprep.mubr.bf16.mxu1 %v14042_v30  ;;  %9619 = vmatpush1.bf16.msra.mxu1 %v12381_v7 }
 0x77c   :  { %v7713_v36 = vpop.f32.mrf.mxu1  ;;  %v7772_v31 = vpop.f32.mrf.mxu0  ;;  %9590 = vmatmul.mubr.bf16.vlgmr.msra.gmra.mxu0 %v14046_v4  ;;  %9620 = vmatprep.subr.bf16.mxu1 %v12389_v11  ;;  %v12413_v11 = vld [vmem:[#allocation13 + $0x84c] ss:$16 sps:$4 sm:$0xff]  }
 0x77d   :  { %v14055_v5 = vadd.f32 %v7772_v31, %v7711_v54  ;;  %9599 = vmatprep.mubr.bf16.mxu0 %v14053_v48  ;;  %9680 = vmatpush1.bf16.msra.mxu0 %v12384_v56  ;;  %v12408_v56 = vld [vmem:[#allocation13 + $0xa68] ss:$16 sps:$4 sm:$0xff]  }
 0x77e   :  { %v7715_v35 = vpop.f32.mrf.mxu1  ;;  %v7774_v9 = vpop.f32.mrf.mxu0  ;;  %9681 = vmatprep.subr.bf16.mxu0 %v12392_v53  ;;  %v12411_v31 = vld [vmem:[#allocation13 + $0x848] ss:$16 sps:$4 sm:$0xff]  }
 0x77f   :  { %v14058_v61 = vadd.f32 %v7774_v9, %v7713_v36  ;;  %9621 = vmatpush1.bf16.msra.mxu1 %v12387_v17  ;;  %v12416_v17 = vld [vmem:[#allocation13 + $0xa4c] ss:$16 sps:$4 sm:$0xff]  }
 0x780   :  { %v7717_v47 = vpop.f32.mrf.mxu1  ;;  %v7776_v19 = vpop.f32.mrf.mxu0  ;;  %9622 = vmatprep.subr.bf16.mxu1 %v12395_v55 }
 0x781   :  { %v14066_v60 = vadd.f32 %v7776_v19, %v7715_v35  ;;  %9682 = vmatpush1.bf16.msra.mxu0 %v12390_v42  ;;  %v12419_v35 = vld [vmem:[#allocation13 + $0x82c] ss:$16 sps:$4 sm:$0xff]  }
 0x782   :  { %v7721_v8 = vpop.f32.mrf.mxu1  ;;  %9539 = vmatmul.mubr.bf16.gmra.mxu1 %v14070_v20  ;;  %v7778_v18 = vpop.f32.mrf.mxu0  ;;  %9683 = vmatprep.subr.bf16.mxu0 %v12398_v22  ;;  %v12414_v22 = vld [vmem:[#allocation13 + $0xa48] ss:$16 sps:$4 sm:$0xff]   ;;  %v12422_v19 = vld [vmem:[#allocation13 + $0xa2c] ss:$16 sps:$4 sm:$0xff]  }
 0x783   :  { %v14073_v51 = vadd.f32 %v7778_v18, %v7717_v47  ;;  %9548 = vmatprep.mubr.bf16.mxu1 %v14028_v57  ;;  %9623 = vmatpush1.bf16.msra.mxu1 %v12393_v63  ;;  %v12425_v18 = vld [vmem:[#allocation13 + $0x80c] ss:$16 sps:$4 sm:$0xff]  }
 0x784   :  { %v7723_v34 = vpop.f32.mrf.mxu1  ;;  %v7782_v24 = vpop.f32.mrf.mxu0  ;;  %9600 = vmatmul.mubr.bf16.gmra.mxu0 %v14078_v37  ;;  %9624 = vmatprep.subr.bf16.mxu1 %v12401_v3 }
 0x785   :  { %v14081_v39 = vadd.f32 %v7782_v24, %v7721_v8  ;;  %9609 = vmatprep.mubr.bf16.mxu0 %v14031_v28  ;;  %9684 = vmatpush1.bf16.msra.mxu0 %v12396_v52  ;;  %v12431_v24 = vld [vmem:[#allocation13 + $0x9ec] ss:$16 sps:$4 sm:$0xff]  }
 0x786   :  { %v7725_v33 = vpop.f32.mrf.mxu1  ;;  %v7784_v12 = vpop.f32.mrf.mxu0  ;;  %9685 = vmatprep.subr.bf16.mxu0 %v12404_v50  ;;  %v12420_v50 = vld [vmem:[#allocation13 + $0xa28] ss:$16 sps:$4 sm:$0xff]  }
 0x787   :  { %v14084_v26 = vadd.f32 %v7784_v12, %v7723_v34  ;;  %9625 = vmatpush1.bf16.msra.mxu1 %v12399_v49  ;;  %v12428_v34 = vld [vmem:[#allocation13 + $0xa0c] ss:$16 sps:$4 sm:$0xff]  }
 0x788   :  { %v7727_v7 = vpop.f32.mrf.mxu1  ;;  %v7786_v32 = vpop.f32.mrf.mxu0  ;;  %9626 = vmatprep.subr.bf16.mxu1 %v12407_v46  ;;  %v12426_v46 = vld [vmem:[#allocation13 + $0xa08] ss:$16 sps:$4 sm:$0xff]   ;;  %v12437_v12 = vld [vmem:[#allocation13 + $0x9cc] ss:$16 sps:$4 sm:$0xff]  }
 0x789   :  { %v14086_v45 = vadd.f32 %v7786_v32, %v7725_v33  ;;  %9686 = vmatpush1.bf16.msra.mxu0 %v12402_v14  ;;  %v12434_v14 = vld [vmem:[#allocation13 + $0xbec] ss:$16 sps:$4 sm:$0xff]   ;;  %v12429_v33 = vld [vmem:[#allocation13 + $0x9e8] ss:$16 sps:$4 sm:$0xff]  }
 0x78a   :  { %v7731_v54 = vpop.f32.mrf.mxu1  ;;  %9549 = vmatmul.mubr.bf16.gmra.mxu1 %v14061_v59  ;;  %v7788_v53 = vpop.f32.mrf.mxu0  ;;  %9687 = vmatprep.subr.bf16.mxu0 %v12410_v62  ;;  %v12432_v62 = vld [vmem:[#allocation13 + $0xbe8] ss:$16 sps:$4 sm:$0xff]   ;;  %v12443_v32 = vld [vmem:[#allocation13 + $0x9ac] ss:$16 sps:$4 sm:$0xff]  }
 0x78b   :  { %v14089_v36 = vadd.f32 %v7788_v53, %v7727_v7  ;;  %9627 = vmatpush1.bf16.msra.mxu1 %v12405_v13  ;;  %9650 = vmatprep.mubr.bf16.mxu1 %v14007_v29  ;;  %v12417_v29 = vld [vmem:[#allocation13 + $0x828] ss:$16 sps:$4 sm:$0xff]   ;;  %v12440_v13 = vld [vmem:[#allocation13 + $0xbcc] ss:$16 sps:$4 sm:$0xff]  }
 0x78c   :  { %v7733_v55 = vpop.f32.mrf.mxu1  ;;  %v7792_v42 = vpop.f32.mrf.mxu0  ;;  %9610 = vmatmul.mubr.bf16.gmra.mxu0 %v14064_v44  ;;  %9628 = vmatprep.subr.bf16.mxu1 %v12413_v11  ;;  %v12435_v7 = vld [vmem:[#allocation13 + $0x9c8] ss:$16 sps:$4 sm:$0xff]   ;;  %v12449_v53 = vld [vmem:[#allocation13 + $0x98c] ss:$16 sps:$4 sm:$0xff]  }
 0x78d   :  { %v14093_v9 = vadd.f32 %v7792_v42, %v7731_v54  ;;  %9688 = vmatpush1.bf16.msra.mxu0 %v12408_v56  ;;  %9711 = vmatprep.mubr.bf16.mxu0 %v14017_v6  ;;  %v12423_v6 = vld [vmem:[#allocation13 + $0x808] ss:$16 sps:$4 sm:$0xff]   ;;  %v12446_v56 = vld [vmem:[#allocation13 + $0xbac] ss:$16 sps:$4 sm:$0xff]  }
 0x78e   :  { %v7735_v63 = vpop.f32.mrf.mxu1  ;;  %v7794_v47 = vpop.f32.mrf.mxu0  ;;  %9689 = vmatprep.subr.bf16.mxu0 %v12416_v17  ;;  %v12438_v11 = vld [vmem:[#allocation13 + $0xbc8] ss:$16 sps:$4 sm:$0xff]   ;;  %v12455_v42 = vld [vmem:[#allocation13 + $0x96c] ss:$16 sps:$4 sm:$0xff]  }
 0x78f   :  { %v14096_v3 = vadd.f32 %v7794_v47, %v7733_v55  ;;  %9629 = vmatpush1.bf16.msra.mxu1 %v12411_v31  ;;  %v12441_v54 = vld [vmem:[#allocation13 + $0x9a8] ss:$16 sps:$4 sm:$0xff]   ;;  %v12452_v31 = vld [vmem:[#allocation13 + $0xb8c] ss:$16 sps:$4 sm:$0xff]  }
 0x790   :  { %v7736_v52 = vpop.f32.mrf.mxu1  ;;  %v7796_v8 = vpop.f32.mrf.mxu0  ;;  %9630 = vmatprep.subr.bf16.mxu1 %v12419_v35  ;;  %v12444_v17 = vld [vmem:[#allocation13 + $0xba8] ss:$16 sps:$4 sm:$0xff]   ;;  %v12461_v47 = vld [vmem:[#allocation13 + $0x94c] ss:$16 sps:$4 sm:$0xff]  }
 0x791   :  { %9690 = vmatpush1.bf16.msra.mxu0 %v12414_v22  ;;  %v12447_v55 = vld [vmem:[#allocation13 + $0x988] ss:$16 sps:$4 sm:$0xff]   ;;  %v12458_v22 = vld [vmem:[#allocation13 + $0xb6c] ss:$16 sps:$4 sm:$0xff]  }
 0x792   :  { %v7797_v49 = vpop.f32.mrf.mxu0  ;;  %9691 = vmatprep.subr.bf16.mxu0 %v12422_v19  ;;  %v12450_v35 = vld [vmem:[#allocation13 + $0xb88] ss:$16 sps:$4 sm:$0xff]   ;;  %v12467_v8 = vld [vmem:[#allocation13 + $0x92c] ss:$16 sps:$4 sm:$0xff]  }
 0x793   :  { %9631 = vmatpush1.bf16.msra.mxu1 %v12417_v29  ;;  %v12453_v63 = vld [vmem:[#allocation13 + $0x968] ss:$16 sps:$4 sm:$0xff]   ;;  %v12464_v29 = vld [vmem:[#allocation13 + $0xb4c] ss:$16 sps:$4 sm:$0xff]  }
 0x794   :  { %9632 = vmatprep.subr.bf16.mxu1 %v12425_v18  ;;  %v12456_v19 = vld [vmem:[#allocation13 + $0xb68] ss:$16 sps:$4 sm:$0xff]  }
 0x795   :  { %9692 = vmatpush1.bf16.msra.mxu0 %v12420_v50  ;;  %v12459_v52 = vld [vmem:[#allocation13 + $0x948] ss:$16 sps:$4 sm:$0xff]   ;;  %v12470_v50 = vld [vmem:[#allocation13 + $0xb2c] ss:$16 sps:$4 sm:$0xff]  }
 0x796   :  { %9693 = vmatprep.subr.bf16.mxu0 %v12428_v34  ;;  %v12462_v18 = vld [vmem:[#allocation13 + $0xb48] ss:$16 sps:$4 sm:$0xff]   ;;  %v12473_v34 = vld [vmem:[#allocation13 + $0x90c] ss:$16 sps:$4 sm:$0xff]  }
 0x797   :  { %9633 = vmatpush1.bf16.msra.mxu1 %v12423_v6  ;;  %v12465_v49 = vld [vmem:[#allocation13 + $0x928] ss:$16 sps:$4 sm:$0xff]  }
 0x798   :  { %9634 = vmatprep.subr.bf16.mxu1 %v12431_v24  ;;  %v12468_v6 = vld [vmem:[#allocation13 + $0xb28] ss:$16 sps:$4 sm:$0xff]   ;;  %v12476_v24 = vld [vmem:[#allocation13 + $0xb0c] ss:$16 sps:$4 sm:$0xff]  }
 0x799   :  { %9694 = vmatpush1.bf16.msra.mxu0 %v12426_v46  ;;  %v12471_v46 = vld [vmem:[#allocation13 + $0x908] ss:$16 sps:$4 sm:$0xff]  }
 0x79a   :  { %9695 = vmatprep.subr.bf16.mxu0 %v12434_v14  ;;  %v12474_v14 = vld [vmem:[#allocation13 + $0xb08] ss:$16 sps:$4 sm:$0xff]  }
 0x79b   :  { %9635 = vmatpush2.bf16.msra.mxu1 %v12429_v33 }
 0x79c   :  { %9636 = vmatprep.subr.bf16.mxu1 %v12437_v12 }
 0x79d   :  { %9696 = vmatpush2.bf16.msra.mxu0 %v12432_v62 }
 0x79e   :  { %9697 = vmatprep.subr.bf16.mxu0 %v12440_v13 }
 0x79f   :  { %9637 = vmatpush2.bf16.msra.mxu1 %v12435_v7 }
 0x7a0   :  { %9638 = vmatprep.subr.bf16.mxu1 %v12443_v32 }
 0x7a1   :  { %9698 = vmatpush2.bf16.msra.mxu0 %v12438_v11 }
 0x7a2   :  { %9699 = vmatprep.subr.bf16.mxu0 %v12446_v56 }
 0x7a3   :  { %9639 = vmatpush2.bf16.msra.mxu1 %v12441_v54 }
 0x7a4   :  { %9640 = vmatprep.subr.bf16.mxu1 %v12449_v53 }
 0x7a5   :  { %9700 = vmatpush2.bf16.msra.mxu0 %v12444_v17 }
 0x7a6   :  { %9701 = vmatprep.subr.bf16.mxu0 %v12452_v31 }
 0x7a7   :  { %9641 = vmatpush2.bf16.msra.mxu1 %v12447_v55 }
 0x7a8   :  { %9642 = vmatprep.subr.bf16.mxu1 %v12455_v42 }
 0x7a9   :  { %9702 = vmatpush2.bf16.msra.mxu0 %v12450_v35 }
 0x7aa   :  { %9703 = vmatprep.subr.bf16.mxu0 %v12458_v22 }
 0x7ab   :  { %9643 = vmatpush2.bf16.msra.mxu1 %v12453_v63 }
 0x7ac   :  { %9644 = vmatprep.subr.bf16.mxu1 %v12461_v47 }
 0x7ad   :  { %9704 = vmatpush2.bf16.msra.mxu0 %v12456_v19 }
 0x7ae   :  { %9705 = vmatprep.subr.bf16.mxu0 %v12464_v29 }
 0x7af   :  { %9645 = vmatpush2.bf16.msra.mxu1 %v12459_v52 }
 0x7b0   :  { %9646 = vmatprep.subr.bf16.mxu1 %v12467_v8 }
 0x7b1   :  { %9706 = vmatpush2.bf16.msra.mxu0 %v12462_v18 }
 0x7b2   :  { %9707 = vmatprep.subr.bf16.mxu0 %v12470_v50 }
 0x7b3   :  { %9647 = vmatpush2.bf16.msra.mxu1 %v12465_v49 }
 0x7b4   :  { %9648 = vmatprep.subr.bf16.mxu1 %v12473_v34 }
 0x7b5   :  { %9708 = vmatpush2.bf16.msra.mxu0 %v12468_v6 }
 0x7b6   :  { %9709 = vmatprep.subr.bf16.mxu0 %v12476_v24 }
 0x7b7   :  { %9649 = vmatpush2.bf16.msra.mxu1 %v12471_v46 }
 0x7b9   :  { %9710 = vmatpush2.bf16.msra.mxu0 %v12474_v14 }
 0x7ba   :  { %v8473_v33 = vpop.f32.mrf.mxu1  ;;  %9651 = vmatmul.mubr.bf16.vlgmr.msra.gmra.mxu1 %v14034_v40 }
 0x7bb   :  { %v8474_v12 = vadd.f32 %v8473_v33, %v13980_v2  ;;  %9660 = vmatprep.mubr.bf16.mxu1 %v14042_v30 }
 0x7bc   :  { %v8475_v62 = vpop.f32.mrf.mxu1  ;;  %v8534_v13 = vpop.f32.mrf.mxu0  ;;  %9712 = vmatmul.mubr.bf16.vlgmr.msra.gmra.mxu0 %v14046_v4 }
 0x7bd   :  { %v8476_v7 = vadd.f32 %v8475_v62, %v13984_v58  ;;  %v14103_v32 = vadd.f32 %v8534_v13, %v8474_v12  ;;  %9721 = vmatprep.mubr.bf16.mxu0 %v14053_v48 }
 0x7be   :  { %v8477_v11 = vpop.f32.mrf.mxu1  ;;  %v8536_v56 = vpop.f32.mrf.mxu0 }
 0x7bf   :  { %v8478_v54 = vadd.f32 %v8477_v11, %v13986_v0  ;;  %v14107_v53 = vadd.f32 %v8536_v56, %v8476_v7 }
 0x7c0   :  { %v8479_v40 = vpop.f32.mrf.mxu1  ;;  %v8538_v2 = vpop.f32.mrf.mxu0 }
 0x7c1   :  { %v8480_v30 = vadd.f32 %v8479_v40, %v13988_v38  ;;  %v14110_v17 = vadd.f32 %v8538_v2, %v8478_v54 }
 0x7c2   :  { %v8483_v31 = vpop.f32.mrf.mxu1  ;;  %9661 = vmatmul.mubr.bf16.gmra.mxu1 %v14070_v20  ;;  %v8540_v58 = vpop.f32.mrf.mxu0 }
 0x7c3   :  { %v8484_v4 = vadd.f32 %v8483_v31, %v13993_v10  ;;  %v14114_v55 = vadd.f32 %v8540_v58, %v8480_v30  ;;  %9670 = vmatprep.mubr.bf16.mxu1 %v14028_v57 }
 0x7c4   :  { %v8485_v48 = vpop.f32.mrf.mxu1  ;;  %v8544_v0 = vpop.f32.mrf.mxu0  ;;  %9722 = vmatmul.mubr.bf16.gmra.mxu0 %v14078_v37 }
 0x7c5   :  { %v8486_v42 = vadd.f32 %v8485_v48, %v13997_v15  ;;  %v14119_v35 = vadd.f32 %v8544_v0, %v8484_v4  ;;  %9731 = vmatprep.mubr.bf16.mxu0 %v14031_v28 }
 0x7c6   :  { %v8487_v38 = vpop.f32.mrf.mxu1  ;;  %v8546_v22 = vpop.f32.mrf.mxu0 }
 0x7c7   :  { %v8488_v20 = vadd.f32 %v8487_v38, %v14001_v27  ;;  %v14123_v63 = vadd.f32 %v8546_v22, %v8486_v42 }
 0x7c8   :  { %v8489_v10 = vpop.f32.mrf.mxu1  ;;  %v8548_v47 = vpop.f32.mrf.mxu0 }
 0x7c9   :  { %v8490_v57 = vadd.f32 %v8489_v10, %v14011_v43  ;;  %v14126_v19 = vadd.f32 %v8548_v47, %v8488_v20 }
 0x7ca   :  { %v8493_v29 = vpop.f32.mrf.mxu1  ;;  %9671 = vmatmul.mubr.bf16.gmra.mxu1 %v14061_v59  ;;  %v8550_v15 = vpop.f32.mrf.mxu0 }
 0x7cb   :  { %v8494_v37 = vadd.f32 %v8493_v29, %v14019_v1  ;;  %v14130_v52 = vadd.f32 %v8550_v15, %v8490_v57 }
 0x7cc   :  { %v8495_v28 = vpop.f32.mrf.mxu1  ;;  %v8554_v8 = vpop.f32.mrf.mxu0  ;;  %9732 = vmatmul.mubr.bf16.gmra.mxu0 %v14064_v44 }
 0x7cd   :  { %v8496_v27 = vadd.f32 %v8495_v28, %v14022_v41  ;;  %v14134_v18 = vadd.f32 %v8554_v8, %v8494_v37 }
 0x7ce   :  { %v8497_v50 = vpop.f32.mrf.mxu1  ;;  %v8556_v43 = vpop.f32.mrf.mxu0 }
 0x7cf   :  { %v14136_v49 = vadd.f32 %v8556_v43, %v8496_v27 }
 0x7d0   :  { %v8498_v34 = vpop.f32.mrf.mxu1  ;;  %v8558_v6 = vpop.f32.mrf.mxu0 }
 0x7d1   :  { %v14168_v34 = vld [vmem:[#allocation18] sm:$0xf] }
 0x7d2   :  { %v8559_v59 = vpop.f32.mrf.mxu0 }
 0x7fa   :  { %v8595_v24 = vpop.f32.mrf.mxu1 }
 0x7fb   :  { %v8596_v1 = vadd.f32 %v8595_v24, %v14055_v5  ;;  %v14172_v24 = vrot.slane %v14168_v34, %v13348_v25 }
 0x7fc   :  { %v8597_v46 = vpop.f32.mrf.mxu1  ;;  %v8656_v14 = vpop.f32.mrf.mxu0 }
 0x7fd   :  { %v8598_v33 = vadd.f32 %v8597_v46, %v14058_v61  ;;  %v14140_v12 = vadd.f32 %v8656_v14, %v8596_v1 }
 0x7fe   :  { %v8599_v44 = vpop.f32.mrf.mxu1  ;;  %v8658_v41 = vpop.f32.mrf.mxu0 }
 0x7ff   :  { %v8600_v62 = vadd.f32 %v8599_v44, %v14066_v60  ;;  %v14143_v13 = vadd.f32 %v8658_v41, %v8598_v33  ;;  %v14177_v33 = vrot.slane %v14168_v34, %v13352_v21 }
 0x800   :  { %v8601_v7 = vpop.f32.mrf.mxu1  ;;  %v8660_v11 = vpop.f32.mrf.mxu0 }
 0x801   :  { %v8602_v56 = vadd.f32 %v8601_v7, %v14073_v51  ;;  %v14146_v54 = vadd.f32 %v8660_v11, %v8600_v62 }
 0x802   :  { %v8605_v40 = vpop.f32.mrf.mxu1  ;;  %v8662_v5 = vpop.f32.mrf.mxu0 }
 0x803   :  { %v8606_v2 = vadd.f32 %v8605_v40, %v14081_v39  ;;  %v14149_v30 = vadd.f32 %v8662_v5, %v8602_v56 }
 0x804   :  { %v8607_v61 = vpop.f32.mrf.mxu1  ;;  %v8666_v31 = vpop.f32.mrf.mxu0 }
 0x805   :  { %v8608_v58 = vadd.f32 %v8607_v61, %v14084_v26  ;;  %v14152_v4 = vadd.f32 %v8666_v31, %v8606_v2 }
 0x806   :  { %v8609_v60 = vpop.f32.mrf.mxu1  ;;  %v8668_v48 = vpop.f32.mrf.mxu0 }
 0x807   :  { %v8610_v0 = vadd.f32 %v8609_v60, %v14086_v45  ;;  %v14155_v42 = vadd.f32 %v8668_v48, %v8608_v58 }
 0x808   :  { %v8611_v51 = vpop.f32.mrf.mxu1  ;;  %v8670_v38 = vpop.f32.mrf.mxu0 }
 0x809   :  { %v8612_v22 = vadd.f32 %v8611_v51, %v14089_v36  ;;  %v14158_v20 = vadd.f32 %v8670_v38, %v8610_v0 }
 0x80a   :  { %v8615_v39 = vpop.f32.mrf.mxu1  ;;  %v8672_v10 = vpop.f32.mrf.mxu0 }
 0x80b   :  { %v8616_v47 = vadd.f32 %v8615_v39, %v14093_v9  ;;  %v14161_v57 = vadd.f32 %v8672_v10, %v8612_v22 }
 0x80c   :  { %v8617_v26 = vpop.f32.mrf.mxu1  ;;  %v8676_v29 = vpop.f32.mrf.mxu0 }
 0x80d   :  { %v8618_v15 = vadd.f32 %v8617_v26, %v14096_v3  ;;  %v14164_v37 = vadd.f32 %v8676_v29, %v8616_v47 }
 0x80e   :  { %v8619_v45 = vpop.f32.mrf.mxu1  ;;  %v8678_v28 = vpop.f32.mrf.mxu0 }
 0x80f   :  { %v14166_v8 = vadd.f32 %v8678_v28, %v8618_v15 }
 0x810   :  { %v8620_v27 = vpop.f32.mrf.mxu1  ;;  %v8680_v36 = vpop.f32.mrf.mxu0 }
 0x812   :  { %v8681_v50 = vpop.f32.mrf.mxu0 }
 0x83a   :  { %v9530_v43 = vpop.f32.mrf.mxu1 }
 0x83c   :  { %v9532_v6 = vpop.f32.mrf.mxu1  ;;  %v9591_v9 = vpop.f32.mrf.mxu0 }
 0x83d   :  { %v9592_v59 = vadd.f32 %v9591_v9, %v9530_v43 }
 0x83e   :  { %v9534_v3 = vpop.f32.mrf.mxu1  ;;  %v9593_v1 = vpop.f32.mrf.mxu0 }
 0x83f   :  { %v9740_v46 = vadd.f32 %v9592_v59, %v14103_v32  ;;  %v9594_v14 = vadd.f32 %v9593_v1, %v9532_v6 }
 0x840   :  { %v9536_v44 = vpop.f32.mrf.mxu1  ;;  %v9595_v41 = vpop.f32.mrf.mxu0 }
 0x841   :  { %v9782_v62 = vadd.f32 %v14172_v24, %v9740_v46  ;;  %v9741_v7 = vadd.f32 %v9594_v14, %v14107_v53  ;;  %v9596_v11 = vadd.f32 %v9595_v41, %v9534_v3 }
 0x842   :  { %v9540_v56 = vpop.f32.mrf.mxu1  ;;  %v9597_v40 = vpop.f32.mrf.mxu0 }
 0x843   :  { %v9802_v25 = vmax.f32 %v9782_v62, 0.0  ;;  %v9783_v5 = vadd.f32 %v14177_v33, %v9741_v7  ;;  %v9744_v2 = vadd.f32 %v9596_v11, %v14110_v17  ;;  %v9598_v32 = vadd.f32 %v9597_v40, %v9536_v44 }
 0x844   :  { %v9542_v61 = vpop.f32.mrf.mxu1  ;;  %v9601_v31 = vpop.f32.mrf.mxu0 }
 0x845   :  { %9822 = vst [vmem:[%s14292_s10] sm:$0xff] %v9802_v25  ;;  %v9803_v21 = vmax.f32 %v9783_v5, 0.0  ;;  %v9786_v58 = vadd.f32 %v14172_v24, %v9744_v2  ;;  %v9745_v53 = vadd.f32 %v9598_v32, %v14114_v55  ;;  %v9602_v60 = vadd.f32 %v9601_v31, %v9540_v56 }
 0x846   :  { %v9544_v48 = vpop.f32.mrf.mxu1  ;;  %v9603_v0 = vpop.f32.mrf.mxu0 }
 0x847   :  { %9823 = vst [vmem:[%s14292_s10 + $0x8] sm:$0xff] %v9803_v21  ;;  %v9806_v17 = vmax.f32 %v9786_v58, 0.0  ;;  %v9787_v51 = vadd.f32 %v14177_v33, %v9745_v53  ;;  %v9748_v38 = vadd.f32 %v9602_v60, %v14119_v35  ;;  %v9604_v22 = vadd.f32 %v9603_v0, %v9542_v61 }
 0x848   :  { %v9546_v39 = vpop.f32.mrf.mxu1  ;;  %v9605_v10 = vpop.f32.mrf.mxu0 }
 0x849   :  { %9826 = vst [vmem:[%s14292_s10 + $0x20] sm:$0xff] %v9806_v17  ;;  %v9807_v55 = vmax.f32 %v9787_v51, 0.0  ;;  %v9790_v47 = vadd.f32 %v14172_v24, %v9748_v38  ;;  %v9749_v26 = vadd.f32 %v9604_v22, %v14123_v63  ;;  %v9606_v29 = vadd.f32 %v9605_v10, %v9544_v48 }
 0x84a   :  { %v9550_v15 = vpop.f32.mrf.mxu1  ;;  %v9607_v45 = vpop.f32.mrf.mxu0  ;;  %v14228_v17 = vrot.slane %v14168_v34, %v13350_v16  ;;  %v14233_v10 = vrot.slane %v14168_v34, %v13354_v23 }
 0x84b   :  { %9827 = vst [vmem:[%s14292_s10 + $0x28] sm:$0xff] %v9807_v55  ;;  %v9791_v35 = vadd.f32 %v14177_v33, %v9749_v26  ;;  %v9752_v28 = vadd.f32 %v9606_v29, %v14126_v19  ;;  %v9608_v27 = vadd.f32 %v9607_v45, %v9546_v39  ;;  %v9810_v43 = vmax.f32 %v9790_v47, 0.0 }
 0x84c   :  { %v9552_v36 = vpop.f32.mrf.mxu1  ;;  %v9611_v50 = vpop.f32.mrf.mxu0 }
 0x84d   :  { %v9794_v6 = vadd.f32 %v14172_v24, %v9752_v28  ;;  %v9753_v9 = vadd.f32 %v9608_v27, %v14130_v52  ;;  %v9612_v63 = vadd.f32 %v9611_v50, %v9550_v15  ;;  %v9811_v1 = vmax.f32 %v9791_v35, 0.0 }
 0x84e   :  { %v9554_v59 = vpop.f32.mrf.mxu1  ;;  %v9613_v3 = vpop.f32.mrf.mxu0  ;;  %v9843_v7 = vrot.slane %v9810_v43, 2 }
 0x84f   :  { %v9814_v46 = vmax.f32 %v9794_v6, 0.0  ;;  %v9795_v14 = vadd.f32 %v14177_v33, %v9753_v9  ;;  %v9614_v44 = vadd.f32 %v9613_v3, %v9552_v36  ;;  %v9756_v41 = vadd.f32 %v9612_v63, %v14134_v18 }
 0x850   :  { %v9555_v19 = vpop.f32.mrf.mxu1  ;;  %v9615_v62 = vpop.f32.mrf.mxu0  ;;  %v9846_v5 = vrot.slane %v9811_v1, 2 }
 0x851   :  { %v9844_v11 = vrot.slane %v9814_v46, 2  ;;  %v9815_v56 = vmax.f32 %v9795_v14, 0.0  ;;  %v9757_v40 = vadd.f32 %v9614_v44, %v14136_v49  ;;  %v9798_v52 = vadd.f32 %v14172_v24, %v9756_v41 }
 0x852   :  { %v9616_v25 = vpop.f32.mrf.mxu0 }
 0x853   :  { %v9845_v2 = vsel %vm9842_vm0, %v9843_v7, %v9844_v11  ;;  %v9847_v32 = vrot.slane %v9815_v56, 2  ;;  %v9799_v61 = vadd.f32 %v14177_v33, %v9757_v40  ;;  %v9818_v18 = vmax.f32 %v9798_v52, 0.0 }
 0x854   :  { %10889 = vst [vmem:[%s14292_s10 + $0x40] sm:$0xff] %v9845_v2 }
 0x855   :  { %v9848_v31 = vsel %vm9842_vm0, %v9846_v5, %v9847_v32  ;;  %v9819_v21 = vmax.f32 %v9799_v61, 0.0  ;;  %v9855_v49 = vrot.slane %v9818_v18, 2 }
 0x856   :  { %10890 = vst [vmem:[%s14292_s10 + $0x48] sm:$0xff] %v9848_v31 }
 0x857   :  { %v9857_v24 = vrot.slane %v9819_v21, 2  ;;  %v9856_v58 = vsel %vm9842_vm0, %v9844_v11, %v9855_v49 }
 0x858   :  { %10893 = vst [vmem:[%s14292_s10 + $0x60] sm:$0xff] %v9856_v58 }
 0x859   :  { %v9858_v33 = vsel %vm9842_vm0, %v9847_v32, %v9857_v24 }
 0x85a   :  { %10894 = vst [vmem:[%s14292_s10 + $0x68] sm:$0xff] %v9858_v33 }
 0x87a   :  { %v9652_v53 = vpop.f32.mrf.mxu1 }
 0x87c   :  { %v9654_v60 = vpop.f32.mrf.mxu1  ;;  %v9713_v48 = vpop.f32.mrf.mxu0 }
 0x87d   :  { %v9714_v0 = vadd.f32 %v9713_v48, %v9652_v53 }
 0x87e   :  { %v9656_v51 = vpop.f32.mrf.mxu1  ;;  %v9715_v38 = vpop.f32.mrf.mxu0 }
 0x87f   :  { %v9742_v22 = vadd.f32 %v9714_v0, %v14140_v12  ;;  %v9716_v39 = vadd.f32 %v9715_v38, %v9654_v60 }
 0x880   :  { %v9658_v55 = vpop.f32.mrf.mxu1  ;;  %v9717_v47 = vpop.f32.mrf.mxu0 }
 0x881   :  { %v9784_v26 = vadd.f32 %v14228_v17, %v9742_v22  ;;  %v9743_v29 = vadd.f32 %v9716_v39, %v14143_v13  ;;  %v9718_v15 = vadd.f32 %v9717_v47, %v9656_v51 }
 0x882   :  { %v9662_v45 = vpop.f32.mrf.mxu1  ;;  %v9719_v35 = vpop.f32.mrf.mxu0 }
 0x883   :  { %v9804_v16 = vmax.f32 %v9784_v26, 0.0  ;;  %v9785_v28 = vadd.f32 %v14233_v10, %v9743_v29  ;;  %v9746_v27 = vadd.f32 %v9718_v15, %v14146_v54  ;;  %v9720_v12 = vadd.f32 %v9719_v35, %v9658_v55 }
 0x884   :  { %v9664_v36 = vpop.f32.mrf.mxu1  ;;  %v9723_v50 = vpop.f32.mrf.mxu0 }
 0x885   :  { %9824 = vst [vmem:[%s14292_s10 + $0x10] sm:$0xff] %v9804_v16  ;;  %v9805_v23 = vmax.f32 %v9785_v28, 0.0  ;;  %v9788_v34 = vadd.f32 %v14228_v17, %v9746_v27  ;;  %v9747_v13 = vadd.f32 %v9720_v12, %v14149_v30  ;;  %v9724_v43 = vadd.f32 %v9723_v50, %v9662_v45 }
 0x886   :  { %v9666_v6 = vpop.f32.mrf.mxu1  ;;  %v9725_v9 = vpop.f32.mrf.mxu0 }
 0x887   :  { %9825 = vst [vmem:[%s14292_s10 + $0x18] sm:$0xff] %v9805_v23  ;;  %v9808_v54 = vmax.f32 %v9788_v34, 0.0  ;;  %v9789_v63 = vadd.f32 %v14233_v10, %v9747_v13  ;;  %v9750_v59 = vadd.f32 %v9724_v43, %v14152_v4  ;;  %v9726_v3 = vadd.f32 %v9725_v9, %v9664_v36 }
 0x888   :  { %v9668_v1 = vpop.f32.mrf.mxu1  ;;  %v9727_v46 = vpop.f32.mrf.mxu0 }
 0x889   :  { %9828 = vst [vmem:[%s14292_s10 + $0x30] sm:$0xff] %v9808_v54  ;;  %v9809_v30 = vmax.f32 %v9789_v63, 0.0  ;;  %v9792_v14 = vadd.f32 %v14228_v17, %v9750_v59  ;;  %v9751_v44 = vadd.f32 %v9726_v3, %v14155_v42  ;;  %v9728_v41 = vadd.f32 %v9727_v46, %v9666_v6 }
 0x88a   :  { %v9672_v19 = vpop.f32.mrf.mxu1  ;;  %v9729_v62 = vpop.f32.mrf.mxu0 }
 0x88b   :  { %9829 = vst [vmem:[%s14292_s10 + $0x38] sm:$0xff] %v9809_v30  ;;  %v9793_v4 = vadd.f32 %v14233_v10, %v9751_v44  ;;  %v9754_v7 = vadd.f32 %v9728_v41, %v14158_v20  ;;  %v9730_v11 = vadd.f32 %v9729_v62, %v9668_v1  ;;  %v9812_v52 = vmax.f32 %v9792_v14, 0.0 }
 0x88c   :  { %v9674_v56 = vpop.f32.mrf.mxu1  ;;  %v9733_v40 = vpop.f32.mrf.mxu0 }
 0x88d   :  { %v9796_v25 = vadd.f32 %v14228_v17, %v9754_v7  ;;  %v9755_v5 = vadd.f32 %v9730_v11, %v14161_v57  ;;  %v9734_v42 = vadd.f32 %v9733_v40, %v9672_v19  ;;  %v9813_v61 = vmax.f32 %v9793_v4, 0.0 }
 0x88e   :  { %v9676_v2 = vpop.f32.mrf.mxu1  ;;  %v9735_v32 = vpop.f32.mrf.mxu0  ;;  %v9849_v58 = vrot.slane %v9812_v52, 2 }
 0x88f   :  { %v9816_v18 = vmax.f32 %v9796_v25, 0.0  ;;  %v9797_v31 = vadd.f32 %v14233_v10, %v9755_v5  ;;  %v9736_v21 = vadd.f32 %v9735_v32, %v9674_v56  ;;  %v9758_v49 = vadd.f32 %v9734_v42, %v14164_v37 }
 0x890   :  { %v9677_v24 = vpop.f32.mrf.mxu1  ;;  %v9737_v20 = vpop.f32.mrf.mxu0  ;;  %v9852_v0 = vrot.slane %v9813_v61, 2 }
 0x891   :  { %v9850_v33 = vrot.slane %v9816_v18, 2  ;;  %v9817_v53 = vmax.f32 %v9797_v31, 0.0  ;;  %v9759_v60 = vadd.f32 %v9736_v21, %v14166_v8  ;;  %v9800_v48 = vadd.f32 %v14228_v17, %v9758_v49 }
 0x892   :  { %v9738_v57 = vpop.f32.mrf.mxu0 }
 0x893   :  { %v9851_v51 = vsel %vm9842_vm0, %v9849_v58, %v9850_v33  ;;  %v9853_v38 = vrot.slane %v9817_v53, 2  ;;  %v9801_v22 = vadd.f32 %v14233_v10, %v9759_v60  ;;  %v9820_v37 = vmax.f32 %v9800_v48, 0.0 }
 0x894   :  { %10891 = vst [vmem:[%s14292_s10 + $0x50] sm:$0xff] %v9851_v51 }
 0x895   :  { %v9854_v39 = vsel %vm9842_vm0, %v9852_v0, %v9853_v38  ;;  %v9821_v55 = vmax.f32 %v9801_v22, 0.0  ;;  %v9859_v8 = vrot.slane %v9820_v37, 2 }
 0x896   :  { %10892 = vst [vmem:[%s14292_s10 + $0x58] sm:$0xff] %v9854_v39 }
 0x897   :  { %v9861_v17 = vrot.slane %v9821_v55, 2  ;;  %v9860_v47 = vsel %vm9842_vm0, %v9850_v33, %v9859_v8 }
 0x898   :  { %10895 = vst [vmem:[%s14292_s10 + $0x70] sm:$0xff] %v9860_v47 }
 0x899   :  { %v9862_v10 = vsel %vm9842_vm0, %v9853_v38, %v9861_v17 }
 0x89a   :  { %10896 = vst [vmem:[%s14292_s10 + $0x78] sm:$0xff] %v9862_v10 }
 0x89b   :  { %9884 = vsyncpa [#allocation6], 1 }
 0x89c   :  { %9885 = vsyncpa [#allocation8], 1 }
 0x89d   :  { %9886 = vsyncpa [#allocation11], 1 }
 0x89e   :  { %9887 = vsyncpa [#allocation14], 1 }
 0x89f   :  { %9888 = vsyncpa [#allocation17], 1 }

</bundles_post_ra>
